<compile_context>
chip_gen: v7x
topology: tpu7x:2x2x1
jax: 0.10.0
libtpu: 0.0.40
codegen_flags: <defaults>
</compile_context>

<pallas_src>
import math

import jax
import jax.numpy as jnp
from jax.experimental import pallas as pl
from jax.experimental.pallas import tpu as pltpu

# ---------------- tiny CLIP config ----------------
D = 32          # hidden dim
H = 4           # attention heads
DH = D // H     # head dim
MLP = 64        # mlp hidden dim
LAYERS = 2      # transformer layers (both towers)
PROJ = 16       # shared projection dim
PATCH = 8
IMG = 16
IMG_C = 3
VOCAB = 64
SEQ = 8
B = 2
NPATCH = (IMG // PATCH) ** 2
VTOK = NPATCH + 1                 # +1 CLS token
PATCH_DIM = IMG_C * PATCH * PATCH


# ---------------- in-kernel helpers (pure functions on VMEM values) ----------------
def _ln(x, g, b):
    mu = jnp.mean(x, axis=-1, keepdims=True)
    var = jnp.mean(jnp.square(x - mu), axis=-1, keepdims=True)
    return (x - mu) * jax.lax.rsqrt(var + 1e-5) * g + b


def _softmax_scores(qh, kh, T, causal, scale):
    # qh, kh: (T, DH); contract last dims (q @ k^T) without materializing k.T
    s = jax.lax.dot_general(
        qh, kh, (((1,), (1,)), ((), ())), preferred_element_type=jnp.float32
    ) * scale
    if causal:
        i = jax.lax.broadcasted_iota(jnp.int32, (T, T), 0)
        j = jax.lax.broadcasted_iota(jnp.int32, (T, T), 1)
        s = jnp.where(j <= i, s, jnp.float32(-1e9))
    m = jnp.max(s, axis=-1, keepdims=True)
    p = jnp.exp(s - m)
    return p / jnp.sum(p, axis=-1, keepdims=True)


def _load_layer(l, ln1_g, ln1_b, wqkv, bqkv, wo, bo, ln2_g, ln2_b, w1, b1, w2, b2):
    # Stacked-per-layer weight refs; static layer index l.
    return dict(
        ln1_g=ln1_g[pl.ds(l, 1), :], ln1_b=ln1_b[pl.ds(l, 1), :],
        wqkv=wqkv[l], bqkv=bqkv[pl.ds(l, 1), :],
        wo=wo[l], bo=bo[pl.ds(l, 1), :],
        ln2_g=ln2_g[pl.ds(l, 1), :], ln2_b=ln2_b[pl.ds(l, 1), :],
        w1=w1[l], b1=b1[pl.ds(l, 1), :],
        w2=w2[l], b2=b2[pl.ds(l, 1), :],
    )


def _transformer_layer(x, lw, attn_buf, T, causal):
    """One fused pre-LN transformer block on x: (B*T, D)."""
    scale = 1.0 / math.sqrt(DH)
    h = _ln(x, lw["ln1_g"], lw["ln1_b"])
    # Fused QKV: one (D, 3D) matmul, split with static lane slices.
    qkv = jnp.dot(h, lw["wqkv"], preferred_element_type=jnp.float32) + lw["bqkv"]
    q, k, v = qkv[:, :D], qkv[:, D:2 * D], qkv[:, 2 * D:]
    wo = lw["wo"]
    for b in range(B):                     # static unroll: B*H tiny matmuls, no grid
        qb = q[b * T:(b + 1) * T]
        kb = k[b * T:(b + 1) * T]
        vb = v[b * T:(b + 1) * T]
        acc = None
        for hh in range(H):
            lo = hh * DH
            p = _softmax_scores(qb[:, lo:lo + DH], kb[:, lo:lo + DH], T, causal, scale)
            o = jnp.dot(p, vb[:, lo:lo + DH], preferred_element_type=jnp.float32)
            # fold the output projection per head: concat_h(o_h) @ Wo == sum_h o_h @ Wo[h]
            c = jnp.dot(o, wo[lo:lo + DH, :], preferred_element_type=jnp.float32)
            acc = c if acc is None else acc + c
        attn_buf[pl.ds(b * T, T), :] = acc
    x = x + attn_buf[...] + lw["bo"]
    h2 = _ln(x, lw["ln2_g"], lw["ln2_b"])
    h2 = jnp.dot(h2, lw["w1"], preferred_element_type=jnp.float32) + lw["b1"]
    h2 = h2 * jax.nn.sigmoid(1.702 * h2)   # CLIP quick_gelu
    h2 = jnp.dot(h2, lw["w2"], preferred_element_type=jnp.float32) + lw["b2"]
    return x + h2


# ---------------- fused tower kernels (one pallas_call each) ----------------
def _vision_tower_kernel(patches_ref, patch_w_ref, cls_ref, vpos_ref,
                         pre_g_ref, pre_b_ref,
                         ln1_g_ref, ln1_b_ref, wqkv_ref, bqkv_ref, wo_ref, bo_ref,
                         ln2_g_ref, ln2_b_ref, w1_ref, b1_ref, w2_ref, b2_ref,
                         post_g_ref, post_b_ref, vproj_ref,
                         out_ref, x_buf, attn_buf):
    T = VTOK
    # Patch-embedding conv (kernel = stride = patch) lowered to a single matmul.
    emb = jnp.dot(patches_ref[...], patch_w_ref[...], preferred_element_type=jnp.float32)
    # Assemble [CLS, patch tokens] per batch into VMEM scratch (no HBM concat).
    for b in range(B):
        x_buf[pl.ds(b * T, 1), :] = cls_ref[...]
        x_buf[pl.ds(b * T + 1, NPATCH), :] = emb[b * NPATCH:(b + 1) * NPATCH, :]
    x = x_buf[...] + vpos_ref[...]                       # vpos pre-tiled to (B*T, D)
    x = _ln(x, pre_g_ref[...], pre_b_ref[...])
    for l in range(LAYERS):
        lw = _load_layer(l, ln1_g_ref, ln1_b_ref, wqkv_ref, bqkv_ref, wo_ref, bo_ref,
                         ln2_g_ref, ln2_b_ref, w1_ref, b1_ref, w2_ref, b2_ref)
        x = _transformer_layer(x, lw, attn_buf, T, causal=False)
    # Pool the CLS token of each batch (row b*T) via a 0/1 selection matmul.
    row = jax.lax.broadcasted_iota(jnp.int32, (B, B * T), 0)
    col = jax.lax.broadcasted_iota(jnp.int32, (B, B * T), 1)
    sel = (col == row * T).astype(jnp.float32)
    pooled = jnp.dot(sel, x, preferred_element_type=jnp.float32)
    pooled = _ln(pooled, post_g_ref[...], post_b_ref[...])
    img = jnp.dot(pooled, vproj_ref[...], preferred_element_type=jnp.float32)
    inv = jax.lax.rsqrt(jnp.sum(img * img, axis=-1, keepdims=True) + 1e-12)
    out_ref[...] = img * inv


def _text_tower_kernel(x0_ref, pool_ref,
                       ln1_g_ref, ln1_b_ref, wqkv_ref, bqkv_ref, wo_ref, bo_ref,
                       ln2_g_ref, ln2_b_ref, w1_ref, b1_ref, w2_ref, b2_ref,
                       fin_g_ref, fin_b_ref, tproj_ref,
                       out_ref, attn_buf):
    T = SEQ
    x = x0_ref[...]
    for l in range(LAYERS):
        lw = _load_layer(l, ln1_g_ref, ln1_b_ref, wqkv_ref, bqkv_ref, wo_ref, bo_ref,
                         ln2_g_ref, ln2_b_ref, w1_ref, b1_ref, w2_ref, b2_ref)
        x = _transformer_layer(x, lw, attn_buf, T, causal=True)
    # EOT pooling via precomputed one-hot matrix (LN is per-token, so pooling
    # before the final LN is mathematically identical to LN-then-pool).
    pooled = jnp.dot(pool_ref[...], x, preferred_element_type=jnp.float32)
    pooled = _ln(pooled, fin_g_ref[...], fin_b_ref[...])
    txt = jnp.dot(pooled, tproj_ref[...], preferred_element_type=jnp.float32)
    inv = jax.lax.rsqrt(jnp.sum(txt * txt, axis=-1, keepdims=True) + 1e-12)
    out_ref[...] = txt * inv


# ---------------- wrappers ----------------
def _layer_args(stk):
    return [stk["ln1_g"], stk["ln1_b"], stk["wqkv"], stk["bqkv"], stk["wo"], stk["bo"],
            stk["ln2_g"], stk["ln2_b"], stk["w1"], stk["b1"], stk["w2"], stk["b2"]]


def vision_encoder(images, p):
    # images: NCHW (B, 3, 16, 16); im2col done as cheap JAX reshape/transpose glue.
    gh = gw = IMG // PATCH
    patches = images.reshape(B, IMG_C, gh, PATCH, gw, PATCH)
    patches = patches.transpose(0, 2, 4, 1, 3, 5).reshape(B * NPATCH, PATCH_DIM)
    vpos_tiled = jnp.tile(p["vpos"], (B, 1))                     # (B*VTOK, D)
    args = [patches, p["patch_w"], p["cls"].reshape(1, D), vpos_tiled,
            p["v_pre_g"].reshape(1, D), p["v_pre_b"].reshape(1, D),
            *_layer_args(p["v_layers"]),
            p["v_post_g"].reshape(1, D), p["v_post_b"].reshape(1, D), p["v_proj"]]
    return pl.pallas_call(
        _vision_tower_kernel,
        out_shape=jax.ShapeDtypeStruct((B, PROJ), jnp.float32),
        scratch_shapes=[pltpu.VMEM((B * VTOK, D), jnp.float32),   # token assembly
                        pltpu.VMEM((B * VTOK, D), jnp.float32)],  # attention output
    )(*args)


def text_encoder(ids, p):
    # TODO(synk): token-embedding gather + EOT argmax/one-hot kept as tiny JAX glue.
    x0 = jnp.take(p["tok_emb"], ids, axis=0) + p["tpos"][None]
    x0 = x0.reshape(B * SEQ, D).astype(jnp.float32)
    eot = jnp.argmax(ids, axis=-1)                 # CLIP pools at EOT token (highest id)
    pool = jax.nn.one_hot(jnp.arange(B) * SEQ + eot, B * SEQ, dtype=jnp.float32)
    args = [x0, pool, *_layer_args(p["t_layers"]),
            p["t_final_g"].reshape(1, D), p["t_final_b"].reshape(1, D), p["t_proj"]]
    return pl.pallas_call(
        _text_tower_kernel,
        out_shape=jax.ShapeDtypeStruct((B, PROJ), jnp.float32),
        scratch_shapes=[pltpu.VMEM((B * SEQ, D), jnp.float32)],   # attention output
    )(*args)


# ---------------- params ----------------
def init_params(key):
    ks = iter(jax.random.split(key, 64))

    def nrm(shape, std=0.02):
        return jax.random.normal(next(ks), shape, jnp.float32) * std

    def stacked_layer_params():
        return dict(
            ln1_g=jnp.ones((LAYERS, D), jnp.float32),
            ln1_b=jnp.zeros((LAYERS, D), jnp.float32),
            wqkv=nrm((LAYERS, D, 3 * D)),                 # fused Q|K|V
            bqkv=jnp.zeros((LAYERS, 3 * D), jnp.float32),
            wo=nrm((LAYERS, D, D)),
            bo=jnp.zeros((LAYERS, D), jnp.float32),
            ln2_g=jnp.ones((LAYERS, D), jnp.float32),
            ln2_b=jnp.zeros((LAYERS, D), jnp.float32),
            w1=nrm((LAYERS, D, MLP)),
            b1=jnp.zeros((LAYERS, MLP), jnp.float32),
            w2=nrm((LAYERS, MLP, D)),
            b2=jnp.zeros((LAYERS, D), jnp.float32),
        )

    return dict(
        # vision tower
        patch_w=nrm((PATCH_DIM, D)),
        cls=nrm((D,)),
        vpos=nrm((VTOK, D)),
        v_pre_g=jnp.ones((D,), jnp.float32), v_pre_b=jnp.zeros((D,), jnp.float32),
        v_layers=stacked_layer_params(),
        v_post_g=jnp.ones((D,), jnp.float32), v_post_b=jnp.zeros((D,), jnp.float32),
        v_proj=nrm((D, PROJ)),
        # text tower
        tok_emb=nrm((VOCAB, D)),
        tpos=nrm((SEQ, D)),
        t_layers=stacked_layer_params(),
        t_final_g=jnp.ones((D,), jnp.float32), t_final_b=jnp.zeros((D,), jnp.float32),
        t_proj=nrm((D, PROJ)),
    )


def fine_tuned_clip_forward(token_ids, images, params):
    # mirrors FineTunedCLIP.forward: returns (text_embeds, image_embeds)
    return text_encoder(token_ids, params), vision_encoder(images, params)


if __name__ == "__main__":
    key = jax.random.PRNGKey(0)
    kp, ki, kt = jax.random.split(key, 3)
    params = init_params(kp)
    images = jax.random.normal(ki, (B, IMG_C, IMG, IMG), jnp.float32)
    token_ids = jax.random.randint(kt, (B, SEQ), 0, VOCAB)

    fwd = jax.jit(lambda t, im: fine_tuned_clip_forward(t, im, params))
    text_embeds, image_embeds = fwd(token_ids, images)
    jax.block_until_ready((text_embeds, image_embeds))

    assert text_embeds.shape == (B, PROJ)
    assert image_embeds.shape == (B, PROJ)
    assert text_embeds.dtype == jnp.float32 and image_embeds.dtype == jnp.float32
    assert bool(jnp.all(jnp.isfinite(text_embeds)))
    assert bool(jnp.all(jnp.isfinite(image_embeds)))
    print("KERNEL_OK")
</pallas_src>

<mosaic_0001>
module attributes {stable_mosaic.version = 11 : i64} {
  func.func @_vision_tower_kernel(%arg0: memref<8x192xf32, #tpu.memory_space<vmem>>, %arg1: memref<192x32xf32, #tpu.memory_space<vmem>>, %arg2: memref<1x32xf32, #tpu.memory_space<vmem>>, %arg3: memref<10x32xf32, #tpu.memory_space<vmem>>, %arg4: memref<1x32xf32, #tpu.memory_space<vmem>>, %arg5: memref<1x32xf32, #tpu.memory_space<vmem>>, %arg6: memref<2x32xf32, #tpu.memory_space<vmem>>, %arg7: memref<2x32xf32, #tpu.memory_space<vmem>>, %arg8: memref<2x32x96xf32, #tpu.memory_space<vmem>>, %arg9: memref<2x96xf32, #tpu.memory_space<vmem>>, %arg10: memref<2x32x32xf32, #tpu.memory_space<vmem>>, %arg11: memref<2x32xf32, #tpu.memory_space<vmem>>, %arg12: memref<2x32xf32, #tpu.memory_space<vmem>>, %arg13: memref<2x32xf32, #tpu.memory_space<vmem>>, %arg14: memref<2x32x64xf32, #tpu.memory_space<vmem>>, %arg15: memref<2x64xf32, #tpu.memory_space<vmem>>, %arg16: memref<2x64x32xf32, #tpu.memory_space<vmem>>, %arg17: memref<2x32xf32, #tpu.memory_space<vmem>>, %arg18: memref<1x32xf32, #tpu.memory_space<vmem>>, %arg19: memref<1x32xf32, #tpu.memory_space<vmem>>, %arg20: memref<32x16xf32, #tpu.memory_space<vmem>>, %arg21: memref<2x16xf32, #tpu.memory_space<vmem>>, %arg22: memref<10x32xf32, #tpu.memory_space<vmem>>, %arg23: memref<10x32xf32, #tpu.memory_space<vmem>>) attributes {dimension_semantics = [], scalar_prefetch = 0 : i64, scratch_operands = 2 : i64, tpu.core_type = #tpu.core_type<tc>} {
    %c0 = arith.constant 0 : index
    %c0_0 = arith.constant 0 : index
    %0 = vector.load %arg0[%c0, %c0_0] : memref<8x192xf32, #tpu.memory_space<vmem>>, vector<8x192xf32>
    %c0_1 = arith.constant 0 : index
    %c0_2 = arith.constant 0 : index
    %1 = vector.load %arg1[%c0_1, %c0_2] : memref<192x32xf32, #tpu.memory_space<vmem>>, vector<192x32xf32>
    %cst = arith.constant dense<0.000000e+00> : vector<8x32xf32>
    %2 = tpu.matmul %0, %1, %cst {dimension_numbers = #tpu.dot_dimension_numbers<[1], [0], [0], [1], [0, 0, 1, 1], [], []>} : vector<8x192xf32>, vector<192x32xf32>, vector<8x32xf32> -> vector<8x32xf32>
    %c0_3 = arith.constant 0 : index
    %c0_4 = arith.constant 0 : index
    %3 = vector.load %arg2[%c0_3, %c0_4] : memref<1x32xf32, #tpu.memory_space<vmem>>, vector<1x32xf32>
    %c0_5 = arith.constant 0 : index
    %c0_6 = arith.constant 0 : index
    %4 = vector.load %arg22[%c0_5, %c0_6] : memref<10x32xf32, #tpu.memory_space<vmem>>, vector<1x32xf32>
    tpu.vector_store %arg22[%c0_5, %c0_6], %3 {strides = array<i32>} : memref<10x32xf32, #tpu.memory_space<vmem>>, vector<1x32xf32>,
    %5 = vector.extract_strided_slice %2 {offsets = [0, 0], sizes = [4, 32], strides = [1, 1]} : vector<8x32xf32> to vector<4x32xf32>
    %c1 = arith.constant 1 : index
    %c0_7 = arith.constant 0 : index
    %6 = vector.load %arg22[%c1, %c0_7] : memref<10x32xf32, #tpu.memory_space<vmem>>, vector<4x32xf32>
    tpu.vector_store %arg22[%c1, %c0_7], %5 {strides = array<i32>} : memref<10x32xf32, #tpu.memory_space<vmem>>, vector<4x32xf32>,
    %c0_8 = arith.constant 0 : index
    %c0_9 = arith.constant 0 : index
    %7 = vector.load %arg2[%c0_8, %c0_9] : memref<1x32xf32, #tpu.memory_space<vmem>>, vector<1x32xf32>
    %c5 = arith.constant 5 : index
    %c0_10 = arith.constant 0 : index
    %8 = vector.load %arg22[%c5, %c0_10] : memref<10x32xf32, #tpu.memory_space<vmem>>, vector<1x32xf32>
    tpu.vector_store %arg22[%c5, %c0_10], %7 {strides = array<i32>} : memref<10x32xf32, #tpu.memory_space<vmem>>, vector<1x32xf32>,
    %9 = vector.extract_strided_slice %2 {offsets = [4, 0], sizes = [4, 32], strides = [1, 1]} : vector<8x32xf32> to vector<4x32xf32>
    %c6 = arith.constant 6 : index
    %c0_11 = arith.constant 0 : index
    %10 = vector.load %arg22[%c6, %c0_11] : memref<10x32xf32, #tpu.memory_space<vmem>>, vector<4x32xf32>
    tpu.vector_store %arg22[%c6, %c0_11], %9 {strides = array<i32>} : memref<10x32xf32, #tpu.memory_space<vmem>>, vector<4x32xf32>,
    %c0_12 = arith.constant 0 : index
    %c0_13 = arith.constant 0 : index
    %11 = vector.load %arg22[%c0_12, %c0_13] : memref<10x32xf32, #tpu.memory_space<vmem>>, vector<10x32xf32>
    %c0_14 = arith.constant 0 : index
    %c0_15 = arith.constant 0 : index
    %12 = vector.load %arg3[%c0_14, %c0_15] : memref<10x32xf32, #tpu.memory_space<vmem>>, vector<10x32xf32>
    %13 = arith.addf %11, %12 : vector<10x32xf32>
    %c0_16 = arith.constant 0 : index
    %c0_17 = arith.constant 0 : index
    %14 = vector.load %arg4[%c0_16, %c0_17] : memref<1x32xf32, #tpu.memory_space<vmem>>, vector<1x32xf32>
    %c0_18 = arith.constant 0 : index
    %c0_19 = arith.constant 0 : index
    %15 = vector.load %arg5[%c0_18, %c0_19] : memref<1x32xf32, #tpu.memory_space<vmem>>, vector<1x32xf32>
    %cst_20 = arith.constant dense<0.000000e+00> : vector<10xf32>
    %16 = vector.multi_reduction <add>, %13, %cst_20 [1] : vector<10x32xf32> to vector<10xf32>
    %17 = vector.shape_cast %16 : vector<10xf32> to vector<10x1xf32>
    %cst_21 = arith.constant 3.200000e+01 : f32
    %18 = vector.broadcast %cst_21 : f32 to vector<10x1xf32>
    %19 = arith.divf %17, %18 : vector<10x1xf32>
    %20 = vector.broadcast %19 : vector<10x1xf32> to vector<10x32xf32>
    %21 = arith.subf %13, %20 : vector<10x32xf32>
    %22 = arith.mulf %21, %21 : vector<10x32xf32>
    %cst_22 = arith.constant dense<0.000000e+00> : vector<10xf32>
    %23 = vector.multi_reduction <add>, %22, %cst_22 [1] : vector<10x32xf32> to vector<10xf32>
    %24 = vector.shape_cast %23 : vector<10xf32> to vector<10x1xf32>
    %cst_23 = arith.constant 3.200000e+01 : f32
    %25 = vector.broadcast %cst_23 : f32 to vector<10x1xf32>
    %26 = arith.divf %24, %25 : vector<10x1xf32>
    %27 = vector.broadcast %19 : vector<10x1xf32> to vector<10x32xf32>
    %28 = arith.subf %13, %27 : vector<10x32xf32>
    %cst_24 = arith.constant 9.99999974E-6 : f32
    %29 = vector.broadcast %cst_24 : f32 to vector<10x1xf32>
    %30 = arith.addf %26, %29 : vector<10x1xf32>
    %31 = math.rsqrt %30 : vector<10x1xf32>
    %32 = vector.broadcast %31 : vector<10x1xf32> to vector<10x32xf32>
    %33 = arith.mulf %28, %32 : vector<10x32xf32>
    %34 = vector.broadcast %14 : vector<1x32xf32> to vector<10x32xf32>
    %35 = arith.mulf %33, %34 : vector<10x32xf32>
    %36 = vector.broadcast %15 : vector<1x32xf32> to vector<10x32xf32>
    %37 = arith.addf %35, %36 : vector<10x32xf32>
    %c0_25 = arith.constant 0 : index
    %c0_26 = arith.constant 0 : index
    %38 = vector.load %arg6[%c0_25, %c0_26] : memref<2x32xf32, #tpu.memory_space<vmem>>, vector<1x32xf32>
    %c0_27 = arith.constant 0 : index
    %c0_28 = arith.constant 0 : index
    %39 = vector.load %arg7[%c0_27, %c0_28] : memref<2x32xf32, #tpu.memory_space<vmem>>, vector<1x32xf32>
    %c0_29 = arith.constant 0 : index
    %c0_30 = arith.constant 0 : index
    %c0_31 = arith.constant 0 : index
    %40 = vector.load %arg8[%c0_29, %c0_30, %c0_31] : memref<2x32x96xf32, #tpu.memory_space<vmem>>, vector<1x32x96xf32>
    %41 = vector.shape_cast %40 : vector<1x32x96xf32> to vector<32x96xf32>
    %c0_32 = arith.constant 0 : index
    %c0_33 = arith.constant 0 : index
    %42 = vector.load %arg9[%c0_32, %c0_33] : memref<2x96xf32, #tpu.memory_space<vmem>>, vector<1x96xf32>
    %c0_34 = arith.constant 0 : index
    %c0_35 = arith.constant 0 : index
    %c0_36 = arith.constant 0 : index
    %43 = vector.load %arg10[%c0_34, %c0_35, %c0_36] : memref<2x32x32xf32, #tpu.memory_space<vmem>>, vector<1x32x32xf32>
    %44 = vector.shape_cast %43 : vector<1x32x32xf32> to vector<32x32xf32>
    %c0_37 = arith.constant 0 : index
    %c0_38 = arith.constant 0 : index
    %45 = vector.load %arg11[%c0_37, %c0_38] : memref<2x32xf32, #tpu.memory_space<vmem>>, vector<1x32xf32>
    %c0_39 = arith.constant 0 : index
    %c0_40 = arith.constant 0 : index
    %46 = vector.load %arg12[%c0_39, %c0_40] : memref<2x32xf32, #tpu.memory_space<vmem>>, vector<1x32xf32>
    %c0_41 = arith.constant 0 : index
    %c0_42 = arith.constant 0 : index
    %47 = vector.load %arg13[%c0_41, %c0_42] : memref<2x32xf32, #tpu.memory_space<vmem>>, vector<1x32xf32>
    %c0_43 = arith.constant 0 : index
    %c0_44 = arith.constant 0 : index
    %c0_45 = arith.constant 0 : index
    %48 = vector.load %arg14[%c0_43, %c0_44, %c0_45] : memref<2x32x64xf32, #tpu.memory_space<vmem>>, vector<1x32x64xf32>
    %49 = vector.shape_cast %48 : vector<1x32x64xf32> to vector<32x64xf32>
    %c0_46 = arith.constant 0 : index
    %c0_47 = arith.constant 0 : index
    %50 = vector.load %arg15[%c0_46, %c0_47] : memref<2x64xf32, #tpu.memory_space<vmem>>, vector<1x64xf32>
    %c0_48 = arith.constant 0 : index
    %c0_49 = arith.constant 0 : index
    %c0_50 = arith.constant 0 : index
    %51 = vector.load %arg16[%c0_48, %c0_49, %c0_50] : memref<2x64x32xf32, #tpu.memory_space<vmem>>, vector<1x64x32xf32>
    %52 = vector.shape_cast %51 : vector<1x64x32xf32> to vector<64x32xf32>
    %c0_51 = arith.constant 0 : index
    %c0_52 = arith.constant 0 : index
    %53 = vector.load %arg17[%c0_51, %c0_52] : memref<2x32xf32, #tpu.memory_space<vmem>>, vector<1x32xf32>
    %cst_53 = arith.constant dense<0.000000e+00> : vector<10xf32>
    %54 = vector.multi_reduction <add>, %37, %cst_53 [1] : vector<10x32xf32> to vector<10xf32>
    %55 = vector.shape_cast %54 : vector<10xf32> to vector<10x1xf32>
    %cst_54 = arith.constant 3.200000e+01 : f32
    %56 = vector.broadcast %cst_54 : f32 to vector<10x1xf32>
    %57 = arith.divf %55, %56 : vector<10x1xf32>
    %58 = vector.broadcast %57 : vector<10x1xf32> to vector<10x32xf32>
    %59 = arith.subf %37, %58 : vector<10x32xf32>
    %60 = arith.mulf %59, %59 : vector<10x32xf32>
    %cst_55 = arith.constant dense<0.000000e+00> : vector<10xf32>
    %61 = vector.multi_reduction <add>, %60, %cst_55 [1] : vector<10x32xf32> to vector<10xf32>
    %62 = vector.shape_cast %61 : vector<10xf32> to vector<10x1xf32>
    %cst_56 = arith.constant 3.200000e+01 : f32
    %63 = vector.broadcast %cst_56 : f32 to vector<10x1xf32>
    %64 = arith.divf %62, %63 : vector<10x1xf32>
    %65 = vector.broadcast %57 : vector<10x1xf32> to vector<10x32xf32>
    %66 = arith.subf %37, %65 : vector<10x32xf32>
    %cst_57 = arith.constant 9.99999974E-6 : f32
    %67 = vector.broadcast %cst_57 : f32 to vector<10x1xf32>
    %68 = arith.addf %64, %67 : vector<10x1xf32>
    %69 = math.rsqrt %68 : vector<10x1xf32>
    %70 = vector.broadcast %69 : vector<10x1xf32> to vector<10x32xf32>
    %71 = arith.mulf %66, %70 : vector<10x32xf32>
    %72 = vector.broadcast %38 : vector<1x32xf32> to vector<10x32xf32>
    %73 = arith.mulf %71, %72 : vector<10x32xf32>
    %74 = vector.broadcast %39 : vector<1x32xf32> to vector<10x32xf32>
    %75 = arith.addf %73, %74 : vector<10x32xf32>
    %cst_58 = arith.constant dense<0.000000e+00> : vector<10x96xf32>
    %76 = tpu.matmul %75, %41, %cst_58 {dimension_numbers = #tpu.dot_dimension_numbers<[1], [0], [0], [1], [0, 0, 1, 1], [], []>} : vector<10x32xf32>, vector<32x96xf32>, vector<10x96xf32> -> vector<10x96xf32>
    %77 = vector.broadcast %42 : vector<1x96xf32> to vector<10x96xf32>
    %78 = arith.addf %76, %77 : vector<10x96xf32>
    %79 = vector.extract_strided_slice %78 {offsets = [0, 0], sizes = [10, 32], strides = [1, 1]} : vector<10x96xf32> to vector<10x32xf32>
    %80 = vector.extract_strided_slice %78 {offsets = [0, 32], sizes = [10, 32], strides = [1, 1]} : vector<10x96xf32> to vector<10x32xf32>
    %81 = vector.extract_strided_slice %78 {offsets = [0, 64], sizes = [10, 32], strides = [1, 1]} : vector<10x96xf32> to vector<10x32xf32>
    %82 = vector.extract_strided_slice %79 {offsets = [0, 0], sizes = [5, 32], strides = [1, 1]} : vector<10x32xf32> to vector<5x32xf32>
    %83 = vector.extract_strided_slice %80 {offsets = [0, 0], sizes = [5, 32], strides = [1, 1]} : vector<10x32xf32> to vector<5x32xf32>
    %84 = vector.extract_strided_slice %81 {offsets = [0, 0], sizes = [5, 32], strides = [1, 1]} : vector<10x32xf32> to vector<5x32xf32>
    %85 = vector.extract_strided_slice %82 {offsets = [0, 0], sizes = [5, 8], strides = [1, 1]} : vector<5x32xf32> to vector<5x8xf32>
    %86 = vector.extract_strided_slice %83 {offsets = [0, 0], sizes = [5, 8], strides = [1, 1]} : vector<5x32xf32> to vector<5x8xf32>
    %cst_59 = arith.constant dense<0.000000e+00> : vector<5x5xf32>
    %87 = tpu.matmul %85, %86, %cst_59 {dimension_numbers = #tpu.dot_dimension_numbers<[1], [1], [0], [0], [0, 0, 1, 0], [], []>} : vector<5x8xf32>, vector<5x8xf32>, vector<5x5xf32> -> vector<5x5xf32>
    %cst_60 = arith.constant 0.353553385 : f32
    %88 = vector.broadcast %cst_60 : f32 to vector<5x5xf32>
    %89 = arith.mulf %87, %88 : vector<5x5xf32>
    %cst_61 = arith.constant dense<0xFF800000> : vector<5xf32>
    %90 = vector.multi_reduction <maximumf>, %89, %cst_61 [1] : vector<5x5xf32> to vector<5xf32>
    %91 = vector.shape_cast %90 : vector<5xf32> to vector<5x1xf32>
    %92 = vector.broadcast %91 : vector<5x1xf32> to vector<5x5xf32>
    %93 = arith.subf %89, %92 : vector<5x5xf32>
    %94 = math.exp %93 : vector<5x5xf32>
    %cst_62 = arith.constant dense<0.000000e+00> : vector<5xf32>
    %95 = vector.multi_reduction <add>, %94, %cst_62 [1] : vector<5x5xf32> to vector<5xf32>
    %96 = vector.shape_cast %95 : vector<5xf32> to vector<5x1xf32>
    %97 = vector.broadcast %96 : vector<5x1xf32> to vector<5x5xf32>
    %98 = arith.divf %94, %97 : vector<5x5xf32>
    %99 = vector.extract_strided_slice %84 {offsets = [0, 0], sizes = [5, 8], strides = [1, 1]} : vector<5x32xf32> to vector<5x8xf32>
    %cst_63 = arith.constant dense<0.000000e+00> : vector<5x8xf32>
    %100 = tpu.matmul %98, %99, %cst_63 {dimension_numbers = #tpu.dot_dimension_numbers<[1], [0], [0], [1], [0, 0, 1, 1], [], []>} : vector<5x5xf32>, vector<5x8xf32>, vector<5x8xf32> -> vector<5x8xf32>
    %101 = vector.extract_strided_slice %44 {offsets = [0, 0], sizes = [8, 32], strides = [1, 1]} : vector<32x32xf32> to vector<8x32xf32>
    %cst_64 = arith.constant dense<0.000000e+00> : vector<5x32xf32>
    %102 = tpu.matmul %100, %101, %cst_64 {dimension_numbers = #tpu.dot_dimension_numbers<[1], [0], [0], [1], [0, 0, 1, 1], [], []>} : vector<5x8xf32>, vector<8x32xf32>, vector<5x32xf32> -> vector<5x32xf32>
    %103 = vector.extract_strided_slice %82 {offsets = [0, 8], sizes = [5, 8], strides = [1, 1]} : vector<5x32xf32> to vector<5x8xf32>
    %104 = vector.extract_strided_slice %83 {offsets = [0, 8], sizes = [5, 8], strides = [1, 1]} : vector<5x32xf32> to vector<5x8xf32>
    %cst_65 = arith.constant dense<0.000000e+00> : vector<5x5xf32>
    %105 = tpu.matmul %103, %104, %cst_65 {dimension_numbers = #tpu.dot_dimension_numbers<[1], [1], [0], [0], [0, 0, 1, 0], [], []>} : vector<5x8xf32>, vector<5x8xf32>, vector<5x5xf32> -> vector<5x5xf32>
    %cst_66 = arith.constant 0.353553385 : f32
    %106 = vector.broadcast %cst_66 : f32 to vector<5x5xf32>
    %107 = arith.mulf %105, %106 : vector<5x5xf32>
    %cst_67 = arith.constant dense<0xFF800000> : vector<5xf32>
    %108 = vector.multi_reduction <maximumf>, %107, %cst_67 [1] : vector<5x5xf32> to vector<5xf32>
    %109 = vector.shape_cast %108 : vector<5xf32> to vector<5x1xf32>
    %110 = vector.broadcast %109 : vector<5x1xf32> to vector<5x5xf32>
    %111 = arith.subf %107, %110 : vector<5x5xf32>
    %112 = math.exp %111 : vector<5x5xf32>
    %cst_68 = arith.constant dense<0.000000e+00> : vector<5xf32>
    %113 = vector.multi_reduction <add>, %112, %cst_68 [1] : vector<5x5xf32> to vector<5xf32>
    %114 = vector.shape_cast %113 : vector<5xf32> to vector<5x1xf32>
    %115 = vector.broadcast %114 : vector<5x1xf32> to vector<5x5xf32>
    %116 = arith.divf %112, %115 : vector<5x5xf32>
    %117 = vector.extract_strided_slice %84 {offsets = [0, 8], sizes = [5, 8], strides = [1, 1]} : vector<5x32xf32> to vector<5x8xf32>
    %cst_69 = arith.constant dense<0.000000e+00> : vector<5x8xf32>
    %118 = tpu.matmul %116, %117, %cst_69 {dimension_numbers = #tpu.dot_dimension_numbers<[1], [0], [0], [1], [0, 0, 1, 1], [], []>} : vector<5x5xf32>, vector<5x8xf32>, vector<5x8xf32> -> vector<5x8xf32>
    %119 = vector.extract_strided_slice %44 {offsets = [8, 0], sizes = [8, 32], strides = [1, 1]} : vector<32x32xf32> to vector<8x32xf32>
    %cst_70 = arith.constant dense<0.000000e+00> : vector<5x32xf32>
    %120 = tpu.matmul %118, %119, %cst_70 {dimension_numbers = #tpu.dot_dimension_numbers<[1], [0], [0], [1], [0, 0, 1, 1], [], []>} : vector<5x8xf32>, vector<8x32xf32>, vector<5x32xf32> -> vector<5x32xf32>
    %121 = arith.addf %102, %120 : vector<5x32xf32>
    %122 = vector.extract_strided_slice %82 {offsets = [0, 16], sizes = [5, 8], strides = [1, 1]} : vector<5x32xf32> to vector<5x8xf32>
    %123 = vector.extract_strided_slice %83 {offsets = [0, 16], sizes = [5, 8], strides = [1, 1]} : vector<5x32xf32> to vector<5x8xf32>
    %cst_71 = arith.constant dense<0.000000e+00> : vector<5x5xf32>
    %124 = tpu.matmul %122, %123, %cst_71 {dimension_numbers = #tpu.dot_dimension_numbers<[1], [1], [0], [0], [0, 0, 1, 0], [], []>} : vector<5x8xf32>, vector<5x8xf32>, vector<5x5xf32> -> vector<5x5xf32>
    %cst_72 = arith.constant 0.353553385 : f32
    %125 = vector.broadcast %cst_72 : f32 to vector<5x5xf32>
    %126 = arith.mulf %124, %125 : vector<5x5xf32>
    %cst_73 = arith.constant dense<0xFF800000> : vector<5xf32>
    %127 = vector.multi_reduction <maximumf>, %126, %cst_73 [1] : vector<5x5xf32> to vector<5xf32>
    %128 = vector.shape_cast %127 : vector<5xf32> to vector<5x1xf32>
    %129 = vector.broadcast %128 : vector<5x1xf32> to vector<5x5xf32>
    %130 = arith.subf %126, %129 : vector<5x5xf32>
    %131 = math.exp %130 : vector<5x5xf32>
    %cst_74 = arith.constant dense<0.000000e+00> : vector<5xf32>
    %132 = vector.multi_reduction <add>, %131, %cst_74 [1] : vector<5x5xf32> to vector<5xf32>
    %133 = vector.shape_cast %132 : vector<5xf32> to vector<5x1xf32>
    %134 = vector.broadcast %133 : vector<5x1xf32> to vector<5x5xf32>
    %135 = arith.divf %131, %134 : vector<5x5xf32>
    %136 = vector.extract_strided_slice %84 {offsets = [0, 16], sizes = [5, 8], strides = [1, 1]} : vector<5x32xf32> to vector<5x8xf32>
    %cst_75 = arith.constant dense<0.000000e+00> : vector<5x8xf32>
    %137 = tpu.matmul %135, %136, %cst_75 {dimension_numbers = #tpu.dot_dimension_numbers<[1], [0], [0], [1], [0, 0, 1, 1], [], []>} : vector<5x5xf32>, vector<5x8xf32>, vector<5x8xf32> -> vector<5x8xf32>
    %138 = vector.extract_strided_slice %44 {offsets = [16, 0], sizes = [8, 32], strides = [1, 1]} : vector<32x32xf32> to vector<8x32xf32>
    %cst_76 = arith.constant dense<0.000000e+00> : vector<5x32xf32>
    %139 = tpu.matmul %137, %138, %cst_76 {dimension_numbers = #tpu.dot_dimension_numbers<[1], [0], [0], [1], [0, 0, 1, 1], [], []>} : vector<5x8xf32>, vector<8x32xf32>, vector<5x32xf32> -> vector<5x32xf32>
    %140 = arith.addf %121, %139 : vector<5x32xf32>
    %141 = vector.extract_strided_slice %82 {offsets = [0, 24], sizes = [5, 8], strides = [1, 1]} : vector<5x32xf32> to vector<5x8xf32>
    %142 = vector.extract_strided_slice %83 {offsets = [0, 24], sizes = [5, 8], strides = [1, 1]} : vector<5x32xf32> to vector<5x8xf32>
    %cst_77 = arith.constant dense<0.000000e+00> : vector<5x5xf32>
    %143 = tpu.matmul %141, %142, %cst_77 {dimension_numbers = #tpu.dot_dimension_numbers<[1], [1], [0], [0], [0, 0, 1, 0], [], []>} : vector<5x8xf32>, vector<5x8xf32>, vector<5x5xf32> -> vector<5x5xf32>
    %cst_78 = arith.constant 0.353553385 : f32
    %144 = vector.broadcast %cst_78 : f32 to vector<5x5xf32>
    %145 = arith.mulf %143, %144 : vector<5x5xf32>
    %cst_79 = arith.constant dense<0xFF800000> : vector<5xf32>
    %146 = vector.multi_reduction <maximumf>, %145, %cst_79 [1] : vector<5x5xf32> to vector<5xf32>
    %147 = vector.shape_cast %146 : vector<5xf32> to vector<5x1xf32>
    %148 = vector.broadcast %147 : vector<5x1xf32> to vector<5x5xf32>
    %149 = arith.subf %145, %148 : vector<5x5xf32>
    %150 = math.exp %149 : vector<5x5xf32>
    %cst_80 = arith.constant dense<0.000000e+00> : vector<5xf32>
    %151 = vector.multi_reduction <add>, %150, %cst_80 [1] : vector<5x5xf32> to vector<5xf32>
    %152 = vector.shape_cast %151 : vector<5xf32> to vector<5x1xf32>
    %153 = vector.broadcast %152 : vector<5x1xf32> to vector<5x5xf32>
    %154 = arith.divf %150, %153 : vector<5x5xf32>
    %155 = vector.extract_strided_slice %84 {offsets = [0, 24], sizes = [5, 8], strides = [1, 1]} : vector<5x32xf32> to vector<5x8xf32>
    %cst_81 = arith.constant dense<0.000000e+00> : vector<5x8xf32>
    %156 = tpu.matmul %154, %155, %cst_81 {dimension_numbers = #tpu.dot_dimension_numbers<[1], [0], [0], [1], [0, 0, 1, 1], [], []>} : vector<5x5xf32>, vector<5x8xf32>, vector<5x8xf32> -> vector<5x8xf32>
    %157 = vector.extract_strided_slice %44 {offsets = [24, 0], sizes = [8, 32], strides = [1, 1]} : vector<32x32xf32> to vector<8x32xf32>
    %cst_82 = arith.constant dense<0.000000e+00> : vector<5x32xf32>
    %158 = tpu.matmul %156, %157, %cst_82 {dimension_numbers = #tpu.dot_dimension_numbers<[1], [0], [0], [1], [0, 0, 1, 1], [], []>} : vector<5x8xf32>, vector<8x32xf32>, vector<5x32xf32> -> vector<5x32xf32>
    %159 = arith.addf %140, %158 : vector<5x32xf32>
    %c0_83 = arith.constant 0 : index
    %c0_84 = arith.constant 0 : index
    %160 = vector.load %arg23[%c0_83, %c0_84] : memref<10x32xf32, #tpu.memory_space<vmem>>, vector<5x32xf32>
    tpu.vector_store %arg23[%c0_83, %c0_84], %159 {strides = array<i32>} : memref<10x32xf32, #tpu.memory_space<vmem>>, vector<5x32xf32>,
    %161 = vector.extract_strided_slice %79 {offsets = [5, 0], sizes = [5, 32], strides = [1, 1]} : vector<10x32xf32> to vector<5x32xf32>
    %162 = vector.extract_strided_slice %80 {offsets = [5, 0], sizes = [5, 32], strides = [1, 1]} : vector<10x32xf32> to vector<5x32xf32>
    %163 = vector.extract_strided_slice %81 {offsets = [5, 0], sizes = [5, 32], strides = [1, 1]} : vector<10x32xf32> to vector<5x32xf32>
    %164 = vector.extract_strided_slice %161 {offsets = [0, 0], sizes = [5, 8], strides = [1, 1]} : vector<5x32xf32> to vector<5x8xf32>
    %165 = vector.extract_strided_slice %162 {offsets = [0, 0], sizes = [5, 8], strides = [1, 1]} : vector<5x32xf32> to vector<5x8xf32>
    %cst_85 = arith.constant dense<0.000000e+00> : vector<5x5xf32>
    %166 = tpu.matmul %164, %165, %cst_85 {dimension_numbers = #tpu.dot_dimension_numbers<[1], [1], [0], [0], [0, 0, 1, 0], [], []>} : vector<5x8xf32>, vector<5x8xf32>, vector<5x5xf32> -> vector<5x5xf32>
    %cst_86 = arith.constant 0.353553385 : f32
    %167 = vector.broadcast %cst_86 : f32 to vector<5x5xf32>
    %168 = arith.mulf %166, %167 : vector<5x5xf32>
    %cst_87 = arith.constant dense<0xFF800000> : vector<5xf32>
    %169 = vector.multi_reduction <maximumf>, %168, %cst_87 [1] : vector<5x5xf32> to vector<5xf32>
    %170 = vector.shape_cast %169 : vector<5xf32> to vector<5x1xf32>
    %171 = vector.broadcast %170 : vector<5x1xf32> to vector<5x5xf32>
    %172 = arith.subf %168, %171 : vector<5x5xf32>
    %173 = math.exp %172 : vector<5x5xf32>
    %cst_88 = arith.constant dense<0.000000e+00> : vector<5xf32>
    %174 = vector.multi_reduction <add>, %173, %cst_88 [1] : vector<5x5xf32> to vector<5xf32>
    %175 = vector.shape_cast %174 : vector<5xf32> to vector<5x1xf32>
    %176 = vector.broadcast %175 : vector<5x1xf32> to vector<5x5xf32>
    %177 = arith.divf %173, %176 : vector<5x5xf32>
    %178 = vector.extract_strided_slice %163 {offsets = [0, 0], sizes = [5, 8], strides = [1, 1]} : vector<5x32xf32> to vector<5x8xf32>
    %cst_89 = arith.constant dense<0.000000e+00> : vector<5x8xf32>
    %179 = tpu.matmul %177, %178, %cst_89 {dimension_numbers = #tpu.dot_dimension_numbers<[1], [0], [0], [1], [0, 0, 1, 1], [], []>} : vector<5x5xf32>, vector<5x8xf32>, vector<5x8xf32> -> vector<5x8xf32>
    %180 = vector.extract_strided_slice %44 {offsets = [0, 0], sizes = [8, 32], strides = [1, 1]} : vector<32x32xf32> to vector<8x32xf32>
    %cst_90 = arith.constant dense<0.000000e+00> : vector<5x32xf32>
    %181 = tpu.matmul %179, %180, %cst_90 {dimension_numbers = #tpu.dot_dimension_numbers<[1], [0], [0], [1], [0, 0, 1, 1], [], []>} : vector<5x8xf32>, vector<8x32xf32>, vector<5x32xf32> -> vector<5x32xf32>
    %182 = vector.extract_strided_slice %161 {offsets = [0, 8], sizes = [5, 8], strides = [1, 1]} : vector<5x32xf32> to vector<5x8xf32>
    %183 = vector.extract_strided_slice %162 {offsets = [0, 8], sizes = [5, 8], strides = [1, 1]} : vector<5x32xf32> to vector<5x8xf32>
    %cst_91 = arith.constant dense<0.000000e+00> : vector<5x5xf32>
    %184 = tpu.matmul %182, %183, %cst_91 {dimension_numbers = #tpu.dot_dimension_numbers<[1], [1], [0], [0], [0, 0, 1, 0], [], []>} : vector<5x8xf32>, vector<5x8xf32>, vector<5x5xf32> -> vector<5x5xf32>
    %cst_92 = arith.constant 0.353553385 : f32
    %185 = vector.broadcast %cst_92 : f32 to vector<5x5xf32>
    %186 = arith.mulf %184, %185 : vector<5x5xf32>
    %cst_93 = arith.constant dense<0xFF800000> : vector<5xf32>
    %187 = vector.multi_reduction <maximumf>, %186, %cst_93 [1] : vector<5x5xf32> to vector<5xf32>
    %188 = vector.shape_cast %187 : vector<5xf32> to vector<5x1xf32>
    %189 = vector.broadcast %188 : vector<5x1xf32> to vector<5x5xf32>
    %190 = arith.subf %186, %189 : vector<5x5xf32>
    %191 = math.exp %190 : vector<5x5xf32>
    %cst_94 = arith.constant dense<0.000000e+00> : vector<5xf32>
    %192 = vector.multi_reduction <add>, %191, %cst_94 [1] : vector<5x5xf32> to vector<5xf32>
    %193 = vector.shape_cast %192 : vector<5xf32> to vector<5x1xf32>
    %194 = vector.broadcast %193 : vector<5x1xf32> to vector<5x5xf32>
    %195 = arith.divf %191, %194 : vector<5x5xf32>
    %196 = vector.extract_strided_slice %163 {offsets = [0, 8], sizes = [5, 8], strides = [1, 1]} : vector<5x32xf32> to vector<5x8xf32>
    %cst_95 = arith.constant dense<0.000000e+00> : vector<5x8xf32>
    %197 = tpu.matmul %195, %196, %cst_95 {dimension_numbers = #tpu.dot_dimension_numbers<[1], [0], [0], [1], [0, 0, 1, 1], [], []>} : vector<5x5xf32>, vector<5x8xf32>, vector<5x8xf32> -> vector<5x8xf32>
    %198 = vector.extract_strided_slice %44 {offsets = [8, 0], sizes = [8, 32], strides = [1, 1]} : vector<32x32xf32> to vector<8x32xf32>
    %cst_96 = arith.constant dense<0.000000e+00> : vector<5x32xf32>
    %199 = tpu.matmul %197, %198, %cst_96 {dimension_numbers = #tpu.dot_dimension_numbers<[1], [0], [0], [1], [0, 0, 1, 1], [], []>} : vector<5x8xf32>, vector<8x32xf32>, vector<5x32xf32> -> vector<5x32xf32>
    %200 = arith.addf %181, %199 : vector<5x32xf32>
    %201 = vector.extract_strided_slice %161 {offsets = [0, 16], sizes = [5, 8], strides = [1, 1]} : vector<5x32xf32> to vector<5x8xf32>
    %202 = vector.extract_strided_slice %162 {offsets = [0, 16], sizes = [5, 8], strides = [1, 1]} : vector<5x32xf32> to vector<5x8xf32>
    %cst_97 = arith.constant dense<0.000000e+00> : vector<5x5xf32>
    %203 = tpu.matmul %201, %202, %cst_97 {dimension_numbers = #tpu.dot_dimension_numbers<[1], [1], [0], [0], [0, 0, 1, 0], [], []>} : vector<5x8xf32>, vector<5x8xf32>, vector<5x5xf32> -> vector<5x5xf32>
    %cst_98 = arith.constant 0.353553385 : f32
    %204 = vector.broadcast %cst_98 : f32 to vector<5x5xf32>
    %205 = arith.mulf %203, %204 : vector<5x5xf32>
    %cst_99 = arith.constant dense<0xFF800000> : vector<5xf32>
    %206 = vector.multi_reduction <maximumf>, %205, %cst_99 [1] : vector<5x5xf32> to vector<5xf32>
    %207 = vector.shape_cast %206 : vector<5xf32> to vector<5x1xf32>
    %208 = vector.broadcast %207 : vector<5x1xf32> to vector<5x5xf32>
    %209 = arith.subf %205, %208 : vector<5x5xf32>
    %210 = math.exp %209 : vector<5x5xf32>
    %cst_100 = arith.constant dense<0.000000e+00> : vector<5xf32>
    %211 = vector.multi_reduction <add>, %210, %cst_100 [1] : vector<5x5xf32> to vector<5xf32>
    %212 = vector.shape_cast %211 : vector<5xf32> to vector<5x1xf32>
    %213 = vector.broadcast %212 : vector<5x1xf32> to vector<5x5xf32>
    %214 = arith.divf %210, %213 : vector<5x5xf32>
    %215 = vector.extract_strided_slice %163 {offsets = [0, 16], sizes = [5, 8], strides = [1, 1]} : vector<5x32xf32> to vector<5x8xf32>
    %cst_101 = arith.constant dense<0.000000e+00> : vector<5x8xf32>
    %216 = tpu.matmul %214, %215, %cst_101 {dimension_numbers = #tpu.dot_dimension_numbers<[1], [0], [0], [1], [0, 0, 1, 1], [], []>} : vector<5x5xf32>, vector<5x8xf32>, vector<5x8xf32> -> vector<5x8xf32>
    %217 = vector.extract_strided_slice %44 {offsets = [16, 0], sizes = [8, 32], strides = [1, 1]} : vector<32x32xf32> to vector<8x32xf32>
    %cst_102 = arith.constant dense<0.000000e+00> : vector<5x32xf32>
    %218 = tpu.matmul %216, %217, %cst_102 {dimension_numbers = #tpu.dot_dimension_numbers<[1], [0], [0], [1], [0, 0, 1, 1], [], []>} : vector<5x8xf32>, vector<8x32xf32>, vector<5x32xf32> -> vector<5x32xf32>
    %219 = arith.addf %200, %218 : vector<5x32xf32>
    %220 = vector.extract_strided_slice %161 {offsets = [0, 24], sizes = [5, 8], strides = [1, 1]} : vector<5x32xf32> to vector<5x8xf32>
    %221 = vector.extract_strided_slice %162 {offsets = [0, 24], sizes = [5, 8], strides = [1, 1]} : vector<5x32xf32> to vector<5x8xf32>
    %cst_103 = arith.constant dense<0.000000e+00> : vector<5x5xf32>
    %222 = tpu.matmul %220, %221, %cst_103 {dimension_numbers = #tpu.dot_dimension_numbers<[1], [1], [0], [0], [0, 0, 1, 0], [], []>} : vector<5x8xf32>, vector<5x8xf32>, vector<5x5xf32> -> vector<5x5xf32>
    %cst_104 = arith.constant 0.353553385 : f32
    %223 = vector.broadcast %cst_104 : f32 to vector<5x5xf32>
    %224 = arith.mulf %222, %223 : vector<5x5xf32>
    %cst_105 = arith.constant dense<0xFF800000> : vector<5xf32>
    %225 = vector.multi_reduction <maximumf>, %224, %cst_105 [1] : vector<5x5xf32> to vector<5xf32>
    %226 = vector.shape_cast %225 : vector<5xf32> to vector<5x1xf32>
    %227 = vector.broadcast %226 : vector<5x1xf32> to vector<5x5xf32>
    %228 = arith.subf %224, %227 : vector<5x5xf32>
    %229 = math.exp %228 : vector<5x5xf32>
    %cst_106 = arith.constant dense<0.000000e+00> : vector<5xf32>
    %230 = vector.multi_reduction <add>, %229, %cst_106 [1] : vector<5x5xf32> to vector<5xf32>
    %231 = vector.shape_cast %230 : vector<5xf32> to vector<5x1xf32>
    %232 = vector.broadcast %231 : vector<5x1xf32> to vector<5x5xf32>
    %233 = arith.divf %229, %232 : vector<5x5xf32>
    %234 = vector.extract_strided_slice %163 {offsets = [0, 24], sizes = [5, 8], strides = [1, 1]} : vector<5x32xf32> to vector<5x8xf32>
    %cst_107 = arith.constant dense<0.000000e+00> : vector<5x8xf32>
    %235 = tpu.matmul %233, %234, %cst_107 {dimension_numbers = #tpu.dot_dimension_numbers<[1], [0], [0], [1], [0, 0, 1, 1], [], []>} : vector<5x5xf32>, vector<5x8xf32>, vector<5x8xf32> -> vector<5x8xf32>
    %236 = vector.extract_strided_slice %44 {offsets = [24, 0], sizes = [8, 32], strides = [1, 1]} : vector<32x32xf32> to vector<8x32xf32>
    %cst_108 = arith.constant dense<0.000000e+00> : vector<5x32xf32>
    %237 = tpu.matmul %235, %236, %cst_108 {dimension_numbers = #tpu.dot_dimension_numbers<[1], [0], [0], [1], [0, 0, 1, 1], [], []>} : vector<5x8xf32>, vector<8x32xf32>, vector<5x32xf32> -> vector<5x32xf32>
    %238 = arith.addf %219, %237 : vector<5x32xf32>
    %c5_109 = arith.constant 5 : index
    %c0_110 = arith.constant 0 : index
    %239 = vector.load %arg23[%c5_109, %c0_110] : memref<10x32xf32, #tpu.memory_space<vmem>>, vector<5x32xf32>
    tpu.vector_store %arg23[%c5_109, %c0_110], %238 {strides = array<i32>} : memref<10x32xf32, #tpu.memory_space<vmem>>, vector<5x32xf32>,
    %c0_111 = arith.constant 0 : index
    %c0_112 = arith.constant 0 : index
    %240 = vector.load %arg23[%c0_111, %c0_112] : memref<10x32xf32, #tpu.memory_space<vmem>>, vector<10x32xf32>
    %241 = arith.addf %37, %240 : vector<10x32xf32>
    %242 = vector.broadcast %45 : vector<1x32xf32> to vector<10x32xf32>
    %243 = arith.addf %241, %242 : vector<10x32xf32>
    %cst_113 = arith.constant dense<0.000000e+00> : vector<10xf32>
    %244 = vector.multi_reduction <add>, %243, %cst_113 [1] : vector<10x32xf32> to vector<10xf32>
    %245 = vector.shape_cast %244 : vector<10xf32> to vector<10x1xf32>
    %cst_114 = arith.constant 3.200000e+01 : f32
    %246 = vector.broadcast %cst_114 : f32 to vector<10x1xf32>
    %247 = arith.divf %245, %246 : vector<10x1xf32>
    %248 = vector.broadcast %247 : vector<10x1xf32> to vector<10x32xf32>
    %249 = arith.subf %243, %248 : vector<10x32xf32>
    %250 = arith.mulf %249, %249 : vector<10x32xf32>
    %cst_115 = arith.constant dense<0.000000e+00> : vector<10xf32>
    %251 = vector.multi_reduction <add>, %250, %cst_115 [1] : vector<10x32xf32> to vector<10xf32>
    %252 = vector.shape_cast %251 : vector<10xf32> to vector<10x1xf32>
    %cst_116 = arith.constant 3.200000e+01 : f32
    %253 = vector.broadcast %cst_116 : f32 to vector<10x1xf32>
    %254 = arith.divf %252, %253 : vector<10x1xf32>
    %255 = vector.broadcast %247 : vector<10x1xf32> to vector<10x32xf32>
    %256 = arith.subf %243, %255 : vector<10x32xf32>
    %cst_117 = arith.constant 9.99999974E-6 : f32
    %257 = vector.broadcast %cst_117 : f32 to vector<10x1xf32>
    %258 = arith.addf %254, %257 : vector<10x1xf32>
    %259 = math.rsqrt %258 : vector<10x1xf32>
    %260 = vector.broadcast %259 : vector<10x1xf32> to vector<10x32xf32>
    %261 = arith.mulf %256, %260 : vector<10x32xf32>
    %262 = vector.broadcast %46 : vector<1x32xf32> to vector<10x32xf32>
    %263 = arith.mulf %261, %262 : vector<10x32xf32>
    %264 = vector.broadcast %47 : vector<1x32xf32> to vector<10x32xf32>
    %265 = arith.addf %263, %264 : vector<10x32xf32>
    %cst_118 = arith.constant dense<0.000000e+00> : vector<10x64xf32>
    %266 = tpu.matmul %265, %49, %cst_118 {dimension_numbers = #tpu.dot_dimension_numbers<[1], [0], [0], [1], [0, 0, 1, 1], [], []>} : vector<10x32xf32>, vector<32x64xf32>, vector<10x64xf32> -> vector<10x64xf32>
    %267 = vector.broadcast %50 : vector<1x64xf32> to vector<10x64xf32>
    %268 = arith.addf %266, %267 : vector<10x64xf32>
    %cst_119 = arith.constant 1.702000e+00 : f32
    %269 = vector.broadcast %cst_119 : f32 to vector<10x64xf32>
    %270 = arith.mulf %269, %268 : vector<10x64xf32>
    %271 = arith.negf %270 : vector<10x64xf32>
    %272 = math.exp %271 : vector<10x64xf32>
    %cst_120 = arith.constant 1.000000e+00 : f32
    %273 = vector.broadcast %cst_120 : f32 to vector<10x64xf32>
    %274 = arith.addf %273, %272 : vector<10x64xf32>
    %275 = arith.divf %273, %274 : vector<10x64xf32>
    %276 = arith.mulf %268, %275 : vector<10x64xf32>
    %cst_121 = arith.constant dense<0.000000e+00> : vector<10x32xf32>
    %277 = tpu.matmul %276, %52, %cst_121 {dimension_numbers = #tpu.dot_dimension_numbers<[1], [0], [0], [1], [0, 0, 1, 1], [], []>} : vector<10x64xf32>, vector<64x32xf32>, vector<10x32xf32> -> vector<10x32xf32>
    %278 = vector.broadcast %53 : vector<1x32xf32> to vector<10x32xf32>
    %279 = arith.addf %277, %278 : vector<10x32xf32>
    %280 = arith.addf %243, %279 : vector<10x32xf32>
    %c1_122 = arith.constant 1 : index
    %c0_123 = arith.constant 0 : index
    %281 = vector.load %arg6[%c1_122, %c0_123] : memref<2x32xf32, #tpu.memory_space<vmem>>, vector<1x32xf32>
    %c1_124 = arith.constant 1 : index
    %c0_125 = arith.constant 0 : index
    %282 = vector.load %arg7[%c1_124, %c0_125] : memref<2x32xf32, #tpu.memory_space<vmem>>, vector<1x32xf32>
    %c1_126 = arith.constant 1 : index
    %c0_127 = arith.constant 0 : index
    %c0_128 = arith.constant 0 : index
    %283 = vector.load %arg8[%c1_126, %c0_127, %c0_128] : memref<2x32x96xf32, #tpu.memory_space<vmem>>, vector<1x32x96xf32>
    %284 = vector.shape_cast %283 : vector<1x32x96xf32> to vector<32x96xf32>
    %c1_129 = arith.constant 1 : index
    %c0_130 = arith.constant 0 : index
    %285 = vector.load %arg9[%c1_129, %c0_130] : memref<2x96xf32, #tpu.memory_space<vmem>>, vector<1x96xf32>
    %c1_131 = arith.constant 1 : index
    %c0_132 = arith.constant 0 : index
    %c0_133 = arith.constant 0 : index
    %286 = vector.load %arg10[%c1_131, %c0_132, %c0_133] : memref<2x32x32xf32, #tpu.memory_space<vmem>>, vector<1x32x32xf32>
    %287 = vector.shape_cast %286 : vector<1x32x32xf32> to vector<32x32xf32>
    %c1_134 = arith.constant 1 : index
    %c0_135 = arith.constant 0 : index
    %288 = vector.load %arg11[%c1_134, %c0_135] : memref<2x32xf32, #tpu.memory_space<vmem>>, vector<1x32xf32>
    %c1_136 = arith.constant 1 : index
    %c0_137 = arith.constant 0 : index
    %289 = vector.load %arg12[%c1_136, %c0_137] : memref<2x32xf32, #tpu.memory_space<vmem>>, vector<1x32xf32>
    %c1_138 = arith.constant 1 : index
    %c0_139 = arith.constant 0 : index
    %290 = vector.load %arg13[%c1_138, %c0_139] : memref<2x32xf32, #tpu.memory_space<vmem>>, vector<1x32xf32>
    %c1_140 = arith.constant 1 : index
    %c0_141 = arith.constant 0 : index
    %c0_142 = arith.constant 0 : index
    %291 = vector.load %arg14[%c1_140, %c0_141, %c0_142] : memref<2x32x64xf32, #tpu.memory_space<vmem>>, vector<1x32x64xf32>
    %292 = vector.shape_cast %291 : vector<1x32x64xf32> to vector<32x64xf32>
    %c1_143 = arith.constant 1 : index
    %c0_144 = arith.constant 0 : index
    %293 = vector.load %arg15[%c1_143, %c0_144] : memref<2x64xf32, #tpu.memory_space<vmem>>, vector<1x64xf32>
    %c1_145 = arith.constant 1 : index
    %c0_146 = arith.constant 0 : index
    %c0_147 = arith.constant 0 : index
    %294 = vector.load %arg16[%c1_145, %c0_146, %c0_147] : memref<2x64x32xf32, #tpu.memory_space<vmem>>, vector<1x64x32xf32>
    %295 = vector.shape_cast %294 : vector<1x64x32xf32> to vector<64x32xf32>
    %c1_148 = arith.constant 1 : index
    %c0_149 = arith.constant 0 : index
    %296 = vector.load %arg17[%c1_148, %c0_149] : memref<2x32xf32, #tpu.memory_space<vmem>>, vector<1x32xf32>
    %cst_150 = arith.constant dense<0.000000e+00> : vector<10xf32>
    %297 = vector.multi_reduction <add>, %280, %cst_150 [1] : vector<10x32xf32> to vector<10xf32>
    %298 = vector.shape_cast %297 : vector<10xf32> to vector<10x1xf32>
    %cst_151 = arith.constant 3.200000e+01 : f32
    %299 = vector.broadcast %cst_151 : f32 to vector<10x1xf32>
    %300 = arith.divf %298, %299 : vector<10x1xf32>
    %301 = vector.broadcast %300 : vector<10x1xf32> to vector<10x32xf32>
    %302 = arith.subf %280, %301 : vector<10x32xf32>
    %303 = arith.mulf %302, %302 : vector<10x32xf32>
    %cst_152 = arith.constant dense<0.000000e+00> : vector<10xf32>
    %304 = vector.multi_reduction <add>, %303, %cst_152 [1] : vector<10x32xf32> to vector<10xf32>
    %305 = vector.shape_cast %304 : vector<10xf32> to vector<10x1xf32>
    %cst_153 = arith.constant 3.200000e+01 : f32
    %306 = vector.broadcast %cst_153 : f32 to vector<10x1xf32>
    %307 = arith.divf %305, %306 : vector<10x1xf32>
    %308 = vector.broadcast %300 : vector<10x1xf32> to vector<10x32xf32>
    %309 = arith.subf %280, %308 : vector<10x32xf32>
    %cst_154 = arith.constant 9.99999974E-6 : f32
    %310 = vector.broadcast %cst_154 : f32 to vector<10x1xf32>
    %311 = arith.addf %307, %310 : vector<10x1xf32>
    %312 = math.rsqrt %311 : vector<10x1xf32>
    %313 = vector.broadcast %312 : vector<10x1xf32> to vector<10x32xf32>
    %314 = arith.mulf %309, %313 : vector<10x32xf32>
    %315 = vector.broadcast %281 : vector<1x32xf32> to vector<10x32xf32>
    %316 = arith.mulf %314, %315 : vector<10x32xf32>
    %317 = vector.broadcast %282 : vector<1x32xf32> to vector<10x32xf32>
    %318 = arith.addf %316, %317 : vector<10x32xf32>
    %cst_155 = arith.constant dense<0.000000e+00> : vector<10x96xf32>
    %319 = tpu.matmul %318, %284, %cst_155 {dimension_numbers = #tpu.dot_dimension_numbers<[1], [0], [0], [1], [0, 0, 1, 1], [], []>} : vector<10x32xf32>, vector<32x96xf32>, vector<10x96xf32> -> vector<10x96xf32>
    %320 = vector.broadcast %285 : vector<1x96xf32> to vector<10x96xf32>
    %321 = arith.addf %319, %320 : vector<10x96xf32>
    %322 = vector.extract_strided_slice %321 {offsets = [0, 0], sizes = [10, 32], strides = [1, 1]} : vector<10x96xf32> to vector<10x32xf32>
    %323 = vector.extract_strided_slice %321 {offsets = [0, 32], sizes = [10, 32], strides = [1, 1]} : vector<10x96xf32> to vector<10x32xf32>
    %324 = vector.extract_strided_slice %321 {offsets = [0, 64], sizes = [10, 32], strides = [1, 1]} : vector<10x96xf32> to vector<10x32xf32>
    %325 = vector.extract_strided_slice %322 {offsets = [0, 0], sizes = [5, 32], strides = [1, 1]} : vector<10x32xf32> to vector<5x32xf32>
    %326 = vector.extract_strided_slice %323 {offsets = [0, 0], sizes = [5, 32], strides = [1, 1]} : vector<10x32xf32> to vector<5x32xf32>
    %327 = vector.extract_strided_slice %324 {offsets = [0, 0], sizes = [5, 32], strides = [1, 1]} : vector<10x32xf32> to vector<5x32xf32>
    %328 = vector.extract_strided_slice %325 {offsets = [0, 0], sizes = [5, 8], strides = [1, 1]} : vector<5x32xf32> to vector<5x8xf32>
    %329 = vector.extract_strided_slice %326 {offsets = [0, 0], sizes = [5, 8], strides = [1, 1]} : vector<5x32xf32> to vector<5x8xf32>
    %cst_156 = arith.constant dense<0.000000e+00> : vector<5x5xf32>
    %330 = tpu.matmul %328, %329, %cst_156 {dimension_numbers = #tpu.dot_dimension_numbers<[1], [1], [0], [0], [0, 0, 1, 0], [], []>} : vector<5x8xf32>, vector<5x8xf32>, vector<5x5xf32> -> vector<5x5xf32>
    %cst_157 = arith.constant 0.353553385 : f32
    %331 = vector.broadcast %cst_157 : f32 to vector<5x5xf32>
    %332 = arith.mulf %330, %331 : vector<5x5xf32>
    %cst_158 = arith.constant dense<0xFF800000> : vector<5xf32>
    %333 = vector.multi_reduction <maximumf>, %332, %cst_158 [1] : vector<5x5xf32> to vector<5xf32>
    %334 = vector.shape_cast %333 : vector<5xf32> to vector<5x1xf32>
    %335 = vector.broadcast %334 : vector<5x1xf32> to vector<5x5xf32>
    %336 = arith.subf %332, %335 : vector<5x5xf32>
    %337 = math.exp %336 : vector<5x5xf32>
    %cst_159 = arith.constant dense<0.000000e+00> : vector<5xf32>
    %338 = vector.multi_reduction <add>, %337, %cst_159 [1] : vector<5x5xf32> to vector<5xf32>
    %339 = vector.shape_cast %338 : vector<5xf32> to vector<5x1xf32>
    %340 = vector.broadcast %339 : vector<5x1xf32> to vector<5x5xf32>
    %341 = arith.divf %337, %340 : vector<5x5xf32>
    %342 = vector.extract_strided_slice %327 {offsets = [0, 0], sizes = [5, 8], strides = [1, 1]} : vector<5x32xf32> to vector<5x8xf32>
    %cst_160 = arith.constant dense<0.000000e+00> : vector<5x8xf32>
    %343 = tpu.matmul %341, %342, %cst_160 {dimension_numbers = #tpu.dot_dimension_numbers<[1], [0], [0], [1], [0, 0, 1, 1], [], []>} : vector<5x5xf32>, vector<5x8xf32>, vector<5x8xf32> -> vector<5x8xf32>
    %344 = vector.extract_strided_slice %287 {offsets = [0, 0], sizes = [8, 32], strides = [1, 1]} : vector<32x32xf32> to vector<8x32xf32>
    %cst_161 = arith.constant dense<0.000000e+00> : vector<5x32xf32>
    %345 = tpu.matmul %343, %344, %cst_161 {dimension_numbers = #tpu.dot_dimension_numbers<[1], [0], [0], [1], [0, 0, 1, 1], [], []>} : vector<5x8xf32>, vector<8x32xf32>, vector<5x32xf32> -> vector<5x32xf32>
    %346 = vector.extract_strided_slice %325 {offsets = [0, 8], sizes = [5, 8], strides = [1, 1]} : vector<5x32xf32> to vector<5x8xf32>
    %347 = vector.extract_strided_slice %326 {offsets = [0, 8], sizes = [5, 8], strides = [1, 1]} : vector<5x32xf32> to vector<5x8xf32>
    %cst_162 = arith.constant dense<0.000000e+00> : vector<5x5xf32>
    %348 = tpu.matmul %346, %347, %cst_162 {dimension_numbers = #tpu.dot_dimension_numbers<[1], [1], [0], [0], [0, 0, 1, 0], [], []>} : vector<5x8xf32>, vector<5x8xf32>, vector<5x5xf32> -> vector<5x5xf32>
    %cst_163 = arith.constant 0.353553385 : f32
    %349 = vector.broadcast %cst_163 : f32 to vector<5x5xf32>
    %350 = arith.mulf %348, %349 : vector<5x5xf32>
    %cst_164 = arith.constant dense<0xFF800000> : vector<5xf32>
    %351 = vector.multi_reduction <maximumf>, %350, %cst_164 [1] : vector<5x5xf32> to vector<5xf32>
    %352 = vector.shape_cast %351 : vector<5xf32> to vector<5x1xf32>
    %353 = vector.broadcast %352 : vector<5x1xf32> to vector<5x5xf32>
    %354 = arith.subf %350, %353 : vector<5x5xf32>
    %355 = math.exp %354 : vector<5x5xf32>
    %cst_165 = arith.constant dense<0.000000e+00> : vector<5xf32>
    %356 = vector.multi_reduction <add>, %355, %cst_165 [1] : vector<5x5xf32> to vector<5xf32>
    %357 = vector.shape_cast %356 : vector<5xf32> to vector<5x1xf32>
    %358 = vector.broadcast %357 : vector<5x1xf32> to vector<5x5xf32>
    %359 = arith.divf %355, %358 : vector<5x5xf32>
    %360 = vector.extract_strided_slice %327 {offsets = [0, 8], sizes = [5, 8], strides = [1, 1]} : vector<5x32xf32> to vector<5x8xf32>
    %cst_166 = arith.constant dense<0.000000e+00> : vector<5x8xf32>
    %361 = tpu.matmul %359, %360, %cst_166 {dimension_numbers = #tpu.dot_dimension_numbers<[1], [0], [0], [1], [0, 0, 1, 1], [], []>} : vector<5x5xf32>, vector<5x8xf32>, vector<5x8xf32> -> vector<5x8xf32>
    %362 = vector.extract_strided_slice %287 {offsets = [8, 0], sizes = [8, 32], strides = [1, 1]} : vector<32x32xf32> to vector<8x32xf32>
    %cst_167 = arith.constant dense<0.000000e+00> : vector<5x32xf32>
    %363 = tpu.matmul %361, %362, %cst_167 {dimension_numbers = #tpu.dot_dimension_numbers<[1], [0], [0], [1], [0, 0, 1, 1], [], []>} : vector<5x8xf32>, vector<8x32xf32>, vector<5x32xf32> -> vector<5x32xf32>
    %364 = arith.addf %345, %363 : vector<5x32xf32>
    %365 = vector.extract_strided_slice %325 {offsets = [0, 16], sizes = [5, 8], strides = [1, 1]} : vector<5x32xf32> to vector<5x8xf32>
    %366 = vector.extract_strided_slice %326 {offsets = [0, 16], sizes = [5, 8], strides = [1, 1]} : vector<5x32xf32> to vector<5x8xf32>
    %cst_168 = arith.constant dense<0.000000e+00> : vector<5x5xf32>
    %367 = tpu.matmul %365, %366, %cst_168 {dimension_numbers = #tpu.dot_dimension_numbers<[1], [1], [0], [0], [0, 0, 1, 0], [], []>} : vector<5x8xf32>, vector<5x8xf32>, vector<5x5xf32> -> vector<5x5xf32>
    %cst_169 = arith.constant 0.353553385 : f32
    %368 = vector.broadcast %cst_169 : f32 to vector<5x5xf32>
    %369 = arith.mulf %367, %368 : vector<5x5xf32>
    %cst_170 = arith.constant dense<0xFF800000> : vector<5xf32>
    %370 = vector.multi_reduction <maximumf>, %369, %cst_170 [1] : vector<5x5xf32> to vector<5xf32>
    %371 = vector.shape_cast %370 : vector<5xf32> to vector<5x1xf32>
    %372 = vector.broadcast %371 : vector<5x1xf32> to vector<5x5xf32>
    %373 = arith.subf %369, %372 : vector<5x5xf32>
    %374 = math.exp %373 : vector<5x5xf32>
    %cst_171 = arith.constant dense<0.000000e+00> : vector<5xf32>
    %375 = vector.multi_reduction <add>, %374, %cst_171 [1] : vector<5x5xf32> to vector<5xf32>
    %376 = vector.shape_cast %375 : vector<5xf32> to vector<5x1xf32>
    %377 = vector.broadcast %376 : vector<5x1xf32> to vector<5x5xf32>
    %378 = arith.divf %374, %377 : vector<5x5xf32>
    %379 = vector.extract_strided_slice %327 {offsets = [0, 16], sizes = [5, 8], strides = [1, 1]} : vector<5x32xf32> to vector<5x8xf32>
    %cst_172 = arith.constant dense<0.000000e+00> : vector<5x8xf32>
    %380 = tpu.matmul %378, %379, %cst_172 {dimension_numbers = #tpu.dot_dimension_numbers<[1], [0], [0], [1], [0, 0, 1, 1], [], []>} : vector<5x5xf32>, vector<5x8xf32>, vector<5x8xf32> -> vector<5x8xf32>
    %381 = vector.extract_strided_slice %287 {offsets = [16, 0], sizes = [8, 32], strides = [1, 1]} : vector<32x32xf32> to vector<8x32xf32>
    %cst_173 = arith.constant dense<0.000000e+00> : vector<5x32xf32>
    %382 = tpu.matmul %380, %381, %cst_173 {dimension_numbers = #tpu.dot_dimension_numbers<[1], [0], [0], [1], [0, 0, 1, 1], [], []>} : vector<5x8xf32>, vector<8x32xf32>, vector<5x32xf32> -> vector<5x32xf32>
    %383 = arith.addf %364, %382 : vector<5x32xf32>
    %384 = vector.extract_strided_slice %325 {offsets = [0, 24], sizes = [5, 8], strides = [1, 1]} : vector<5x32xf32> to vector<5x8xf32>
    %385 = vector.extract_strided_slice %326 {offsets = [0, 24], sizes = [5, 8], strides = [1, 1]} : vector<5x32xf32> to vector<5x8xf32>
    %cst_174 = arith.constant dense<0.000000e+00> : vector<5x5xf32>
    %386 = tpu.matmul %384, %385, %cst_174 {dimension_numbers = #tpu.dot_dimension_numbers<[1], [1], [0], [0], [0, 0, 1, 0], [], []>} : vector<5x8xf32>, vector<5x8xf32>, vector<5x5xf32> -> vector<5x5xf32>
    %cst_175 = arith.constant 0.353553385 : f32
    %387 = vector.broadcast %cst_175 : f32 to vector<5x5xf32>
    %388 = arith.mulf %386, %387 : vector<5x5xf32>
    %cst_176 = arith.constant dense<0xFF800000> : vector<5xf32>
    %389 = vector.multi_reduction <maximumf>, %388, %cst_176 [1] : vector<5x5xf32> to vector<5xf32>
    %390 = vector.shape_cast %389 : vector<5xf32> to vector<5x1xf32>
    %391 = vector.broadcast %390 : vector<5x1xf32> to vector<5x5xf32>
    %392 = arith.subf %388, %391 : vector<5x5xf32>
    %393 = math.exp %392 : vector<5x5xf32>
    %cst_177 = arith.constant dense<0.000000e+00> : vector<5xf32>
    %394 = vector.multi_reduction <add>, %393, %cst_177 [1] : vector<5x5xf32> to vector<5xf32>
    %395 = vector.shape_cast %394 : vector<5xf32> to vector<5x1xf32>
    %396 = vector.broadcast %395 : vector<5x1xf32> to vector<5x5xf32>
    %397 = arith.divf %393, %396 : vector<5x5xf32>
    %398 = vector.extract_strided_slice %327 {offsets = [0, 24], sizes = [5, 8], strides = [1, 1]} : vector<5x32xf32> to vector<5x8xf32>
    %cst_178 = arith.constant dense<0.000000e+00> : vector<5x8xf32>
    %399 = tpu.matmul %397, %398, %cst_178 {dimension_numbers = #tpu.dot_dimension_numbers<[1], [0], [0], [1], [0, 0, 1, 1], [], []>} : vector<5x5xf32>, vector<5x8xf32>, vector<5x8xf32> -> vector<5x8xf32>
    %400 = vector.extract_strided_slice %287 {offsets = [24, 0], sizes = [8, 32], strides = [1, 1]} : vector<32x32xf32> to vector<8x32xf32>
    %cst_179 = arith.constant dense<0.000000e+00> : vector<5x32xf32>
    %401 = tpu.matmul %399, %400, %cst_179 {dimension_numbers = #tpu.dot_dimension_numbers<[1], [0], [0], [1], [0, 0, 1, 1], [], []>} : vector<5x8xf32>, vector<8x32xf32>, vector<5x32xf32> -> vector<5x32xf32>
    %402 = arith.addf %383, %401 : vector<5x32xf32>
    %c0_180 = arith.constant 0 : index
    %c0_181 = arith.constant 0 : index
    %403 = vector.load %arg23[%c0_180, %c0_181] : memref<10x32xf32, #tpu.memory_space<vmem>>, vector<5x32xf32>
    tpu.vector_store %arg23[%c0_180, %c0_181], %402 {strides = array<i32>} : memref<10x32xf32, #tpu.memory_space<vmem>>, vector<5x32xf32>,
    %404 = vector.extract_strided_slice %322 {offsets = [5, 0], sizes = [5, 32], strides = [1, 1]} : vector<10x32xf32> to vector<5x32xf32>
    %405 = vector.extract_strided_slice %323 {offsets = [5, 0], sizes = [5, 32], strides = [1, 1]} : vector<10x32xf32> to vector<5x32xf32>
    %406 = vector.extract_strided_slice %324 {offsets = [5, 0], sizes = [5, 32], strides = [1, 1]} : vector<10x32xf32> to vector<5x32xf32>
    %407 = vector.extract_strided_slice %404 {offsets = [0, 0], sizes = [5, 8], strides = [1, 1]} : vector<5x32xf32> to vector<5x8xf32>
    %408 = vector.extract_strided_slice %405 {offsets = [0, 0], sizes = [5, 8], strides = [1, 1]} : vector<5x32xf32> to vector<5x8xf32>
    %cst_182 = arith.constant dense<0.000000e+00> : vector<5x5xf32>
    %409 = tpu.matmul %407, %408, %cst_182 {dimension_numbers = #tpu.dot_dimension_numbers<[1], [1], [0], [0], [0, 0, 1, 0], [], []>} : vector<5x8xf32>, vector<5x8xf32>, vector<5x5xf32> -> vector<5x5xf32>
    %cst_183 = arith.constant 0.353553385 : f32
    %410 = vector.broadcast %cst_183 : f32 to vector<5x5xf32>
    %411 = arith.mulf %409, %410 : vector<5x5xf32>
    %cst_184 = arith.constant dense<0xFF800000> : vector<5xf32>
    %412 = vector.multi_reduction <maximumf>, %411, %cst_184 [1] : vector<5x5xf32> to vector<5xf32>
    %413 = vector.shape_cast %412 : vector<5xf32> to vector<5x1xf32>
    %414 = vector.broadcast %413 : vector<5x1xf32> to vector<5x5xf32>
    %415 = arith.subf %411, %414 : vector<5x5xf32>
    %416 = math.exp %415 : vector<5x5xf32>
    %cst_185 = arith.constant dense<0.000000e+00> : vector<5xf32>
    %417 = vector.multi_reduction <add>, %416, %cst_185 [1] : vector<5x5xf32> to vector<5xf32>
    %418 = vector.shape_cast %417 : vector<5xf32> to vector<5x1xf32>
    %419 = vector.broadcast %418 : vector<5x1xf32> to vector<5x5xf32>
    %420 = arith.divf %416, %419 : vector<5x5xf32>
    %421 = vector.extract_strided_slice %406 {offsets = [0, 0], sizes = [5, 8], strides = [1, 1]} : vector<5x32xf32> to vector<5x8xf32>
    %cst_186 = arith.constant dense<0.000000e+00> : vector<5x8xf32>
    %422 = tpu.matmul %420, %421, %cst_186 {dimension_numbers = #tpu.dot_dimension_numbers<[1], [0], [0], [1], [0, 0, 1, 1], [], []>} : vector<5x5xf32>, vector<5x8xf32>, vector<5x8xf32> -> vector<5x8xf32>
    %423 = vector.extract_strided_slice %287 {offsets = [0, 0], sizes = [8, 32], strides = [1, 1]} : vector<32x32xf32> to vector<8x32xf32>
    %cst_187 = arith.constant dense<0.000000e+00> : vector<5x32xf32>
    %424 = tpu.matmul %422, %423, %cst_187 {dimension_numbers = #tpu.dot_dimension_numbers<[1], [0], [0], [1], [0, 0, 1, 1], [], []>} : vector<5x8xf32>, vector<8x32xf32>, vector<5x32xf32> -> vector<5x32xf32>
    %425 = vector.extract_strided_slice %404 {offsets = [0, 8], sizes = [5, 8], strides = [1, 1]} : vector<5x32xf32> to vector<5x8xf32>
    %426 = vector.extract_strided_slice %405 {offsets = [0, 8], sizes = [5, 8], strides = [1, 1]} : vector<5x32xf32> to vector<5x8xf32>
    %cst_188 = arith.constant dense<0.000000e+00> : vector<5x5xf32>
    %427 = tpu.matmul %425, %426, %cst_188 {dimension_numbers = #tpu.dot_dimension_numbers<[1], [1], [0], [0], [0, 0, 1, 0], [], []>} : vector<5x8xf32>, vector<5x8xf32>, vector<5x5xf32> -> vector<5x5xf32>
    %cst_189 = arith.constant 0.353553385 : f32
    %428 = vector.broadcast %cst_189 : f32 to vector<5x5xf32>
    %429 = arith.mulf %427, %428 : vector<5x5xf32>
    %cst_190 = arith.constant dense<0xFF800000> : vector<5xf32>
    %430 = vector.multi_reduction <maximumf>, %429, %cst_190 [1] : vector<5x5xf32> to vector<5xf32>
    %431 = vector.shape_cast %430 : vector<5xf32> to vector<5x1xf32>
    %432 = vector.broadcast %431 : vector<5x1xf32> to vector<5x5xf32>
    %433 = arith.subf %429, %432 : vector<5x5xf32>
    %434 = math.exp %433 : vector<5x5xf32>
    %cst_191 = arith.constant dense<0.000000e+00> : vector<5xf32>
    %435 = vector.multi_reduction <add>, %434, %cst_191 [1] : vector<5x5xf32> to vector<5xf32>
    %436 = vector.shape_cast %435 : vector<5xf32> to vector<5x1xf32>
    %437 = vector.broadcast %436 : vector<5x1xf32> to vector<5x5xf32>
    %438 = arith.divf %434, %437 : vector<5x5xf32>
    %439 = vector.extract_strided_slice %406 {offsets = [0, 8], sizes = [5, 8], strides = [1, 1]} : vector<5x32xf32> to vector<5x8xf32>
    %cst_192 = arith.constant dense<0.000000e+00> : vector<5x8xf32>
    %440 = tpu.matmul %438, %439, %cst_192 {dimension_numbers = #tpu.dot_dimension_numbers<[1], [0], [0], [1], [0, 0, 1, 1], [], []>} : vector<5x5xf32>, vector<5x8xf32>, vector<5x8xf32> -> vector<5x8xf32>
    %441 = vector.extract_strided_slice %287 {offsets = [8, 0], sizes = [8, 32], strides = [1, 1]} : vector<32x32xf32> to vector<8x32xf32>
    %cst_193 = arith.constant dense<0.000000e+00> : vector<5x32xf32>
    %442 = tpu.matmul %440, %441, %cst_193 {dimension_numbers = #tpu.dot_dimension_numbers<[1], [0], [0], [1], [0, 0, 1, 1], [], []>} : vector<5x8xf32>, vector<8x32xf32>, vector<5x32xf32> -> vector<5x32xf32>
    %443 = arith.addf %424, %442 : vector<5x32xf32>
    %444 = vector.extract_strided_slice %404 {offsets = [0, 16], sizes = [5, 8], strides = [1, 1]} : vector<5x32xf32> to vector<5x8xf32>
    %445 = vector.extract_strided_slice %405 {offsets = [0, 16], sizes = [5, 8], strides = [1, 1]} : vector<5x32xf32> to vector<5x8xf32>
    %cst_194 = arith.constant dense<0.000000e+00> : vector<5x5xf32>
    %446 = tpu.matmul %444, %445, %cst_194 {dimension_numbers = #tpu.dot_dimension_numbers<[1], [1], [0], [0], [0, 0, 1, 0], [], []>} : vector<5x8xf32>, vector<5x8xf32>, vector<5x5xf32> -> vector<5x5xf32>
    %cst_195 = arith.constant 0.353553385 : f32
    %447 = vector.broadcast %cst_195 : f32 to vector<5x5xf32>
    %448 = arith.mulf %446, %447 : vector<5x5xf32>
    %cst_196 = arith.constant dense<0xFF800000> : vector<5xf32>
    %449 = vector.multi_reduction <maximumf>, %448, %cst_196 [1] : vector<5x5xf32> to vector<5xf32>
    %450 = vector.shape_cast %449 : vector<5xf32> to vector<5x1xf32>
    %451 = vector.broadcast %450 : vector<5x1xf32> to vector<5x5xf32>
    %452 = arith.subf %448, %451 : vector<5x5xf32>
    %453 = math.exp %452 : vector<5x5xf32>
    %cst_197 = arith.constant dense<0.000000e+00> : vector<5xf32>
    %454 = vector.multi_reduction <add>, %453, %cst_197 [1] : vector<5x5xf32> to vector<5xf32>
    %455 = vector.shape_cast %454 : vector<5xf32> to vector<5x1xf32>
    %456 = vector.broadcast %455 : vector<5x1xf32> to vector<5x5xf32>
    %457 = arith.divf %453, %456 : vector<5x5xf32>
    %458 = vector.extract_strided_slice %406 {offsets = [0, 16], sizes = [5, 8], strides = [1, 1]} : vector<5x32xf32> to vector<5x8xf32>
    %cst_198 = arith.constant dense<0.000000e+00> : vector<5x8xf32>
    %459 = tpu.matmul %457, %458, %cst_198 {dimension_numbers = #tpu.dot_dimension_numbers<[1], [0], [0], [1], [0, 0, 1, 1], [], []>} : vector<5x5xf32>, vector<5x8xf32>, vector<5x8xf32> -> vector<5x8xf32>
    %460 = vector.extract_strided_slice %287 {offsets = [16, 0], sizes = [8, 32], strides = [1, 1]} : vector<32x32xf32> to vector<8x32xf32>
    %cst_199 = arith.constant dense<0.000000e+00> : vector<5x32xf32>
    %461 = tpu.matmul %459, %460, %cst_199 {dimension_numbers = #tpu.dot_dimension_numbers<[1], [0], [0], [1], [0, 0, 1, 1], [], []>} : vector<5x8xf32>, vector<8x32xf32>, vector<5x32xf32> -> vector<5x32xf32>
    %462 = arith.addf %443, %461 : vector<5x32xf32>
    %463 = vector.extract_strided_slice %404 {offsets = [0, 24], sizes = [5, 8], strides = [1, 1]} : vector<5x32xf32> to vector<5x8xf32>
    %464 = vector.extract_strided_slice %405 {offsets = [0, 24], sizes = [5, 8], strides = [1, 1]} : vector<5x32xf32> to vector<5x8xf32>
    %cst_200 = arith.constant dense<0.000000e+00> : vector<5x5xf32>
    %465 = tpu.matmul %463, %464, %cst_200 {dimension_numbers = #tpu.dot_dimension_numbers<[1], [1], [0], [0], [0, 0, 1, 0], [], []>} : vector<5x8xf32>, vector<5x8xf32>, vector<5x5xf32> -> vector<5x5xf32>
    %cst_201 = arith.constant 0.353553385 : f32
    %466 = vector.broadcast %cst_201 : f32 to vector<5x5xf32>
    %467 = arith.mulf %465, %466 : vector<5x5xf32>
    %cst_202 = arith.constant dense<0xFF800000> : vector<5xf32>
    %468 = vector.multi_reduction <maximumf>, %467, %cst_202 [1] : vector<5x5xf32> to vector<5xf32>
    %469 = vector.shape_cast %468 : vector<5xf32> to vector<5x1xf32>
    %470 = vector.broadcast %469 : vector<5x1xf32> to vector<5x5xf32>
    %471 = arith.subf %467, %470 : vector<5x5xf32>
    %472 = math.exp %471 : vector<5x5xf32>
    %cst_203 = arith.constant dense<0.000000e+00> : vector<5xf32>
    %473 = vector.multi_reduction <add>, %472, %cst_203 [1] : vector<5x5xf32> to vector<5xf32>
    %474 = vector.shape_cast %473 : vector<5xf32> to vector<5x1xf32>
    %475 = vector.broadcast %474 : vector<5x1xf32> to vector<5x5xf32>
    %476 = arith.divf %472, %475 : vector<5x5xf32>
    %477 = vector.extract_strided_slice %406 {offsets = [0, 24], sizes = [5, 8], strides = [1, 1]} : vector<5x32xf32> to vector<5x8xf32>
    %cst_204 = arith.constant dense<0.000000e+00> : vector<5x8xf32>
    %478 = tpu.matmul %476, %477, %cst_204 {dimension_numbers = #tpu.dot_dimension_numbers<[1], [0], [0], [1], [0, 0, 1, 1], [], []>} : vector<5x5xf32>, vector<5x8xf32>, vector<5x8xf32> -> vector<5x8xf32>
    %479 = vector.extract_strided_slice %287 {offsets = [24, 0], sizes = [8, 32], strides = [1, 1]} : vector<32x32xf32> to vector<8x32xf32>
    %cst_205 = arith.constant dense<0.000000e+00> : vector<5x32xf32>
    %480 = tpu.matmul %478, %479, %cst_205 {dimension_numbers = #tpu.dot_dimension_numbers<[1], [0], [0], [1], [0, 0, 1, 1], [], []>} : vector<5x8xf32>, vector<8x32xf32>, vector<5x32xf32> -> vector<5x32xf32>
    %481 = arith.addf %462, %480 : vector<5x32xf32>
    %c5_206 = arith.constant 5 : index
    %c0_207 = arith.constant 0 : index
    %482 = vector.load %arg23[%c5_206, %c0_207] : memref<10x32xf32, #tpu.memory_space<vmem>>, vector<5x32xf32>
    tpu.vector_store %arg23[%c5_206, %c0_207], %481 {strides = array<i32>} : memref<10x32xf32, #tpu.memory_space<vmem>>, vector<5x32xf32>,
    %c0_208 = arith.constant 0 : index
    %c0_209 = arith.constant 0 : index
    %483 = vector.load %arg23[%c0_208, %c0_209] : memref<10x32xf32, #tpu.memory_space<vmem>>, vector<10x32xf32>
    %484 = arith.addf %280, %483 : vector<10x32xf32>
    %485 = vector.broadcast %288 : vector<1x32xf32> to vector<10x32xf32>
    %486 = arith.addf %484, %485 : vector<10x32xf32>
    %cst_210 = arith.constant dense<0.000000e+00> : vector<10xf32>
    %487 = vector.multi_reduction <add>, %486, %cst_210 [1] : vector<10x32xf32> to vector<10xf32>
    %488 = vector.shape_cast %487 : vector<10xf32> to vector<10x1xf32>
    %cst_211 = arith.constant 3.200000e+01 : f32
    %489 = vector.broadcast %cst_211 : f32 to vector<10x1xf32>
    %490 = arith.divf %488, %489 : vector<10x1xf32>
    %491 = vector.broadcast %490 : vector<10x1xf32> to vector<10x32xf32>
    %492 = arith.subf %486, %491 : vector<10x32xf32>
    %493 = arith.mulf %492, %492 : vector<10x32xf32>
    %cst_212 = arith.constant dense<0.000000e+00> : vector<10xf32>
    %494 = vector.multi_reduction <add>, %493, %cst_212 [1] : vector<10x32xf32> to vector<10xf32>
    %495 = vector.shape_cast %494 : vector<10xf32> to vector<10x1xf32>
    %cst_213 = arith.constant 3.200000e+01 : f32
    %496 = vector.broadcast %cst_213 : f32 to vector<10x1xf32>
    %497 = arith.divf %495, %496 : vector<10x1xf32>
    %498 = vector.broadcast %490 : vector<10x1xf32> to vector<10x32xf32>
    %499 = arith.subf %486, %498 : vector<10x32xf32>
    %cst_214 = arith.constant 9.99999974E-6 : f32
    %500 = vector.broadcast %cst_214 : f32 to vector<10x1xf32>
    %501 = arith.addf %497, %500 : vector<10x1xf32>
    %502 = math.rsqrt %501 : vector<10x1xf32>
    %503 = vector.broadcast %502 : vector<10x1xf32> to vector<10x32xf32>
    %504 = arith.mulf %499, %503 : vector<10x32xf32>
    %505 = vector.broadcast %289 : vector<1x32xf32> to vector<10x32xf32>
    %506 = arith.mulf %504, %505 : vector<10x32xf32>
    %507 = vector.broadcast %290 : vector<1x32xf32> to vector<10x32xf32>
    %508 = arith.addf %506, %507 : vector<10x32xf32>
    %cst_215 = arith.constant dense<0.000000e+00> : vector<10x64xf32>
    %509 = tpu.matmul %508, %292, %cst_215 {dimension_numbers = #tpu.dot_dimension_numbers<[1], [0], [0], [1], [0, 0, 1, 1], [], []>} : vector<10x32xf32>, vector<32x64xf32>, vector<10x64xf32> -> vector<10x64xf32>
    %510 = vector.broadcast %293 : vector<1x64xf32> to vector<10x64xf32>
    %511 = arith.addf %509, %510 : vector<10x64xf32>
    %cst_216 = arith.constant 1.702000e+00 : f32
    %512 = vector.broadcast %cst_216 : f32 to vector<10x64xf32>
    %513 = arith.mulf %512, %511 : vector<10x64xf32>
    %514 = arith.negf %513 : vector<10x64xf32>
    %515 = math.exp %514 : vector<10x64xf32>
    %cst_217 = arith.constant 1.000000e+00 : f32
    %516 = vector.broadcast %cst_217 : f32 to vector<10x64xf32>
    %517 = arith.addf %516, %515 : vector<10x64xf32>
    %518 = arith.divf %516, %517 : vector<10x64xf32>
    %519 = arith.mulf %511, %518 : vector<10x64xf32>
    %cst_218 = arith.constant dense<0.000000e+00> : vector<10x32xf32>
    %520 = tpu.matmul %519, %295, %cst_218 {dimension_numbers = #tpu.dot_dimension_numbers<[1], [0], [0], [1], [0, 0, 1, 1], [], []>} : vector<10x64xf32>, vector<64x32xf32>, vector<10x32xf32> -> vector<10x32xf32>
    %521 = vector.broadcast %296 : vector<1x32xf32> to vector<10x32xf32>
    %522 = arith.addf %520, %521 : vector<10x32xf32>
    %523 = arith.addf %486, %522 : vector<10x32xf32>
    %524 = tpu.iota {dimensions = array<i32: 0>} : vector<2x10xi32>
    %525 = tpu.iota {dimensions = array<i32: 1>} : vector<2x10xi32>
    %c5_i32 = arith.constant 5 : i32
    %526 = vector.broadcast %c5_i32 : i32 to vector<2x10xi32>
    %527 = arith.muli %524, %526 : vector<2x10xi32>
    %528 = arith.cmpi eq, %525, %527 : vector<2x10xi32>
    %529 = arith.extui %528 : vector<2x10xi1> to vector<2x10xi32>
    %530 = arith.sitofp %529 : vector<2x10xi32> to vector<2x10xf32>
    %cst_219 = arith.constant dense<0.000000e+00> : vector<2x32xf32>
    %531 = tpu.matmul %530, %523, %cst_219 {dimension_numbers = #tpu.dot_dimension_numbers<[1], [0], [0], [1], [0, 0, 1, 1], [], []>} : vector<2x10xf32>, vector<10x32xf32>, vector<2x32xf32> -> vector<2x32xf32>
    %c0_220 = arith.constant 0 : index
    %c0_221 = arith.constant 0 : index
    %532 = vector.load %arg18[%c0_220, %c0_221] : memref<1x32xf32, #tpu.memory_space<vmem>>, vector<1x32xf32>
    %c0_222 = arith.constant 0 : index
    %c0_223 = arith.constant 0 : index
    %533 = vector.load %arg19[%c0_222, %c0_223] : memref<1x32xf32, #tpu.memory_space<vmem>>, vector<1x32xf32>
    %cst_224 = arith.constant dense<0.000000e+00> : vector<2xf32>
    %534 = vector.multi_reduction <add>, %531, %cst_224 [1] : vector<2x32xf32> to vector<2xf32>
    %535 = vector.shape_cast %534 : vector<2xf32> to vector<2x1xf32>
    %cst_225 = arith.constant 3.200000e+01 : f32
    %536 = vector.broadcast %cst_225 : f32 to vector<2x1xf32>
    %537 = arith.divf %535, %536 : vector<2x1xf32>
    %538 = vector.broadcast %537 : vector<2x1xf32> to vector<2x32xf32>
    %539 = arith.subf %531, %538 : vector<2x32xf32>
    %540 = arith.mulf %539, %539 : vector<2x32xf32>
    %cst_226 = arith.constant dense<0.000000e+00> : vector<2xf32>
    %541 = vector.multi_reduction <add>, %540, %cst_226 [1] : vector<2x32xf32> to vector<2xf32>
    %542 = vector.shape_cast %541 : vector<2xf32> to vector<2x1xf32>
    %cst_227 = arith.constant 3.200000e+01 : f32
    %543 = vector.broadcast %cst_227 : f32 to vector<2x1xf32>
    %544 = arith.divf %542, %543 : vector<2x1xf32>
    %545 = vector.broadcast %537 : vector<2x1xf32> to vector<2x32xf32>
    %546 = arith.subf %531, %545 : vector<2x32xf32>
    %cst_228 = arith.constant 9.99999974E-6 : f32
    %547 = vector.broadcast %cst_228 : f32 to vector<2x1xf32>
    %548 = arith.addf %544, %547 : vector<2x1xf32>
    %549 = math.rsqrt %548 : vector<2x1xf32>
    %550 = vector.broadcast %549 : vector<2x1xf32> to vector<2x32xf32>
    %551 = arith.mulf %546, %550 : vector<2x32xf32>
    %552 = vector.broadcast %532 : vector<1x32xf32> to vector<2x32xf32>
    %553 = arith.mulf %551, %552 : vector<2x32xf32>
    %554 = vector.broadcast %533 : vector<1x32xf32> to vector<2x32xf32>
    %555 = arith.addf %553, %554 : vector<2x32xf32>
    %c0_229 = arith.constant 0 : index
    %c0_230 = arith.constant 0 : index
    %556 = vector.load %arg20[%c0_229, %c0_230] : memref<32x16xf32, #tpu.memory_space<vmem>>, vector<32x16xf32>
    %cst_231 = arith.constant dense<0.000000e+00> : vector<2x16xf32>
    %557 = tpu.matmul %555, %556, %cst_231 {dimension_numbers = #tpu.dot_dimension_numbers<[1], [0], [0], [1], [0, 0, 1, 1], [], []>} : vector<2x32xf32>, vector<32x16xf32>, vector<2x16xf32> -> vector<2x16xf32>
    %558 = arith.mulf %557, %557 : vector<2x16xf32>
    %cst_232 = arith.constant dense<0.000000e+00> : vector<2xf32>
    %559 = vector.multi_reduction <add>, %558, %cst_232 [1] : vector<2x16xf32> to vector<2xf32>
    %560 = vector.shape_cast %559 : vector<2xf32> to vector<2x1xf32>
    %cst_233 = arith.constant 9.99999996E-13 : f32
    %561 = vector.broadcast %cst_233 : f32 to vector<2x1xf32>
    %562 = arith.addf %560, %561 : vector<2x1xf32>
    %563 = math.rsqrt %562 : vector<2x1xf32>
    %564 = vector.broadcast %563 : vector<2x1xf32> to vector<2x16xf32>
    %565 = arith.mulf %557, %564 : vector<2x16xf32>
    %c0_234 = arith.constant 0 : index
    %c0_235 = arith.constant 0 : index
    %566 = vector.load %arg21[%c0_234, %c0_235] : memref<2x16xf32, #tpu.memory_space<vmem>>, vector<2x16xf32>
    tpu.vector_store %arg21[%c0_234, %c0_235], %565 {strides = array<i32>} : memref<2x16xf32, #tpu.memory_space<vmem>>, vector<2x16xf32>,
    return
  }
}

module attributes {stable_mosaic.version = 11 : i64} {
  func.func @_text_tower_kernel(%arg0: memref<16x32xf32, #tpu.memory_space<vmem>>, %arg1: memref<2x16xf32, #tpu.memory_space<vmem>>, %arg2: memref<2x32xf32, #tpu.memory_space<vmem>>, %arg3: memref<2x32xf32, #tpu.memory_space<vmem>>, %arg4: memref<2x32x96xf32, #tpu.memory_space<vmem>>, %arg5: memref<2x96xf32, #tpu.memory_space<vmem>>, %arg6: memref<2x32x32xf32, #tpu.memory_space<vmem>>, %arg7: memref<2x32xf32, #tpu.memory_space<vmem>>, %arg8: memref<2x32xf32, #tpu.memory_space<vmem>>, %arg9: memref<2x32xf32, #tpu.memory_space<vmem>>, %arg10: memref<2x32x64xf32, #tpu.memory_space<vmem>>, %arg11: memref<2x64xf32, #tpu.memory_space<vmem>>, %arg12: memref<2x64x32xf32, #tpu.memory_space<vmem>>, %arg13: memref<2x32xf32, #tpu.memory_space<vmem>>, %arg14: memref<1x32xf32, #tpu.memory_space<vmem>>, %arg15: memref<1x32xf32, #tpu.memory_space<vmem>>, %arg16: memref<32x16xf32, #tpu.memory_space<vmem>>, %arg17: memref<2x16xf32, #tpu.memory_space<vmem>>, %arg18: memref<16x32xf32, #tpu.memory_space<vmem>>) attributes {dimension_semantics = [], scalar_prefetch = 0 : i64, scratch_operands = 1 : i64, tpu.core_type = #tpu.core_type<tc>} {
    %c0 = arith.constant 0 : index
    %c0_0 = arith.constant 0 : index
    %0 = vector.load %arg0[%c0, %c0_0] : memref<16x32xf32, #tpu.memory_space<vmem>>, vector<16x32xf32>
    %c0_1 = arith.constant 0 : index
    %c0_2 = arith.constant 0 : index
    %1 = vector.load %arg2[%c0_1, %c0_2] : memref<2x32xf32, #tpu.memory_space<vmem>>, vector<1x32xf32>
    %c0_3 = arith.constant 0 : index
    %c0_4 = arith.constant 0 : index
    %2 = vector.load %arg3[%c0_3, %c0_4] : memref<2x32xf32, #tpu.memory_space<vmem>>, vector<1x32xf32>
    %c0_5 = arith.constant 0 : index
    %c0_6 = arith.constant 0 : index
    %c0_7 = arith.constant 0 : index
    %3 = vector.load %arg4[%c0_5, %c0_6, %c0_7] : memref<2x32x96xf32, #tpu.memory_space<vmem>>, vector<1x32x96xf32>
    %4 = vector.shape_cast %3 : vector<1x32x96xf32> to vector<32x96xf32>
    %c0_8 = arith.constant 0 : index
    %c0_9 = arith.constant 0 : index
    %5 = vector.load %arg5[%c0_8, %c0_9] : memref<2x96xf32, #tpu.memory_space<vmem>>, vector<1x96xf32>
    %c0_10 = arith.constant 0 : index
    %c0_11 = arith.constant 0 : index
    %c0_12 = arith.constant 0 : index
    %6 = vector.load %arg6[%c0_10, %c0_11, %c0_12] : memref<2x32x32xf32, #tpu.memory_space<vmem>>, vector<1x32x32xf32>
    %7 = vector.shape_cast %6 : vector<1x32x32xf32> to vector<32x32xf32>
    %c0_13 = arith.constant 0 : index
    %c0_14 = arith.constant 0 : index
    %8 = vector.load %arg7[%c0_13, %c0_14] : memref<2x32xf32, #tpu.memory_space<vmem>>, vector<1x32xf32>
    %c0_15 = arith.constant 0 : index
    %c0_16 = arith.constant 0 : index
    %9 = vector.load %arg8[%c0_15, %c0_16] : memref<2x32xf32, #tpu.memory_space<vmem>>, vector<1x32xf32>
    %c0_17 = arith.constant 0 : index
    %c0_18 = arith.constant 0 : index
    %10 = vector.load %arg9[%c0_17, %c0_18] : memref<2x32xf32, #tpu.memory_space<vmem>>, vector<1x32xf32>
    %c0_19 = arith.constant 0 : index
    %c0_20 = arith.constant 0 : index
    %c0_21 = arith.constant 0 : index
    %11 = vector.load %arg10[%c0_19, %c0_20, %c0_21] : memref<2x32x64xf32, #tpu.memory_space<vmem>>, vector<1x32x64xf32>
    %12 = vector.shape_cast %11 : vector<1x32x64xf32> to vector<32x64xf32>
    %c0_22 = arith.constant 0 : index
    %c0_23 = arith.constant 0 : index
    %13 = vector.load %arg11[%c0_22, %c0_23] : memref<2x64xf32, #tpu.memory_space<vmem>>, vector<1x64xf32>
    %c0_24 = arith.constant 0 : index
    %c0_25 = arith.constant 0 : index
    %c0_26 = arith.constant 0 : index
    %14 = vector.load %arg12[%c0_24, %c0_25, %c0_26] : memref<2x64x32xf32, #tpu.memory_space<vmem>>, vector<1x64x32xf32>
    %15 = vector.shape_cast %14 : vector<1x64x32xf32> to vector<64x32xf32>
    %c0_27 = arith.constant 0 : index
    %c0_28 = arith.constant 0 : index
    %16 = vector.load %arg13[%c0_27, %c0_28] : memref<2x32xf32, #tpu.memory_space<vmem>>, vector<1x32xf32>
    %cst = arith.constant dense<0.000000e+00> : vector<16xf32>
    %17 = vector.multi_reduction <add>, %0, %cst [1] : vector<16x32xf32> to vector<16xf32>
    %18 = vector.shape_cast %17 : vector<16xf32> to vector<16x1xf32>
    %cst_29 = arith.constant 3.200000e+01 : f32
    %19 = vector.broadcast %cst_29 : f32 to vector<16x1xf32>
    %20 = arith.divf %18, %19 : vector<16x1xf32>
    %21 = vector.broadcast %20 : vector<16x1xf32> to vector<16x32xf32>
    %22 = arith.subf %0, %21 : vector<16x32xf32>
    %23 = arith.mulf %22, %22 : vector<16x32xf32>
    %cst_30 = arith.constant dense<0.000000e+00> : vector<16xf32>
    %24 = vector.multi_reduction <add>, %23, %cst_30 [1] : vector<16x32xf32> to vector<16xf32>
    %25 = vector.shape_cast %24 : vector<16xf32> to vector<16x1xf32>
    %cst_31 = arith.constant 3.200000e+01 : f32
    %26 = vector.broadcast %cst_31 : f32 to vector<16x1xf32>
    %27 = arith.divf %25, %26 : vector<16x1xf32>
    %28 = vector.broadcast %20 : vector<16x1xf32> to vector<16x32xf32>
    %29 = arith.subf %0, %28 : vector<16x32xf32>
    %cst_32 = arith.constant 9.99999974E-6 : f32
    %30 = vector.broadcast %cst_32 : f32 to vector<16x1xf32>
    %31 = arith.addf %27, %30 : vector<16x1xf32>
    %32 = math.rsqrt %31 : vector<16x1xf32>
    %33 = vector.broadcast %32 : vector<16x1xf32> to vector<16x32xf32>
    %34 = arith.mulf %29, %33 : vector<16x32xf32>
    %35 = vector.broadcast %1 : vector<1x32xf32> to vector<16x32xf32>
    %36 = arith.mulf %34, %35 : vector<16x32xf32>
    %37 = vector.broadcast %2 : vector<1x32xf32> to vector<16x32xf32>
    %38 = arith.addf %36, %37 : vector<16x32xf32>
    %cst_33 = arith.constant dense<0.000000e+00> : vector<16x96xf32>
    %39 = tpu.matmul %38, %4, %cst_33 {dimension_numbers = #tpu.dot_dimension_numbers<[1], [0], [0], [1], [0, 0, 1, 1], [], []>} : vector<16x32xf32>, vector<32x96xf32>, vector<16x96xf32> -> vector<16x96xf32>
    %40 = vector.broadcast %5 : vector<1x96xf32> to vector<16x96xf32>
    %41 = arith.addf %39, %40 : vector<16x96xf32>
    %42 = vector.extract_strided_slice %41 {offsets = [0, 0], sizes = [16, 32], strides = [1, 1]} : vector<16x96xf32> to vector<16x32xf32>
    %43 = vector.extract_strided_slice %41 {offsets = [0, 32], sizes = [16, 32], strides = [1, 1]} : vector<16x96xf32> to vector<16x32xf32>
    %44 = vector.extract_strided_slice %41 {offsets = [0, 64], sizes = [16, 32], strides = [1, 1]} : vector<16x96xf32> to vector<16x32xf32>
    %45 = vector.extract_strided_slice %42 {offsets = [0, 0], sizes = [8, 32], strides = [1, 1]} : vector<16x32xf32> to vector<8x32xf32>
    %46 = vector.extract_strided_slice %43 {offsets = [0, 0], sizes = [8, 32], strides = [1, 1]} : vector<16x32xf32> to vector<8x32xf32>
    %47 = vector.extract_strided_slice %44 {offsets = [0, 0], sizes = [8, 32], strides = [1, 1]} : vector<16x32xf32> to vector<8x32xf32>
    %48 = vector.extract_strided_slice %45 {offsets = [0, 0], sizes = [8, 8], strides = [1, 1]} : vector<8x32xf32> to vector<8x8xf32>
    %49 = vector.extract_strided_slice %46 {offsets = [0, 0], sizes = [8, 8], strides = [1, 1]} : vector<8x32xf32> to vector<8x8xf32>
    %cst_34 = arith.constant dense<0.000000e+00> : vector<8x8xf32>
    %50 = tpu.matmul %48, %49, %cst_34 {dimension_numbers = #tpu.dot_dimension_numbers<[1], [1], [0], [0], [0, 0, 1, 0], [], []>} : vector<8x8xf32>, vector<8x8xf32>, vector<8x8xf32> -> vector<8x8xf32>
    %cst_35 = arith.constant 0.353553385 : f32
    %51 = vector.broadcast %cst_35 : f32 to vector<8x8xf32>
    %52 = arith.mulf %50, %51 : vector<8x8xf32>
    %53 = tpu.iota {dimensions = array<i32: 0>} : vector<8x8xi32>
    %54 = tpu.iota {dimensions = array<i32: 1>} : vector<8x8xi32>
    %55 = arith.cmpi sle, %54, %53 : vector<8x8xi32>
    %cst_36 = arith.constant -1.000000e+09 : f32
    %56 = vector.broadcast %cst_36 : f32 to vector<8x8xf32>
    %57 = arith.select %55, %52, %56 : vector<8x8xi1>, vector<8x8xf32>
    %cst_37 = arith.constant dense<0xFF800000> : vector<8xf32>
    %58 = vector.multi_reduction <maximumf>, %57, %cst_37 [1] : vector<8x8xf32> to vector<8xf32>
    %59 = vector.shape_cast %58 : vector<8xf32> to vector<8x1xf32>
    %60 = vector.broadcast %59 : vector<8x1xf32> to vector<8x8xf32>
    %61 = arith.subf %57, %60 : vector<8x8xf32>
    %62 = math.exp %61 : vector<8x8xf32>
    %cst_38 = arith.constant dense<0.000000e+00> : vector<8xf32>
    %63 = vector.multi_reduction <add>, %62, %cst_38 [1] : vector<8x8xf32> to vector<8xf32>
    %64 = vector.shape_cast %63 : vector<8xf32> to vector<8x1xf32>
    %65 = vector.broadcast %64 : vector<8x1xf32> to vector<8x8xf32>
    %66 = arith.divf %62, %65 : vector<8x8xf32>
    %67 = vector.extract_strided_slice %47 {offsets = [0, 0], sizes = [8, 8], strides = [1, 1]} : vector<8x32xf32> to vector<8x8xf32>
    %cst_39 = arith.constant dense<0.000000e+00> : vector<8x8xf32>
    %68 = tpu.matmul %66, %67, %cst_39 {dimension_numbers = #tpu.dot_dimension_numbers<[1], [0], [0], [1], [0, 0, 1, 1], [], []>} : vector<8x8xf32>, vector<8x8xf32>, vector<8x8xf32> -> vector<8x8xf32>
    %69 = vector.extract_strided_slice %7 {offsets = [0, 0], sizes = [8, 32], strides = [1, 1]} : vector<32x32xf32> to vector<8x32xf32>
    %cst_40 = arith.constant dense<0.000000e+00> : vector<8x32xf32>
    %70 = tpu.matmul %68, %69, %cst_40 {dimension_numbers = #tpu.dot_dimension_numbers<[1], [0], [0], [1], [0, 0, 1, 1], [], []>} : vector<8x8xf32>, vector<8x32xf32>, vector<8x32xf32> -> vector<8x32xf32>
    %71 = vector.extract_strided_slice %45 {offsets = [0, 8], sizes = [8, 8], strides = [1, 1]} : vector<8x32xf32> to vector<8x8xf32>
    %72 = vector.extract_strided_slice %46 {offsets = [0, 8], sizes = [8, 8], strides = [1, 1]} : vector<8x32xf32> to vector<8x8xf32>
    %cst_41 = arith.constant dense<0.000000e+00> : vector<8x8xf32>
    %73 = tpu.matmul %71, %72, %cst_41 {dimension_numbers = #tpu.dot_dimension_numbers<[1], [1], [0], [0], [0, 0, 1, 0], [], []>} : vector<8x8xf32>, vector<8x8xf32>, vector<8x8xf32> -> vector<8x8xf32>
    %cst_42 = arith.constant 0.353553385 : f32
    %74 = vector.broadcast %cst_42 : f32 to vector<8x8xf32>
    %75 = arith.mulf %73, %74 : vector<8x8xf32>
    %76 = tpu.iota {dimensions = array<i32: 0>} : vector<8x8xi32>
    %77 = tpu.iota {dimensions = array<i32: 1>} : vector<8x8xi32>
    %78 = arith.cmpi sle, %77, %76 : vector<8x8xi32>
    %cst_43 = arith.constant -1.000000e+09 : f32
    %79 = vector.broadcast %cst_43 : f32 to vector<8x8xf32>
    %80 = arith.select %78, %75, %79 : vector<8x8xi1>, vector<8x8xf32>
    %cst_44 = arith.constant dense<0xFF800000> : vector<8xf32>
    %81 = vector.multi_reduction <maximumf>, %80, %cst_44 [1] : vector<8x8xf32> to vector<8xf32>
    %82 = vector.shape_cast %81 : vector<8xf32> to vector<8x1xf32>
    %83 = vector.broadcast %82 : vector<8x1xf32> to vector<8x8xf32>
    %84 = arith.subf %80, %83 : vector<8x8xf32>
    %85 = math.exp %84 : vector<8x8xf32>
    %cst_45 = arith.constant dense<0.000000e+00> : vector<8xf32>
    %86 = vector.multi_reduction <add>, %85, %cst_45 [1] : vector<8x8xf32> to vector<8xf32>
    %87 = vector.shape_cast %86 : vector<8xf32> to vector<8x1xf32>
    %88 = vector.broadcast %87 : vector<8x1xf32> to vector<8x8xf32>
    %89 = arith.divf %85, %88 : vector<8x8xf32>
    %90 = vector.extract_strided_slice %47 {offsets = [0, 8], sizes = [8, 8], strides = [1, 1]} : vector<8x32xf32> to vector<8x8xf32>
    %cst_46 = arith.constant dense<0.000000e+00> : vector<8x8xf32>
    %91 = tpu.matmul %89, %90, %cst_46 {dimension_numbers = #tpu.dot_dimension_numbers<[1], [0], [0], [1], [0, 0, 1, 1], [], []>} : vector<8x8xf32>, vector<8x8xf32>, vector<8x8xf32> -> vector<8x8xf32>
    %92 = vector.extract_strided_slice %7 {offsets = [8, 0], sizes = [8, 32], strides = [1, 1]} : vector<32x32xf32> to vector<8x32xf32>
    %cst_47 = arith.constant dense<0.000000e+00> : vector<8x32xf32>
    %93 = tpu.matmul %91, %92, %cst_47 {dimension_numbers = #tpu.dot_dimension_numbers<[1], [0], [0], [1], [0, 0, 1, 1], [], []>} : vector<8x8xf32>, vector<8x32xf32>, vector<8x32xf32> -> vector<8x32xf32>
    %94 = arith.addf %70, %93 : vector<8x32xf32>
    %95 = vector.extract_strided_slice %45 {offsets = [0, 16], sizes = [8, 8], strides = [1, 1]} : vector<8x32xf32> to vector<8x8xf32>
    %96 = vector.extract_strided_slice %46 {offsets = [0, 16], sizes = [8, 8], strides = [1, 1]} : vector<8x32xf32> to vector<8x8xf32>
    %cst_48 = arith.constant dense<0.000000e+00> : vector<8x8xf32>
    %97 = tpu.matmul %95, %96, %cst_48 {dimension_numbers = #tpu.dot_dimension_numbers<[1], [1], [0], [0], [0, 0, 1, 0], [], []>} : vector<8x8xf32>, vector<8x8xf32>, vector<8x8xf32> -> vector<8x8xf32>
    %cst_49 = arith.constant 0.353553385 : f32
    %98 = vector.broadcast %cst_49 : f32 to vector<8x8xf32>
    %99 = arith.mulf %97, %98 : vector<8x8xf32>
    %100 = tpu.iota {dimensions = array<i32: 0>} : vector<8x8xi32>
    %101 = tpu.iota {dimensions = array<i32: 1>} : vector<8x8xi32>
    %102 = arith.cmpi sle, %101, %100 : vector<8x8xi32>
    %cst_50 = arith.constant -1.000000e+09 : f32
    %103 = vector.broadcast %cst_50 : f32 to vector<8x8xf32>
    %104 = arith.select %102, %99, %103 : vector<8x8xi1>, vector<8x8xf32>
    %cst_51 = arith.constant dense<0xFF800000> : vector<8xf32>
    %105 = vector.multi_reduction <maximumf>, %104, %cst_51 [1] : vector<8x8xf32> to vector<8xf32>
    %106 = vector.shape_cast %105 : vector<8xf32> to vector<8x1xf32>
    %107 = vector.broadcast %106 : vector<8x1xf32> to vector<8x8xf32>
    %108 = arith.subf %104, %107 : vector<8x8xf32>
    %109 = math.exp %108 : vector<8x8xf32>
    %cst_52 = arith.constant dense<0.000000e+00> : vector<8xf32>
    %110 = vector.multi_reduction <add>, %109, %cst_52 [1] : vector<8x8xf32> to vector<8xf32>
    %111 = vector.shape_cast %110 : vector<8xf32> to vector<8x1xf32>
    %112 = vector.broadcast %111 : vector<8x1xf32> to vector<8x8xf32>
    %113 = arith.divf %109, %112 : vector<8x8xf32>
    %114 = vector.extract_strided_slice %47 {offsets = [0, 16], sizes = [8, 8], strides = [1, 1]} : vector<8x32xf32> to vector<8x8xf32>
    %cst_53 = arith.constant dense<0.000000e+00> : vector<8x8xf32>
    %115 = tpu.matmul %113, %114, %cst_53 {dimension_numbers = #tpu.dot_dimension_numbers<[1], [0], [0], [1], [0, 0, 1, 1], [], []>} : vector<8x8xf32>, vector<8x8xf32>, vector<8x8xf32> -> vector<8x8xf32>
    %116 = vector.extract_strided_slice %7 {offsets = [16, 0], sizes = [8, 32], strides = [1, 1]} : vector<32x32xf32> to vector<8x32xf32>
    %cst_54 = arith.constant dense<0.000000e+00> : vector<8x32xf32>
    %117 = tpu.matmul %115, %116, %cst_54 {dimension_numbers = #tpu.dot_dimension_numbers<[1], [0], [0], [1], [0, 0, 1, 1], [], []>} : vector<8x8xf32>, vector<8x32xf32>, vector<8x32xf32> -> vector<8x32xf32>
    %118 = arith.addf %94, %117 : vector<8x32xf32>
    %119 = vector.extract_strided_slice %45 {offsets = [0, 24], sizes = [8, 8], strides = [1, 1]} : vector<8x32xf32> to vector<8x8xf32>
    %120 = vector.extract_strided_slice %46 {offsets = [0, 24], sizes = [8, 8], strides = [1, 1]} : vector<8x32xf32> to vector<8x8xf32>
    %cst_55 = arith.constant dense<0.000000e+00> : vector<8x8xf32>
    %121 = tpu.matmul %119, %120, %cst_55 {dimension_numbers = #tpu.dot_dimension_numbers<[1], [1], [0], [0], [0, 0, 1, 0], [], []>} : vector<8x8xf32>, vector<8x8xf32>, vector<8x8xf32> -> vector<8x8xf32>
    %cst_56 = arith.constant 0.353553385 : f32
    %122 = vector.broadcast %cst_56 : f32 to vector<8x8xf32>
    %123 = arith.mulf %121, %122 : vector<8x8xf32>
    %124 = tpu.iota {dimensions = array<i32: 0>} : vector<8x8xi32>
    %125 = tpu.iota {dimensions = array<i32: 1>} : vector<8x8xi32>
    %126 = arith.cmpi sle, %125, %124 : vector<8x8xi32>
    %cst_57 = arith.constant -1.000000e+09 : f32
    %127 = vector.broadcast %cst_57 : f32 to vector<8x8xf32>
    %128 = arith.select %126, %123, %127 : vector<8x8xi1>, vector<8x8xf32>
    %cst_58 = arith.constant dense<0xFF800000> : vector<8xf32>
    %129 = vector.multi_reduction <maximumf>, %128, %cst_58 [1] : vector<8x8xf32> to vector<8xf32>
    %130 = vector.shape_cast %129 : vector<8xf32> to vector<8x1xf32>
    %131 = vector.broadcast %130 : vector<8x1xf32> to vector<8x8xf32>
    %132 = arith.subf %128, %131 : vector<8x8xf32>
    %133 = math.exp %132 : vector<8x8xf32>
    %cst_59 = arith.constant dense<0.000000e+00> : vector<8xf32>
    %134 = vector.multi_reduction <add>, %133, %cst_59 [1] : vector<8x8xf32> to vector<8xf32>
    %135 = vector.shape_cast %134 : vector<8xf32> to vector<8x1xf32>
    %136 = vector.broadcast %135 : vector<8x1xf32> to vector<8x8xf32>
    %137 = arith.divf %133, %136 : vector<8x8xf32>
    %138 = vector.extract_strided_slice %47 {offsets = [0, 24], sizes = [8, 8], strides = [1, 1]} : vector<8x32xf32> to vector<8x8xf32>
    %cst_60 = arith.constant dense<0.000000e+00> : vector<8x8xf32>
    %139 = tpu.matmul %137, %138, %cst_60 {dimension_numbers = #tpu.dot_dimension_numbers<[1], [0], [0], [1], [0, 0, 1, 1], [], []>} : vector<8x8xf32>, vector<8x8xf32>, vector<8x8xf32> -> vector<8x8xf32>
    %140 = vector.extract_strided_slice %7 {offsets = [24, 0], sizes = [8, 32], strides = [1, 1]} : vector<32x32xf32> to vector<8x32xf32>
    %cst_61 = arith.constant dense<0.000000e+00> : vector<8x32xf32>
    %141 = tpu.matmul %139, %140, %cst_61 {dimension_numbers = #tpu.dot_dimension_numbers<[1], [0], [0], [1], [0, 0, 1, 1], [], []>} : vector<8x8xf32>, vector<8x32xf32>, vector<8x32xf32> -> vector<8x32xf32>
    %142 = arith.addf %118, %141 : vector<8x32xf32>
    %c0_62 = arith.constant 0 : index
    %c0_63 = arith.constant 0 : index
    %143 = vector.load %arg18[%c0_62, %c0_63] : memref<16x32xf32, #tpu.memory_space<vmem>>, vector<8x32xf32>
    tpu.vector_store %arg18[%c0_62, %c0_63], %142 {strides = array<i32>} : memref<16x32xf32, #tpu.memory_space<vmem>>, vector<8x32xf32>,
    %144 = vector.extract_strided_slice %42 {offsets = [8, 0], sizes = [8, 32], strides = [1, 1]} : vector<16x32xf32> to vector<8x32xf32>
    %145 = vector.extract_strided_slice %43 {offsets = [8, 0], sizes = [8, 32], strides = [1, 1]} : vector<16x32xf32> to vector<8x32xf32>
    %146 = vector.extract_strided_slice %44 {offsets = [8, 0], sizes = [8, 32], strides = [1, 1]} : vector<16x32xf32> to vector<8x32xf32>
    %147 = vector.extract_strided_slice %144 {offsets = [0, 0], sizes = [8, 8], strides = [1, 1]} : vector<8x32xf32> to vector<8x8xf32>
    %148 = vector.extract_strided_slice %145 {offsets = [0, 0], sizes = [8, 8], strides = [1, 1]} : vector<8x32xf32> to vector<8x8xf32>
    %cst_64 = arith.constant dense<0.000000e+00> : vector<8x8xf32>
    %149 = tpu.matmul %147, %148, %cst_64 {dimension_numbers = #tpu.dot_dimension_numbers<[1], [1], [0], [0], [0, 0, 1, 0], [], []>} : vector<8x8xf32>, vector<8x8xf32>, vector<8x8xf32> -> vector<8x8xf32>
    %cst_65 = arith.constant 0.353553385 : f32
    %150 = vector.broadcast %cst_65 : f32 to vector<8x8xf32>
    %151 = arith.mulf %149, %150 : vector<8x8xf32>
    %152 = tpu.iota {dimensions = array<i32: 0>} : vector<8x8xi32>
    %153 = tpu.iota {dimensions = array<i32: 1>} : vector<8x8xi32>
    %154 = arith.cmpi sle, %153, %152 : vector<8x8xi32>
    %cst_66 = arith.constant -1.000000e+09 : f32
    %155 = vector.broadcast %cst_66 : f32 to vector<8x8xf32>
    %156 = arith.select %154, %151, %155 : vector<8x8xi1>, vector<8x8xf32>
    %cst_67 = arith.constant dense<0xFF800000> : vector<8xf32>
    %157 = vector.multi_reduction <maximumf>, %156, %cst_67 [1] : vector<8x8xf32> to vector<8xf32>
    %158 = vector.shape_cast %157 : vector<8xf32> to vector<8x1xf32>
    %159 = vector.broadcast %158 : vector<8x1xf32> to vector<8x8xf32>
    %160 = arith.subf %156, %159 : vector<8x8xf32>
    %161 = math.exp %160 : vector<8x8xf32>
    %cst_68 = arith.constant dense<0.000000e+00> : vector<8xf32>
    %162 = vector.multi_reduction <add>, %161, %cst_68 [1] : vector<8x8xf32> to vector<8xf32>
    %163 = vector.shape_cast %162 : vector<8xf32> to vector<8x1xf32>
    %164 = vector.broadcast %163 : vector<8x1xf32> to vector<8x8xf32>
    %165 = arith.divf %161, %164 : vector<8x8xf32>
    %166 = vector.extract_strided_slice %146 {offsets = [0, 0], sizes = [8, 8], strides = [1, 1]} : vector<8x32xf32> to vector<8x8xf32>
    %cst_69 = arith.constant dense<0.000000e+00> : vector<8x8xf32>
    %167 = tpu.matmul %165, %166, %cst_69 {dimension_numbers = #tpu.dot_dimension_numbers<[1], [0], [0], [1], [0, 0, 1, 1], [], []>} : vector<8x8xf32>, vector<8x8xf32>, vector<8x8xf32> -> vector<8x8xf32>
    %168 = vector.extract_strided_slice %7 {offsets = [0, 0], sizes = [8, 32], strides = [1, 1]} : vector<32x32xf32> to vector<8x32xf32>
    %cst_70 = arith.constant dense<0.000000e+00> : vector<8x32xf32>
    %169 = tpu.matmul %167, %168, %cst_70 {dimension_numbers = #tpu.dot_dimension_numbers<[1], [0], [0], [1], [0, 0, 1, 1], [], []>} : vector<8x8xf32>, vector<8x32xf32>, vector<8x32xf32> -> vector<8x32xf32>
    %170 = vector.extract_strided_slice %144 {offsets = [0, 8], sizes = [8, 8], strides = [1, 1]} : vector<8x32xf32> to vector<8x8xf32>
    %171 = vector.extract_strided_slice %145 {offsets = [0, 8], sizes = [8, 8], strides = [1, 1]} : vector<8x32xf32> to vector<8x8xf32>
    %cst_71 = arith.constant dense<0.000000e+00> : vector<8x8xf32>
    %172 = tpu.matmul %170, %171, %cst_71 {dimension_numbers = #tpu.dot_dimension_numbers<[1], [1], [0], [0], [0, 0, 1, 0], [], []>} : vector<8x8xf32>, vector<8x8xf32>, vector<8x8xf32> -> vector<8x8xf32>
    %cst_72 = arith.constant 0.353553385 : f32
    %173 = vector.broadcast %cst_72 : f32 to vector<8x8xf32>
    %174 = arith.mulf %172, %173 : vector<8x8xf32>
    %175 = tpu.iota {dimensions = array<i32: 0>} : vector<8x8xi32>
    %176 = tpu.iota {dimensions = array<i32: 1>} : vector<8x8xi32>
    %177 = arith.cmpi sle, %176, %175 : vector<8x8xi32>
    %cst_73 = arith.constant -1.000000e+09 : f32
    %178 = vector.broadcast %cst_73 : f32 to vector<8x8xf32>
    %179 = arith.select %177, %174, %178 : vector<8x8xi1>, vector<8x8xf32>
    %cst_74 = arith.constant dense<0xFF800000> : vector<8xf32>
    %180 = vector.multi_reduction <maximumf>, %179, %cst_74 [1] : vector<8x8xf32> to vector<8xf32>
    %181 = vector.shape_cast %180 : vector<8xf32> to vector<8x1xf32>
    %182 = vector.broadcast %181 : vector<8x1xf32> to vector<8x8xf32>
    %183 = arith.subf %179, %182 : vector<8x8xf32>
    %184 = math.exp %183 : vector<8x8xf32>
    %cst_75 = arith.constant dense<0.000000e+00> : vector<8xf32>
    %185 = vector.multi_reduction <add>, %184, %cst_75 [1] : vector<8x8xf32> to vector<8xf32>
    %186 = vector.shape_cast %185 : vector<8xf32> to vector<8x1xf32>
    %187 = vector.broadcast %186 : vector<8x1xf32> to vector<8x8xf32>
    %188 = arith.divf %184, %187 : vector<8x8xf32>
    %189 = vector.extract_strided_slice %146 {offsets = [0, 8], sizes = [8, 8], strides = [1, 1]} : vector<8x32xf32> to vector<8x8xf32>
    %cst_76 = arith.constant dense<0.000000e+00> : vector<8x8xf32>
    %190 = tpu.matmul %188, %189, %cst_76 {dimension_numbers = #tpu.dot_dimension_numbers<[1], [0], [0], [1], [0, 0, 1, 1], [], []>} : vector<8x8xf32>, vector<8x8xf32>, vector<8x8xf32> -> vector<8x8xf32>
    %191 = vector.extract_strided_slice %7 {offsets = [8, 0], sizes = [8, 32], strides = [1, 1]} : vector<32x32xf32> to vector<8x32xf32>
    %cst_77 = arith.constant dense<0.000000e+00> : vector<8x32xf32>
    %192 = tpu.matmul %190, %191, %cst_77 {dimension_numbers = #tpu.dot_dimension_numbers<[1], [0], [0], [1], [0, 0, 1, 1], [], []>} : vector<8x8xf32>, vector<8x32xf32>, vector<8x32xf32> -> vector<8x32xf32>
    %193 = arith.addf %169, %192 : vector<8x32xf32>
    %194 = vector.extract_strided_slice %144 {offsets = [0, 16], sizes = [8, 8], strides = [1, 1]} : vector<8x32xf32> to vector<8x8xf32>
    %195 = vector.extract_strided_slice %145 {offsets = [0, 16], sizes = [8, 8], strides = [1, 1]} : vector<8x32xf32> to vector<8x8xf32>
    %cst_78 = arith.constant dense<0.000000e+00> : vector<8x8xf32>
    %196 = tpu.matmul %194, %195, %cst_78 {dimension_numbers = #tpu.dot_dimension_numbers<[1], [1], [0], [0], [0, 0, 1, 0], [], []>} : vector<8x8xf32>, vector<8x8xf32>, vector<8x8xf32> -> vector<8x8xf32>
    %cst_79 = arith.constant 0.353553385 : f32
    %197 = vector.broadcast %cst_79 : f32 to vector<8x8xf32>
    %198 = arith.mulf %196, %197 : vector<8x8xf32>
    %199 = tpu.iota {dimensions = array<i32: 0>} : vector<8x8xi32>
    %200 = tpu.iota {dimensions = array<i32: 1>} : vector<8x8xi32>
    %201 = arith.cmpi sle, %200, %199 : vector<8x8xi32>
    %cst_80 = arith.constant -1.000000e+09 : f32
    %202 = vector.broadcast %cst_80 : f32 to vector<8x8xf32>
    %203 = arith.select %201, %198, %202 : vector<8x8xi1>, vector<8x8xf32>
    %cst_81 = arith.constant dense<0xFF800000> : vector<8xf32>
    %204 = vector.multi_reduction <maximumf>, %203, %cst_81 [1] : vector<8x8xf32> to vector<8xf32>
    %205 = vector.shape_cast %204 : vector<8xf32> to vector<8x1xf32>
    %206 = vector.broadcast %205 : vector<8x1xf32> to vector<8x8xf32>
    %207 = arith.subf %203, %206 : vector<8x8xf32>
    %208 = math.exp %207 : vector<8x8xf32>
    %cst_82 = arith.constant dense<0.000000e+00> : vector<8xf32>
    %209 = vector.multi_reduction <add>, %208, %cst_82 [1] : vector<8x8xf32> to vector<8xf32>
    %210 = vector.shape_cast %209 : vector<8xf32> to vector<8x1xf32>
    %211 = vector.broadcast %210 : vector<8x1xf32> to vector<8x8xf32>
    %212 = arith.divf %208, %211 : vector<8x8xf32>
    %213 = vector.extract_strided_slice %146 {offsets = [0, 16], sizes = [8, 8], strides = [1, 1]} : vector<8x32xf32> to vector<8x8xf32>
    %cst_83 = arith.constant dense<0.000000e+00> : vector<8x8xf32>
    %214 = tpu.matmul %212, %213, %cst_83 {dimension_numbers = #tpu.dot_dimension_numbers<[1], [0], [0], [1], [0, 0, 1, 1], [], []>} : vector<8x8xf32>, vector<8x8xf32>, vector<8x8xf32> -> vector<8x8xf32>
    %215 = vector.extract_strided_slice %7 {offsets = [16, 0], sizes = [8, 32], strides = [1, 1]} : vector<32x32xf32> to vector<8x32xf32>
    %cst_84 = arith.constant dense<0.000000e+00> : vector<8x32xf32>
    %216 = tpu.matmul %214, %215, %cst_84 {dimension_numbers = #tpu.dot_dimension_numbers<[1], [0], [0], [1], [0, 0, 1, 1], [], []>} : vector<8x8xf32>, vector<8x32xf32>, vector<8x32xf32> -> vector<8x32xf32>
    %217 = arith.addf %193, %216 : vector<8x32xf32>
    %218 = vector.extract_strided_slice %144 {offsets = [0, 24], sizes = [8, 8], strides = [1, 1]} : vector<8x32xf32> to vector<8x8xf32>
    %219 = vector.extract_strided_slice %145 {offsets = [0, 24], sizes = [8, 8], strides = [1, 1]} : vector<8x32xf32> to vector<8x8xf32>
    %cst_85 = arith.constant dense<0.000000e+00> : vector<8x8xf32>
    %220 = tpu.matmul %218, %219, %cst_85 {dimension_numbers = #tpu.dot_dimension_numbers<[1], [1], [0], [0], [0, 0, 1, 0], [], []>} : vector<8x8xf32>, vector<8x8xf32>, vector<8x8xf32> -> vector<8x8xf32>
    %cst_86 = arith.constant 0.353553385 : f32
    %221 = vector.broadcast %cst_86 : f32 to vector<8x8xf32>
    %222 = arith.mulf %220, %221 : vector<8x8xf32>
    %223 = tpu.iota {dimensions = array<i32: 0>} : vector<8x8xi32>
    %224 = tpu.iota {dimensions = array<i32: 1>} : vector<8x8xi32>
    %225 = arith.cmpi sle, %224, %223 : vector<8x8xi32>
    %cst_87 = arith.constant -1.000000e+09 : f32
    %226 = vector.broadcast %cst_87 : f32 to vector<8x8xf32>
    %227 = arith.select %225, %222, %226 : vector<8x8xi1>, vector<8x8xf32>
    %cst_88 = arith.constant dense<0xFF800000> : vector<8xf32>
    %228 = vector.multi_reduction <maximumf>, %227, %cst_88 [1] : vector<8x8xf32> to vector<8xf32>
    %229 = vector.shape_cast %228 : vector<8xf32> to vector<8x1xf32>
    %230 = vector.broadcast %229 : vector<8x1xf32> to vector<8x8xf32>
    %231 = arith.subf %227, %230 : vector<8x8xf32>
    %232 = math.exp %231 : vector<8x8xf32>
    %cst_89 = arith.constant dense<0.000000e+00> : vector<8xf32>
    %233 = vector.multi_reduction <add>, %232, %cst_89 [1] : vector<8x8xf32> to vector<8xf32>
    %234 = vector.shape_cast %233 : vector<8xf32> to vector<8x1xf32>
    %235 = vector.broadcast %234 : vector<8x1xf32> to vector<8x8xf32>
    %236 = arith.divf %232, %235 : vector<8x8xf32>
    %237 = vector.extract_strided_slice %146 {offsets = [0, 24], sizes = [8, 8], strides = [1, 1]} : vector<8x32xf32> to vector<8x8xf32>
    %cst_90 = arith.constant dense<0.000000e+00> : vector<8x8xf32>
    %238 = tpu.matmul %236, %237, %cst_90 {dimension_numbers = #tpu.dot_dimension_numbers<[1], [0], [0], [1], [0, 0, 1, 1], [], []>} : vector<8x8xf32>, vector<8x8xf32>, vector<8x8xf32> -> vector<8x8xf32>
    %239 = vector.extract_strided_slice %7 {offsets = [24, 0], sizes = [8, 32], strides = [1, 1]} : vector<32x32xf32> to vector<8x32xf32>
    %cst_91 = arith.constant dense<0.000000e+00> : vector<8x32xf32>
    %240 = tpu.matmul %238, %239, %cst_91 {dimension_numbers = #tpu.dot_dimension_numbers<[1], [0], [0], [1], [0, 0, 1, 1], [], []>} : vector<8x8xf32>, vector<8x32xf32>, vector<8x32xf32> -> vector<8x32xf32>
    %241 = arith.addf %217, %240 : vector<8x32xf32>
    %c8 = arith.constant 8 : index
    %c0_92 = arith.constant 0 : index
    %242 = vector.load %arg18[%c8, %c0_92] : memref<16x32xf32, #tpu.memory_space<vmem>>, vector<8x32xf32>
    tpu.vector_store %arg18[%c8, %c0_92], %241 {strides = array<i32>} : memref<16x32xf32, #tpu.memory_space<vmem>>, vector<8x32xf32>,
    %c0_93 = arith.constant 0 : index
    %c0_94 = arith.constant 0 : index
    %243 = vector.load %arg18[%c0_93, %c0_94] : memref<16x32xf32, #tpu.memory_space<vmem>>, vector<16x32xf32>
    %244 = arith.addf %0, %243 : vector<16x32xf32>
    %245 = vector.broadcast %8 : vector<1x32xf32> to vector<16x32xf32>
    %246 = arith.addf %244, %245 : vector<16x32xf32>
    %cst_95 = arith.constant dense<0.000000e+00> : vector<16xf32>
    %247 = vector.multi_reduction <add>, %246, %cst_95 [1] : vector<16x32xf32> to vector<16xf32>
    %248 = vector.shape_cast %247 : vector<16xf32> to vector<16x1xf32>
    %cst_96 = arith.constant 3.200000e+01 : f32
    %249 = vector.broadcast %cst_96 : f32 to vector<16x1xf32>
    %250 = arith.divf %248, %249 : vector<16x1xf32>
    %251 = vector.broadcast %250 : vector<16x1xf32> to vector<16x32xf32>
    %252 = arith.subf %246, %251 : vector<16x32xf32>
    %253 = arith.mulf %252, %252 : vector<16x32xf32>
    %cst_97 = arith.constant dense<0.000000e+00> : vector<16xf32>
    %254 = vector.multi_reduction <add>, %253, %cst_97 [1] : vector<16x32xf32> to vector<16xf32>
    %255 = vector.shape_cast %254 : vector<16xf32> to vector<16x1xf32>
    %cst_98 = arith.constant 3.200000e+01 : f32
    %256 = vector.broadcast %cst_98 : f32 to vector<16x1xf32>
    %257 = arith.divf %255, %256 : vector<16x1xf32>
    %258 = vector.broadcast %250 : vector<16x1xf32> to vector<16x32xf32>
    %259 = arith.subf %246, %258 : vector<16x32xf32>
    %cst_99 = arith.constant 9.99999974E-6 : f32
    %260 = vector.broadcast %cst_99 : f32 to vector<16x1xf32>
    %261 = arith.addf %257, %260 : vector<16x1xf32>
    %262 = math.rsqrt %261 : vector<16x1xf32>
    %263 = vector.broadcast %262 : vector<16x1xf32> to vector<16x32xf32>
    %264 = arith.mulf %259, %263 : vector<16x32xf32>
    %265 = vector.broadcast %9 : vector<1x32xf32> to vector<16x32xf32>
    %266 = arith.mulf %264, %265 : vector<16x32xf32>
    %267 = vector.broadcast %10 : vector<1x32xf32> to vector<16x32xf32>
    %268 = arith.addf %266, %267 : vector<16x32xf32>
    %cst_100 = arith.constant dense<0.000000e+00> : vector<16x64xf32>
    %269 = tpu.matmul %268, %12, %cst_100 {dimension_numbers = #tpu.dot_dimension_numbers<[1], [0], [0], [1], [0, 0, 1, 1], [], []>} : vector<16x32xf32>, vector<32x64xf32>, vector<16x64xf32> -> vector<16x64xf32>
    %270 = vector.broadcast %13 : vector<1x64xf32> to vector<16x64xf32>
    %271 = arith.addf %269, %270 : vector<16x64xf32>
    %cst_101 = arith.constant 1.702000e+00 : f32
    %272 = vector.broadcast %cst_101 : f32 to vector<16x64xf32>
    %273 = arith.mulf %272, %271 : vector<16x64xf32>
    %274 = arith.negf %273 : vector<16x64xf32>
    %275 = math.exp %274 : vector<16x64xf32>
    %cst_102 = arith.constant 1.000000e+00 : f32
    %276 = vector.broadcast %cst_102 : f32 to vector<16x64xf32>
    %277 = arith.addf %276, %275 : vector<16x64xf32>
    %278 = arith.divf %276, %277 : vector<16x64xf32>
    %279 = arith.mulf %271, %278 : vector<16x64xf32>
    %cst_103 = arith.constant dense<0.000000e+00> : vector<16x32xf32>
    %280 = tpu.matmul %279, %15, %cst_103 {dimension_numbers = #tpu.dot_dimension_numbers<[1], [0], [0], [1], [0, 0, 1, 1], [], []>} : vector<16x64xf32>, vector<64x32xf32>, vector<16x32xf32> -> vector<16x32xf32>
    %281 = vector.broadcast %16 : vector<1x32xf32> to vector<16x32xf32>
    %282 = arith.addf %280, %281 : vector<16x32xf32>
    %283 = arith.addf %246, %282 : vector<16x32xf32>
    %c1 = arith.constant 1 : index
    %c0_104 = arith.constant 0 : index
    %284 = vector.load %arg2[%c1, %c0_104] : memref<2x32xf32, #tpu.memory_space<vmem>>, vector<1x32xf32>
    %c1_105 = arith.constant 1 : index
    %c0_106 = arith.constant 0 : index
    %285 = vector.load %arg3[%c1_105, %c0_106] : memref<2x32xf32, #tpu.memory_space<vmem>>, vector<1x32xf32>
    %c1_107 = arith.constant 1 : index
    %c0_108 = arith.constant 0 : index
    %c0_109 = arith.constant 0 : index
    %286 = vector.load %arg4[%c1_107, %c0_108, %c0_109] : memref<2x32x96xf32, #tpu.memory_space<vmem>>, vector<1x32x96xf32>
    %287 = vector.shape_cast %286 : vector<1x32x96xf32> to vector<32x96xf32>
    %c1_110 = arith.constant 1 : index
    %c0_111 = arith.constant 0 : index
    %288 = vector.load %arg5[%c1_110, %c0_111] : memref<2x96xf32, #tpu.memory_space<vmem>>, vector<1x96xf32>
    %c1_112 = arith.constant 1 : index
    %c0_113 = arith.constant 0 : index
    %c0_114 = arith.constant 0 : index
    %289 = vector.load %arg6[%c1_112, %c0_113, %c0_114] : memref<2x32x32xf32, #tpu.memory_space<vmem>>, vector<1x32x32xf32>
    %290 = vector.shape_cast %289 : vector<1x32x32xf32> to vector<32x32xf32>
    %c1_115 = arith.constant 1 : index
    %c0_116 = arith.constant 0 : index
    %291 = vector.load %arg7[%c1_115, %c0_116] : memref<2x32xf32, #tpu.memory_space<vmem>>, vector<1x32xf32>
    %c1_117 = arith.constant 1 : index
    %c0_118 = arith.constant 0 : index
    %292 = vector.load %arg8[%c1_117, %c0_118] : memref<2x32xf32, #tpu.memory_space<vmem>>, vector<1x32xf32>
    %c1_119 = arith.constant 1 : index
    %c0_120 = arith.constant 0 : index
    %293 = vector.load %arg9[%c1_119, %c0_120] : memref<2x32xf32, #tpu.memory_space<vmem>>, vector<1x32xf32>
    %c1_121 = arith.constant 1 : index
    %c0_122 = arith.constant 0 : index
    %c0_123 = arith.constant 0 : index
    %294 = vector.load %arg10[%c1_121, %c0_122, %c0_123] : memref<2x32x64xf32, #tpu.memory_space<vmem>>, vector<1x32x64xf32>
    %295 = vector.shape_cast %294 : vector<1x32x64xf32> to vector<32x64xf32>
    %c1_124 = arith.constant 1 : index
    %c0_125 = arith.constant 0 : index
    %296 = vector.load %arg11[%c1_124, %c0_125] : memref<2x64xf32, #tpu.memory_space<vmem>>, vector<1x64xf32>
    %c1_126 = arith.constant 1 : index
    %c0_127 = arith.constant 0 : index
    %c0_128 = arith.constant 0 : index
    %297 = vector.load %arg12[%c1_126, %c0_127, %c0_128] : memref<2x64x32xf32, #tpu.memory_space<vmem>>, vector<1x64x32xf32>
    %298 = vector.shape_cast %297 : vector<1x64x32xf32> to vector<64x32xf32>
    %c1_129 = arith.constant 1 : index
    %c0_130 = arith.constant 0 : index
    %299 = vector.load %arg13[%c1_129, %c0_130] : memref<2x32xf32, #tpu.memory_space<vmem>>, vector<1x32xf32>
    %cst_131 = arith.constant dense<0.000000e+00> : vector<16xf32>
    %300 = vector.multi_reduction <add>, %283, %cst_131 [1] : vector<16x32xf32> to vector<16xf32>
    %301 = vector.shape_cast %300 : vector<16xf32> to vector<16x1xf32>
    %cst_132 = arith.constant 3.200000e+01 : f32
    %302 = vector.broadcast %cst_132 : f32 to vector<16x1xf32>
    %303 = arith.divf %301, %302 : vector<16x1xf32>
    %304 = vector.broadcast %303 : vector<16x1xf32> to vector<16x32xf32>
    %305 = arith.subf %283, %304 : vector<16x32xf32>
    %306 = arith.mulf %305, %305 : vector<16x32xf32>
    %cst_133 = arith.constant dense<0.000000e+00> : vector<16xf32>
    %307 = vector.multi_reduction <add>, %306, %cst_133 [1] : vector<16x32xf32> to vector<16xf32>
    %308 = vector.shape_cast %307 : vector<16xf32> to vector<16x1xf32>
    %cst_134 = arith.constant 3.200000e+01 : f32
    %309 = vector.broadcast %cst_134 : f32 to vector<16x1xf32>
    %310 = arith.divf %308, %309 : vector<16x1xf32>
    %311 = vector.broadcast %303 : vector<16x1xf32> to vector<16x32xf32>
    %312 = arith.subf %283, %311 : vector<16x32xf32>
    %cst_135 = arith.constant 9.99999974E-6 : f32
    %313 = vector.broadcast %cst_135 : f32 to vector<16x1xf32>
    %314 = arith.addf %310, %313 : vector<16x1xf32>
    %315 = math.rsqrt %314 : vector<16x1xf32>
    %316 = vector.broadcast %315 : vector<16x1xf32> to vector<16x32xf32>
    %317 = arith.mulf %312, %316 : vector<16x32xf32>
    %318 = vector.broadcast %284 : vector<1x32xf32> to vector<16x32xf32>
    %319 = arith.mulf %317, %318 : vector<16x32xf32>
    %320 = vector.broadcast %285 : vector<1x32xf32> to vector<16x32xf32>
    %321 = arith.addf %319, %320 : vector<16x32xf32>
    %cst_136 = arith.constant dense<0.000000e+00> : vector<16x96xf32>
    %322 = tpu.matmul %321, %287, %cst_136 {dimension_numbers = #tpu.dot_dimension_numbers<[1], [0], [0], [1], [0, 0, 1, 1], [], []>} : vector<16x32xf32>, vector<32x96xf32>, vector<16x96xf32> -> vector<16x96xf32>
    %323 = vector.broadcast %288 : vector<1x96xf32> to vector<16x96xf32>
    %324 = arith.addf %322, %323 : vector<16x96xf32>
    %325 = vector.extract_strided_slice %324 {offsets = [0, 0], sizes = [16, 32], strides = [1, 1]} : vector<16x96xf32> to vector<16x32xf32>
    %326 = vector.extract_strided_slice %324 {offsets = [0, 32], sizes = [16, 32], strides = [1, 1]} : vector<16x96xf32> to vector<16x32xf32>
    %327 = vector.extract_strided_slice %324 {offsets = [0, 64], sizes = [16, 32], strides = [1, 1]} : vector<16x96xf32> to vector<16x32xf32>
    %328 = vector.extract_strided_slice %325 {offsets = [0, 0], sizes = [8, 32], strides = [1, 1]} : vector<16x32xf32> to vector<8x32xf32>
    %329 = vector.extract_strided_slice %326 {offsets = [0, 0], sizes = [8, 32], strides = [1, 1]} : vector<16x32xf32> to vector<8x32xf32>
    %330 = vector.extract_strided_slice %327 {offsets = [0, 0], sizes = [8, 32], strides = [1, 1]} : vector<16x32xf32> to vector<8x32xf32>
    %331 = vector.extract_strided_slice %328 {offsets = [0, 0], sizes = [8, 8], strides = [1, 1]} : vector<8x32xf32> to vector<8x8xf32>
    %332 = vector.extract_strided_slice %329 {offsets = [0, 0], sizes = [8, 8], strides = [1, 1]} : vector<8x32xf32> to vector<8x8xf32>
    %cst_137 = arith.constant dense<0.000000e+00> : vector<8x8xf32>
    %333 = tpu.matmul %331, %332, %cst_137 {dimension_numbers = #tpu.dot_dimension_numbers<[1], [1], [0], [0], [0, 0, 1, 0], [], []>} : vector<8x8xf32>, vector<8x8xf32>, vector<8x8xf32> -> vector<8x8xf32>
    %cst_138 = arith.constant 0.353553385 : f32
    %334 = vector.broadcast %cst_138 : f32 to vector<8x8xf32>
    %335 = arith.mulf %333, %334 : vector<8x8xf32>
    %336 = tpu.iota {dimensions = array<i32: 0>} : vector<8x8xi32>
    %337 = tpu.iota {dimensions = array<i32: 1>} : vector<8x8xi32>
    %338 = arith.cmpi sle, %337, %336 : vector<8x8xi32>
    %cst_139 = arith.constant -1.000000e+09 : f32
    %339 = vector.broadcast %cst_139 : f32 to vector<8x8xf32>
    %340 = arith.select %338, %335, %339 : vector<8x8xi1>, vector<8x8xf32>
    %cst_140 = arith.constant dense<0xFF800000> : vector<8xf32>
    %341 = vector.multi_reduction <maximumf>, %340, %cst_140 [1] : vector<8x8xf32> to vector<8xf32>
    %342 = vector.shape_cast %341 : vector<8xf32> to vector<8x1xf32>
    %343 = vector.broadcast %342 : vector<8x1xf32> to vector<8x8xf32>
    %344 = arith.subf %340, %343 : vector<8x8xf32>
    %345 = math.exp %344 : vector<8x8xf32>
    %cst_141 = arith.constant dense<0.000000e+00> : vector<8xf32>
    %346 = vector.multi_reduction <add>, %345, %cst_141 [1] : vector<8x8xf32> to vector<8xf32>
    %347 = vector.shape_cast %346 : vector<8xf32> to vector<8x1xf32>
    %348 = vector.broadcast %347 : vector<8x1xf32> to vector<8x8xf32>
    %349 = arith.divf %345, %348 : vector<8x8xf32>
    %350 = vector.extract_strided_slice %330 {offsets = [0, 0], sizes = [8, 8], strides = [1, 1]} : vector<8x32xf32> to vector<8x8xf32>
    %cst_142 = arith.constant dense<0.000000e+00> : vector<8x8xf32>
    %351 = tpu.matmul %349, %350, %cst_142 {dimension_numbers = #tpu.dot_dimension_numbers<[1], [0], [0], [1], [0, 0, 1, 1], [], []>} : vector<8x8xf32>, vector<8x8xf32>, vector<8x8xf32> -> vector<8x8xf32>
    %352 = vector.extract_strided_slice %290 {offsets = [0, 0], sizes = [8, 32], strides = [1, 1]} : vector<32x32xf32> to vector<8x32xf32>
    %cst_143 = arith.constant dense<0.000000e+00> : vector<8x32xf32>
    %353 = tpu.matmul %351, %352, %cst_143 {dimension_numbers = #tpu.dot_dimension_numbers<[1], [0], [0], [1], [0, 0, 1, 1], [], []>} : vector<8x8xf32>, vector<8x32xf32>, vector<8x32xf32> -> vector<8x32xf32>
    %354 = vector.extract_strided_slice %328 {offsets = [0, 8], sizes = [8, 8], strides = [1, 1]} : vector<8x32xf32> to vector<8x8xf32>
    %355 = vector.extract_strided_slice %329 {offsets = [0, 8], sizes = [8, 8], strides = [1, 1]} : vector<8x32xf32> to vector<8x8xf32>
    %cst_144 = arith.constant dense<0.000000e+00> : vector<8x8xf32>
    %356 = tpu.matmul %354, %355, %cst_144 {dimension_numbers = #tpu.dot_dimension_numbers<[1], [1], [0], [0], [0, 0, 1, 0], [], []>} : vector<8x8xf32>, vector<8x8xf32>, vector<8x8xf32> -> vector<8x8xf32>
    %cst_145 = arith.constant 0.353553385 : f32
    %357 = vector.broadcast %cst_145 : f32 to vector<8x8xf32>
    %358 = arith.mulf %356, %357 : vector<8x8xf32>
    %359 = tpu.iota {dimensions = array<i32: 0>} : vector<8x8xi32>
    %360 = tpu.iota {dimensions = array<i32: 1>} : vector<8x8xi32>
    %361 = arith.cmpi sle, %360, %359 : vector<8x8xi32>
    %cst_146 = arith.constant -1.000000e+09 : f32
    %362 = vector.broadcast %cst_146 : f32 to vector<8x8xf32>
    %363 = arith.select %361, %358, %362 : vector<8x8xi1>, vector<8x8xf32>
    %cst_147 = arith.constant dense<0xFF800000> : vector<8xf32>
    %364 = vector.multi_reduction <maximumf>, %363, %cst_147 [1] : vector<8x8xf32> to vector<8xf32>
    %365 = vector.shape_cast %364 : vector<8xf32> to vector<8x1xf32>
    %366 = vector.broadcast %365 : vector<8x1xf32> to vector<8x8xf32>
    %367 = arith.subf %363, %366 : vector<8x8xf32>
    %368 = math.exp %367 : vector<8x8xf32>
    %cst_148 = arith.constant dense<0.000000e+00> : vector<8xf32>
    %369 = vector.multi_reduction <add>, %368, %cst_148 [1] : vector<8x8xf32> to vector<8xf32>
    %370 = vector.shape_cast %369 : vector<8xf32> to vector<8x1xf32>
    %371 = vector.broadcast %370 : vector<8x1xf32> to vector<8x8xf32>
    %372 = arith.divf %368, %371 : vector<8x8xf32>
    %373 = vector.extract_strided_slice %330 {offsets = [0, 8], sizes = [8, 8], strides = [1, 1]} : vector<8x32xf32> to vector<8x8xf32>
    %cst_149 = arith.constant dense<0.000000e+00> : vector<8x8xf32>
    %374 = tpu.matmul %372, %373, %cst_149 {dimension_numbers = #tpu.dot_dimension_numbers<[1], [0], [0], [1], [0, 0, 1, 1], [], []>} : vector<8x8xf32>, vector<8x8xf32>, vector<8x8xf32> -> vector<8x8xf32>
    %375 = vector.extract_strided_slice %290 {offsets = [8, 0], sizes = [8, 32], strides = [1, 1]} : vector<32x32xf32> to vector<8x32xf32>
    %cst_150 = arith.constant dense<0.000000e+00> : vector<8x32xf32>
    %376 = tpu.matmul %374, %375, %cst_150 {dimension_numbers = #tpu.dot_dimension_numbers<[1], [0], [0], [1], [0, 0, 1, 1], [], []>} : vector<8x8xf32>, vector<8x32xf32>, vector<8x32xf32> -> vector<8x32xf32>
    %377 = arith.addf %353, %376 : vector<8x32xf32>
    %378 = vector.extract_strided_slice %328 {offsets = [0, 16], sizes = [8, 8], strides = [1, 1]} : vector<8x32xf32> to vector<8x8xf32>
    %379 = vector.extract_strided_slice %329 {offsets = [0, 16], sizes = [8, 8], strides = [1, 1]} : vector<8x32xf32> to vector<8x8xf32>
    %cst_151 = arith.constant dense<0.000000e+00> : vector<8x8xf32>
    %380 = tpu.matmul %378, %379, %cst_151 {dimension_numbers = #tpu.dot_dimension_numbers<[1], [1], [0], [0], [0, 0, 1, 0], [], []>} : vector<8x8xf32>, vector<8x8xf32>, vector<8x8xf32> -> vector<8x8xf32>
    %cst_152 = arith.constant 0.353553385 : f32
    %381 = vector.broadcast %cst_152 : f32 to vector<8x8xf32>
    %382 = arith.mulf %380, %381 : vector<8x8xf32>
    %383 = tpu.iota {dimensions = array<i32: 0>} : vector<8x8xi32>
    %384 = tpu.iota {dimensions = array<i32: 1>} : vector<8x8xi32>
    %385 = arith.cmpi sle, %384, %383 : vector<8x8xi32>
    %cst_153 = arith.constant -1.000000e+09 : f32
    %386 = vector.broadcast %cst_153 : f32 to vector<8x8xf32>
    %387 = arith.select %385, %382, %386 : vector<8x8xi1>, vector<8x8xf32>
    %cst_154 = arith.constant dense<0xFF800000> : vector<8xf32>
    %388 = vector.multi_reduction <maximumf>, %387, %cst_154 [1] : vector<8x8xf32> to vector<8xf32>
    %389 = vector.shape_cast %388 : vector<8xf32> to vector<8x1xf32>
    %390 = vector.broadcast %389 : vector<8x1xf32> to vector<8x8xf32>
    %391 = arith.subf %387, %390 : vector<8x8xf32>
    %392 = math.exp %391 : vector<8x8xf32>
    %cst_155 = arith.constant dense<0.000000e+00> : vector<8xf32>
    %393 = vector.multi_reduction <add>, %392, %cst_155 [1] : vector<8x8xf32> to vector<8xf32>
    %394 = vector.shape_cast %393 : vector<8xf32> to vector<8x1xf32>
    %395 = vector.broadcast %394 : vector<8x1xf32> to vector<8x8xf32>
    %396 = arith.divf %392, %395 : vector<8x8xf32>
    %397 = vector.extract_strided_slice %330 {offsets = [0, 16], sizes = [8, 8], strides = [1, 1]} : vector<8x32xf32> to vector<8x8xf32>
    %cst_156 = arith.constant dense<0.000000e+00> : vector<8x8xf32>
    %398 = tpu.matmul %396, %397, %cst_156 {dimension_numbers = #tpu.dot_dimension_numbers<[1], [0], [0], [1], [0, 0, 1, 1], [], []>} : vector<8x8xf32>, vector<8x8xf32>, vector<8x8xf32> -> vector<8x8xf32>
    %399 = vector.extract_strided_slice %290 {offsets = [16, 0], sizes = [8, 32], strides = [1, 1]} : vector<32x32xf32> to vector<8x32xf32>
    %cst_157 = arith.constant dense<0.000000e+00> : vector<8x32xf32>
    %400 = tpu.matmul %398, %399, %cst_157 {dimension_numbers = #tpu.dot_dimension_numbers<[1], [0], [0], [1], [0, 0, 1, 1], [], []>} : vector<8x8xf32>, vector<8x32xf32>, vector<8x32xf32> -> vector<8x32xf32>
    %401 = arith.addf %377, %400 : vector<8x32xf32>
    %402 = vector.extract_strided_slice %328 {offsets = [0, 24], sizes = [8, 8], strides = [1, 1]} : vector<8x32xf32> to vector<8x8xf32>
    %403 = vector.extract_strided_slice %329 {offsets = [0, 24], sizes = [8, 8], strides = [1, 1]} : vector<8x32xf32> to vector<8x8xf32>
    %cst_158 = arith.constant dense<0.000000e+00> : vector<8x8xf32>
    %404 = tpu.matmul %402, %403, %cst_158 {dimension_numbers = #tpu.dot_dimension_numbers<[1], [1], [0], [0], [0, 0, 1, 0], [], []>} : vector<8x8xf32>, vector<8x8xf32>, vector<8x8xf32> -> vector<8x8xf32>
    %cst_159 = arith.constant 0.353553385 : f32
    %405 = vector.broadcast %cst_159 : f32 to vector<8x8xf32>
    %406 = arith.mulf %404, %405 : vector<8x8xf32>
    %407 = tpu.iota {dimensions = array<i32: 0>} : vector<8x8xi32>
    %408 = tpu.iota {dimensions = array<i32: 1>} : vector<8x8xi32>
    %409 = arith.cmpi sle, %408, %407 : vector<8x8xi32>
    %cst_160 = arith.constant -1.000000e+09 : f32
    %410 = vector.broadcast %cst_160 : f32 to vector<8x8xf32>
    %411 = arith.select %409, %406, %410 : vector<8x8xi1>, vector<8x8xf32>
    %cst_161 = arith.constant dense<0xFF800000> : vector<8xf32>
    %412 = vector.multi_reduction <maximumf>, %411, %cst_161 [1] : vector<8x8xf32> to vector<8xf32>
    %413 = vector.shape_cast %412 : vector<8xf32> to vector<8x1xf32>
    %414 = vector.broadcast %413 : vector<8x1xf32> to vector<8x8xf32>
    %415 = arith.subf %411, %414 : vector<8x8xf32>
    %416 = math.exp %415 : vector<8x8xf32>
    %cst_162 = arith.constant dense<0.000000e+00> : vector<8xf32>
    %417 = vector.multi_reduction <add>, %416, %cst_162 [1] : vector<8x8xf32> to vector<8xf32>
    %418 = vector.shape_cast %417 : vector<8xf32> to vector<8x1xf32>
    %419 = vector.broadcast %418 : vector<8x1xf32> to vector<8x8xf32>
    %420 = arith.divf %416, %419 : vector<8x8xf32>
    %421 = vector.extract_strided_slice %330 {offsets = [0, 24], sizes = [8, 8], strides = [1, 1]} : vector<8x32xf32> to vector<8x8xf32>
    %cst_163 = arith.constant dense<0.000000e+00> : vector<8x8xf32>
    %422 = tpu.matmul %420, %421, %cst_163 {dimension_numbers = #tpu.dot_dimension_numbers<[1], [0], [0], [1], [0, 0, 1, 1], [], []>} : vector<8x8xf32>, vector<8x8xf32>, vector<8x8xf32> -> vector<8x8xf32>
    %423 = vector.extract_strided_slice %290 {offsets = [24, 0], sizes = [8, 32], strides = [1, 1]} : vector<32x32xf32> to vector<8x32xf32>
    %cst_164 = arith.constant dense<0.000000e+00> : vector<8x32xf32>
    %424 = tpu.matmul %422, %423, %cst_164 {dimension_numbers = #tpu.dot_dimension_numbers<[1], [0], [0], [1], [0, 0, 1, 1], [], []>} : vector<8x8xf32>, vector<8x32xf32>, vector<8x32xf32> -> vector<8x32xf32>
    %425 = arith.addf %401, %424 : vector<8x32xf32>
    %c0_165 = arith.constant 0 : index
    %c0_166 = arith.constant 0 : index
    %426 = vector.load %arg18[%c0_165, %c0_166] : memref<16x32xf32, #tpu.memory_space<vmem>>, vector<8x32xf32>
    tpu.vector_store %arg18[%c0_165, %c0_166], %425 {strides = array<i32>} : memref<16x32xf32, #tpu.memory_space<vmem>>, vector<8x32xf32>,
    %427 = vector.extract_strided_slice %325 {offsets = [8, 0], sizes = [8, 32], strides = [1, 1]} : vector<16x32xf32> to vector<8x32xf32>
    %428 = vector.extract_strided_slice %326 {offsets = [8, 0], sizes = [8, 32], strides = [1, 1]} : vector<16x32xf32> to vector<8x32xf32>
    %429 = vector.extract_strided_slice %327 {offsets = [8, 0], sizes = [8, 32], strides = [1, 1]} : vector<16x32xf32> to vector<8x32xf32>
    %430 = vector.extract_strided_slice %427 {offsets = [0, 0], sizes = [8, 8], strides = [1, 1]} : vector<8x32xf32> to vector<8x8xf32>
    %431 = vector.extract_strided_slice %428 {offsets = [0, 0], sizes = [8, 8], strides = [1, 1]} : vector<8x32xf32> to vector<8x8xf32>
    %cst_167 = arith.constant dense<0.000000e+00> : vector<8x8xf32>
    %432 = tpu.matmul %430, %431, %cst_167 {dimension_numbers = #tpu.dot_dimension_numbers<[1], [1], [0], [0], [0, 0, 1, 0], [], []>} : vector<8x8xf32>, vector<8x8xf32>, vector<8x8xf32> -> vector<8x8xf32>
    %cst_168 = arith.constant 0.353553385 : f32
    %433 = vector.broadcast %cst_168 : f32 to vector<8x8xf32>
    %434 = arith.mulf %432, %433 : vector<8x8xf32>
    %435 = tpu.iota {dimensions = array<i32: 0>} : vector<8x8xi32>
    %436 = tpu.iota {dimensions = array<i32: 1>} : vector<8x8xi32>
    %437 = arith.cmpi sle, %436, %435 : vector<8x8xi32>
    %cst_169 = arith.constant -1.000000e+09 : f32
    %438 = vector.broadcast %cst_169 : f32 to vector<8x8xf32>
    %439 = arith.select %437, %434, %438 : vector<8x8xi1>, vector<8x8xf32>
    %cst_170 = arith.constant dense<0xFF800000> : vector<8xf32>
    %440 = vector.multi_reduction <maximumf>, %439, %cst_170 [1] : vector<8x8xf32> to vector<8xf32>
    %441 = vector.shape_cast %440 : vector<8xf32> to vector<8x1xf32>
    %442 = vector.broadcast %441 : vector<8x1xf32> to vector<8x8xf32>
    %443 = arith.subf %439, %442 : vector<8x8xf32>
    %444 = math.exp %443 : vector<8x8xf32>
    %cst_171 = arith.constant dense<0.000000e+00> : vector<8xf32>
    %445 = vector.multi_reduction <add>, %444, %cst_171 [1] : vector<8x8xf32> to vector<8xf32>
    %446 = vector.shape_cast %445 : vector<8xf32> to vector<8x1xf32>
    %447 = vector.broadcast %446 : vector<8x1xf32> to vector<8x8xf32>
    %448 = arith.divf %444, %447 : vector<8x8xf32>
    %449 = vector.extract_strided_slice %429 {offsets = [0, 0], sizes = [8, 8], strides = [1, 1]} : vector<8x32xf32> to vector<8x8xf32>
    %cst_172 = arith.constant dense<0.000000e+00> : vector<8x8xf32>
    %450 = tpu.matmul %448, %449, %cst_172 {dimension_numbers = #tpu.dot_dimension_numbers<[1], [0], [0], [1], [0, 0, 1, 1], [], []>} : vector<8x8xf32>, vector<8x8xf32>, vector<8x8xf32> -> vector<8x8xf32>
    %451 = vector.extract_strided_slice %290 {offsets = [0, 0], sizes = [8, 32], strides = [1, 1]} : vector<32x32xf32> to vector<8x32xf32>
    %cst_173 = arith.constant dense<0.000000e+00> : vector<8x32xf32>
    %452 = tpu.matmul %450, %451, %cst_173 {dimension_numbers = #tpu.dot_dimension_numbers<[1], [0], [0], [1], [0, 0, 1, 1], [], []>} : vector<8x8xf32>, vector<8x32xf32>, vector<8x32xf32> -> vector<8x32xf32>
    %453 = vector.extract_strided_slice %427 {offsets = [0, 8], sizes = [8, 8], strides = [1, 1]} : vector<8x32xf32> to vector<8x8xf32>
    %454 = vector.extract_strided_slice %428 {offsets = [0, 8], sizes = [8, 8], strides = [1, 1]} : vector<8x32xf32> to vector<8x8xf32>
    %cst_174 = arith.constant dense<0.000000e+00> : vector<8x8xf32>
    %455 = tpu.matmul %453, %454, %cst_174 {dimension_numbers = #tpu.dot_dimension_numbers<[1], [1], [0], [0], [0, 0, 1, 0], [], []>} : vector<8x8xf32>, vector<8x8xf32>, vector<8x8xf32> -> vector<8x8xf32>
    %cst_175 = arith.constant 0.353553385 : f32
    %456 = vector.broadcast %cst_175 : f32 to vector<8x8xf32>
    %457 = arith.mulf %455, %456 : vector<8x8xf32>
    %458 = tpu.iota {dimensions = array<i32: 0>} : vector<8x8xi32>
    %459 = tpu.iota {dimensions = array<i32: 1>} : vector<8x8xi32>
    %460 = arith.cmpi sle, %459, %458 : vector<8x8xi32>
    %cst_176 = arith.constant -1.000000e+09 : f32
    %461 = vector.broadcast %cst_176 : f32 to vector<8x8xf32>
    %462 = arith.select %460, %457, %461 : vector<8x8xi1>, vector<8x8xf32>
    %cst_177 = arith.constant dense<0xFF800000> : vector<8xf32>
    %463 = vector.multi_reduction <maximumf>, %462, %cst_177 [1] : vector<8x8xf32> to vector<8xf32>
    %464 = vector.shape_cast %463 : vector<8xf32> to vector<8x1xf32>
    %465 = vector.broadcast %464 : vector<8x1xf32> to vector<8x8xf32>
    %466 = arith.subf %462, %465 : vector<8x8xf32>
    %467 = math.exp %466 : vector<8x8xf32>
    %cst_178 = arith.constant dense<0.000000e+00> : vector<8xf32>
    %468 = vector.multi_reduction <add>, %467, %cst_178 [1] : vector<8x8xf32> to vector<8xf32>
    %469 = vector.shape_cast %468 : vector<8xf32> to vector<8x1xf32>
    %470 = vector.broadcast %469 : vector<8x1xf32> to vector<8x8xf32>
    %471 = arith.divf %467, %470 : vector<8x8xf32>
    %472 = vector.extract_strided_slice %429 {offsets = [0, 8], sizes = [8, 8], strides = [1, 1]} : vector<8x32xf32> to vector<8x8xf32>
    %cst_179 = arith.constant dense<0.000000e+00> : vector<8x8xf32>
    %473 = tpu.matmul %471, %472, %cst_179 {dimension_numbers = #tpu.dot_dimension_numbers<[1], [0], [0], [1], [0, 0, 1, 1], [], []>} : vector<8x8xf32>, vector<8x8xf32>, vector<8x8xf32> -> vector<8x8xf32>
    %474 = vector.extract_strided_slice %290 {offsets = [8, 0], sizes = [8, 32], strides = [1, 1]} : vector<32x32xf32> to vector<8x32xf32>
    %cst_180 = arith.constant dense<0.000000e+00> : vector<8x32xf32>
    %475 = tpu.matmul %473, %474, %cst_180 {dimension_numbers = #tpu.dot_dimension_numbers<[1], [0], [0], [1], [0, 0, 1, 1], [], []>} : vector<8x8xf32>, vector<8x32xf32>, vector<8x32xf32> -> vector<8x32xf32>
    %476 = arith.addf %452, %475 : vector<8x32xf32>
    %477 = vector.extract_strided_slice %427 {offsets = [0, 16], sizes = [8, 8], strides = [1, 1]} : vector<8x32xf32> to vector<8x8xf32>
    %478 = vector.extract_strided_slice %428 {offsets = [0, 16], sizes = [8, 8], strides = [1, 1]} : vector<8x32xf32> to vector<8x8xf32>
    %cst_181 = arith.constant dense<0.000000e+00> : vector<8x8xf32>
    %479 = tpu.matmul %477, %478, %cst_181 {dimension_numbers = #tpu.dot_dimension_numbers<[1], [1], [0], [0], [0, 0, 1, 0], [], []>} : vector<8x8xf32>, vector<8x8xf32>, vector<8x8xf32> -> vector<8x8xf32>
    %cst_182 = arith.constant 0.353553385 : f32
    %480 = vector.broadcast %cst_182 : f32 to vector<8x8xf32>
    %481 = arith.mulf %479, %480 : vector<8x8xf32>
    %482 = tpu.iota {dimensions = array<i32: 0>} : vector<8x8xi32>
    %483 = tpu.iota {dimensions = array<i32: 1>} : vector<8x8xi32>
    %484 = arith.cmpi sle, %483, %482 : vector<8x8xi32>
    %cst_183 = arith.constant -1.000000e+09 : f32
    %485 = vector.broadcast %cst_183 : f32 to vector<8x8xf32>
    %486 = arith.select %484, %481, %485 : vector<8x8xi1>, vector<8x8xf32>
    %cst_184 = arith.constant dense<0xFF800000> : vector<8xf32>
    %487 = vector.multi_reduction <maximumf>, %486, %cst_184 [1] : vector<8x8xf32> to vector<8xf32>
    %488 = vector.shape_cast %487 : vector<8xf32> to vector<8x1xf32>
    %489 = vector.broadcast %488 : vector<8x1xf32> to vector<8x8xf32>
    %490 = arith.subf %486, %489 : vector<8x8xf32>
    %491 = math.exp %490 : vector<8x8xf32>
    %cst_185 = arith.constant dense<0.000000e+00> : vector<8xf32>
    %492 = vector.multi_reduction <add>, %491, %cst_185 [1] : vector<8x8xf32> to vector<8xf32>
    %493 = vector.shape_cast %492 : vector<8xf32> to vector<8x1xf32>
    %494 = vector.broadcast %493 : vector<8x1xf32> to vector<8x8xf32>
    %495 = arith.divf %491, %494 : vector<8x8xf32>
    %496 = vector.extract_strided_slice %429 {offsets = [0, 16], sizes = [8, 8], strides = [1, 1]} : vector<8x32xf32> to vector<8x8xf32>
    %cst_186 = arith.constant dense<0.000000e+00> : vector<8x8xf32>
    %497 = tpu.matmul %495, %496, %cst_186 {dimension_numbers = #tpu.dot_dimension_numbers<[1], [0], [0], [1], [0, 0, 1, 1], [], []>} : vector<8x8xf32>, vector<8x8xf32>, vector<8x8xf32> -> vector<8x8xf32>
    %498 = vector.extract_strided_slice %290 {offsets = [16, 0], sizes = [8, 32], strides = [1, 1]} : vector<32x32xf32> to vector<8x32xf32>
    %cst_187 = arith.constant dense<0.000000e+00> : vector<8x32xf32>
    %499 = tpu.matmul %497, %498, %cst_187 {dimension_numbers = #tpu.dot_dimension_numbers<[1], [0], [0], [1], [0, 0, 1, 1], [], []>} : vector<8x8xf32>, vector<8x32xf32>, vector<8x32xf32> -> vector<8x32xf32>
    %500 = arith.addf %476, %499 : vector<8x32xf32>
    %501 = vector.extract_strided_slice %427 {offsets = [0, 24], sizes = [8, 8], strides = [1, 1]} : vector<8x32xf32> to vector<8x8xf32>
    %502 = vector.extract_strided_slice %428 {offsets = [0, 24], sizes = [8, 8], strides = [1, 1]} : vector<8x32xf32> to vector<8x8xf32>
    %cst_188 = arith.constant dense<0.000000e+00> : vector<8x8xf32>
    %503 = tpu.matmul %501, %502, %cst_188 {dimension_numbers = #tpu.dot_dimension_numbers<[1], [1], [0], [0], [0, 0, 1, 0], [], []>} : vector<8x8xf32>, vector<8x8xf32>, vector<8x8xf32> -> vector<8x8xf32>
    %cst_189 = arith.constant 0.353553385 : f32
    %504 = vector.broadcast %cst_189 : f32 to vector<8x8xf32>
    %505 = arith.mulf %503, %504 : vector<8x8xf32>
    %506 = tpu.iota {dimensions = array<i32: 0>} : vector<8x8xi32>
    %507 = tpu.iota {dimensions = array<i32: 1>} : vector<8x8xi32>
    %508 = arith.cmpi sle, %507, %506 : vector<8x8xi32>
    %cst_190 = arith.constant -1.000000e+09 : f32
    %509 = vector.broadcast %cst_190 : f32 to vector<8x8xf32>
    %510 = arith.select %508, %505, %509 : vector<8x8xi1>, vector<8x8xf32>
    %cst_191 = arith.constant dense<0xFF800000> : vector<8xf32>
    %511 = vector.multi_reduction <maximumf>, %510, %cst_191 [1] : vector<8x8xf32> to vector<8xf32>
    %512 = vector.shape_cast %511 : vector<8xf32> to vector<8x1xf32>
    %513 = vector.broadcast %512 : vector<8x1xf32> to vector<8x8xf32>
    %514 = arith.subf %510, %513 : vector<8x8xf32>
    %515 = math.exp %514 : vector<8x8xf32>
    %cst_192 = arith.constant dense<0.000000e+00> : vector<8xf32>
    %516 = vector.multi_reduction <add>, %515, %cst_192 [1] : vector<8x8xf32> to vector<8xf32>
    %517 = vector.shape_cast %516 : vector<8xf32> to vector<8x1xf32>
    %518 = vector.broadcast %517 : vector<8x1xf32> to vector<8x8xf32>
    %519 = arith.divf %515, %518 : vector<8x8xf32>
    %520 = vector.extract_strided_slice %429 {offsets = [0, 24], sizes = [8, 8], strides = [1, 1]} : vector<8x32xf32> to vector<8x8xf32>
    %cst_193 = arith.constant dense<0.000000e+00> : vector<8x8xf32>
    %521 = tpu.matmul %519, %520, %cst_193 {dimension_numbers = #tpu.dot_dimension_numbers<[1], [0], [0], [1], [0, 0, 1, 1], [], []>} : vector<8x8xf32>, vector<8x8xf32>, vector<8x8xf32> -> vector<8x8xf32>
    %522 = vector.extract_strided_slice %290 {offsets = [24, 0], sizes = [8, 32], strides = [1, 1]} : vector<32x32xf32> to vector<8x32xf32>
    %cst_194 = arith.constant dense<0.000000e+00> : vector<8x32xf32>
    %523 = tpu.matmul %521, %522, %cst_194 {dimension_numbers = #tpu.dot_dimension_numbers<[1], [0], [0], [1], [0, 0, 1, 1], [], []>} : vector<8x8xf32>, vector<8x32xf32>, vector<8x32xf32> -> vector<8x32xf32>
    %524 = arith.addf %500, %523 : vector<8x32xf32>
    %c8_195 = arith.constant 8 : index
    %c0_196 = arith.constant 0 : index
    %525 = vector.load %arg18[%c8_195, %c0_196] : memref<16x32xf32, #tpu.memory_space<vmem>>, vector<8x32xf32>
    tpu.vector_store %arg18[%c8_195, %c0_196], %524 {strides = array<i32>} : memref<16x32xf32, #tpu.memory_space<vmem>>, vector<8x32xf32>,
    %c0_197 = arith.constant 0 : index
    %c0_198 = arith.constant 0 : index
    %526 = vector.load %arg18[%c0_197, %c0_198] : memref<16x32xf32, #tpu.memory_space<vmem>>, vector<16x32xf32>
    %527 = arith.addf %283, %526 : vector<16x32xf32>
    %528 = vector.broadcast %291 : vector<1x32xf32> to vector<16x32xf32>
    %529 = arith.addf %527, %528 : vector<16x32xf32>
    %cst_199 = arith.constant dense<0.000000e+00> : vector<16xf32>
    %530 = vector.multi_reduction <add>, %529, %cst_199 [1] : vector<16x32xf32> to vector<16xf32>
    %531 = vector.shape_cast %530 : vector<16xf32> to vector<16x1xf32>
    %cst_200 = arith.constant 3.200000e+01 : f32
    %532 = vector.broadcast %cst_200 : f32 to vector<16x1xf32>
    %533 = arith.divf %531, %532 : vector<16x1xf32>
    %534 = vector.broadcast %533 : vector<16x1xf32> to vector<16x32xf32>
    %535 = arith.subf %529, %534 : vector<16x32xf32>
    %536 = arith.mulf %535, %535 : vector<16x32xf32>
    %cst_201 = arith.constant dense<0.000000e+00> : vector<16xf32>
    %537 = vector.multi_reduction <add>, %536, %cst_201 [1] : vector<16x32xf32> to vector<16xf32>
    %538 = vector.shape_cast %537 : vector<16xf32> to vector<16x1xf32>
    %cst_202 = arith.constant 3.200000e+01 : f32
    %539 = vector.broadcast %cst_202 : f32 to vector<16x1xf32>
    %540 = arith.divf %538, %539 : vector<16x1xf32>
    %541 = vector.broadcast %533 : vector<16x1xf32> to vector<16x32xf32>
    %542 = arith.subf %529, %541 : vector<16x32xf32>
    %cst_203 = arith.constant 9.99999974E-6 : f32
    %543 = vector.broadcast %cst_203 : f32 to vector<16x1xf32>
    %544 = arith.addf %540, %543 : vector<16x1xf32>
    %545 = math.rsqrt %544 : vector<16x1xf32>
    %546 = vector.broadcast %545 : vector<16x1xf32> to vector<16x32xf32>
    %547 = arith.mulf %542, %546 : vector<16x32xf32>
    %548 = vector.broadcast %292 : vector<1x32xf32> to vector<16x32xf32>
    %549 = arith.mulf %547, %548 : vector<16x32xf32>
    %550 = vector.broadcast %293 : vector<1x32xf32> to vector<16x32xf32>
    %551 = arith.addf %549, %550 : vector<16x32xf32>
    %cst_204 = arith.constant dense<0.000000e+00> : vector<16x64xf32>
    %552 = tpu.matmul %551, %295, %cst_204 {dimension_numbers = #tpu.dot_dimension_numbers<[1], [0], [0], [1], [0, 0, 1, 1], [], []>} : vector<16x32xf32>, vector<32x64xf32>, vector<16x64xf32> -> vector<16x64xf32>
    %553 = vector.broadcast %296 : vector<1x64xf32> to vector<16x64xf32>
    %554 = arith.addf %552, %553 : vector<16x64xf32>
    %cst_205 = arith.constant 1.702000e+00 : f32
    %555 = vector.broadcast %cst_205 : f32 to vector<16x64xf32>
    %556 = arith.mulf %555, %554 : vector<16x64xf32>
    %557 = arith.negf %556 : vector<16x64xf32>
    %558 = math.exp %557 : vector<16x64xf32>
    %cst_206 = arith.constant 1.000000e+00 : f32
    %559 = vector.broadcast %cst_206 : f32 to vector<16x64xf32>
    %560 = arith.addf %559, %558 : vector<16x64xf32>
    %561 = arith.divf %559, %560 : vector<16x64xf32>
    %562 = arith.mulf %554, %561 : vector<16x64xf32>
    %cst_207 = arith.constant dense<0.000000e+00> : vector<16x32xf32>
    %563 = tpu.matmul %562, %298, %cst_207 {dimension_numbers = #tpu.dot_dimension_numbers<[1], [0], [0], [1], [0, 0, 1, 1], [], []>} : vector<16x64xf32>, vector<64x32xf32>, vector<16x32xf32> -> vector<16x32xf32>
    %564 = vector.broadcast %299 : vector<1x32xf32> to vector<16x32xf32>
    %565 = arith.addf %563, %564 : vector<16x32xf32>
    %566 = arith.addf %529, %565 : vector<16x32xf32>
    %c0_208 = arith.constant 0 : index
    %c0_209 = arith.constant 0 : index
    %567 = vector.load %arg1[%c0_208, %c0_209] : memref<2x16xf32, #tpu.memory_space<vmem>>, vector<2x16xf32>
    %cst_210 = arith.constant dense<0.000000e+00> : vector<2x32xf32>
    %568 = tpu.matmul %567, %566, %cst_210 {dimension_numbers = #tpu.dot_dimension_numbers<[1], [0], [0], [1], [0, 0, 1, 1], [], []>} : vector<2x16xf32>, vector<16x32xf32>, vector<2x32xf32> -> vector<2x32xf32>
    %c0_211 = arith.constant 0 : index
    %c0_212 = arith.constant 0 : index
    %569 = vector.load %arg14[%c0_211, %c0_212] : memref<1x32xf32, #tpu.memory_space<vmem>>, vector<1x32xf32>
    %c0_213 = arith.constant 0 : index
    %c0_214 = arith.constant 0 : index
    %570 = vector.load %arg15[%c0_213, %c0_214] : memref<1x32xf32, #tpu.memory_space<vmem>>, vector<1x32xf32>
    %cst_215 = arith.constant dense<0.000000e+00> : vector<2xf32>
    %571 = vector.multi_reduction <add>, %568, %cst_215 [1] : vector<2x32xf32> to vector<2xf32>
    %572 = vector.shape_cast %571 : vector<2xf32> to vector<2x1xf32>
    %cst_216 = arith.constant 3.200000e+01 : f32
    %573 = vector.broadcast %cst_216 : f32 to vector<2x1xf32>
    %574 = arith.divf %572, %573 : vector<2x1xf32>
    %575 = vector.broadcast %574 : vector<2x1xf32> to vector<2x32xf32>
    %576 = arith.subf %568, %575 : vector<2x32xf32>
    %577 = arith.mulf %576, %576 : vector<2x32xf32>
    %cst_217 = arith.constant dense<0.000000e+00> : vector<2xf32>
    %578 = vector.multi_reduction <add>, %577, %cst_217 [1] : vector<2x32xf32> to vector<2xf32>
    %579 = vector.shape_cast %578 : vector<2xf32> to vector<2x1xf32>
    %cst_218 = arith.constant 3.200000e+01 : f32
    %580 = vector.broadcast %cst_218 : f32 to vector<2x1xf32>
    %581 = arith.divf %579, %580 : vector<2x1xf32>
    %582 = vector.broadcast %574 : vector<2x1xf32> to vector<2x32xf32>
    %583 = arith.subf %568, %582 : vector<2x32xf32>
    %cst_219 = arith.constant 9.99999974E-6 : f32
    %584 = vector.broadcast %cst_219 : f32 to vector<2x1xf32>
    %585 = arith.addf %581, %584 : vector<2x1xf32>
    %586 = math.rsqrt %585 : vector<2x1xf32>
    %587 = vector.broadcast %586 : vector<2x1xf32> to vector<2x32xf32>
    %588 = arith.mulf %583, %587 : vector<2x32xf32>
    %589 = vector.broadcast %569 : vector<1x32xf32> to vector<2x32xf32>
    %590 = arith.mulf %588, %589 : vector<2x32xf32>
    %591 = vector.broadcast %570 : vector<1x32xf32> to vector<2x32xf32>
    %592 = arith.addf %590, %591 : vector<2x32xf32>
    %c0_220 = arith.constant 0 : index
    %c0_221 = arith.constant 0 : index
    %593 = vector.load %arg16[%c0_220, %c0_221] : memref<32x16xf32, #tpu.memory_space<vmem>>, vector<32x16xf32>
    %cst_222 = arith.constant dense<0.000000e+00> : vector<2x16xf32>
    %594 = tpu.matmul %592, %593, %cst_222 {dimension_numbers = #tpu.dot_dimension_numbers<[1], [0], [0], [1], [0, 0, 1, 1], [], []>} : vector<2x32xf32>, vector<32x16xf32>, vector<2x16xf32> -> vector<2x16xf32>
    %595 = arith.mulf %594, %594 : vector<2x16xf32>
    %cst_223 = arith.constant dense<0.000000e+00> : vector<2xf32>
    %596 = vector.multi_reduction <add>, %595, %cst_223 [1] : vector<2x16xf32> to vector<2xf32>
    %597 = vector.shape_cast %596 : vector<2xf32> to vector<2x1xf32>
    %cst_224 = arith.constant 9.99999996E-13 : f32
    %598 = vector.broadcast %cst_224 : f32 to vector<2x1xf32>
    %599 = arith.addf %597, %598 : vector<2x1xf32>
    %600 = math.rsqrt %599 : vector<2x1xf32>
    %601 = vector.broadcast %600 : vector<2x1xf32> to vector<2x16xf32>
    %602 = arith.mulf %594, %601 : vector<2x16xf32>
    %c0_225 = arith.constant 0 : index
    %c0_226 = arith.constant 0 : index
    %603 = vector.load %arg17[%c0_225, %c0_226] : memref<2x16xf32, #tpu.memory_space<vmem>>, vector<2x16xf32>
    tpu.vector_store %arg17[%c0_225, %c0_226], %602 {strides = array<i32>} : memref<2x16xf32, #tpu.memory_space<vmem>>, vector<2x16xf32>,
    return
  }
}

</mosaic_0001>

<bundles_post_ra>
// kernel: tile.7
= control target key start
LH: loop header
LB: loop body
LE: loop exit
PB: predicated region body
PF: predicated region fallthrough
CT: control target
= control target key end

     0   :  { %vm3_vm0 = vcmask 261120   ;;  %s34_s0 = inlined_call_operand.vmem [shape: f32[2,5,32], index: 0, kind: input, shape index: {}]   ;;  %s35_s1 = inlined_call_operand.vmem [shape: f32[10,32], index: 1, kind: output, shape index: {}]  }
   0x1   :  { %v2_v0 = vld [vmem:[%s34_s0] sm:$0x1f]   ;;  %v10_v1 = vld [vmem:[%s34_s0 + $0x8] sm:$0x1f]  }
   0x2   :  { %4 = vst.msk [vmem:[%s35_s1] sm:$0x1f] %vm3_vm0, %v2_v0   ;;  %11 = vst.msk [vmem:[%s35_s1 + $0x5] sm:$0x1f] %vm3_vm0, %v10_v1  }

// kernel: _lambda_.2
= control target key start
LH: loop header
LB: loop body
LE: loop exit
PB: predicated region body
PF: predicated region fallthrough
CT: control target
= control target key end

     0   :  { %s6540_s0 = inlined_call_operand.vmem [shape: f32[16,32], index: 0, kind: input, shape index: {}]   ;;  %s6541_s1 = inlined_call_operand.vmem [shape: f32[2,16], index: 1, kind: input, shape index: {}]   ;;  %s6542_s2 = inlined_call_operand.vmem [shape: f32[2,32], index: 2, kind: input, shape index: {}, may-alias: {2,8}]   ;;  %s6543_s3 = inlined_call_operand.vmem [shape: f32[2,32], index: 3, kind: input, shape index: {}, may-alias: {3,7,9,13}]   ;;  %s6544_s4 = inlined_call_operand.vmem [shape: f32[2,32,96], index: 4, kind: input, shape index: {}]   ;;  %s6545_s5 = inlined_call_operand.vmem [shape: f32[2,96], index: 5, kind: input, shape index: {}]   ;;  %s6546_s6 = inlined_call_operand.vmem [shape: f32[2,32,32], index: 6, kind: input, shape index: {}]   ;;  %s6547_s7 = inlined_call_operand.vmem [shape: f32[2,32], index: 7, kind: input, shape index: {}, may-alias: {3,7,9,13}]   ;;  %s6548_s8 = inlined_call_operand.vmem [shape: f32[2,32], index: 8, kind: input, shape index: {}, may-alias: {2,8}]   ;;  %s6549_s9 = inlined_call_operand.vmem [shape: f32[2,32], index: 9, kind: input, shape index: {}, may-alias: {3,7,9,13}]   ;;  %s6550_s10 = inlined_call_operand.vmem [shape: f32[2,32,64], index: 10, kind: input, shape index: {}]   ;;  %s6551_s11 = inlined_call_operand.vmem [shape: f32[2,64], index: 11, kind: input, shape index: {}]   ;;  %s6552_s12 = inlined_call_operand.vmem [shape: f32[2,64,32], index: 12, kind: input, shape index: {}]   ;;  %s6553_s13 = inlined_call_operand.vmem [shape: f32[2,32], index: 13, kind: input, shape index: {}, may-alias: {3,7,9,13}]   ;;  %s6554_s14 = inlined_call_operand.vmem [shape: f32[1,32], index: 14, kind: input, shape index: {}]   ;;  %s6555_s15 = inlined_call_operand.vmem [shape: f32[1,32], index: 15, kind: input, shape index: {}]   ;;  %s6556_s16 = inlined_call_operand.vmem [shape: f32[32,16], index: 16, kind: input, shape index: {}]   ;;  %s6557_s17 = inlined_call_operand.hbm [shape: f32[2,16], index: 17, kind: output, shape index: {}]  }
   0x1   :  { %6567 = sst [smem:[#allocation6_spill]] %s6540_s0 }
   0x2   :  { %6568 = sst [smem:[#allocation7_spill]] %s6541_s1 }
   0x3   :  { %s6569_s26 = sld [smem:[#allocation6_spill]]  ;;  %vm87_vm0 = vcmask 261120  }
   0x9   :  { %v5851_v0 = vld [vmem:[%s6569_s26] sm:$0xff]  ;;  %v5856_v1 = vld [vmem:[%s6569_s26 + $0x8] sm:$0xff] }
   0xa   :  { %22 = vsyncpa [#allocation4], 0  ;;  %v88_v2 = vsel %vm87_vm0, %v5851_v0, 0.0  ;;  %v91_v3 = vsel %vm87_vm0, %v5856_v1, 0.0  ;;  %v61_v14 = vld [vmem:[%s6544_s4] sm:$0xff]  ;;  %v62_v15 = vld [vmem:[%s6544_s4 + $0x8] sm:$0xff]  ;;  %v291_v45 = vlaneseq }
   0xb   :  { %89 = vadd.xlane.f32.xlu0 %v88_v2  ;;  %v63_v16 = vld [vmem:[%s6544_s4 + $0x10] sm:$0xff]  ;;  %v5507_v17 = vpack.c.bf16 %v62_v15, %v61_v14  ;;  %v64_v18 = vld [vmem:[%s6544_s4 + $0x18] sm:$0xff]  ;;  %v4899_v27 = vld [vmem:[%s6542_s2] ss:$0 sm:$0xff]  ;;  %v5743_v36 = vmov 0.0   ;;  %vm5744_vm1 = vmmov 0  }
   0xc   :  { %v5511_v19 = vpack.c.bf16 %v64_v18, %v63_v16  ;;  %v4900_v29 = vld [vmem:[%s6543_s3] ss:$0 sm:$0xff]  ;;  %5178 = vmatprep.subr.mxu1 %v5743_v36  ;;  %5180 = vmatprep.mubr.msk.f32.mxu1 %vm5744_vm1, %v5743_v36  ;;  %s5745_s28 = smov 88   ;;  %s5746_s29 = smov 96   ;;  %vm215_vm2 = vcmask 64512   ;;  %v292_v46 = vshrl.u32 %v291_v45, 7 }
   0xd   :  { %5508 = vmatprep.subr.bf16.mxu0 %v5507_v17  ;;  %v4901_v37 = vld [vmem:[%s6545_s5] ss:$0 sm:$0xff]  ;;  %s5747_s0 = smov 120   ;;  %v294_v47 = vand.u32 127, %v291_v45  ;;  %s5748_s30 = smov 64   ;;  %vm2295_vm4 = vcmask 523264  }
   0xe   :  { %5510 = vmatpush3.bf16.msra.mxu0 %v5507_v17  ;;  %s5749_s18 = smov 80   ;;  %s5750_s19 = smov 112   ;;  %v5952_v17 = vld [vmem:[%s6546_s6 + $0x8] sm:$0xff]  ;;  %v5004_v49 = vld [vmem:[%s6547_s7 + $0x1] ss:$0 sm:$0xff]  ;;  %vm4695_vm5 = vcmask 130048  }
   0xf   :  { %92 = vadd.xlane.f32.xlu0 %v91_v3  ;;  %5512 = vmatprep.subr.bf16.mxu0 %v5511_v19  ;;  %vm5916_vm3 = vcmp.le.s32.totalorder %v294_v47, %v292_v46  ;;  %s5751_s1 = smov 56   ;;  %s6561_s24 = smov 72   ;;  %vm4771_vm6 = vcmask 254976   ;;  %vm4877_vm7 = vcmask 123904  }
  0x10   :  { %s6563_s25 = smov 104   ;;  %s6565_s26 = smov 48  }
  0x11   :  { %s6559_s21 = smov 40   ;;  %s6574_s22 = smov 72  }
  0x12   :  { %5514 = vmatpush3.bf16.msra.mxu0 %v5511_v19 }
  0x13   :  { %5188 = vmatprep.subr.mxu0 %v5743_v36 }
  0x98   :  { %v90_v4 = vpop.xlane.xlu0 %89 }
  0x99   :  { %v95_v5 = vmul.f32 0.03125, %v90_v4 }
  0x9b   :  { %v97_v6 = vsub.f32 %v5851_v0, %v95_v5 }
  0x9c   :  { %v93_v7 = vpop.xlane.xlu0 %92 }
  0x9d   :  { %v96_v8 = vmul.f32 0.03125, %v93_v7  ;;  %v99_v9 = vmul.f32 %v97_v6, %v97_v6 }
  0x9f   :  { %v98_v10 = vsub.f32 %v5856_v1, %v96_v8  ;;  %v101_v11 = vsel %vm87_vm0, %v99_v9, 0.0 }
  0xa0   :  { %102 = vadd.xlane.f32.xlu1 %v101_v11 }
  0xa1   :  { %v100_v12 = vmul.f32 %v98_v10, %v98_v10 }
  0xa3   :  { %v104_v13 = vsel %vm87_vm0, %v100_v12, 0.0 }
  0xa4   :  { %105 = vadd.xlane.f32.xlu1 %v104_v13 }
 0x12d   :  { %v103_v20 = vpop.xlane.xlu1 %102 }
 0x12e   :  { %v107_v21 = vmul.f32 0.03125, %v103_v20  ;;  %v5959_v20 = vld [vmem:[%s6546_s6] sm:$0xff] }
 0x130   :  { %v109_v22 = vadd.f32 1e-05, %v107_v21 }
 0x131   :  { %v106_v23 = vpop.xlane.xlu1 %105 }
 0x132   :  { %5619 = vrsqrt.f32 %v109_v22  ;;  %v108_v24 = vmul.f32 0.03125, %v106_v23 }
 0x134   :  { %v110_v25 = vadd.f32 1e-05, %v108_v24 }
 0x136   :  { %5621 = vrsqrt.f32 %v110_v25 }
 0x13c   :  { %v5620_v26 = vpop.eup %5619 }
 0x13d   :  { %v113_v28 = vmul.f32 %v5620_v26, %v97_v6 }
 0x13f   :  { %v119_v30 = vmul.f32 %v4899_v27, %v113_v28 }
 0x140   :  { %v5622_v31 = vpop.eup %5621 }
 0x141   :  { %v114_v32 = vmul.f32 %v5622_v31, %v98_v10  ;;  %v125_v33 = vadd.f32 %v4900_v29, %v119_v30 }
 0x143   :  { %v120_v34 = vmul.f32 %v4899_v27, %v114_v32  ;;  %5175 = vmatprep.mubr.msk.f32.mxu0 %vm87_vm0, %v125_v33 }
 0x145   :  { %v126_v35 = vadd.f32 %v4900_v29, %v120_v34 }
 0x147   :  { %5176 = vmatmul.mubr.msk.f32.vlgmr.msra.gmra.mrb[0].mxu0 %vm87_vm0, %v126_v35 }
 0x148   :  { %5190 = vmatprep.mubr.msk.f32.mxu0 %vm5744_vm1, %v5743_v36 }
 0x21a   :  { %v5177_v38 = vpop.f32.mrb[0].mxu0 }
 0x21b   :  { %v5895_v39 = vadd.f32 %v5177_v38, %v4901_v37  ;;  %v203_v40 = vpop.f32.mrb[1].mxu0 }
 0x21c   :  { %v5897_v41 = vadd.f32 %v4901_v37, %v203_v40 }
 0x21e   :  { %386 = vrot.lane.b32.xlu1 %v5897_v41, %s5745_s28  ;;  %213 = vrot.lane.b32.xlu0 %v5897_v41, %s5746_s29 }
 0x222   :  { %384 = vrot.lane.b32.xlu1 %v5897_v41, %s5747_s0 }
 0x290   :  { %v387_v42 = vpop.permute.xlu1 %386  ;;  %v214_v43 = vpop.permute.xlu0 %213 }
 0x291   :  { %5179 = vmatpush3.xpose.msk.msra.mxu1 %vm215_vm2, %v214_v43  ;;  %5189 = vmatpush3.xpose.msk.msra.mxu0 %vm215_vm2, %v387_v42  ;;  %v5991_v42 = vld [vmem:[%s6546_s6 + $0x10] sm:$0xff] }
 0x292   :  { %5183 = vmatprep.subr.mxu1 %v5743_v36  ;;  %5198 = vmatprep.subr.mxu0 %v5743_v36 }
 0x294   :  { %v385_v44 = vpop.permute.xlu1 %384  ;;  %5181 = vmatmul.mubr.msk.f32.vlgmr.msra.gmra.mrb[0].mxu1 %vm215_vm2, %v5897_v41 }
 0x295   :  { %5191 = vmatmul.mubr.msk.f32.vlgmr.msra.gmra.mrb[2].mxu0 %vm215_vm2, %v385_v44  ;;  %5185 = vmatprep.mubr.msk.f32.mxu1 %vm5744_vm1, %v5743_v36 }
 0x296   :  { %5200 = vmatprep.mubr.msk.f32.mxu0 %vm5744_vm1, %v5743_v36  ;;  %5199 = vmatpush3.msra.mxu0 %v5952_v17 }
 0x297   :  { %5203 = vmatprep.subr.mxu0 %v5743_v36 }
 0x367   :  { %v286_v48 = vpop.f32.mrb[0].mxu1 }
 0x368   :  { %v290_v50 = vmul.f32 0.35355338, %v286_v48  ;;  %v5182_v51 = vpop.f32.mrb[1].mxu1  ;;  %v458_v52 = vpop.f32.mrb[2].mxu0 }
 0x369   :  { %v462_v53 = vmul.f32 0.35355338, %v458_v52  ;;  %v5192_v54 = vpop.f32.mrb[3].mxu0 }
 0x36a   :  { %v296_v55 = vsel %vm5916_vm3, %v290_v50, -1e+09 }
 0x36b   :  { %v297_v56 = vsel %vm215_vm2, %v296_v55, -inf  ;;  %v463_v57 = vsel %vm5916_vm3, %v462_v53, -1e+09 }
 0x36c   :  { %298 = vmax.xlane.f32.xlu1 %v297_v56  ;;  %v464_v58 = vsel %vm215_vm2, %v463_v57, -inf }
 0x36d   :  { %465 = vmax.xlane.f32.xlu0 %v464_v58 }
 0x37d   :  { %308 = vrot.lane.b32.xlu1 %v5897_v41, %s5748_s30 }
 0x381   :  { %699 = vrot.lane.b32.xlu1 %v5897_v41, %s5749_s18 }
 0x385   :  { %697 = vrot.lane.b32.xlu1 %v5897_v41, %s5750_s19 }
 0x3f9   :  { %v299_v59 = vpop.xlane.xlu1 %298 }
 0x3fa   :  { %v300_v60 = vsub.f32 %v296_v55, %v299_v59  ;;  %v466_v61 = vpop.xlane.xlu0 %465 }
 0x3fb   :  { %v467_v62 = vsub.f32 %v463_v57, %v466_v61 }
 0x3fc   :  { %v301_v63 = vmul.f32 1.442695, %v300_v60  ;;  %v6020_v60 = vld [vmem:[%s6546_s6 + $0x18] sm:$0xff] }
 0x3fd   :  { %v468_v2 = vmul.f32 1.442695, %v467_v62  ;;  %v309_v3 = vpop.permute.xlu1 %308 }
 0x3fe   :  { %5623 = vpow2.f32 %v301_v63  ;;  %5184 = vmatpush3.msra.mxu1 %v309_v3 }
 0x3ff   :  { %5193 = vmatprep.subr.mxu1 %v5743_v36  ;;  %5625 = vpow2.f32 %v468_v2 }
 0x401   :  { %v700_v15 = vpop.permute.xlu1 %699 }
 0x405   :  { %v698_v16 = vpop.permute.xlu1 %697 }
 0x408   :  { %v5624_v4 = vpop.eup %5623 }
 0x409   :  { %v303_v5 = vsel %vm215_vm2, %v5624_v4, 0.0  ;;  %v5626_v6 = vpop.eup %5625 }
 0x40a   :  { %304 = vadd.xlane.f32.xlu0 %v303_v5  ;;  %v470_v7 = vsel %vm215_vm2, %v5626_v6, 0.0 }
 0x40e   :  { %471 = vadd.xlane.f32.xlu0 %v470_v7 }
 0x424   :  { %475 = vrot.lane.b32.xlu0 %v5897_v41, %s5751_s1 }
 0x497   :  { %v305_v8 = vpop.xlane.xlu0 %304 }
 0x498   :  { %5627 = vrcp.f32 %v305_v8 }
 0x49b   :  { %v472_v9 = vpop.xlane.xlu0 %471 }
 0x49c   :  { %5629 = vrcp.f32 %v472_v9 }
 0x49f   :  { %v476_v12 = vpop.permute.xlu0 %475 }
 0x4a2   :  { %v5628_v10 = vpop.eup %5627 }
 0x4a3   :  { %v307_v11 = vmul.f32 %v5628_v10, %v5624_v4 }
 0x4a5   :  { %5186 = vmatmul.mubr.msk.f32.vlgmr.msra.gmra.mrb[2].mxu1 %vm215_vm2, %v307_v11 }
 0x4a6   :  { %v5630_v13 = vpop.eup %5629  ;;  %5194 = vmatpush3.msra.mxu1 %v476_v12  ;;  %5195 = vmatprep.mubr.msk.f32.mxu1 %vm5744_vm1, %v5743_v36 }
 0x4a7   :  { %v474_v14 = vmul.f32 %v5630_v13, %v5626_v6  ;;  %5208 = vmatprep.subr.mxu1 %v5743_v36 }
 0x4a9   :  { %5196 = vmatmul.mubr.msk.f32.vlgmr.msra.gmra.mrb[4].mxu1 %vm215_vm2, %v474_v14 }
 0x4aa   :  { %5210 = vmatprep.mubr.msk.f32.mxu1 %vm5744_vm1, %v5743_v36 }
 0x4ad   :  { %5209 = vmatpush3.xpose.msk.msra.mxu1 %vm215_vm2, %v700_v15 }
 0x4ae   :  { %5213 = vmatprep.subr.mxu1 %v5743_v36 }
 0x4b0   :  { %5211 = vmatmul.mubr.msk.f32.vlgmr.msra.gmra.mrb[6].mxu1 %vm215_vm2, %v698_v16 }
 0x4b1   :  { %5215 = vmatprep.mubr.msk.f32.mxu1 %vm5744_vm1, %v5743_v36 }
 0x578   :  { %v380_v18 = vpop.f32.mrb[2].mxu1 }
 0x579   :  { %v5187_v19 = vpop.f32.mrb[3].mxu1 }
 0x57c   :  { %v547_v21 = vpop.f32.mrb[4].mxu1 }
 0x57d   :  { %v5197_v22 = vpop.f32.mrb[5].mxu1  ;;  %5201 = vmatmul.mubr.msk.f32.vlgmr.msra.gmra.mrb[4].mxu0 %vm215_vm2, %v547_v21 }
 0x57e   :  { %5204 = vmatpush3.msra.mxu0 %v5959_v20  ;;  %5205 = vmatprep.mubr.msk.f32.mxu0 %vm5744_vm1, %v5743_v36 }
 0x57f   :  { %5218 = vmatprep.subr.mxu0 %v5743_v36 }
 0x583   :  { %v771_v23 = vpop.f32.mrb[6].mxu1 }
 0x584   :  { %v775_v24 = vmul.f32 0.35355338, %v771_v23  ;;  %v5212_v25 = vpop.f32.mrb[7].mxu1 }
 0x585   :  { %5206 = vmatmul.mubr.msk.f32.vlgmr.msra.gmra.mrb[4].mxu0 %vm215_vm2, %v380_v18 }
 0x586   :  { %v776_v26 = vsel %vm5916_vm3, %v775_v24, -1e+09  ;;  %5220 = vmatprep.mubr.msk.f32.mxu0 %vm5744_vm1, %v5743_v36  ;;  %5219 = vmatpush3.msra.mxu0 %v5991_v42 }
 0x587   :  { %v777_v27 = vsel %vm215_vm2, %v776_v26, -inf  ;;  %5228 = vmatprep.subr.mxu0 %v5743_v36 }
 0x588   :  { %778 = vmax.xlane.f32.xlu1 %v777_v27 }
 0x599   :  { %940 = vrot.lane.b32.xlu1 %v5897_v41, %s6561_s24 }
 0x59d   :  { %938 = vrot.lane.b32.xlu1 %v5897_v41, %s6563_s25 }
 0x615   :  { %v779_v28 = vpop.xlane.xlu1 %778 }
 0x616   :  { %v780_v29 = vsub.f32 %v776_v26, %v779_v28 }
 0x618   :  { %v781_v30 = vmul.f32 1.442695, %v780_v29 }
 0x619   :  { %v941_v37 = vpop.permute.xlu1 %940 }
 0x61a   :  { %5631 = vpow2.f32 %v781_v30 }
 0x61d   :  { %v939_v40 = vpop.permute.xlu1 %938 }
 0x624   :  { %v5632_v31 = vpop.eup %5631 }
 0x625   :  { %v783_v32 = vsel %vm215_vm2, %v5632_v31, 0.0 }
 0x626   :  { %784 = vadd.xlane.f32.xlu0 %v783_v32 }
 0x63c   :  { %788 = vrot.lane.b32.xlu0 %v5897_v41, %s6565_s26 }
 0x6b3   :  { %v785_v33 = vpop.xlane.xlu0 %784 }
 0x6b4   :  { %5633 = vrcp.f32 %v785_v33 }
 0x6b7   :  { %v789_v34 = vpop.permute.xlu0 %788 }
 0x6b8   :  { %5214 = vmatpush3.msra.mxu1 %v789_v34 }
 0x6b9   :  { %5223 = vmatprep.subr.mxu1 %v5743_v36 }
 0x6be   :  { %v5634_v35 = vpop.eup %5633 }
 0x6bf   :  { %v787_v38 = vmul.f32 %v5634_v35, %v5632_v31 }
 0x6c1   :  { %5216 = vmatmul.mubr.msk.f32.vlgmr.msra.gmra.mrb[8].mxu1 %vm215_vm2, %v787_v38 }
 0x6c2   :  { %5224 = vmatpush3.xpose.msk.msra.mxu1 %vm215_vm2, %v941_v37  ;;  %5225 = vmatprep.mubr.msk.f32.mxu1 %vm5744_vm1, %v5743_v36 }
 0x6c3   :  { %5238 = vmatprep.subr.mxu1 %v5743_v36 }
 0x6c5   :  { %5226 = vmatmul.mubr.msk.f32.vlgmr.msra.gmra.mrb[10].mxu1 %vm215_vm2, %v939_v40 }
 0x6c6   :  { %5240 = vmatprep.mubr.msk.f32.mxu1 %vm5744_vm1, %v5743_v36 }
 0x794   :  { %v860_v43 = vpop.f32.mrb[8].mxu1 }
 0x795   :  { %v5217_v44 = vpop.f32.mrb[9].mxu1  ;;  %5221 = vmatmul.mubr.msk.f32.vlgmr.msra.gmra.mrb[4].mxu0 %vm215_vm2, %v860_v43 }
 0x796   :  { %5230 = vmatprep.mubr.msk.f32.mxu0 %vm5744_vm1, %v5743_v36 }
 0x798   :  { %v1012_v45 = vpop.f32.mrb[10].mxu1 }
 0x799   :  { %v1016_v46 = vmul.f32 0.35355338, %v1012_v45  ;;  %v5227_v47 = vpop.f32.mrb[11].mxu1 }
 0x79b   :  { %v1017_v48 = vsel %vm5916_vm3, %v1016_v46, -1e+09 }
 0x79c   :  { %v1018_v50 = vsel %vm215_vm2, %v1017_v48, -inf }
 0x79d   :  { %1019 = vmax.xlane.f32.xlu0 %v1018_v50 }
 0x7b3   :  { %1029 = vrot.lane.b32.xlu0 %v5897_v41, %s6559_s21 }
 0x7b7   :  { %1348 = vrot.lane.b32.xlu0 %v5895_v39, %s5745_s28 }
 0x82a   :  { %v1020_v51 = vpop.xlane.xlu0 %1019 }
 0x82b   :  { %v1021_v52 = vsub.f32 %v1017_v48, %v1020_v51 }
 0x82d   :  { %v1022_v53 = vmul.f32 1.442695, %v1021_v52 }
 0x82e   :  { %v1030_v54 = vpop.permute.xlu0 %1029 }
 0x82f   :  { %5635 = vpow2.f32 %v1022_v53  ;;  %5229 = vmatpush3.msra.mxu0 %v1030_v54 }
 0x830   :  { %5233 = vmatprep.subr.mxu0 %v5743_v36 }
 0x832   :  { %v1349_v5 = vpop.permute.xlu0 %1348 }
 0x839   :  { %v5636_v55 = vpop.eup %5635 }
 0x83a   :  { %v1024_v56 = vsel %vm215_vm2, %v5636_v55, 0.0 }
 0x83b   :  { %1025 = vadd.xlane.f32.xlu1 %v1024_v56 }
 0x84c   :  { %1181 = vrot.lane.b32.xlu1 %v5895_v39, %s5746_s29 }
 0x850   :  { %1346 = vrot.lane.b32.xlu1 %v5895_v39, %s5747_s0 }
 0x8c8   :  { %v1026_v41 = vpop.xlane.xlu1 %1025 }
 0x8c9   :  { %5637 = vrcp.f32 %v1026_v41 }
 0x8cc   :  { %v1182_v57 = vpop.permute.xlu1 %1181 }
 0x8cd   :  { %5239 = vmatpush3.xpose.msk.msra.mxu1 %vm215_vm2, %v1182_v57 }
 0x8ce   :  { %5243 = vmatprep.subr.mxu1 %v5743_v36 }
 0x8d0   :  { %5241 = vmatmul.mubr.msk.f32.vlgmr.msra.gmra.mrb[12].mxu1 %vm215_vm2, %v5895_v39  ;;  %v1347_v7 = vpop.permute.xlu1 %1346 }
 0x8d1   :  { %5245 = vmatprep.mubr.msk.f32.mxu1 %vm5744_vm1, %v5743_v36 }
 0x8d3   :  { %v5638_v58 = vpop.eup %5637 }
 0x8d4   :  { %v1028_v59 = vmul.f32 %v5638_v58, %v5636_v55 }
 0x8d6   :  { %5231 = vmatmul.mubr.msk.f32.vlgmr.msra.gmra.mrb[6].mxu0 %vm215_vm2, %v1028_v59 }
 0x8d7   :  { %5234 = vmatpush3.msra.mxu0 %v6020_v60  ;;  %5235 = vmatprep.mubr.msk.f32.mxu0 %vm5744_vm1, %v5743_v36 }
 0x8d8   :  { %5248 = vmatprep.subr.mxu0 %v5743_v36 }
 0x9a3   :  { %v1253_v61 = vpop.f32.mrb[12].mxu1 }
 0x9a4   :  { %v1257_v62 = vmul.f32 0.35355338, %v1253_v61  ;;  %v5242_v63 = vpop.f32.mrb[13].mxu1 }
 0x9a6   :  { %v1258_v2 = vsel %vm5916_vm3, %v1257_v62, -1e+09 }
 0x9a7   :  { %v1259_v3 = vsel %vm215_vm2, %v1258_v2, -inf }
 0x9a8   :  { %1260 = vmax.xlane.f32.xlu0 %v1259_v3 }
 0x9a9   :  { %v1101_v4 = vpop.f32.mrb[6].mxu0 }
 0x9aa   :  { %v5232_v6 = vpop.f32.mrb[7].mxu0  ;;  %5236 = vmatmul.mubr.msk.f32.vlgmr.msra.gmra.mrb[4].mxu0 %vm215_vm2, %v1101_v4  ;;  %v4936_v4 = vld [vmem:[%s6547_s7] ss:$0 sm:$0xff] }
 0x9ab   :  { %5249 = vmatpush3.xpose.msk.msra.mxu0 %vm215_vm2, %v1349_v5  ;;  %5250 = vmatprep.mubr.msk.f32.mxu0 %vm5744_vm1, %v5743_v36 }
 0x9ac   :  { %5258 = vmatprep.subr.mxu0 %v5743_v36 }
 0x9ae   :  { %5251 = vmatmul.mubr.msk.f32.vlgmr.msra.gmra.mrb[8].mxu0 %vm215_vm2, %v1347_v7 }
 0x9af   :  { %5259 = vmatpush3.msra.mxu0 %v5952_v17  ;;  %5260 = vmatprep.mubr.msk.f32.mxu0 %vm5744_vm1, %v5743_v36 }
 0x9b0   :  { %5263 = vmatprep.subr.mxu0 %v5743_v36 }
 0xa35   :  { %v1261_v8 = vpop.xlane.xlu0 %1260 }
 0xa36   :  { %v1262_v9 = vsub.f32 %v1258_v2, %v1261_v8 }
 0xa38   :  { %v1263_v10 = vmul.f32 1.442695, %v1262_v9 }
 0xa3a   :  { %5639 = vpow2.f32 %v1263_v10 }
 0xa44   :  { %v5640_v11 = vpop.eup %5639 }
 0xa45   :  { %v1265_v12 = vsel %vm215_vm2, %v5640_v11, 0.0 }
 0xa46   :  { %1266 = vadd.xlane.f32.xlu0 %v1265_v12 }
 0xa7d   :  { %v1174_v13 = vpop.f32.mrb[4].mxu0 }
 0xa7e   :  { %1179 = vst.msk [vmem:[#allocation2] sm:$0xff] %vm87_vm0, %v1174_v13  ;;  %v5237_v14 = vpop.f32.mrb[5].mxu0 }
 0xa81   :  { %v1420_v15 = vpop.f32.mrb[8].mxu0 }
 0xa82   :  { %v1424_v16 = vmul.f32 0.35355338, %v1420_v15  ;;  %v5252_v17 = vpop.f32.mrb[9].mxu0 }
 0xa84   :  { %v1425_v18 = vsel %vm5916_vm3, %v1424_v16, -1e+09 }
 0xa85   :  { %v1426_v19 = vsel %vm215_vm2, %v1425_v18, -inf  ;;  %v2142_v61 = vld [vmem:[#allocation2] sm:$0xff] }
 0xa86   :  { %1427 = vmax.xlane.f32.xlu1 %v1426_v19  ;;  %v2144_v63 = vadd.f32 %v2142_v61, %v5851_v0  ;;  %v80_v61 = vld [vmem:[%s6552_s12 + $0x10] sm:$0xff] }
 0xa88   :  { %v6103_v7 = vadd.f32 %v4936_v4, %v2144_v63 }
 0xa8a   :  { %v2152_v8 = vsel %vm87_vm0, %v6103_v7, 0.0 }
 0xa97   :  { %1437 = vrot.lane.b32.xlu1 %v5895_v39, %s5751_s1 }
 0xa9b   :  { %1661 = vrot.lane.b32.xlu1 %v5895_v39, %s5749_s18 }
 0xa9f   :  { %1659 = vrot.lane.b32.xlu1 %v5895_v39, %s5750_s19 }
 0xad3   :  { %v1267_v26 = vpop.xlane.xlu0 %1266 }
 0xb13   :  { %v1428_v21 = vpop.xlane.xlu1 %1427 }
 0xb14   :  { %v1429_v22 = vsub.f32 %v1425_v18, %v1428_v21 }
 0xb16   :  { %v1430_v23 = vmul.f32 1.442695, %v1429_v22 }
 0xb17   :  { %v1438_v31 = vpop.permute.xlu1 %1437 }
 0xb18   :  { %5641 = vpow2.f32 %v1430_v23 }
 0xb19   :  { %5643 = vrcp.f32 %v1267_v26 }
 0xb1b   :  { %v1662_v33 = vpop.permute.xlu1 %1661 }
 0xb1f   :  { %v1660_v35 = vpop.permute.xlu1 %1659 }
 0xb22   :  { %v5642_v24 = vpop.eup %5641 }
 0xb23   :  { %v1432_v25 = vsel %vm215_vm2, %v5642_v24, 0.0  ;;  %v5644_v28 = vpop.eup %5643 }
 0xb24   :  { %1433 = vadd.xlane.f32.xlu0 %v1432_v25  ;;  %v1269_v29 = vmul.f32 %v5644_v28, %v5640_v11 }
 0xb3a   :  { %1270 = vrot.lane.b32.xlu0 %v5895_v39, %s5748_s30 }
 0xbb1   :  { %v1434_v27 = vpop.xlane.xlu0 %1433 }
 0xbb2   :  { %5645 = vrcp.f32 %v1434_v27 }
 0xbb5   :  { %v1271_v30 = vpop.permute.xlu0 %1270 }
 0xbb6   :  { %5244 = vmatpush3.msra.mxu1 %v1271_v30 }
 0xbb7   :  { %5246 = vmatmul.mubr.msk.f32.vlgmr.msra.gmra.mrb[14].mxu1 %vm215_vm2, %v1269_v29  ;;  %5253 = vmatprep.subr.mxu1 %v5743_v36 }
 0xbb8   :  { %5254 = vmatpush3.msra.mxu1 %v1438_v31  ;;  %5255 = vmatprep.mubr.msk.f32.mxu1 %vm5744_vm1, %v5743_v36 }
 0xbb9   :  { %5268 = vmatprep.subr.mxu1 %v5743_v36 }
 0xbbc   :  { %v5646_v32 = vpop.eup %5645 }
 0xbbd   :  { %v1436_v34 = vmul.f32 %v5646_v32, %v5642_v24 }
 0xbbf   :  { %5256 = vmatmul.mubr.msk.f32.vlgmr.msra.gmra.mrb[16].mxu1 %vm215_vm2, %v1436_v34 }
 0xbc0   :  { %5269 = vmatpush3.xpose.msk.msra.mxu1 %vm215_vm2, %v1662_v33  ;;  %5270 = vmatprep.mubr.msk.f32.mxu1 %vm5744_vm1, %v5743_v36 }
 0xbc1   :  { %5273 = vmatprep.subr.mxu1 %v5743_v36 }
 0xbc3   :  { %5271 = vmatmul.mubr.msk.f32.vlgmr.msra.gmra.mrb[18].mxu1 %vm215_vm2, %v1660_v35 }
 0xbc4   :  { %5275 = vmatprep.mubr.msk.f32.mxu1 %vm5744_vm1, %v5743_v36 }
 0xc8a   :  { %v1342_v37 = vpop.f32.mrb[14].mxu1 }
 0xc8b   :  { %v5247_v38 = vpop.f32.mrb[15].mxu1 }
 0xc8c   :  { %v4937_v38 = vld [vmem:[%s6548_s8] ss:$0 sm:$0xff] }
 0xc92   :  { %v1509_v40 = vpop.f32.mrb[16].mxu1 }
 0xc93   :  { %v5257_v43 = vpop.f32.mrb[17].mxu1  ;;  %5261 = vmatmul.mubr.msk.f32.vlgmr.msra.gmra.mrb[10].mxu0 %vm215_vm2, %v1509_v40 }
 0xc94   :  { %5264 = vmatpush3.msra.mxu0 %v5959_v20  ;;  %5265 = vmatprep.mubr.msk.f32.mxu0 %vm5744_vm1, %v5743_v36  ;;  %v4938_v43 = vld [vmem:[%s6549_s9] ss:$0 sm:$0xff] }
 0xc95   :  { %5278 = vmatprep.subr.mxu0 %v5743_v36 }
 0xc96   :  { %v1733_v44 = vpop.f32.mrb[18].mxu1 }
 0xc97   :  { %v1737_v45 = vmul.f32 0.35355338, %v1733_v44  ;;  %v5272_v46 = vpop.f32.mrb[19].mxu1 }
 0xc98   :  { %v73_v46 = vld [vmem:[%s6550_s10] sm:$0xff] }
 0xc99   :  { %v1738_v47 = vsel %vm5916_vm3, %v1737_v45, -1e+09 }
 0xc9a   :  { %v1739_v48 = vsel %vm215_vm2, %v1738_v47, -inf }
 0xc9b   :  { %5266 = vmatmul.mubr.msk.f32.vlgmr.msra.gmra.mrb[10].mxu0 %vm215_vm2, %v1342_v37  ;;  %1740 = vmax.xlane.f32.xlu0 %v1739_v48 }
 0xc9c   :  { %5279 = vmatpush3.msra.mxu0 %v5991_v42  ;;  %5280 = vmatprep.mubr.msk.f32.mxu0 %vm5744_vm1, %v5743_v36 }
 0xc9d   :  { %5288 = vmatprep.subr.mxu0 %v5743_v36 }
 0xcb1   :  { %1750 = vrot.lane.b32.xlu0 %v5895_v39, %s6565_s26  ;;  %s6572_s26 = smov 48  }
 0xcb5   :  { %1900 = vrot.lane.b32.xlu0 %v5895_v39, %s6563_s25 }
 0xd28   :  { %v1741_v20 = vpop.xlane.xlu0 %1740 }
 0xd29   :  { %v1742_v50 = vsub.f32 %v1738_v47, %v1741_v20  ;;  %v74_v47 = vld [vmem:[%s6550_s10 + $0x8] sm:$0xff]  ;;  %v75_v20 = vld [vmem:[%s6550_s10 + $0x10] sm:$0xff] }
 0xd2a   :  { %v5515_v48 = vpack.c.bf16 %v74_v47, %v73_v46  ;;  %v4948_v46 = vld [vmem:[%s6544_s4 + $0x28] sm:$0xff] }
 0xd2b   :  { %v1743_v51 = vmul.f32 1.442695, %v1742_v50  ;;  %v76_v50 = vld [vmem:[%s6550_s10 + $0x18] sm:$0xff] }
 0xd2c   :  { %v1751_v52 = vpop.permute.xlu0 %1750 }
 0xd2d   :  { %5647 = vpow2.f32 %v1743_v51  ;;  %5274 = vmatpush3.msra.mxu1 %v1751_v52  ;;  %v5519_v51 = vpack.c.bf16 %v76_v50, %v75_v20  ;;  %v4950_v20 = vld [vmem:[%s6544_s4 + $0x38] sm:$0xff] }
 0xd2e   :  { %5283 = vmatprep.subr.mxu1 %v5743_v36 }
 0xd30   :  { %v1901_v57 = vpop.permute.xlu0 %1900 }
 0xd37   :  { %v5648_v42 = vpop.eup %5647 }
 0xd38   :  { %v1745_v53 = vsel %vm215_vm2, %v5648_v42, 0.0 }
 0xd39   :  { %1746 = vadd.xlane.f32.xlu1 %v1745_v53 }
 0xd4a   :  { %1902 = vrot.lane.b32.xlu1 %v5895_v39, %s6561_s24 }
 0xdc6   :  { %v1747_v54 = vpop.xlane.xlu1 %1746 }
 0xdc7   :  { %5649 = vrcp.f32 %v1747_v54 }
 0xdca   :  { %v1903_v41 = vpop.permute.xlu1 %1902 }
 0xdd1   :  { %v5650_v55 = vpop.eup %5649 }
 0xdd2   :  { %v1749_v56 = vmul.f32 %v5650_v55, %v5648_v42 }
 0xdd4   :  { %5276 = vmatmul.mubr.msk.f32.vlgmr.msra.gmra.mrb[20].mxu1 %vm215_vm2, %v1749_v56 }
 0xdd5   :  { %5284 = vmatpush3.xpose.msk.msra.mxu1 %vm215_vm2, %v1903_v41  ;;  %5285 = vmatprep.mubr.msk.f32.mxu1 %vm5744_vm1, %v5743_v36 }
 0xdd6   :  { %5516 = vmatprep.subr.bf16.mxu1 %v5515_v48 }
 0xdd8   :  { %5286 = vmatmul.mubr.msk.f32.vlgmr.msra.gmra.mrb[22].mxu1 %vm215_vm2, %v1901_v57  ;;  %v78_v57 = vld [vmem:[%s6552_s12] sm:$0xff] }
 0xdd9   :  { %5518 = vmatpush3.bf16.msra.mxu1 %v5515_v48  ;;  %v4949_v48 = vld [vmem:[%s6544_s4 + $0x30] sm:$0xff] }
 0xdda   :  { %5520 = vmatprep.subr.bf16.mxu1 %v5519_v51  ;;  %v5543_v50 = vpack.c.bf16 %v4950_v20, %v4949_v48  ;;  %v6281_v48 = vld [vmem:[%s6546_s6 + $0x20] sm:$0xff] }
 0xddd   :  { %5522 = vmatpush3.bf16.msra.mxu1 %v5519_v51 }
 0xea7   :  { %v1822_v58 = vpop.f32.mrb[20].mxu1 }
 0xea8   :  { %v5277_v59 = vpop.f32.mrb[21].mxu1  ;;  %5281 = vmatmul.mubr.msk.f32.vlgmr.msra.gmra.mrb[10].mxu0 %vm215_vm2, %v1822_v58  ;;  %v79_v58 = vld [vmem:[%s6552_s12 + $0x8] sm:$0xff] }
 0xea9   :  { %5290 = vmatprep.mubr.msk.f32.mxu0 %vm5744_vm1, %v5743_v36  ;;  %v5523_v59 = vpack.c.bf16 %v79_v58, %v78_v57  ;;  %v4968_v58 = vld [vmem:[%s6543_s3 + $0x1] ss:$0 sm:$0xff] }
 0xeab   :  { %v1974_v62 = vpop.f32.mrb[22].mxu1 }
 0xeac   :  { %v1978_v2 = vmul.f32 0.35355338, %v1974_v62  ;;  %v5287_v3 = vpop.f32.mrb[23].mxu1  ;;  %v81_v62 = vld [vmem:[%s6552_s12 + $0x18] sm:$0xff] }
 0xead   :  { %v5527_v63 = vpack.c.bf16 %v81_v62, %v80_v61  ;;  %v83_v3 = vld [vmem:[%s6552_s12 + $0x28] sm:$0xff] }
 0xeae   :  { %v1979_v5 = vsel %vm5916_vm3, %v1978_v2, -1e+09  ;;  %v82_v2 = vld [vmem:[%s6552_s12 + $0x20] sm:$0xff] }
 0xeaf   :  { %v1980_v6 = vsel %vm215_vm2, %v1979_v5, -inf }
 0xeb0   :  { %1981 = vmax.xlane.f32.xlu1 %v1980_v6  ;;  %v85_v6 = vld [vmem:[%s6552_s12 + $0x38] sm:$0xff] }
 0xeb4   :  { %2153 = vadd.xlane.f32.xlu1 %v2152_v8 }
 0xf3d   :  { %v1982_v9 = vpop.xlane.xlu1 %1981 }
 0xf3e   :  { %v1983_v0 = vsub.f32 %v1979_v5, %v1982_v9  ;;  %v84_v5 = vld [vmem:[%s6552_s12 + $0x30] sm:$0xff]  ;;  %v4939_v9 = vld [vmem:[%s6551_s11] ss:$0 sm:$0xff] }
 0xf3f   :  { %v5535_v8 = vpack.c.bf16 %v85_v6, %v84_v5 }
 0xf40   :  { %v1984_v10 = vmul.f32 1.442695, %v1983_v0 }
 0xf41   :  { %v2154_v21 = vpop.xlane.xlu1 %2153 }
 0xf42   :  { %5651 = vpow2.f32 %v1984_v10  ;;  %v2158_v22 = vmul.f32 0.03125, %v2154_v21 }
 0xf44   :  { %v2160_v24 = vsub.f32 %v6103_v7, %v2158_v22 }
 0xf46   :  { %v2162_v27 = vmul.f32 %v2160_v24, %v2160_v24 }
 0xf48   :  { %v2164_v28 = vsel %vm87_vm0, %v2162_v27, 0.0 }
 0xf4c   :  { %v5652_v11 = vpop.eup %5651 }
 0xf4d   :  { %v1986_v12 = vsel %vm215_vm2, %v5652_v11, 0.0 }
 0xf4e   :  { %1987 = vadd.xlane.f32.xlu0 %v1986_v12 }
 0xf64   :  { %1991 = vrot.lane.b32.xlu0 %v5895_v39, %s6559_s21  ;;  %s6573_s21 = smov 104  }
 0xfdb   :  { %v1988_v13 = vpop.xlane.xlu0 %1987 }
 0xfdc   :  { %5653 = vrcp.f32 %v1988_v13 }
 0xfdf   :  { %v1992_v14 = vpop.permute.xlu0 %1991 }
 0xfe0   :  { %5289 = vmatpush3.msra.mxu0 %v1992_v14 }
 0xfe1   :  { %5293 = vmatprep.subr.mxu0 %v5743_v36 }
 0xfe6   :  { %v5654_v15 = vpop.eup %5653 }
 0xfe7   :  { %v1990_v16 = vmul.f32 %v5654_v15, %v5652_v11 }
 0xfe9   :  { %5291 = vmatmul.mubr.msk.f32.vlgmr.msra.gmra.mrb[12].mxu0 %vm215_vm2, %v1990_v16 }
 0xfea   :  { %5294 = vmatpush3.msra.mxu0 %v6020_v60  ;;  %5295 = vmatprep.mubr.msk.f32.mxu0 %vm5744_vm1, %v5743_v36 }
 0xfeb   :  { %5524 = vmatprep.subr.bf16.mxu0 %v5523_v59 }
0x10bc   :  { %v2063_v17 = vpop.f32.mrb[12].mxu0 }
0x10bd   :  { %v5292_v18 = vpop.f32.mrb[13].mxu0  ;;  %5296 = vmatmul.mubr.msk.f32.vlgmr.msra.gmra.mrb[10].mxu0 %vm215_vm2, %v2063_v17 }
0x10be   :  { %5526 = vmatpush3.bf16.msra.mxu0 %v5523_v59 }
0x10bf   :  { %5528 = vmatprep.subr.bf16.mxu0 %v5527_v63 }
0x10c2   :  { %5530 = vmatpush3.bf16.msra.mxu0 %v5527_v63 }
0x1190   :  { %v2136_v39 = vpop.f32.mrb[10].mxu0 }
0x1191   :  { %2141 = vst.msk [vmem:[#allocation2 + $0x8] sm:$0xff] %vm87_vm0, %v2136_v39  ;;  %v5297_v19 = vpop.f32.mrb[11].mxu0 }
0x1198   :  { %v2143_v23 = vld [vmem:[#allocation2 + $0x8] sm:$0xff] }
0x1199   :  { %v2145_v25 = vadd.f32 %v2143_v23, %v5856_v1 }
0x119b   :  { %v6119_v26 = vadd.f32 %v4936_v4, %v2145_v25  ;;  %v5531_v4 = vpack.c.bf16 %v83_v3, %v82_v2  ;;  %v4944_v25 = vld [vmem:[%s6553_s13] ss:$0 sm:$0xff] }
0x119d   :  { %v2155_v60 = vsel %vm87_vm0, %v6119_v26, 0.0  ;;  %5532 = vmatprep.subr.bf16.mxu0 %v5531_v4 }
0x119e   :  { %2156 = vadd.xlane.f32.xlu1 %v2155_v60  ;;  %5534 = vmatpush3.bf16.msra.mxu0 %v5531_v4  ;;  %v4969_v4 = vld [vmem:[%s6545_s5 + $0x1] ss:$0 sm:$0xff] }
0x119f   :  { %5536 = vmatprep.subr.bf16.mxu0 %v5535_v8 }
0x11a2   :  { %2165 = vadd.xlane.f32.xlu1 %v2164_v28  ;;  %5538 = vmatpush3.bf16.msra.mxu0 %v5535_v8 }
0x11a3   :  { %5349 = vmatprep.subr.mxu0 %v5743_v36 }
0x122b   :  { %v2157_v29 = vpop.xlane.xlu1 %2156 }
0x122c   :  { %v2159_v30 = vmul.f32 0.03125, %v2157_v29 }
0x122e   :  { %v2161_v31 = vsub.f32 %v6119_v26, %v2159_v30 }
0x122f   :  { %v2166_v32 = vpop.xlane.xlu1 %2165 }
0x1230   :  { %v2170_v33 = vmul.f32 0.03125, %v2166_v32  ;;  %v2163_v34 = vmul.f32 %v2161_v31, %v2161_v31 }
0x1232   :  { %v2172_v35 = vadd.f32 1e-05, %v2170_v33  ;;  %v2167_v1 = vsel %vm87_vm0, %v2163_v34, 0.0 }
0x1233   :  { %2168 = vadd.xlane.f32.xlu1 %v2167_v1 }
0x1234   :  { %5655 = vrsqrt.f32 %v2172_v35 }
0x123e   :  { %v5656_v37 = vpop.eup %5655 }
0x123f   :  { %v2176_v40 = vmul.f32 %v5656_v37, %v2160_v24 }
0x1241   :  { %v2182_v44 = vmul.f32 %v4937_v38, %v2176_v40 }
0x1243   :  { %v2188_v45 = vadd.f32 %v4938_v43, %v2182_v44 }
0x1245   :  { %5306 = vmatprep.mubr.msk.f32.mxu1 %vm87_vm0, %v2188_v45  ;;  %v4947_v45 = vld [vmem:[%s6544_s4 + $0x20] sm:$0xff] }
0x1246   :  { %v5539_v47 = vpack.c.bf16 %v4948_v46, %v4947_v45  ;;  %v6274_v45 = vld [vmem:[%s6546_s6 + $0x28] sm:$0xff] }
0x1248   :  { %5540 = vmatprep.subr.bf16.mxu1 %v5539_v47 }
0x12c0   :  { %v2169_v52 = vpop.xlane.xlu1 %2168 }
0x12c1   :  { %v2171_v42 = vmul.f32 0.03125, %v2169_v52 }
0x12c3   :  { %v2173_v53 = vadd.f32 1e-05, %v2171_v42 }
0x12c5   :  { %5657 = vrsqrt.f32 %v2173_v53 }
0x12cf   :  { %v5658_v54 = vpop.eup %5657 }
0x12d0   :  { %v2177_v55 = vmul.f32 %v5658_v54, %v2161_v31 }
0x12d2   :  { %v2183_v56 = vmul.f32 %v4937_v38, %v2177_v55 }
0x12d4   :  { %v2189_v41 = vadd.f32 %v4938_v43, %v2183_v56 }
0x12d6   :  { %5307 = vmatmul.mubr.msk.f32.vlgmr.msra.gmra.mrb[24].mxu1 %vm87_vm0, %v2189_v41  ;;  %v4967_v41 = vld [vmem:[%s6542_s2 + $0x1] ss:$0 sm:$0xff] }
0x12d7   :  { %5542 = vmatpush3.bf16.msra.mxu1 %v5539_v47 }
0x12d8   :  { %5544 = vmatprep.subr.bf16.mxu1 %v5543_v50 }
0x12db   :  { %5546 = vmatpush3.bf16.msra.mxu1 %v5543_v50 }
0x12dc   :  { %5339 = vmatprep.subr.mxu1 %v5743_v36 }
0x13a9   :  { %v5308_v0 = vpop.f32.mrb[24].mxu1 }
0x13aa   :  { %v2272_v10 = vadd.f32 %v5308_v0, %v4939_v9  ;;  %v2266_v11 = vpop.f32.mrb[25].mxu1 }
0x13ab   :  { %v2267_v12 = vadd.f32 %v4939_v9, %v2266_v11 }
0x13ac   :  { %v4943_v13 = vmul.f32 -1.702, %v2272_v10 }
0x13ad   :  { %v4942_v14 = vmul.f32 -1.702, %v2267_v12 }
0x13ae   :  { %v2281_v15 = vmul.f32 1.442695, %v4943_v13 }
0x13af   :  { %v2279_v16 = vmul.f32 1.442695, %v4942_v14 }
0x13b0   :  { %5659 = vpow2.f32 %v2281_v15 }
0x13b1   :  { %5661 = vpow2.f32 %v2279_v16 }
0x13ba   :  { %v5660_v17 = vpop.eup %5659 }
0x13bb   :  { %v5662_v18 = vpop.eup %5661  ;;  %v2284_v39 = vadd.f32 1.0, %v5660_v17 }
0x13bc   :  { %v2283_v19 = vadd.f32 1.0, %v5662_v18 }
0x13bd   :  { %5663 = vrcp.f32 %v2284_v39 }
0x13be   :  { %5665 = vrcp.f32 %v2283_v19 }
0x13c7   :  { %v5664_v21 = vpop.eup %5663 }
0x13c8   :  { %v5666_v22 = vpop.eup %5665  ;;  %v2290_v24 = vmul.f32 %v5664_v21, %v2272_v10 }
0x13c9   :  { %v2289_v23 = vmul.f32 %v5666_v22, %v2267_v12 }
0x13cb   :  { %5325 = vmatprep.mubr.msk.f32.mxu0 %vm2295_vm4, %v2289_v23 }
0x13cc   :  { %5326 = vmatmul.mubr.msk.f32.vlgmr.msra.gmra.mrb[14].mxu0 %vm2295_vm4, %v2290_v24 }
0x13cd   :  { %5351 = vmatprep.mubr.msk.f32.mxu0 %vm5744_vm1, %v5743_v36 }
0x149f   :  { %v5327_v60 = vpop.f32.mrb[14].mxu0 }
0x14a0   :  { %v2374_v27 = vadd.f32 %v5327_v60, %v4944_v25  ;;  %v2368_v28 = vpop.f32.mrb[15].mxu0 }
0x14a1   :  { %v2369_v29 = vadd.f32 %v4944_v25, %v2368_v28 }
0x14a2   :  { %v6182_v30 = vadd.f32 %v2374_v27, %v6119_v26 }
0x14a3   :  { %v6185_v31 = vadd.f32 %v2369_v29, %v6103_v7 }
0x14a4   :  { %v2414_v32 = vsel %vm87_vm0, %v6182_v30, 0.0 }
0x14a5   :  { %2415 = vadd.xlane.f32.xlu0 %v2414_v32  ;;  %v2411_v33 = vsel %vm87_vm0, %v6185_v31, 0.0 }
0x14a6   :  { %2412 = vadd.xlane.f32.xlu1 %v2411_v33 }
0x1532   :  { %v2416_v34 = vpop.xlane.xlu0 %2415 }
0x1533   :  { %v2418_v35 = vmul.f32 0.03125, %v2416_v34  ;;  %v2413_v1 = vpop.xlane.xlu1 %2412 }
0x1534   :  { %v2417_v37 = vmul.f32 0.03125, %v2413_v1 }
0x1535   :  { %v2420_v38 = vsub.f32 %v6182_v30, %v2418_v35 }
0x1536   :  { %v2419_v26 = vsub.f32 %v6185_v31, %v2417_v37 }
0x1537   :  { %v2422_v43 = vmul.f32 %v2420_v38, %v2420_v38 }
0x1538   :  { %v2421_v40 = vmul.f32 %v2419_v26, %v2419_v26 }
0x1539   :  { %v2426_v44 = vsel %vm87_vm0, %v2422_v43, 0.0 }
0x153a   :  { %v2423_v7 = vsel %vm87_vm0, %v2421_v40, 0.0 }
0x153b   :  { %2424 = vadd.xlane.f32.xlu1 %v2423_v7 }
0x153f   :  { %2427 = vadd.xlane.f32.xlu1 %v2426_v44 }
0x15c8   :  { %v2425_v51 = vpop.xlane.xlu1 %2424 }
0x15c9   :  { %v2429_v52 = vmul.f32 0.03125, %v2425_v51 }
0x15cb   :  { %v2431_v42 = vadd.f32 1e-05, %v2429_v52 }
0x15cc   :  { %v2428_v53 = vpop.xlane.xlu1 %2427 }
0x15cd   :  { %5667 = vrsqrt.f32 %v2431_v42  ;;  %v2430_v54 = vmul.f32 0.03125, %v2428_v53 }
0x15cf   :  { %v2432_v55 = vadd.f32 1e-05, %v2430_v54 }
0x15d1   :  { %5669 = vrsqrt.f32 %v2432_v55 }
0x15d7   :  { %v5668_v56 = vpop.eup %5667 }
0x15d8   :  { %v2435_v57 = vmul.f32 %v5668_v56, %v2419_v26 }
0x15da   :  { %v2441_v59 = vmul.f32 %v4967_v41, %v2435_v57 }
0x15db   :  { %v5670_v61 = vpop.eup %5669 }
0x15dc   :  { %v2436_v62 = vmul.f32 %v5670_v61, %v2420_v38  ;;  %v2447_v63 = vadd.f32 %v4968_v58, %v2441_v59 }
0x15de   :  { %v2442_v2 = vmul.f32 %v4967_v41, %v2436_v62  ;;  %5336 = vmatprep.mubr.msk.f32.mxu1 %vm87_vm0, %v2447_v63 }
0x15e0   :  { %v2448_v3 = vadd.f32 %v4968_v58, %v2442_v2 }
0x15e2   :  { %5337 = vmatmul.mubr.msk.f32.vlgmr.msra.gmra.mrb[26].mxu1 %vm87_vm0, %v2448_v3 }
0x15e3   :  { %5341 = vmatprep.mubr.msk.f32.mxu1 %vm5744_vm1, %v5743_v36 }
0x16b5   :  { %v5338_v5 = vpop.f32.mrb[26].mxu1 }
0x16b6   :  { %v6221_v6 = vadd.f32 %v5338_v5, %v4969_v4  ;;  %v2525_v8 = vpop.f32.mrb[27].mxu1 }
0x16b7   :  { %v6223_v9 = vadd.f32 %v4969_v4, %v2525_v8  ;;  %v6313_v4 = vld [vmem:[%s6546_s6 + $0x30] sm:$0xff] }
0x16b9   :  { %2700 = vrot.lane.b32.xlu0 %v6223_v9, %s5747_s0  ;;  %2535 = vrot.lane.b32.xlu1 %v6223_v9, %s5746_s29 }
0x16bd   :  { %2702 = vrot.lane.b32.xlu1 %v6223_v9, %s5745_s28 }
0x172b   :  { %v2536_v0 = vpop.permute.xlu1 %2535  ;;  %v2701_v11 = vpop.permute.xlu0 %2700 }
0x172c   :  { %5340 = vmatpush3.xpose.msk.msra.mxu1 %vm215_vm2, %v2536_v0 }
0x172d   :  { %5344 = vmatprep.subr.mxu1 %v5743_v36 }
0x172f   :  { %5342 = vmatmul.mubr.msk.f32.vlgmr.msra.gmra.mrb[28].mxu1 %vm215_vm2, %v6223_v9  ;;  %v2703_v10 = vpop.permute.xlu1 %2702 }
0x1730   :  { %5350 = vmatpush3.xpose.msk.msra.mxu0 %vm215_vm2, %v2703_v10  ;;  %5346 = vmatprep.mubr.msk.f32.mxu1 %vm5744_vm1, %v5743_v36 }
0x1731   :  { %5359 = vmatprep.subr.mxu0 %v5743_v36 }
0x1733   :  { %5352 = vmatmul.mubr.msk.f32.vlgmr.msra.gmra.mrb[16].mxu0 %vm215_vm2, %v2701_v11 }
0x1734   :  { %5361 = vmatprep.mubr.msk.f32.mxu0 %vm5744_vm1, %v5743_v36  ;;  %5360 = vmatpush3.msra.mxu0 %v6274_v45 }
0x1735   :  { %5364 = vmatprep.subr.mxu0 %v5743_v36 }
0x1802   :  { %v2607_v12 = vpop.f32.mrb[28].mxu1 }
0x1803   :  { %v2611_v13 = vmul.f32 0.35355338, %v2607_v12  ;;  %v5343_v14 = vpop.f32.mrb[29].mxu1 }
0x1805   :  { %v2612_v15 = vsel %vm5916_vm3, %v2611_v13, -1e+09 }
0x1806   :  { %v2774_v16 = vpop.f32.mrb[16].mxu0  ;;  %v2613_v17 = vsel %vm215_vm2, %v2612_v15, -inf }
0x1807   :  { %v2778_v18 = vmul.f32 0.35355338, %v2774_v16  ;;  %2614 = vmax.xlane.f32.xlu1 %v2613_v17  ;;  %v5353_v39 = vpop.f32.mrb[17].mxu0 }
0x1809   :  { %v2779_v19 = vsel %vm5916_vm3, %v2778_v18, -1e+09 }
0x180a   :  { %v2780_v21 = vsel %vm215_vm2, %v2779_v19, -inf }
0x180b   :  { %2781 = vmax.xlane.f32.xlu0 %v2780_v21 }
0x1818   :  { %2624 = vrot.lane.b32.xlu1 %v6223_v9, %s5748_s30 }
0x181c   :  { %3015 = vrot.lane.b32.xlu1 %v6223_v9, %s5749_s18 }
0x1821   :  { %2791 = vrot.lane.b32.xlu0 %v6223_v9, %s5751_s1 }
0x1894   :  { %v2615_v22 = vpop.xlane.xlu1 %2614 }
0x1895   :  { %v2616_v23 = vsub.f32 %v2612_v15, %v2615_v22 }
0x1897   :  { %v2617_v24 = vmul.f32 1.442695, %v2616_v23 }
0x1898   :  { %v2782_v25 = vpop.xlane.xlu0 %2781  ;;  %v2625_v60 = vpop.permute.xlu1 %2624 }
0x1899   :  { %5671 = vpow2.f32 %v2617_v24  ;;  %v2783_v27 = vsub.f32 %v2779_v19, %v2782_v25  ;;  %5345 = vmatpush3.msra.mxu1 %v2625_v60 }
0x189a   :  { %5354 = vmatprep.subr.mxu1 %v5743_v36 }
0x189b   :  { %v2784_v28 = vmul.f32 1.442695, %v2783_v27 }
0x189c   :  { %v3016_v35 = vpop.permute.xlu1 %3015  ;;  %v2792_v40 = vpop.permute.xlu0 %2791 }
0x189d   :  { %5673 = vpow2.f32 %v2784_v28  ;;  %v6350_v28 = vld [vmem:[%s6546_s6 + $0x38] sm:$0xff] }
0x18a3   :  { %v5672_v29 = vpop.eup %5671 }
0x18a4   :  { %v2619_v32 = vsel %vm215_vm2, %v5672_v29, 0.0 }
0x18a5   :  { %2620 = vadd.xlane.f32.xlu1 %v2619_v32 }
0x18a7   :  { %v5674_v33 = vpop.eup %5673 }
0x18a8   :  { %v2786_v34 = vsel %vm215_vm2, %v5674_v33, 0.0 }
0x18a9   :  { %2787 = vadd.xlane.f32.xlu1 %v2786_v34 }
0x18ba   :  { %3013 = vrot.lane.b32.xlu1 %v6223_v9, %s5750_s19 }
0x1932   :  { %v2621_v1 = vpop.xlane.xlu1 %2620 }
0x1933   :  { %5675 = vrcp.f32 %v2621_v1 }
0x1936   :  { %v2788_v37 = vpop.xlane.xlu1 %2787 }
0x1937   :  { %5677 = vrcp.f32 %v2788_v37 }
0x193a   :  { %v3014_v44 = vpop.permute.xlu1 %3013 }
0x193d   :  { %v5676_v38 = vpop.eup %5675 }
0x193e   :  { %v2623_v26 = vmul.f32 %v5676_v38, %v5672_v29 }
0x1940   :  { %5347 = vmatmul.mubr.msk.f32.vlgmr.msra.gmra.mrb[30].mxu1 %vm215_vm2, %v2623_v26 }
0x1941   :  { %v5678_v7 = vpop.eup %5677  ;;  %5355 = vmatpush3.msra.mxu1 %v2792_v40  ;;  %5356 = vmatprep.mubr.msk.f32.mxu1 %vm5744_vm1, %v5743_v36 }
0x1942   :  { %v2790_v43 = vmul.f32 %v5678_v7, %v5674_v33  ;;  %5369 = vmatprep.subr.mxu1 %v5743_v36 }
0x1944   :  { %5357 = vmatmul.mubr.msk.f32.vlgmr.msra.gmra.mrb[32].mxu1 %vm215_vm2, %v2790_v43 }
0x1945   :  { %5371 = vmatprep.mubr.msk.f32.mxu1 %vm5744_vm1, %v5743_v36 }
0x1948   :  { %5370 = vmatpush3.xpose.msk.msra.mxu1 %vm215_vm2, %v3016_v35 }
0x1949   :  { %5374 = vmatprep.subr.mxu1 %v5743_v36 }
0x194b   :  { %5372 = vmatmul.mubr.msk.f32.vlgmr.msra.gmra.mrb[34].mxu1 %vm215_vm2, %v3014_v44 }
0x194c   :  { %5376 = vmatprep.mubr.msk.f32.mxu1 %vm5744_vm1, %v5743_v36 }
0x1a13   :  { %v2696_v46 = vpop.f32.mrb[30].mxu1 }
0x1a14   :  { %v5348_v47 = vpop.f32.mrb[31].mxu1 }
0x1a17   :  { %v2863_v20 = vpop.f32.mrb[32].mxu1 }
0x1a18   :  { %v5358_v50 = vpop.f32.mrb[33].mxu1  ;;  %5362 = vmatmul.mubr.msk.f32.vlgmr.msra.gmra.mrb[18].mxu0 %vm215_vm2, %v2863_v20 }
0x1a19   :  { %5365 = vmatpush3.msra.mxu0 %v6281_v48  ;;  %5366 = vmatprep.mubr.msk.f32.mxu0 %vm5744_vm1, %v5743_v36 }
0x1a1a   :  { %5379 = vmatprep.subr.mxu0 %v5743_v36 }
0x1a1e   :  { %v3087_v51 = vpop.f32.mrb[34].mxu1 }
0x1a1f   :  { %v3091_v52 = vmul.f32 0.35355338, %v3087_v51  ;;  %v5373_v42 = vpop.f32.mrb[35].mxu1 }
0x1a20   :  { %5367 = vmatmul.mubr.msk.f32.vlgmr.msra.gmra.mrb[18].mxu0 %vm215_vm2, %v2696_v46 }
0x1a21   :  { %v3092_v53 = vsel %vm5916_vm3, %v3091_v52, -1e+09  ;;  %5381 = vmatprep.mubr.msk.f32.mxu0 %vm5744_vm1, %v5743_v36  ;;  %5380 = vmatpush3.msra.mxu0 %v6313_v4 }
0x1a22   :  { %v3093_v54 = vsel %vm215_vm2, %v3092_v53, -inf  ;;  %5389 = vmatprep.subr.mxu0 %v5743_v36 }
0x1a23   :  { %3094 = vmax.xlane.f32.xlu1 %v3093_v54 }
0x1a34   :  { %3104 = vrot.lane.b32.xlu1 %v6223_v9, %s6572_s26 }
0x1a38   :  { %3254 = vrot.lane.b32.xlu1 %v6223_v9, %s6573_s21 }
0x1ab0   :  { %v3095_v55 = vpop.xlane.xlu1 %3094 }
0x1ab1   :  { %v3096_v56 = vsub.f32 %v3092_v53, %v3095_v55 }
0x1ab3   :  { %v3097_v41 = vmul.f32 1.442695, %v3096_v56 }
0x1ab4   :  { %v3105_v57 = vpop.permute.xlu1 %3104 }
0x1ab5   :  { %5679 = vpow2.f32 %v3097_v41  ;;  %5375 = vmatpush3.msra.mxu1 %v3105_v57 }
0x1ab6   :  { %5384 = vmatprep.subr.mxu1 %v5743_v36 }
0x1ab8   :  { %v3255_v3 = vpop.permute.xlu1 %3254 }
0x1abf   :  { %v5680_v58 = vpop.eup %5679 }
0x1ac0   :  { %v3099_v59 = vsel %vm215_vm2, %v5680_v58, 0.0 }
0x1ac1   :  { %3100 = vadd.xlane.f32.xlu0 %v3099_v59 }
0x1ad7   :  { %3256 = vrot.lane.b32.xlu0 %v6223_v9, %s6574_s22 }
0x1b4e   :  { %v3101_v61 = vpop.xlane.xlu0 %3100 }
0x1b4f   :  { %5681 = vrcp.f32 %v3101_v61 }
0x1b52   :  { %v3257_v2 = vpop.permute.xlu0 %3256 }
0x1b59   :  { %v5682_v62 = vpop.eup %5681 }
0x1b5a   :  { %v3103_v63 = vmul.f32 %v5682_v62, %v5680_v58 }
0x1b5c   :  { %5377 = vmatmul.mubr.msk.f32.vlgmr.msra.gmra.mrb[36].mxu1 %vm215_vm2, %v3103_v63 }
0x1b5d   :  { %5385 = vmatpush3.xpose.msk.msra.mxu1 %vm215_vm2, %v3257_v2  ;;  %5386 = vmatprep.mubr.msk.f32.mxu1 %vm5744_vm1, %v5743_v36 }
0x1b5e   :  { %5399 = vmatprep.subr.mxu1 %v5743_v36 }
0x1b60   :  { %5387 = vmatmul.mubr.msk.f32.vlgmr.msra.gmra.mrb[38].mxu1 %vm215_vm2, %v3255_v3 }
0x1b61   :  { %5401 = vmatprep.mubr.msk.f32.mxu1 %vm5744_vm1, %v5743_v36 }
0x1c2f   :  { %v3176_v5 = vpop.f32.mrb[36].mxu1 }
0x1c30   :  { %v5378_v8 = vpop.f32.mrb[37].mxu1  ;;  %5382 = vmatmul.mubr.msk.f32.vlgmr.msra.gmra.mrb[18].mxu0 %vm215_vm2, %v3176_v5 }
0x1c31   :  { %5391 = vmatprep.mubr.msk.f32.mxu0 %vm5744_vm1, %v5743_v36 }
0x1c33   :  { %v3328_v0 = vpop.f32.mrb[38].mxu1 }
0x1c34   :  { %v3332_v10 = vmul.f32 0.35355338, %v3328_v0  ;;  %v5388_v11 = vpop.f32.mrb[39].mxu1 }
0x1c36   :  { %v3333_v12 = vsel %vm5916_vm3, %v3332_v10, -1e+09 }
0x1c37   :  { %v3334_v13 = vsel %vm215_vm2, %v3333_v12, -inf }
0x1c38   :  { %3335 = vmax.xlane.f32.xlu1 %v3334_v13 }
0x1c49   :  { %3497 = vrot.lane.b32.xlu1 %v6221_v6, %s5746_s29 }
0x1c4d   :  { %3664 = vrot.lane.b32.xlu1 %v6221_v6, %s5745_s28  ;;  %s6575_s28 = smov 40  }
0x1cc5   :  { %v3336_v14 = vpop.xlane.xlu1 %3335 }
0x1cc6   :  { %v3337_v15 = vsub.f32 %v3333_v12, %v3336_v14 }
0x1cc8   :  { %v3338_v16 = vmul.f32 1.442695, %v3337_v15 }
0x1cc9   :  { %v3498_v17 = vpop.permute.xlu1 %3497 }
0x1cca   :  { %5683 = vpow2.f32 %v3338_v16  ;;  %5400 = vmatpush3.xpose.msk.msra.mxu1 %vm215_vm2, %v3498_v17 }
0x1ccb   :  { %5404 = vmatprep.subr.mxu1 %v5743_v36 }
0x1ccd   :  { %5402 = vmatmul.mubr.msk.f32.vlgmr.msra.gmra.mrb[40].mxu1 %vm215_vm2, %v6221_v6  ;;  %v3665_v32 = vpop.permute.xlu1 %3664 }
0x1cce   :  { %5406 = vmatprep.mubr.msk.f32.mxu1 %vm5744_vm1, %v5743_v36 }
0x1cd4   :  { %v5684_v18 = vpop.eup %5683 }
0x1cd5   :  { %v3340_v39 = vsel %vm215_vm2, %v5684_v18, 0.0 }
0x1cd6   :  { %3341 = vadd.xlane.f32.xlu0 %v3340_v39 }
0x1cec   :  { %3345 = vrot.lane.b32.xlu0 %v6223_v9, %s6575_s28 }
0x1cf0   :  { %3662 = vrot.lane.b32.xlu0 %v6221_v6, %s5747_s0 }
0x1d63   :  { %v3342_v19 = vpop.xlane.xlu0 %3341 }
0x1d64   :  { %5685 = vrcp.f32 %v3342_v19 }
0x1d67   :  { %v3346_v21 = vpop.permute.xlu0 %3345 }
0x1d68   :  { %5390 = vmatpush3.msra.mxu0 %v3346_v21 }
0x1d69   :  { %5394 = vmatprep.subr.mxu0 %v5743_v36 }
0x1d6b   :  { %v3663_v34 = vpop.permute.xlu0 %3662 }
0x1d6e   :  { %v5686_v22 = vpop.eup %5685 }
0x1d6f   :  { %v3344_v23 = vmul.f32 %v5686_v22, %v5684_v18 }
0x1d71   :  { %5392 = vmatmul.mubr.msk.f32.vlgmr.msra.gmra.mrb[20].mxu0 %vm215_vm2, %v3344_v23 }
0x1d72   :  { %5396 = vmatprep.mubr.msk.f32.mxu0 %vm5744_vm1, %v5743_v36  ;;  %5395 = vmatpush3.msra.mxu0 %v6350_v28 }
0x1d73   :  { %5409 = vmatprep.subr.mxu0 %v5743_v36 }
0x1da0   :  { %v3569_v24 = vpop.f32.mrb[40].mxu1 }
0x1da1   :  { %v3573_v25 = vmul.f32 0.35355338, %v3569_v24  ;;  %v5403_v60 = vpop.f32.mrb[41].mxu1 }
0x1da3   :  { %v3574_v9 = vsel %vm5916_vm3, %v3573_v25, -1e+09 }
0x1da4   :  { %v3575_v27 = vsel %vm215_vm2, %v3574_v9, -inf }
0x1da5   :  { %3576 = vmax.xlane.f32.xlu1 %v3575_v27 }
0x1db6   :  { %3753 = vrot.lane.b32.xlu1 %v6221_v6, %s5751_s1 }
0x1e32   :  { %v3577_v35 = vpop.xlane.xlu1 %3576 }
0x1e33   :  { %v3578_v1 = vsub.f32 %v3574_v9, %v3577_v35 }
0x1e35   :  { %v3579_v37 = vmul.f32 1.442695, %v3578_v1 }
0x1e36   :  { %v3754_v41 = vpop.permute.xlu1 %3753 }
0x1e37   :  { %5687 = vpow2.f32 %v3579_v37 }
0x1e41   :  { %v5688_v46 = vpop.eup %5687 }
0x1e42   :  { %v3581_v47 = vsel %vm215_vm2, %v5688_v46, 0.0 }
0x1e44   :  { %v3417_v29 = vpop.f32.mrb[20].mxu0 }
0x1e45   :  { %v5393_v33 = vpop.f32.mrb[21].mxu0  ;;  %5397 = vmatmul.mubr.msk.f32.vlgmr.msra.gmra.mrb[18].mxu0 %vm215_vm2, %v3417_v29 }
0x1e46   :  { %5410 = vmatpush3.xpose.msk.msra.mxu0 %vm215_vm2, %v3665_v32  ;;  %5411 = vmatprep.mubr.msk.f32.mxu0 %vm5744_vm1, %v5743_v36 }
0x1e47   :  { %5419 = vmatprep.subr.mxu0 %v5743_v36 }
0x1e49   :  { %5412 = vmatmul.mubr.msk.f32.vlgmr.msra.gmra.mrb[22].mxu0 %vm215_vm2, %v3663_v34 }
0x1e4a   :  { %5420 = vmatpush3.msra.mxu0 %v6274_v45  ;;  %5421 = vmatprep.mubr.msk.f32.mxu0 %vm5744_vm1, %v5743_v36 }
0x1e4b   :  { %5424 = vmatprep.subr.mxu0 %v5743_v36 }
0x1f18   :  { %v3490_v38 = vpop.f32.mrb[18].mxu0 }
0x1f19   :  { %3495 = vst.msk [vmem:[#allocation2] sm:$0xff] %vm87_vm0, %v3490_v38  ;;  %v5398_v26 = vpop.f32.mrb[19].mxu0 }
0x1f1c   :  { %v3736_v40 = vpop.f32.mrb[22].mxu0 }
0x1f1d   :  { %v3740_v7 = vmul.f32 0.35355338, %v3736_v40  ;;  %v5413_v43 = vpop.f32.mrb[23].mxu0 }
0x1f1f   :  { %v3741_v44 = vsel %vm5916_vm3, %v3740_v7, -1e+09 }
0x1f20   :  { %v3742_v45 = vsel %vm215_vm2, %v3741_v44, -inf  ;;  %v4458_v35 = vld [vmem:[#allocation2] sm:$0xff] }
0x1f21   :  { %3743 = vmax.xlane.f32.xlu0 %v3742_v45  ;;  %v4460_v1 = vadd.f32 %v4458_v35, %v6185_v31 }
0x1f23   :  { %v6429_v26 = vadd.f32 %v5004_v49, %v4460_v1 }
0x1f25   :  { %3582 = vadd.xlane.f32.xlu0 %v3581_v47 }
0x1f3b   :  { %3586 = vrot.lane.b32.xlu0 %v6221_v6, %s5748_s30 }
0x1f3f   :  { %3975 = vrot.lane.b32.xlu0 %v6221_v6, %s5750_s19 }
0x1fae   :  { %v3744_v20 = vpop.xlane.xlu0 %3743 }
0x1faf   :  { %v3745_v50 = vsub.f32 %v3741_v44, %v3744_v20 }
0x1fb1   :  { %v3746_v51 = vmul.f32 1.442695, %v3745_v50 }
0x1fb2   :  { %v3583_v52 = vpop.xlane.xlu0 %3582 }
0x1fb3   :  { %5689 = vpow2.f32 %v3746_v51 }
0x1fb4   :  { %5691 = vrcp.f32 %v3583_v52 }
0x1fb6   :  { %v3587_v42 = vpop.permute.xlu0 %3586 }
0x1fb7   :  { %5405 = vmatpush3.msra.mxu1 %v3587_v42 }
0x1fb8   :  { %5414 = vmatprep.subr.mxu1 %v5743_v36 }
0x1fba   :  { %v3976_v62 = vpop.permute.xlu0 %3975 }
0x1fbd   :  { %v5690_v53 = vpop.eup %5689 }
0x1fbe   :  { %v5692_v54 = vpop.eup %5691  ;;  %v3748_v55 = vsel %vm215_vm2, %v5690_v53, 0.0 }
0x1fbf   :  { %v3585_v56 = vmul.f32 %v5692_v54, %v5688_v46  ;;  %3749 = vadd.xlane.f32.xlu1 %v3748_v55 }
0x1fc1   :  { %5407 = vmatmul.mubr.msk.f32.vlgmr.msra.gmra.mrb[42].mxu1 %vm215_vm2, %v3585_v56 }
0x1fc2   :  { %5415 = vmatpush3.msra.mxu1 %v3754_v41  ;;  %5416 = vmatprep.mubr.msk.f32.mxu1 %vm5744_vm1, %v5743_v36 }
0x1fc3   :  { %5429 = vmatprep.subr.mxu1 %v5743_v36 }
0x1fd0   :  { %3977 = vrot.lane.b32.xlu1 %v6221_v6, %s5749_s18 }
0x204c   :  { %v3750_v57 = vpop.xlane.xlu1 %3749 }
0x204d   :  { %5693 = vrcp.f32 %v3750_v57 }
0x2050   :  { %v3978_v61 = vpop.permute.xlu1 %3977 }
0x2057   :  { %v5694_v58 = vpop.eup %5693 }
0x2058   :  { %v3752_v59 = vmul.f32 %v5694_v58, %v5690_v53 }
0x205a   :  { %5417 = vmatmul.mubr.msk.f32.vlgmr.msra.gmra.mrb[44].mxu1 %vm215_vm2, %v3752_v59 }
0x205b   :  { %5430 = vmatpush3.xpose.msk.msra.mxu1 %vm215_vm2, %v3978_v61  ;;  %5431 = vmatprep.mubr.msk.f32.mxu1 %vm5744_vm1, %v5743_v36 }
0x205c   :  { %5434 = vmatprep.subr.mxu1 %v5743_v36 }
0x205e   :  { %5432 = vmatmul.mubr.msk.f32.vlgmr.msra.gmra.mrb[46].mxu1 %vm215_vm2, %v3976_v62 }
0x205f   :  { %5436 = vmatprep.mubr.msk.f32.mxu1 %vm5744_vm1, %v5743_v36 }
0x2094   :  { %v3658_v63 = vpop.f32.mrb[42].mxu1 }
0x2095   :  { %v5408_v2 = vpop.f32.mrb[43].mxu1 }
0x212d   :  { %v3825_v3 = vpop.f32.mrb[44].mxu1 }
0x212e   :  { %v5418_v5 = vpop.f32.mrb[45].mxu1  ;;  %5422 = vmatmul.mubr.msk.f32.vlgmr.msra.gmra.mrb[24].mxu0 %vm215_vm2, %v3825_v3  ;;  %v5006_v3 = vld [vmem:[%s6549_s9 + $0x1] ss:$0 sm:$0xff] }
0x212f   :  { %5425 = vmatpush3.msra.mxu0 %v6281_v48  ;;  %5426 = vmatprep.mubr.msk.f32.mxu0 %vm5744_vm1, %v5743_v36 }
0x2130   :  { %5439 = vmatprep.subr.mxu0 %v5743_v36 }
0x2131   :  { %v4049_v8 = vpop.f32.mrb[46].mxu1 }
0x2132   :  { %v4053_v0 = vmul.f32 0.35355338, %v4049_v8  ;;  %v5433_v10 = vpop.f32.mrb[47].mxu1 }
0x2133   :  { %v4956_v10 = vld [vmem:[%s6550_s10 + $0x28] sm:$0xff] }
0x2134   :  { %v4054_v11 = vsel %vm5916_vm3, %v4053_v0, -1e+09  ;;  %v4955_v0 = vld [vmem:[%s6550_s10 + $0x20] sm:$0xff] }
0x2135   :  { %v4055_v12 = vsel %vm215_vm2, %v4054_v11, -inf }
0x2136   :  { %5427 = vmatmul.mubr.msk.f32.vlgmr.msra.gmra.mrb[24].mxu0 %vm215_vm2, %v3658_v63  ;;  %4056 = vmax.xlane.f32.xlu1 %v4055_v12  ;;  %v5005_v63 = vld [vmem:[%s6548_s8 + $0x1] ss:$0 sm:$0xff]  ;;  %v4957_v12 = vld [vmem:[%s6550_s10 + $0x30] sm:$0xff]  ;;  %s6576_s8 = sld [smem:[#allocation7_spill]] }
0x2137   :  { %5440 = vmatpush3.msra.mxu0 %v6313_v4  ;;  %5441 = vmatprep.mubr.msk.f32.mxu0 %vm5744_vm1, %v5743_v36 }
0x2138   :  { %5449 = vmatprep.subr.mxu0 %v5743_v36 }
0x2147   :  { %4218 = vrot.lane.b32.xlu1 %v6221_v6, %s6574_s22 }
0x214b   :  { %4216 = vrot.lane.b32.xlu1 %v6221_v6, %s6573_s21 }
0x21c3   :  { %v4057_v48 = vpop.xlane.xlu1 %4056 }
0x21c4   :  { %v4058_v13 = vsub.f32 %v4054_v11, %v4057_v48  ;;  %v5547_v11 = vpack.c.bf16 %v4956_v10, %v4955_v0  ;;  %v4958_v48 = vld [vmem:[%s6550_s10 + $0x38] sm:$0xff] }
0x21c5   :  { %v4802_v0 = vld [vmem:[%s6556_s16 + $0x18] sm:$0xff] }
0x21c6   :  { %v4059_v14 = vmul.f32 1.442695, %v4058_v13  ;;  %v5551_v13 = vpack.c.bf16 %v4958_v48, %v4957_v12 }
0x21c7   :  { %v4219_v39 = vpop.permute.xlu1 %4218 }
0x21c8   :  { %5695 = vpow2.f32 %v4059_v14 }
0x21cb   :  { %v4217_v21 = vpop.permute.xlu1 %4216 }
0x21d2   :  { %v5696_v15 = vpop.eup %5695 }
0x21d3   :  { %v4061_v16 = vsel %vm215_vm2, %v5696_v15, 0.0 }
0x21d4   :  { %4062 = vadd.xlane.f32.xlu0 %v4061_v16 }
0x21ea   :  { %4066 = vrot.lane.b32.xlu0 %v6221_v6, %s6572_s26 }
0x2261   :  { %v4063_v4 = vpop.xlane.xlu0 %4062 }
0x2262   :  { %5697 = vrcp.f32 %v4063_v4 }
0x2265   :  { %v4067_v17 = vpop.permute.xlu0 %4066 }
0x2266   :  { %5435 = vmatpush3.msra.mxu1 %v4067_v17 }
0x2267   :  { %5444 = vmatprep.subr.mxu1 %v5743_v36 }
0x226c   :  { %v5698_v18 = vpop.eup %5697 }
0x226d   :  { %v4065_v19 = vmul.f32 %v5698_v18, %v5696_v15 }
0x226f   :  { %5437 = vmatmul.mubr.msk.f32.vlgmr.msra.gmra.mrb[48].mxu1 %vm215_vm2, %v4065_v19  ;;  %v4959_v19 = vld [vmem:[%s6552_s12 + $0x40] sm:$0xff] }
0x2270   :  { %5445 = vmatpush3.xpose.msk.msra.mxu1 %vm215_vm2, %v4219_v39  ;;  %5446 = vmatprep.mubr.msk.f32.mxu1 %vm5744_vm1, %v5743_v36 }
0x2271   :  { %5548 = vmatprep.subr.bf16.mxu1 %v5547_v11 }
0x2273   :  { %5447 = vmatmul.mubr.msk.f32.vlgmr.msra.gmra.mrb[50].mxu1 %vm215_vm2, %v4217_v21  ;;  %v4960_v21 = vld [vmem:[%s6552_s12 + $0x48] sm:$0xff] }
0x2274   :  { %5550 = vmatpush3.bf16.msra.mxu1 %v5547_v11 }
0x2275   :  { %5552 = vmatprep.subr.bf16.mxu1 %v5551_v13 }
0x2278   :  { %5554 = vmatpush3.bf16.msra.mxu1 %v5551_v13 }
0x2342   :  { %v4138_v22 = vpop.f32.mrb[48].mxu1 }
0x2343   :  { %v5438_v23 = vpop.f32.mrb[49].mxu1  ;;  %5442 = vmatmul.mubr.msk.f32.vlgmr.msra.gmra.mrb[24].mxu0 %vm215_vm2, %v4138_v22  ;;  %v5555_v22 = vpack.c.bf16 %v4960_v21, %v4959_v19 }
0x2344   :  { %5451 = vmatprep.mubr.msk.f32.mxu0 %vm5744_vm1, %v5743_v36  ;;  %v4961_v23 = vld [vmem:[%s6552_s12 + $0x50] sm:$0xff] }
0x2346   :  { %v4290_v24 = vpop.f32.mrb[50].mxu1 }
0x2347   :  { %v4294_v25 = vmul.f32 0.35355338, %v4290_v24  ;;  %v5448_v60 = vpop.f32.mrb[51].mxu1  ;;  %v4962_v24 = vld [vmem:[%s6552_s12 + $0x58] sm:$0xff] }
0x2348   :  { %v4963_v60 = vld [vmem:[%s6552_s12 + $0x60] sm:$0xff] }
0x2349   :  { %v4295_v9 = vsel %vm5916_vm3, %v4294_v25, -1e+09  ;;  %v5559_v25 = vpack.c.bf16 %v4962_v24, %v4961_v23 }
0x234a   :  { %v4296_v27 = vsel %vm215_vm2, %v4295_v9, -inf }
0x234b   :  { %4297 = vmax.xlane.f32.xlu0 %v4296_v27 }
0x2361   :  { %4307 = vrot.lane.b32.xlu0 %v6221_v6, %s6575_s28  ;;  %v4468_v6 = vsel %vm87_vm0, %v6429_v26, 0.0 }
0x23d8   :  { %v4298_v29 = vpop.xlane.xlu0 %4297 }
0x23d9   :  { %v4299_v32 = vsub.f32 %v4295_v9, %v4298_v29  ;;  %v4964_v9 = vld [vmem:[%s6552_s12 + $0x68] sm:$0xff]  ;;  %v4965_v29 = vld [vmem:[%s6552_s12 + $0x70] sm:$0xff] }
0x23da   :  { %v5563_v27 = vpack.c.bf16 %v4964_v9, %v4963_v60 }
0x23db   :  { %v4300_v33 = vmul.f32 1.442695, %v4299_v32  ;;  %v4966_v32 = vld [vmem:[%s6552_s12 + $0x78] sm:$0xff] }
0x23dc   :  { %v4308_v34 = vpop.permute.xlu0 %4307 }
0x23dd   :  { %5699 = vpow2.f32 %v4300_v33  ;;  %5450 = vmatpush3.msra.mxu0 %v4308_v34  ;;  %v5567_v33 = vpack.c.bf16 %v4966_v32, %v4965_v29  ;;  %v5007_v34 = vld [vmem:[%s6551_s11 + $0x1] ss:$0 sm:$0xff] }
0x23de   :  { %5454 = vmatprep.subr.mxu0 %v5743_v36 }
0x23e7   :  { %v5700_v37 = vpop.eup %5699 }
0x23e8   :  { %v4302_v38 = vsel %vm215_vm2, %v5700_v37, 0.0 }
0x23e9   :  { %4303 = vadd.xlane.f32.xlu1 %v4302_v38 }
0x23ed   :  { %4469 = vadd.xlane.f32.xlu1 %v4468_v6 }
0x2476   :  { %v4304_v40 = vpop.xlane.xlu1 %4303 }
0x2477   :  { %5701 = vrcp.f32 %v4304_v40 }
0x247a   :  { %v4470_v47 = vpop.xlane.xlu1 %4469 }
0x247b   :  { %v4474_v20 = vmul.f32 0.03125, %v4470_v47 }
0x247d   :  { %v4476_v51 = vsub.f32 %v6429_v26, %v4474_v20 }
0x247f   :  { %v4478_v53 = vmul.f32 %v4476_v51, %v4476_v51 }
0x2481   :  { %v5702_v7 = vpop.eup %5701  ;;  %v4480_v54 = vsel %vm87_vm0, %v4478_v53, 0.0 }
0x2482   :  { %v4306_v43 = vmul.f32 %v5702_v7, %v5700_v37 }
0x2484   :  { %5452 = vmatmul.mubr.msk.f32.vlgmr.msra.gmra.mrb[26].mxu0 %vm215_vm2, %v4306_v43 }
0x2485   :  { %5455 = vmatpush3.msra.mxu0 %v6350_v28  ;;  %5456 = vmatprep.mubr.msk.f32.mxu0 %vm5744_vm1, %v5743_v36 }
0x2486   :  { %5556 = vmatprep.subr.bf16.mxu0 %v5555_v22 }
0x2557   :  { %v4379_v31 = vpop.f32.mrb[26].mxu0 }
0x2558   :  { %v5453_v44 = vpop.f32.mrb[27].mxu0  ;;  %5457 = vmatmul.mubr.msk.f32.vlgmr.msra.gmra.mrb[24].mxu0 %vm215_vm2, %v4379_v31 }
0x2559   :  { %5558 = vmatpush3.bf16.msra.mxu0 %v5555_v22 }
0x255a   :  { %5560 = vmatprep.subr.bf16.mxu0 %v5559_v25 }
0x255d   :  { %5562 = vmatpush3.bf16.msra.mxu0 %v5559_v25 }
0x255e   :  { %5564 = vmatprep.subr.bf16.mxu0 %v5563_v27 }
0x2561   :  { %5566 = vmatpush3.bf16.msra.mxu0 %v5563_v27 }
0x2562   :  { %5568 = vmatprep.subr.bf16.mxu0 %v5567_v33 }
0x2565   :  { %5570 = vmatpush3.bf16.msra.mxu0 %v5567_v33 }
0x262b   :  { %v4452_v45 = vpop.f32.mrb[24].mxu0 }
0x262c   :  { %4457 = vst.msk [vmem:[#allocation2 + $0x8] sm:$0xff] %vm87_vm0, %v4452_v45  ;;  %v5458_v46 = vpop.f32.mrb[25].mxu0 }
0x2633   :  { %v4459_v50 = vld [vmem:[#allocation2 + $0x8] sm:$0xff] }
0x2634   :  { %v4461_v52 = vadd.f32 %v4459_v50, %v6182_v30 }
0x2636   :  { %v6441_v42 = vadd.f32 %v5004_v49, %v4461_v52  ;;  %v5012_v52 = vld [vmem:[%s6553_s13 + $0x1] ss:$0 sm:$0xff] }
0x2638   :  { %v4471_v28 = vsel %vm87_vm0, %v6441_v42, 0.0 }
0x2639   :  { %4472 = vadd.xlane.f32.xlu1 %v4471_v28 }
0x263d   :  { %4481 = vadd.xlane.f32.xlu1 %v4480_v54 }
0x26c6   :  { %v4473_v55 = vpop.xlane.xlu1 %4472 }
0x26c7   :  { %v4475_v56 = vmul.f32 0.03125, %v4473_v55 }
0x26c9   :  { %v4477_v41 = vsub.f32 %v6441_v42, %v4475_v56 }
0x26ca   :  { %v4482_v57 = vpop.xlane.xlu1 %4481 }
0x26cb   :  { %v4486_v58 = vmul.f32 0.03125, %v4482_v57  ;;  %v4479_v59 = vmul.f32 %v4477_v41, %v4477_v41 }
0x26cd   :  { %v4488_v61 = vadd.f32 1e-05, %v4486_v58  ;;  %v4483_v30 = vsel %vm87_vm0, %v4479_v59, 0.0  ;;  %v4694_v58 = vld [vmem:[%s6576_s8] sm:$0x3] }
0x26ce   :  { %4484 = vadd.xlane.f32.xlu1 %v4483_v30 }
0x26cf   :  { %5703 = vrsqrt.f32 %v4488_v61 }
0x26d9   :  { %v5704_v62 = vpop.eup %5703 }
0x26da   :  { %v4492_v2 = vmul.f32 %v5704_v62, %v4476_v51  ;;  %v5756_v51 = vmov 0.0|0.0  }
0x26db   :  { %5571 = vmatprep.subr.bf16.mxu1 %v5756_v51 }
0x26dc   :  { %v4498_v5 = vmul.f32 %v5005_v63, %v4492_v2 }
0x26de   :  { %v4504_v8 = vadd.f32 %v5006_v3, %v4498_v5  ;;  %v4800_v5 = vld [vmem:[%s6556_s16 + $0x8] sm:$0xff] }
0x26e0   :  { %5467 = vmatprep.mubr.msk.f32.mxu1 %vm87_vm0, %v4504_v8  ;;  %v4801_v8 = vld [vmem:[%s6556_s16 + $0x10] sm:$0xff] }
0x26e1   :  { %v5578_v10 = vpack.c.bf16 %v4802_v0, %v4801_v8 }
0x275b   :  { %v4485_v14 = vpop.xlane.xlu1 %4484 }
0x275c   :  { %v4487_v15 = vmul.f32 0.03125, %v4485_v14  ;;  %v5016_v14 = vld [vmem:[%s6554_s14] ss:$0 sm:$0xff] }
0x275e   :  { %v4489_v16 = vadd.f32 1e-05, %v4487_v15 }
0x2760   :  { %5705 = vrsqrt.f32 %v4489_v16  ;;  %v5017_v16 = vld [vmem:[%s6555_s15] ss:$0 sm:$0xff] }
0x276a   :  { %v5706_v4 = vpop.eup %5705 }
0x276b   :  { %v4493_v17 = vmul.f32 %v5706_v4, %v4477_v41 }
0x276d   :  { %v4499_v18 = vmul.f32 %v5005_v63, %v4493_v17 }
0x276f   :  { %v4505_v39 = vadd.f32 %v5006_v3, %v4499_v18  ;;  %v4799_v3 = vld [vmem:[%s6556_s16] sm:$0xff]  ;;  %s5757_s16 = smov [#allocation3]  }
0x2770   :  { %s4891_s14 = sshll.u32 %s5757_s16, 4  ;;  %s4892_s14 = int_to_ptr.vmem [resolvable:$true] %s4891_s14 }
0x2771   :  { %5468 = vmatmul.mubr.msk.f32.vlgmr.msra.gmra.mrb[52].mxu1 %vm87_vm0, %v4505_v39  ;;  %s5719_s15 = scalar_lea.vmem %s4892_s14, 32  ;;  %p5724_p1 = scmp.lt.s32.totalorder %s4892_s14, %s4892_s14 }
0x2772   :  { %5493 = vmatprep.mubr.msk.f32.mxu1 %vm5744_vm1, %v5743_v36  ;;  %p5720_p0 = scmp.ne.s32.totalorder %s4892_s14, %s5719_s15  ;;  %p5725_p2 = scmp.lt.s32.totalorder %s5719_s15, %s5719_s15 }
0x2774   :  { %p5726_p3 = por %p5725_p2, %p5724_p1 }
0x2776   :  { %p5727_p4 = pnand %p5726_p3, %p5720_p0 }
0x2844   :  { %v5469_v35 = vpop.f32.mrb[52].mxu1 }
0x2845   :  { %v4588_v1 = vadd.f32 %v5469_v35, %v5007_v34  ;;  %v4582_v49 = vpop.f32.mrb[53].mxu1 }
0x2846   :  { %v4583_v37 = vadd.f32 %v5007_v34, %v4582_v49 }
0x2847   :  { %v5011_v38 = vmul.f32 -1.702, %v4588_v1 }
0x2848   :  { %v5010_v6 = vmul.f32 -1.702, %v4583_v37 }
0x2849   :  { %v4597_v40 = vmul.f32 1.442695, %v5011_v38 }
0x284a   :  { %v4595_v7 = vmul.f32 1.442695, %v5010_v6 }
0x284b   :  { %5707 = vpow2.f32 %v4597_v40 }
0x284c   :  { %5709 = vpow2.f32 %v4595_v7 }
0x2855   :  { %v5708_v43 = vpop.eup %5707 }
0x2856   :  { %v5710_v31 = vpop.eup %5709  ;;  %v4600_v44 = vadd.f32 1.0, %v5708_v43 }
0x2857   :  { %v4599_v45 = vadd.f32 1.0, %v5710_v31 }
0x2858   :  { %5711 = vrcp.f32 %v4600_v44 }
0x2859   :  { %5713 = vrcp.f32 %v4599_v45 }
0x2862   :  { %v5712_v46 = vpop.eup %5711 }
0x2863   :  { %v5714_v47 = vpop.eup %5713  ;;  %v4606_v50 = vmul.f32 %v5712_v46, %v4588_v1 }
0x2864   :  { %v4605_v20 = vmul.f32 %v5714_v47, %v4583_v37 }
0x2866   :  { %5486 = vmatprep.mubr.msk.f32.mxu0 %vm2295_vm4, %v4605_v20 }
0x2867   :  { %5487 = vmatmul.mubr.msk.f32.vlgmr.msra.gmra.mrb[28].mxu0 %vm2295_vm4, %v4606_v50 }
0x293a   :  { %v5488_v28 = vpop.f32.mrb[28].mxu0 }
0x293b   :  { %v4689_v53 = vadd.f32 %v5488_v28, %v5012_v52  ;;  %v4683_v54 = vpop.f32.mrb[29].mxu0 }
0x293c   :  { %v4684_v55 = vadd.f32 %v5012_v52, %v4683_v54 }
0x293d   :  { %v4693_v56 = vadd.f32 %v4689_v53, %v6441_v42 }
0x293e   :  { %v4692_v41 = vadd.f32 %v4684_v55, %v6429_v26 }
0x2940   :  { %v5572_v57 = vpack.c.bf16 %v4693_v56, %v4692_v41 }
0x2942   :  { %5573 = vmatpush3.bf16.msra.mxu1 %v5572_v57 }
0x2943   :  { %5574 = vmatprep.subr.bf16.mxu1 %v5756_v51 }
0x2945   :  { %5494 = vmatmul.mubr.msk.f32.vlgmr.msra.gmra.mrb[54].mxu1 %vm4695_vm5, %v4694_v58 }
0x2946   :  { %5504 = vmatprep.mubr.msk.f32.mxu1 %vm5744_vm1, %v5743_v36  ;;  %v5575_v36 = vpack.c.bf16 %v4800_v5, %v4799_v3 }
0x2948   :  { %5576 = vmatpush3.bf16.msra.mxu1 %v5575_v36 }
0x2949   :  { %5577 = vmatprep.subr.bf16.mxu1 %v5756_v51 }
0x294c   :  { %5579 = vmatpush3.bf16.msra.mxu1 %v5578_v10 }
0x2a18   :  { %v4765_v59 = vpop.f32.mrb[54].mxu1 }
0x2a19   :  { %v5495_v61 = vpop.f32.mrb[55].mxu1  ;;  %v4772_v30 = vsel %vm4771_vm6, %v4765_v59, 0.0 }
0x2a1a   :  { %4773 = vadd.xlane.f32.xlu0 %v4772_v30 }
0x2aa7   :  { %v4774_v42 = vpop.xlane.xlu0 %4773 }
0x2aa8   :  { %v4775_v62 = vmul.f32 0.03125, %v4774_v42 }
0x2aaa   :  { %v4776_v26 = vsub.f32 %v4765_v59, %v4775_v62 }
0x2aac   :  { %v4777_v63 = vmul.f32 %v4776_v26, %v4776_v26 }
0x2aae   :  { %v4778_v2 = vsel %vm4771_vm6, %v4777_v63, 0.0 }
0x2aaf   :  { %4779 = vadd.xlane.f32.xlu1 %v4778_v2 }
0x2b3c   :  { %v4780_v11 = vpop.xlane.xlu1 %4779 }
0x2b3d   :  { %v4781_v12 = vmul.f32 0.03125, %v4780_v11 }
0x2b3f   :  { %v4782_v48 = vadd.f32 1e-05, %v4781_v12 }
0x2b41   :  { %5715 = vrsqrt.f32 %v4782_v48 }
0x2b4b   :  { %v5716_v13 = vpop.eup %5715 }
0x2b4c   :  { %v4784_v15 = vmul.f32 %v5716_v13, %v4776_v26 }
0x2b4e   :  { %v4791_v4 = vmul.f32 %v5016_v14, %v4784_v15 }
0x2b50   :  { %v4798_v17 = vadd.f32 %v5017_v16, %v4791_v4 }
0x2b52   :  { %5505 = vmatmul.mubr.msk.f32.vlgmr.msra.gmra.mrb[56].mxu1 %vm87_vm0, %v4798_v17 }
0x2c25   :  { %v4872_v18 = vpop.f32.mrb[56].mxu1 }
0x2c26   :  { %v4876_v39 = vmul.f32 %v4872_v18, %v4872_v18  ;;  %v5506_v19 = vpop.f32.mrb[57].mxu1 }
0x2c28   :  { %v4878_v21 = vsel %vm4877_vm7, %v4876_v39, 0.0 }
0x2c29   :  { %4879 = vadd.xlane.f32.xlu1 %v4878_v21 }
0x2cb6   :  { %v4880_v22 = vpop.xlane.xlu1 %4879 }
0x2cb7   :  { %v4881_v23 = vadd.f32 1e-12, %v4880_v22 }
0x2cb9   :  { %5717 = vrsqrt.f32 %v4881_v23 }
0x2cc3   :  { %v5718_v24 = vpop.eup %5717 }
0x2cc4   :  { %v4883_v25 = vmul.f32 %v5718_v24, %v4872_v18 }
0x2cc6   :  { %4884 = vst.msk [vmem:[#allocation3] sm:$0x3] %vm4877_vm7, %v4883_v25 }
0x2cc7   :  { %5730 = shalt.err (!%p5727_p4)
}
0x2cc8   :  { %s5731_s6 = scalar_lea.hbm %s6557_s17, 32 }
0x2cc9   :  { %p5732_p5 = scmp.ne.s32.totalorder %s6557_s17, %s5731_s6  ;;  %p5735_p6 = scmp.lt.u32.totalorder %s5731_s6, %s6557_s17 }
0x2ccb   :  { %p5737_p7 = pnand %p5735_p6, %p5732_p5 }
0x2ccd   :  { %5740 = shalt.err (!%p5737_p7)
}
0x2cce   :  { %4894 = dma.vmem_to_hbm [thread:$0]  %s4892_s14, 32, %s6557_s17, [#allocation4]  }
0x2ccf   :  { %5741 = dma.done.wait [#allocation4], 32  }
0x2cd0   :  { %5742 = vsyncadd [#allocation4], 4294967264 }
0x2cd1   :  { %4898 = vsyncpa [#allocation4], 1 }

// kernel: _lambda_.3
= control target key start
LH: loop header
LB: loop body
LE: loop exit
PB: predicated region body
PF: predicated region fallthrough
CT: control target
= control target key end

     0   :  { %s6909_s0 = inlined_call_operand.vmem [shape: f32[8,192], index: 0, kind: input, shape index: {}]   ;;  %s6910_s1 = inlined_call_operand.vmem [shape: f32[192,32], index: 1, kind: input, shape index: {}]   ;;  %s6911_s2 = inlined_call_operand.vmem [shape: f32[1,32], index: 2, kind: input, shape index: {}]   ;;  %s6912_s3 = inlined_call_operand.vmem [shape: f32[10,32], index: 3, kind: input, shape index: {}]   ;;  %s6913_s4 = inlined_call_operand.vmem [shape: f32[1,32], index: 4, kind: input, shape index: {}, may-alias: {4,18}]   ;;  %s6914_s5 = inlined_call_operand.vmem [shape: f32[1,32], index: 5, kind: input, shape index: {}, may-alias: {5,19}]   ;;  %s6915_s6 = inlined_call_operand.vmem [shape: f32[2,32], index: 6, kind: input, shape index: {}, may-alias: {6,12}]   ;;  %s6916_s7 = inlined_call_operand.vmem [shape: f32[2,32], index: 7, kind: input, shape index: {}, may-alias: {7,11,13,17}]   ;;  %s6917_s8 = inlined_call_operand.vmem [shape: f32[2,32,96], index: 8, kind: input, shape index: {}]   ;;  %s6918_s9 = inlined_call_operand.vmem [shape: f32[2,96], index: 9, kind: input, shape index: {}]   ;;  %s6919_s10 = inlined_call_operand.vmem [shape: f32[2,32,32], index: 10, kind: input, shape index: {}]   ;;  %s6920_s11 = inlined_call_operand.vmem [shape: f32[2,32], index: 11, kind: input, shape index: {}, may-alias: {7,11,13,17}]   ;;  %s6921_s12 = inlined_call_operand.vmem [shape: f32[2,32], index: 12, kind: input, shape index: {}, may-alias: {6,12}]   ;;  %s6922_s13 = inlined_call_operand.vmem [shape: f32[2,32], index: 13, kind: input, shape index: {}, may-alias: {7,11,13,17}]   ;;  %s6923_s14 = inlined_call_operand.vmem [shape: f32[2,32,64], index: 14, kind: input, shape index: {}]   ;;  %s6924_s15 = inlined_call_operand.vmem [shape: f32[2,64], index: 15, kind: input, shape index: {}]   ;;  %s6925_s16 = inlined_call_operand.vmem [shape: f32[2,64,32], index: 16, kind: input, shape index: {}]   ;;  %s6926_s17 = inlined_call_operand.vmem [shape: f32[2,32], index: 17, kind: input, shape index: {}, may-alias: {7,11,13,17}]   ;;  %s6927_s18 = inlined_call_operand.vmem [shape: f32[1,32], index: 18, kind: input, shape index: {}, may-alias: {4,18}]   ;;  %s6928_s19 = inlined_call_operand.vmem [shape: f32[1,32], index: 19, kind: input, shape index: {}, may-alias: {5,19}]   ;;  %s6929_s20 = inlined_call_operand.vmem [shape: f32[32,16], index: 20, kind: input, shape index: {}]   ;;  %s6930_s21 = inlined_call_operand.hbm [shape: f32[2,16], index: 21, kind: output, shape index: {}]  }
   0x1   :  { %6943 = sst [smem:[#allocation7_spill]] %s6909_s0 }
   0x2   :  { %6944 = sst [smem:[#allocation8_spill]] %s6910_s1 }
   0x3   :  { %6945 = sst [smem:[#allocation9_spill]] %s6911_s2 }
   0x4   :  { %6946 = sst [smem:[#allocation10_spill]] %s6912_s3 }
   0x5   :  { %6947 = sst [smem:[#allocation11_spill]] %s6913_s4 }
   0x6   :  { %6948 = sst [smem:[#allocation12_spill]] %s6914_s5 }
   0x7   :  { %s6949_s26 = sld [smem:[#allocation8_spill]]  ;;  %v5991_v3 = vmov 0.0|0.0   ;;  %vm95_vm0 = vcmask 523264   ;;  %s6950_s28 = sld [smem:[#allocation7_spill]] }
   0x8   :  { %5713 = vmatprep.subr.bf16.mxu0 %v5991_v3 }
   0xd   :  { %v71_v0 = vld [vmem:[%s6949_s26] sm:$0xff]  ;;  %v72_v1 = vld [vmem:[%s6949_s26 + $0x8] sm:$0xff]  ;;  %v73_v2 = vld [vmem:[%s6949_s26 + $0x10] sm:$0xff] }
   0xe   :  { %v5714_v4 = vpack.c.bf16 %v72_v1, %v71_v0  ;;  %v74_v5 = vld [vmem:[%s6949_s26 + $0x18] sm:$0xff]  ;;  %v75_v7 = vld [vmem:[%s6949_s26 + $0x20] sm:$0xff]  ;;  %v76_v8 = vld [vmem:[%s6949_s26 + $0x28] sm:$0xff] }
   0xf   :  { %v5717_v6 = vpack.c.bf16 %v74_v5, %v73_v2  ;;  %v5720_v9 = vpack.c.bf16 %v76_v8, %v75_v7  ;;  %v77_v10 = vld [vmem:[%s6949_s26 + $0x30] sm:$0xff]  ;;  %v78_v11 = vld [vmem:[%s6949_s26 + $0x38] sm:$0xff]  ;;  %v70_v12 = vld [vmem:[%s6950_s28 + $0x8] sm:$0xff] }
  0x10   :  { %5715 = vmatpush1.bf16.msra.mxu0 %v5714_v4 }
  0x11   :  { %5716 = vmatprep.subr.bf16.mxu0 %v5991_v3 }
  0x14   :  { %5718 = vmatpush1.bf16.msra.mxu0 %v5717_v6 }
  0x15   :  { %5719 = vmatprep.subr.bf16.mxu0 %v5991_v3 }
  0x16   :  { %26 = vsyncpa [#allocation5], 0  ;;  %5084 = vmatprep.mubr.msk.f32.mxu0 %vm95_vm0, %v70_v12  ;;  %v5723_v13 = vpack.c.bf16 %v78_v11, %v77_v10  ;;  %v79_v14 = vld [vmem:[%s6949_s26 + $0x40] sm:$0xff]  ;;  %v80_v15 = vld [vmem:[%s6949_s26 + $0x48] sm:$0xff]  ;;  %s6951_s25 = sld [smem:[#allocation9_spill]]  ;;  %vm170_vm1 = vcmask 253952  }
  0x17   :  { %v5726_v16 = vpack.c.bf16 %v80_v15, %v79_v14  ;;  %v81_v17 = vld [vmem:[%s6949_s26 + $0x50] sm:$0xff]  ;;  %v82_v18 = vld [vmem:[%s6949_s26 + $0x58] sm:$0xff]  ;;  %v83_v20 = vld [vmem:[%s6949_s26 + $0x60] sm:$0xff]  ;;  %vm172_vm2 = vcmask 257024   ;;  %vm176_vm3 = vcmask 261124   ;;  %s6952_s29 = sld [smem:[#allocation10_spill]] }
  0x18   :  { %5721 = vmatpush1.bf16.msra.mxu0 %v5720_v9  ;;  %v5729_v19 = vpack.c.bf16 %v82_v18, %v81_v17  ;;  %v84_v21 = vld [vmem:[%s6949_s26 + $0x68] sm:$0xff]  ;;  %v85_v23 = vld [vmem:[%s6949_s26 + $0x70] sm:$0xff]  ;;  %v86_v24 = vld [vmem:[%s6949_s26 + $0x78] sm:$0xff]  ;;  %vm186_vm4 = vcmask 261120   ;;  %vm190_vm5 = vcmask 254976   ;;  %s6953_s22 = sld [smem:[#allocation11_spill]] }
  0x19   :  { %5722 = vmatprep.subr.bf16.mxu0 %v5991_v3  ;;  %v5732_v22 = vpack.c.bf16 %v84_v21, %v83_v20  ;;  %v5735_v25 = vpack.c.bf16 %v86_v24, %v85_v23  ;;  %v87_v26 = vld [vmem:[%s6949_s26 + $0x80] sm:$0xff]  ;;  %v88_v27 = vld [vmem:[%s6949_s26 + $0x88] sm:$0xff]  ;;  %v89_v29 = vld [vmem:[%s6949_s26 + $0x90] sm:$0xff]  ;;  %s6954_s24 = sld [smem:[#allocation12_spill]]  ;;  %vm5993_vm6 = vmmov 0   ;;  %s5995_s2 = smov 88  }
  0x1a   :  { %v5738_v28 = vpack.c.bf16 %v88_v27, %v87_v26  ;;  %v90_v30 = vld [vmem:[%s6949_s26 + $0x98] sm:$0xff]  ;;  %v91_v32 = vld [vmem:[%s6949_s26 + $0xa0] sm:$0xff]  ;;  %v92_v33 = vld [vmem:[%s6949_s26 + $0xa8] sm:$0xff]  ;;  %vm385_vm7 = vcmask 64512   ;;  %vm461_vm8 = vcmask 36864   ;;  %vm479_vm9 = vcmask 1044480  }
  0x1b   :  { %v5741_v31 = vpack.c.bf16 %v90_v30, %v89_v29  ;;  %v5744_v34 = vpack.c.bf16 %v92_v33, %v91_v32  ;;  %v93_v35 = vld [vmem:[%s6949_s26 + $0xb0] sm:$0xff]  ;;  %v94_v36 = vld [vmem:[%s6949_s26 + $0xb8] sm:$0xff]  ;;  %v69_v38 = vld [vmem:[%s6950_s28] sm:$0xff]  ;;  %s5997_s27 = smov 120   ;;  %vm475_vm10 = vcmask 39936   ;;  %s5998_s3 = smov 56  }
  0x1c   :  { %5724 = vmatpush1.bf16.msra.mxu0 %v5723_v13  ;;  %v5747_v37 = vpack.c.bf16 %v94_v36, %v93_v35  ;;  %v169_v39 = vld [vmem:[%s6951_s25] sm:$0x1]  ;;  %v234_v27 = vld [vmem:[%s6917_s8 + $0x8] sm:$0xff]  ;;  %v236_v30 = vld [vmem:[%s6917_s8 + $0x18] sm:$0xff]  ;;  %s5999_s26 = smov 112   ;;  %s6000_s28 = smov 80  }
  0x1d   :  { %5725 = vmatprep.subr.bf16.mxu0 %v5991_v3  ;;  %171 = vst.msk [vmem:[#allocation2] sm:$0x1] %vm170_vm1, %v169_v39  ;;  %v174_v40 = vld [vmem:[%s6951_s25] sm:$0x1]  ;;  %v181_v46 = vld [vmem:[%s6952_s29 + $0x8] sm:$0x3] }
  0x1e   :  { %175 = vst.msk [vmem:[#allocation2 + $0x5] sm:$0x1] %vm170_vm1, %v174_v40  ;;  %v180_v43 = vld [vmem:[%s6952_s29] sm:$0xff]  ;;  %s5996_s25 = smov 64   ;;  %s6937_s5 = smov 72   ;;  %vm1350_vm11 = vcmask 1042432  }
  0x1f   :  { %v5085_v5 = vld [vmem:[%s6953_s22] ss:$0 sm:$0xff]  ;;  %s6939_s22 = smov 104   ;;  %s6941_s23 = smov 48   ;;  %vm1347_vm12 = vcmask 258048   ;;  %vm4881_vm13 = vcmask 1041408  }
  0x20   :  { %5727 = vmatpush1.bf16.msra.mxu0 %v5726_v16  ;;  %v5086_v7 = vld [vmem:[%s6954_s24] ss:$0 sm:$0xff]  ;;  %s5994_s24 = smov 96   ;;  %s6935_s0 = smov 40   ;;  %vm6005_vm14 = vmmov 1   ;;  %vm4877_vm1 = vcmask 80896  }
  0x21   :  { %5728 = vmatprep.subr.bf16.mxu0 %v5991_v3  ;;  %v233_v26 = vld [vmem:[%s6917_s8] sm:$0xff]  ;;  %s6955_s1 = smov 48   ;;  %s6956_s29 = smov 104   ;;  %vm5815_vm15 = vmpackc.low %vm4881_vm13, %vm6005_vm14 }
  0x22   :  { %v5749_v29 = vpack.c.bf16 %v234_v27, %v233_v26  ;;  %v5087_v39 = vld [vmem:[%s6915_s6] ss:$0 sm:$0xff]  ;;  %s6957_s4 = smov 72  }
  0x24   :  { %5730 = vmatpush1.bf16.msra.mxu0 %v5729_v19  ;;  %5750 = vmatprep.subr.bf16.mxu1 %v5749_v29 }
  0x25   :  { %5731 = vmatprep.subr.bf16.mxu0 %v5991_v3  ;;  %5752 = vmatpush3.bf16.msra.mxu1 %v5749_v29 }
  0x28   :  { %5733 = vmatpush1.bf16.msra.mxu0 %v5732_v22 }
  0x29   :  { %5734 = vmatprep.subr.bf16.mxu0 %v5991_v3 }
  0x2c   :  { %5736 = vmatpush1.bf16.msra.mxu0 %v5735_v25 }
  0x2d   :  { %5737 = vmatprep.subr.bf16.mxu0 %v5991_v3 }
  0x30   :  { %5739 = vmatpush1.bf16.msra.mxu0 %v5738_v28  ;;  %v235_v28 = vld [vmem:[%s6917_s8 + $0x10] sm:$0xff] }
  0x31   :  { %5740 = vmatprep.subr.bf16.mxu0 %v5991_v3 }
  0x34   :  { %5742 = vmatpush1.bf16.msra.mxu0 %v5741_v31  ;;  %v5753_v31 = vpack.c.bf16 %v236_v30, %v235_v28 }
  0x35   :  { %5743 = vmatprep.subr.bf16.mxu0 %v5991_v3 }
  0x36   :  { %5754 = vmatprep.subr.bf16.mxu1 %v5753_v31 }
  0x37   :  { %5756 = vmatpush3.bf16.msra.mxu1 %v5753_v31 }
  0x38   :  { %5745 = vmatpush1.bf16.msra.mxu0 %v5744_v34 }
  0x39   :  { %5746 = vmatprep.subr.bf16.mxu0 %v5991_v3 }
  0x3c   :  { %5748 = vmatpush1.bf16.msra.mxu0 %v5747_v37 }
  0x3f   :  { %164 = vmatmul.mubr.f32.vlgmr.msra.gmra.mrb[0].mxu0 %v69_v38 }
 0x112   :  { %v165_v41 = vpop.f32.mrb[0].mxu0 }
 0x113   :  { %173 = vst.msk [vmem:[#allocation2 + $0x1] sm:$0xf] %vm172_vm2, %v165_v41  ;;  %v167_v42 = vpop.f32.mrb[1].mxu0  ;;  %vm5062_vm2 = vcmask 123904  }
 0x114   :  { %177 = vst.msk [vmem:[#allocation2 + $0x2] sm:$0xf0] %vm176_vm3, %v165_v41  ;;  %v5088_v41 = vld [vmem:[%s6916_s7] ss:$0 sm:$0xff] }
 0x11b   :  { %v178_v44 = vld [vmem:[#allocation2] sm:$0xff]  ;;  %v179_v45 = vld [vmem:[#allocation2 + $0x8] sm:$0x3] }
 0x11c   :  { %v182_v47 = vadd.f32 %v180_v43, %v178_v44  ;;  %v183_v49 = vadd.f32 %v181_v46, %v179_v45 }
 0x11e   :  { %v187_v48 = vsel %vm186_vm4, %v182_v47, 0.0  ;;  %v191_v50 = vsel %vm190_vm5, %v183_v49, 0.0 }
 0x11f   :  { %188 = vadd.xlane.f32.xlu0 %v187_v48  ;;  %v5992_v48 = vmov 0.0  }
 0x120   :  { %5384 = vmatprep.subr.mxu1 %v5992_v48  ;;  %5434 = vmatprep.subr.mxu0 %v5992_v48 }
 0x121   :  { %5436 = vmatprep.mubr.msk.f32.mxu0 %vm5993_vm6, %v5992_v48 }
 0x123   :  { %192 = vadd.xlane.f32.xlu0 %v191_v50 }
 0x1ac   :  { %v189_v51 = vpop.xlane.xlu0 %188 }
 0x1ad   :  { %v195_v52 = vmul.f32 0.03125, %v189_v51 }
 0x1af   :  { %v197_v53 = vsub.f32 %v182_v47, %v195_v52 }
 0x1b0   :  { %v193_v54 = vpop.xlane.xlu0 %192 }
 0x1b1   :  { %v196_v55 = vmul.f32 0.03125, %v193_v54  ;;  %v199_v56 = vmul.f32 %v197_v53, %v197_v53 }
 0x1b3   :  { %v198_v57 = vsub.f32 %v183_v49, %v196_v55  ;;  %v201_v58 = vsel %vm186_vm4, %v199_v56, 0.0  ;;  %v5089_v49 = vld [vmem:[%s6918_s9] ss:$0 sm:$0xff] }
 0x1b4   :  { %202 = vadd.xlane.f32.xlu1 %v201_v58 }
 0x1b5   :  { %v200_v59 = vmul.f32 %v198_v57, %v198_v57 }
 0x1b7   :  { %v204_v60 = vsel %vm190_vm5, %v200_v59, 0.0 }
 0x1b8   :  { %205 = vadd.xlane.f32.xlu1 %v204_v60 }
 0x241   :  { %v203_v61 = vpop.xlane.xlu1 %202 }
 0x242   :  { %v207_v62 = vmul.f32 0.03125, %v203_v61 }
 0x244   :  { %v209_v63 = vadd.f32 1e-05, %v207_v62 }
 0x245   :  { %v206_v0 = vpop.xlane.xlu1 %205 }
 0x246   :  { %5863 = vrsqrt.f32 %v209_v63  ;;  %v208_v1 = vmul.f32 0.03125, %v206_v0 }
 0x248   :  { %v210_v2 = vadd.f32 1e-05, %v208_v1 }
 0x24a   :  { %5865 = vrsqrt.f32 %v210_v2 }
 0x250   :  { %v5864_v4 = vpop.eup %5863 }
 0x251   :  { %v213_v6 = vmul.f32 %v5864_v4, %v197_v53 }
 0x253   :  { %v221_v8 = vmul.f32 %v5085_v5, %v213_v6 }
 0x254   :  { %v5866_v9 = vpop.eup %5865 }
 0x255   :  { %v6230_v10 = vadd.f32 %v5086_v7, %v221_v8  ;;  %v214_v11 = vmul.f32 %v5866_v9, %v198_v57 }
 0x257   :  { %v259_v12 = vsel %vm186_vm4, %v6230_v10, 0.0  ;;  %v222_v13 = vmul.f32 %v5085_v5, %v214_v11 }
 0x258   :  { %260 = vadd.xlane.f32.xlu0 %v259_v12 }
 0x259   :  { %v6234_v14 = vadd.f32 %v5086_v7, %v222_v13 }
 0x25b   :  { %v262_v15 = vsel %vm190_vm5, %v6234_v14, 0.0 }
 0x25c   :  { %263 = vadd.xlane.f32.xlu1 %v262_v15 }
 0x2e5   :  { %v261_v16 = vpop.xlane.xlu0 %260 }
 0x2e6   :  { %v265_v17 = vmul.f32 0.03125, %v261_v16 }
 0x2e8   :  { %v267_v18 = vsub.f32 %v6230_v10, %v265_v17 }
 0x2e9   :  { %v264_v19 = vpop.xlane.xlu1 %263 }
 0x2ea   :  { %v266_v20 = vmul.f32 0.03125, %v264_v19  ;;  %v269_v21 = vmul.f32 %v267_v18, %v267_v18 }
 0x2ec   :  { %v268_v22 = vsub.f32 %v6234_v14, %v266_v20  ;;  %v271_v23 = vsel %vm186_vm4, %v269_v21, 0.0 }
 0x2ed   :  { %272 = vadd.xlane.f32.xlu0 %v271_v23 }
 0x2ee   :  { %v270_v24 = vmul.f32 %v268_v22, %v268_v22 }
 0x2f0   :  { %v274_v25 = vsel %vm190_vm5, %v270_v24, 0.0  ;;  %v6314_v24 = vld [vmem:[%s6919_s10 + $0x8] sm:$0xff] }
 0x2f1   :  { %275 = vadd.xlane.f32.xlu1 %v274_v25  ;;  %v6324_v25 = vld [vmem:[%s6919_s10] sm:$0xff] }
 0x37a   :  { %v273_v32 = vpop.xlane.xlu0 %272 }
 0x37b   :  { %v277_v33 = vmul.f32 0.03125, %v273_v32 }
 0x37d   :  { %v279_v34 = vadd.f32 1e-05, %v277_v33 }
 0x37e   :  { %v276_v35 = vpop.xlane.xlu1 %275 }
 0x37f   :  { %5867 = vrsqrt.f32 %v279_v34  ;;  %v278_v36 = vmul.f32 0.03125, %v276_v35 }
 0x381   :  { %v280_v37 = vadd.f32 1e-05, %v278_v36 }
 0x383   :  { %5869 = vrsqrt.f32 %v280_v37 }
 0x389   :  { %v5868_v38 = vpop.eup %5867 }
 0x38a   :  { %v283_v40 = vmul.f32 %v5868_v38, %v267_v18 }
 0x38c   :  { %v289_v42 = vmul.f32 %v5087_v39, %v283_v40 }
 0x38d   :  { %v5870_v43 = vpop.eup %5869 }
 0x38e   :  { %v284_v44 = vmul.f32 %v5870_v43, %v268_v22  ;;  %v295_v45 = vadd.f32 %v5088_v41, %v289_v42  ;;  %v6352_v43 = vld [vmem:[%s6919_s10 + $0x10] sm:$0xff] }
 0x390   :  { %v290_v46 = vmul.f32 %v5087_v39, %v284_v44  ;;  %5381 = vmatprep.mubr.msk.f32.mxu1 %vm186_vm4, %v295_v45 }
 0x392   :  { %v296_v47 = vadd.f32 %v5088_v41, %v290_v46 }
 0x394   :  { %5382 = vmatmul.mubr.msk.f32.vlgmr.msra.gmra.mrb[0].mxu1 %vm186_vm4, %v296_v47 }
 0x395   :  { %5386 = vmatprep.mubr.msk.f32.mxu1 %vm5993_vm6, %v5992_v48 }
 0x467   :  { %v5383_v50 = vpop.f32.mrb[0].mxu1 }
 0x468   :  { %v6271_v51 = vadd.f32 %v5383_v50, %v5089_v49  ;;  %v373_v52 = vpop.f32.mrb[1].mxu1 }
 0x469   :  { %v6273_v53 = vadd.f32 %v5089_v49, %v373_v52 }
 0x46b   :  { %383 = vrot.lane.b32.xlu0 %v6273_v53, %s5994_s24 }
 0x46f   :  { %554 = vrot.lane.b32.xlu0 %v6273_v53, %s5995_s2 }
 0x4dd   :  { %v384_v54 = vpop.permute.xlu0 %383 }
 0x4de   :  { %5385 = vmatpush3.xpose.msk.msra.mxu1 %vm385_vm7, %v384_v54 }
 0x4df   :  { %5389 = vmatprep.subr.mxu1 %v5992_v48 }
 0x4e1   :  { %5387 = vmatmul.mubr.msk.f32.vlgmr.msra.gmra.mrb[2].mxu1 %vm385_vm7, %v6273_v53  ;;  %v555_v5 = vpop.permute.xlu0 %554 }
 0x4e2   :  { %5391 = vmatprep.mubr.msk.f32.mxu1 %vm5993_vm6, %v5992_v48 }
 0x5b4   :  { %v456_v55 = vpop.f32.mrb[2].mxu1 }
 0x5b5   :  { %v460_v56 = vmul.f32 0.35355338, %v456_v55  ;;  %v5388_v57 = vpop.f32.mrb[3].mxu1  ;;  %v1352_v55 = vrot.slane %v6271_v51, 5 }
 0x5b7   :  { %v462_v58 = vsel %vm461_vm8, %v460_v56, -inf }
 0x5b8   :  { %463 = vmax.xlane.f32.xlu1 %v462_v58 }
 0x5c9   :  { %473 = vrot.lane.b32.xlu1 %v6273_v53, %s5996_s25 }
 0x645   :  { %v464_v59 = vpop.xlane.xlu1 %463 }
 0x646   :  { %v465_v60 = vsub.f32 %v460_v56, %v464_v59  ;;  %v1351_v56 = vrot.slane %v6273_v53, 5 }
 0x648   :  { %v466_v61 = vmul.f32 1.442695, %v465_v60  ;;  %v6373_v57 = vsel %vm1350_vm11, %v1351_v56, %v1352_v55 }
 0x649   :  { %v474_v62 = vpop.permute.xlu1 %473 }
 0x64a   :  { %5871 = vpow2.f32 %v466_v61  ;;  %5390 = vmatpush3.msk.msra.mxu1 %vm479_vm9, %v474_v62 }
 0x64b   :  { %5394 = vmatprep.subr.mxu1 %v5992_v48 }
 0x654   :  { %v5872_v63 = vpop.eup %5871 }
 0x655   :  { %v468_v0 = vsel %vm461_vm8, %v5872_v63, 0.0 }
 0x656   :  { %469 = vadd.xlane.f32.xlu1 %v468_v0 }
 0x667   :  { %552 = vrot.lane.b32.xlu1 %v6273_v53, %s5997_s27 }
 0x6e3   :  { %v470_v1 = vpop.xlane.xlu1 %469 }
 0x6e4   :  { %5873 = vrcp.f32 %v470_v1 }
 0x6e7   :  { %v553_v6 = vpop.permute.xlu1 %552 }
 0x6ee   :  { %v5874_v2 = vpop.eup %5873 }
 0x6ef   :  { %v472_v4 = vmul.f32 %v5874_v2, %v5872_v63 }
 0x6f1   :  { %5392 = vmatmul.mubr.msk.f32.vlgmr.msra.gmra.mrb[4].mxu1 %vm475_vm10, %v472_v4 }
 0x6f2   :  { %5395 = vmatpush3.xpose.msk.msra.mxu1 %vm385_vm7, %v555_v5  ;;  %5396 = vmatprep.mubr.msk.f32.mxu1 %vm5993_vm6, %v5992_v48  ;;  %v6403_v5 = vld [vmem:[%s6919_s10 + $0x18] sm:$0xff] }
 0x6f3   :  { %5399 = vmatprep.subr.mxu1 %v5992_v48 }
 0x6f5   :  { %5397 = vmatmul.mubr.msk.f32.vlgmr.msra.gmra.mrb[6].mxu1 %vm385_vm7, %v553_v6 }
 0x6f6   :  { %5401 = vmatprep.mubr.msk.f32.mxu1 %vm5993_vm6, %v5992_v48 }
 0x7c4   :  { %v548_v7 = vpop.f32.mrb[4].mxu1 }
 0x7c5   :  { %v5393_v8 = vpop.f32.mrb[5].mxu1 }
 0x7c8   :  { %v626_v9 = vpop.f32.mrb[6].mxu1 }
 0x7c9   :  { %v630_v11 = vmul.f32 0.35355338, %v626_v9  ;;  %v5398_v12 = vpop.f32.mrb[7].mxu1 }
 0x7cb   :  { %v631_v13 = vsel %vm461_vm8, %v630_v11, -inf }
 0x7cc   :  { %632 = vmax.xlane.f32.xlu0 %v631_v13 }
 0x7e2   :  { %642 = vrot.lane.b32.xlu0 %v6273_v53, %s5998_s3 }
 0x7e6   :  { %865 = vrot.lane.b32.xlu0 %v6273_v53, %s5999_s26 }
 0x859   :  { %v633_v15 = vpop.xlane.xlu0 %632 }
 0x85a   :  { %v634_v16 = vsub.f32 %v630_v11, %v633_v15 }
 0x85c   :  { %v635_v17 = vmul.f32 1.442695, %v634_v16 }
 0x85d   :  { %v643_v18 = vpop.permute.xlu0 %642 }
 0x85e   :  { %5875 = vpow2.f32 %v635_v17  ;;  %5400 = vmatpush3.msk.msra.mxu1 %vm479_vm9, %v643_v18 }
 0x85f   :  { %5404 = vmatprep.subr.mxu1 %v5992_v48 }
 0x861   :  { %v866_v29 = vpop.permute.xlu0 %865 }
 0x868   :  { %v5876_v19 = vpop.eup %5875 }
 0x869   :  { %v637_v20 = vsel %vm461_vm8, %v5876_v19, 0.0 }
 0x86a   :  { %638 = vadd.xlane.f32.xlu1 %v637_v20 }
 0x87b   :  { %867 = vrot.lane.b32.xlu1 %v6273_v53, %s6000_s28 }
 0x8f7   :  { %v639_v21 = vpop.xlane.xlu1 %638 }
 0x8f8   :  { %5877 = vrcp.f32 %v639_v21 }
 0x8fb   :  { %v868_v28 = vpop.permute.xlu1 %867 }
 0x902   :  { %v5878_v22 = vpop.eup %5877 }
 0x903   :  { %v641_v23 = vmul.f32 %v5878_v22, %v5876_v19 }
 0x905   :  { %5402 = vmatmul.mubr.msk.f32.vlgmr.msra.gmra.mrb[8].mxu1 %vm475_vm10, %v641_v23 }
 0x906   :  { %5405 = vmatpush3.msra.mxu1 %v6314_v24  ;;  %5406 = vmatprep.mubr.msk.f32.mxu1 %vm5993_vm6, %v5992_v48 }
 0x907   :  { %5409 = vmatprep.subr.mxu1 %v5992_v48 }
 0x9d8   :  { %v715_v26 = vpop.f32.mrb[8].mxu1 }
 0x9d9   :  { %v5403_v27 = vpop.f32.mrb[9].mxu1  ;;  %5407 = vmatmul.mubr.msk.f32.vlgmr.msra.gmra.mrb[10].mxu1 %vm385_vm7, %v715_v26 }
 0x9da   :  { %5410 = vmatpush3.msra.mxu1 %v6324_v25  ;;  %5411 = vmatprep.mubr.msk.f32.mxu1 %vm5993_vm6, %v5992_v48 }
 0x9db   :  { %5414 = vmatprep.subr.mxu1 %v5992_v48 }
 0x9e1   :  { %5412 = vmatmul.mubr.msk.f32.vlgmr.msra.gmra.mrb[10].mxu1 %vm385_vm7, %v548_v7 }
 0x9e2   :  { %5415 = vmatpush3.xpose.msk.msra.mxu1 %vm385_vm7, %v868_v28  ;;  %5416 = vmatprep.mubr.msk.f32.mxu1 %vm5993_vm6, %v5992_v48 }
 0x9e3   :  { %5419 = vmatprep.subr.mxu1 %v5992_v48 }
 0x9e5   :  { %5417 = vmatmul.mubr.msk.f32.vlgmr.msra.gmra.mrb[12].mxu1 %vm385_vm7, %v866_v29 }
 0x9e6   :  { %5421 = vmatprep.mubr.msk.f32.mxu1 %vm5993_vm6, %v5992_v48 }
 0xab8   :  { %v939_v30 = vpop.f32.mrb[12].mxu1 }
 0xab9   :  { %v943_v31 = vmul.f32 0.35355338, %v939_v30  ;;  %v5418_v32 = vpop.f32.mrb[13].mxu1 }
 0xabb   :  { %v944_v33 = vsel %vm461_vm8, %v943_v31, -inf }
 0xabc   :  { %945 = vmax.xlane.f32.xlu1 %v944_v33 }
 0xacd   :  { %1108 = vrot.lane.b32.xlu1 %v6273_v53, %s6937_s5 }
 0xad1   :  { %1106 = vrot.lane.b32.xlu1 %v6273_v53, %s6939_s22 }
 0xb49   :  { %v946_v34 = vpop.xlane.xlu1 %945 }
 0xb4a   :  { %v947_v35 = vsub.f32 %v943_v31, %v946_v34 }
 0xb4c   :  { %v948_v36 = vmul.f32 1.442695, %v947_v35 }
 0xb4d   :  { %v1109_v44 = vpop.permute.xlu1 %1108 }
 0xb4e   :  { %5879 = vpow2.f32 %v948_v36 }
 0xb51   :  { %v1107_v47 = vpop.permute.xlu1 %1106 }
 0xb58   :  { %v5880_v37 = vpop.eup %5879 }
 0xb59   :  { %v950_v38 = vsel %vm461_vm8, %v5880_v37, 0.0 }
 0xb5a   :  { %951 = vadd.xlane.f32.xlu0 %v950_v38 }
 0xb70   :  { %955 = vrot.lane.b32.xlu0 %v6273_v53, %s6941_s23 }
 0xbe7   :  { %v952_v39 = vpop.xlane.xlu0 %951 }
 0xbe8   :  { %5881 = vrcp.f32 %v952_v39 }
 0xbeb   :  { %v956_v40 = vpop.permute.xlu0 %955 }
 0xbec   :  { %5420 = vmatpush3.msk.msra.mxu1 %vm479_vm9, %v956_v40 }
 0xbed   :  { %5424 = vmatprep.subr.mxu1 %v5992_v48 }
 0xbf2   :  { %v5882_v41 = vpop.eup %5881 }
 0xbf3   :  { %v954_v42 = vmul.f32 %v5882_v41, %v5880_v37 }
 0xbf5   :  { %5422 = vmatmul.mubr.msk.f32.vlgmr.msra.gmra.mrb[14].mxu1 %vm475_vm10, %v954_v42 }
 0xbf6   :  { %5425 = vmatpush3.msra.mxu1 %v6352_v43  ;;  %5426 = vmatprep.mubr.msk.f32.mxu1 %vm5993_vm6, %v5992_v48 }
 0xbf7   :  { %5429 = vmatprep.subr.mxu1 %v5992_v48 }
 0xcc8   :  { %v1028_v45 = vpop.f32.mrb[14].mxu1 }
 0xcc9   :  { %v5423_v46 = vpop.f32.mrb[15].mxu1  ;;  %5427 = vmatmul.mubr.msk.f32.vlgmr.msra.gmra.mrb[10].mxu1 %vm385_vm7, %v1028_v45 }
 0xcca   :  { %5430 = vmatpush3.xpose.msk.msra.mxu1 %vm385_vm7, %v1109_v44  ;;  %5431 = vmatprep.mubr.msk.f32.mxu1 %vm5993_vm6, %v5992_v48 }
 0xccb   :  { %5439 = vmatprep.subr.mxu1 %v5992_v48 }
 0xccd   :  { %5432 = vmatmul.mubr.msk.f32.vlgmr.msra.gmra.mrb[16].mxu1 %vm385_vm7, %v1107_v47 }
 0xcce   :  { %5441 = vmatprep.mubr.msk.f32.mxu1 %vm5993_vm6, %v5992_v48  ;;  %5440 = vmatpush3.msra.mxu1 %v6403_v5 }
 0xccf   :  { %5449 = vmatprep.subr.mxu1 %v5992_v48 }
 0xda0   :  { %v1180_v49 = vpop.f32.mrb[16].mxu1 }
 0xda1   :  { %v1184_v50 = vmul.f32 0.35355338, %v1180_v49  ;;  %v5433_v52 = vpop.f32.mrb[17].mxu1 }
 0xda3   :  { %v1185_v54 = vsel %vm461_vm8, %v1184_v50, -inf }
 0xda4   :  { %1186 = vmax.xlane.f32.xlu0 %v1185_v54 }
 0xdba   :  { %1196 = vrot.lane.b32.xlu0 %v6273_v53, %s6935_s0 }
 0xdbe   :  { %1521 = vrot.lane.b32.xlu0 %v6373_v57, %s5995_s2 }
 0xe31   :  { %v1187_v58 = vpop.xlane.xlu0 %1186 }
 0xe32   :  { %v1188_v59 = vsub.f32 %v1184_v50, %v1187_v58 }
 0xe34   :  { %v1189_v60 = vmul.f32 1.442695, %v1188_v59 }
 0xe35   :  { %v1197_v61 = vpop.permute.xlu0 %1196 }
 0xe36   :  { %5883 = vpow2.f32 %v1189_v60  ;;  %5435 = vmatpush3.msk.msra.mxu0 %vm479_vm9, %v1197_v61 }
 0xe37   :  { %5444 = vmatprep.subr.mxu0 %v5992_v48 }
 0xe39   :  { %v1522_v2 = vpop.permute.xlu0 %1521 }
 0xe40   :  { %v5884_v51 = vpop.eup %5883 }
 0xe41   :  { %v1191_v62 = vsel %vm461_vm8, %v5884_v51, 0.0 }
 0xe42   :  { %1192 = vadd.xlane.f32.xlu1 %v1191_v62 }
 0xe53   :  { %1354 = vrot.lane.b32.xlu1 %v6373_v57, %s5994_s24 }
 0xe57   :  { %1519 = vrot.lane.b32.xlu1 %v6373_v57, %s5997_s27 }
 0xecf   :  { %v1193_v53 = vpop.xlane.xlu1 %1192 }
 0xed0   :  { %5885 = vrcp.f32 %v1193_v53 }
 0xed3   :  { %v1355_v1 = vpop.permute.xlu1 %1354 }
 0xed7   :  { %v1520_v4 = vpop.permute.xlu1 %1519 }
 0xeda   :  { %v5886_v63 = vpop.eup %5885 }
 0xedb   :  { %v1195_v0 = vmul.f32 %v5886_v63, %v5884_v51 }
 0xedd   :  { %5437 = vmatmul.mubr.msk.f32.vlgmr.msra.gmra.mrb[2].mxu0 %vm475_vm10, %v1195_v0 }
 0xede   :  { %5445 = vmatpush3.xpose.msk.msra.mxu0 %vm385_vm7, %v1355_v1  ;;  %5446 = vmatprep.mubr.msk.f32.mxu0 %vm5993_vm6, %v5992_v48 }
 0xedf   :  { %5454 = vmatprep.subr.mxu0 %v5992_v48 }
 0xee1   :  { %5447 = vmatmul.mubr.msk.f32.vlgmr.msra.gmra.mrb[4].mxu0 %vm385_vm7, %v6373_v57 }
 0xee2   :  { %5455 = vmatpush3.xpose.msk.msra.mxu0 %vm385_vm7, %v1522_v2  ;;  %5456 = vmatprep.mubr.msk.f32.mxu0 %vm5993_vm6, %v5992_v48 }
 0xee3   :  { %5464 = vmatprep.subr.mxu0 %v5992_v48 }
 0xee5   :  { %5457 = vmatmul.mubr.msk.f32.vlgmr.msra.gmra.mrb[6].mxu0 %vm385_vm7, %v1520_v4 }
 0xee6   :  { %5465 = vmatpush3.msra.mxu0 %v6314_v24  ;;  %5466 = vmatprep.mubr.msk.f32.mxu0 %vm5993_vm6, %v5992_v48 }
 0xee7   :  { %5469 = vmatprep.subr.mxu0 %v5992_v48 }
 0xfb0   :  { %v1269_v6 = vpop.f32.mrb[2].mxu0 }
 0xfb1   :  { %v5438_v7 = vpop.f32.mrb[3].mxu0  ;;  %5442 = vmatmul.mubr.msk.f32.vlgmr.msra.gmra.mrb[10].mxu1 %vm385_vm7, %v1269_v6 }
 0xfb2   :  { %5451 = vmatprep.mubr.msk.f32.mxu1 %vm5993_vm6, %v5992_v48 }
 0xfb4   :  { %v1426_v8 = vpop.f32.mrb[4].mxu0 }
 0xfb5   :  { %v1430_v9 = vmul.f32 0.35355338, %v1426_v8  ;;  %v5448_v11 = vpop.f32.mrb[5].mxu0 }
 0xfb7   :  { %v1431_v12 = vsel %vm461_vm8, %v1430_v9, -inf }
 0xfb8   :  { %1432 = vmax.xlane.f32.xlu0 %v1431_v12  ;;  %v1593_v13 = vpop.f32.mrb[6].mxu0 }
 0xfb9   :  { %v1597_v15 = vmul.f32 0.35355338, %v1593_v13  ;;  %v5458_v16 = vpop.f32.mrb[7].mxu0 }
 0xfbb   :  { %v1598_v17 = vsel %vm461_vm8, %v1597_v15, -inf }
 0xfbc   :  { %1599 = vmax.xlane.f32.xlu1 %v1598_v17 }
 0xfcd   :  { %1609 = vrot.lane.b32.xlu1 %v6373_v57, %s5998_s3 }
 0xfd1   :  { %1834 = vrot.lane.b32.xlu1 %v6373_v57, %s6000_s28 }
 0xfd5   :  { %1832 = vrot.lane.b32.xlu1 %v6373_v57, %s5999_s26 }
0x1045   :  { %v1433_v18 = vpop.xlane.xlu0 %1432 }
0x1046   :  { %v1434_v19 = vsub.f32 %v1430_v9, %v1433_v18 }
0x1048   :  { %v1435_v20 = vmul.f32 1.442695, %v1434_v19  ;;  %v5132_v19 = vld [vmem:[%s6920_s11] ss:$0 sm:$0xff] }
0x1049   :  { %v1600_v21 = vpop.xlane.xlu1 %1599 }
0x104a   :  { %5887 = vpow2.f32 %v1435_v20  ;;  %v1601_v22 = vsub.f32 %v1597_v15, %v1600_v21 }
0x104c   :  { %v1602_v23 = vmul.f32 1.442695, %v1601_v22 }
0x104d   :  { %v1610_v35 = vpop.permute.xlu1 %1609 }
0x104e   :  { %5889 = vpow2.f32 %v1602_v23 }
0x1051   :  { %v1835_v39 = vpop.permute.xlu1 %1834 }
0x1054   :  { %v5888_v24 = vpop.eup %5887 }
0x1055   :  { %v1437_v26 = vsel %vm461_vm8, %v5888_v24, 0.0  ;;  %v1833_v40 = vpop.permute.xlu1 %1832 }
0x1056   :  { %1438 = vadd.xlane.f32.xlu0 %v1437_v26 }
0x1058   :  { %v5890_v27 = vpop.eup %5889 }
0x1059   :  { %v1604_v28 = vsel %vm461_vm8, %v5890_v27, 0.0 }
0x105a   :  { %1605 = vadd.xlane.f32.xlu0 %v1604_v28 }
0x1070   :  { %1442 = vrot.lane.b32.xlu0 %v6373_v57, %s5996_s25 }
0x1084   :  { %v1342_v29 = vpop.f32.mrb[10].mxu1 }
0x1085   :  { %1348 = vst.msk [vmem:[#allocation3] sm:$0x1f] %vm1347_vm12, %v1342_v29  ;;  %v5443_v30 = vpop.f32.mrb[11].mxu1 }
0x10e3   :  { %v1439_v31 = vpop.xlane.xlu0 %1438 }
0x10e4   :  { %5891 = vrcp.f32 %v1439_v31 }
0x10e7   :  { %v1606_v32 = vpop.xlane.xlu0 %1605 }
0x10e8   :  { %5893 = vrcp.f32 %v1606_v32 }
0x10eb   :  { %v1443_v33 = vpop.permute.xlu0 %1442 }
0x10ec   :  { %5450 = vmatpush3.msk.msra.mxu1 %vm479_vm9, %v1443_v33 }
0x10ed   :  { %5459 = vmatprep.subr.mxu1 %v5992_v48 }
0x10ee   :  { %v5892_v34 = vpop.eup %5891 }
0x10ef   :  { %v1441_v36 = vmul.f32 %v5892_v34, %v5888_v24 }
0x10f1   :  { %5452 = vmatmul.mubr.msk.f32.vlgmr.msra.gmra.mrb[18].mxu1 %vm475_vm10, %v1441_v36  ;;  %v245_v36 = vld [vmem:[%s6923_s14] sm:$0xff] }
0x10f2   :  { %v5894_v37 = vpop.eup %5893  ;;  %5460 = vmatpush3.msk.msra.mxu1 %vm479_vm9, %v1610_v35  ;;  %5461 = vmatprep.mubr.msk.f32.mxu1 %vm5993_vm6, %v5992_v48 }
0x10f3   :  { %v1608_v38 = vmul.f32 %v5894_v37, %v5890_v27  ;;  %5474 = vmatprep.subr.mxu1 %v5992_v48  ;;  %v246_v37 = vld [vmem:[%s6923_s14 + $0x8] sm:$0xff] }
0x10f5   :  { %5462 = vmatmul.mubr.msk.f32.vlgmr.msra.gmra.mrb[20].mxu1 %vm475_vm10, %v1608_v38  ;;  %v5757_v38 = vpack.c.bf16 %v246_v37, %v245_v36 }
0x10f6   :  { %5476 = vmatprep.mubr.msk.f32.mxu1 %vm5993_vm6, %v5992_v48 }
0x10f9   :  { %5475 = vmatpush3.xpose.msk.msra.mxu1 %vm385_vm7, %v1835_v39  ;;  %v247_v39 = vld [vmem:[%s6923_s14 + $0x10] sm:$0xff] }
0x10fa   :  { %5479 = vmatprep.subr.mxu1 %v5992_v48 }
0x10fc   :  { %5477 = vmatmul.mubr.msk.f32.vlgmr.msra.gmra.mrb[22].mxu1 %vm385_vm7, %v1833_v40  ;;  %v248_v40 = vld [vmem:[%s6923_s14 + $0x18] sm:$0xff] }
0x10fd   :  { %5481 = vmatprep.mubr.msk.f32.mxu1 %vm5993_vm6, %v5992_v48 }
0x11c4   :  { %v1515_v41 = vpop.f32.mrb[18].mxu1 }
0x11c5   :  { %v5453_v42 = vpop.f32.mrb[19].mxu1 }
0x11c8   :  { %v1682_v44 = vpop.f32.mrb[20].mxu1 }
0x11c9   :  { %v5463_v45 = vpop.f32.mrb[21].mxu1  ;;  %5467 = vmatmul.mubr.msk.f32.vlgmr.msra.gmra.mrb[8].mxu0 %vm385_vm7, %v1682_v44 }
0x11ca   :  { %5470 = vmatpush3.msra.mxu0 %v6324_v25  ;;  %5471 = vmatprep.mubr.msk.f32.mxu0 %vm5993_vm6, %v5992_v48 }
0x11cb   :  { %5484 = vmatprep.subr.mxu0 %v5992_v48 }
0x11cf   :  { %v1906_v46 = vpop.f32.mrb[22].mxu1 }
0x11d0   :  { %v1910_v47 = vmul.f32 0.35355338, %v1906_v46  ;;  %v5478_v49 = vpop.f32.mrb[23].mxu1 }
0x11d1   :  { %5472 = vmatmul.mubr.msk.f32.vlgmr.msra.gmra.mrb[8].mxu0 %vm385_vm7, %v1515_v41  ;;  %v5761_v41 = vpack.c.bf16 %v248_v40, %v247_v39 }
0x11d2   :  { %v1911_v50 = vsel %vm461_vm8, %v1910_v47, -inf  ;;  %5485 = vmatpush3.msra.mxu0 %v6352_v43  ;;  %5486 = vmatprep.mubr.msk.f32.mxu0 %vm5993_vm6, %v5992_v48 }
0x11d3   :  { %1912 = vmax.xlane.f32.xlu0 %v1911_v50  ;;  %5494 = vmatprep.subr.mxu0 %v5992_v48 }
0x11e9   :  { %1922 = vrot.lane.b32.xlu0 %v6373_v57, %s6941_s23 }
0x11ed   :  { %2073 = vrot.lane.b32.xlu0 %v6373_v57, %s6939_s22 }
0x1260   :  { %v1913_v25 = vpop.xlane.xlu0 %1912 }
0x1261   :  { %v1914_v52 = vsub.f32 %v1910_v47, %v1913_v25  ;;  %v5133_v25 = vld [vmem:[%s6921_s12] ss:$0 sm:$0xff] }
0x1263   :  { %v1915_v54 = vmul.f32 1.442695, %v1914_v52 }
0x1264   :  { %v1923_v55 = vpop.permute.xlu0 %1922 }
0x1265   :  { %5895 = vpow2.f32 %v1915_v54  ;;  %5480 = vmatpush3.msk.msra.mxu1 %vm479_vm9, %v1923_v55  ;;  %v5134_v54 = vld [vmem:[%s6922_s13] ss:$0 sm:$0xff] }
0x1266   :  { %5489 = vmatprep.subr.mxu1 %v5992_v48 }
0x1268   :  { %v2074_v51 = vpop.permute.xlu0 %2073 }
0x126f   :  { %v5896_v43 = vpop.eup %5895 }
0x1270   :  { %v1917_v56 = vsel %vm461_vm8, %v5896_v43, 0.0 }
0x1271   :  { %1918 = vadd.xlane.f32.xlu1 %v1917_v56 }
0x1282   :  { %2075 = vrot.lane.b32.xlu1 %v6373_v57, %s6937_s5 }
0x12fe   :  { %v1919_v58 = vpop.xlane.xlu1 %1918 }
0x12ff   :  { %5897 = vrcp.f32 %v1919_v58 }
0x1302   :  { %v2076_v61 = vpop.permute.xlu1 %2075 }
0x1309   :  { %v5898_v59 = vpop.eup %5897 }
0x130a   :  { %v1921_v60 = vmul.f32 %v5898_v59, %v5896_v43 }
0x130c   :  { %5482 = vmatmul.mubr.msk.f32.vlgmr.msra.gmra.mrb[24].mxu1 %vm475_vm10, %v1921_v60 }
0x130d   :  { %5490 = vmatpush3.xpose.msk.msra.mxu1 %vm385_vm7, %v2076_v61  ;;  %5491 = vmatprep.mubr.msk.f32.mxu1 %vm5993_vm6, %v5992_v48  ;;  %v250_v61 = vld [vmem:[%s6925_s16] sm:$0xff] }
0x130e   :  { %5758 = vmatprep.subr.bf16.mxu1 %v5757_v38 }
0x1310   :  { %5492 = vmatmul.mubr.msk.f32.vlgmr.msra.gmra.mrb[26].mxu1 %vm385_vm7, %v2074_v51  ;;  %v251_v51 = vld [vmem:[%s6925_s16 + $0x8] sm:$0xff] }
0x1311   :  { %5760 = vmatpush3.bf16.msra.mxu1 %v5757_v38 }
0x1312   :  { %5762 = vmatprep.subr.bf16.mxu1 %v5761_v41 }
0x1315   :  { %5764 = vmatpush3.bf16.msra.mxu1 %v5761_v41 }
0x13df   :  { %v1995_v62 = vpop.f32.mrb[24].mxu1 }
0x13e0   :  { %v5483_v53 = vpop.f32.mrb[25].mxu1  ;;  %5487 = vmatmul.mubr.msk.f32.vlgmr.msra.gmra.mrb[8].mxu0 %vm385_vm7, %v1995_v62  ;;  %v5765_v62 = vpack.c.bf16 %v251_v51, %v250_v61  ;;  %v5164_v51 = vld [vmem:[%s6916_s7 + $0x1] ss:$0 sm:$0xff] }
0x13e1   :  { %5496 = vmatprep.mubr.msk.f32.mxu0 %vm5993_vm6, %v5992_v48  ;;  %v252_v53 = vld [vmem:[%s6925_s16 + $0x10] sm:$0xff] }
0x13e3   :  { %v2147_v63 = vpop.f32.mrb[26].mxu1 }
0x13e4   :  { %v2151_v0 = vmul.f32 0.35355338, %v2147_v63  ;;  %v5493_v1 = vpop.f32.mrb[27].mxu1  ;;  %v253_v63 = vld [vmem:[%s6925_s16 + $0x18] sm:$0xff] }
0x13e5   :  { %v254_v1 = vld [vmem:[%s6925_s16 + $0x20] sm:$0xff] }
0x13e6   :  { %v2152_v2 = vsel %vm461_vm8, %v2151_v0, -inf }
0x13e7   :  { %2153 = vmax.xlane.f32.xlu1 %v2152_v2  ;;  %v255_v2 = vld [vmem:[%s6925_s16 + $0x28] sm:$0xff] }
0x1474   :  { %v2154_v4 = vpop.xlane.xlu1 %2153 }
0x1475   :  { %v2155_v6 = vsub.f32 %v2151_v0, %v2154_v4  ;;  %v5769_v0 = vpack.c.bf16 %v253_v63, %v252_v53  ;;  %v5773_v4 = vpack.c.bf16 %v255_v2, %v254_v1 }
0x1477   :  { %v2156_v7 = vmul.f32 1.442695, %v2155_v6  ;;  %v256_v6 = vld [vmem:[%s6925_s16 + $0x30] sm:$0xff] }
0x1479   :  { %5899 = vpow2.f32 %v2156_v7  ;;  %v257_v7 = vld [vmem:[%s6925_s16 + $0x38] sm:$0xff] }
0x1483   :  { %v5900_v8 = vpop.eup %5899 }
0x1484   :  { %v2158_v9 = vsel %vm461_vm8, %v5900_v8, 0.0 }
0x1485   :  { %2159 = vadd.xlane.f32.xlu0 %v2158_v9  ;;  %v5135_v9 = vld [vmem:[%s6924_s15] ss:$0 sm:$0xff] }
0x149b   :  { %2163 = vrot.lane.b32.xlu0 %v6373_v57, %s6935_s0 }
0x1512   :  { %v2160_v11 = vpop.xlane.xlu0 %2159 }
0x1513   :  { %5901 = vrcp.f32 %v2160_v11 }
0x1516   :  { %v2164_v12 = vpop.permute.xlu0 %2163 }
0x1517   :  { %5495 = vmatpush3.msk.msra.mxu0 %vm479_vm9, %v2164_v12 }
0x1518   :  { %5499 = vmatprep.subr.mxu0 %v5992_v48 }
0x151d   :  { %v5902_v13 = vpop.eup %5901 }
0x151e   :  { %v2162_v15 = vmul.f32 %v5902_v13, %v5900_v8  ;;  %v5777_v8 = vpack.c.bf16 %v257_v7, %v256_v6 }
0x1520   :  { %5497 = vmatmul.mubr.msk.f32.vlgmr.msra.gmra.mrb[10].mxu0 %vm475_vm10, %v2162_v15 }
0x1521   :  { %5500 = vmatpush3.msra.mxu0 %v6403_v5  ;;  %5501 = vmatprep.mubr.msk.f32.mxu0 %vm5993_vm6, %v5992_v48 }
0x1522   :  { %5766 = vmatprep.subr.bf16.mxu0 %v5765_v62 }
0x15f3   :  { %v2236_v16 = vpop.f32.mrb[10].mxu0 }
0x15f4   :  { %v5498_v17 = vpop.f32.mrb[11].mxu0  ;;  %5502 = vmatmul.mubr.msk.f32.vlgmr.msra.gmra.mrb[8].mxu0 %vm385_vm7, %v2236_v16 }
0x15f5   :  { %5768 = vmatpush3.bf16.msra.mxu0 %v5765_v62 }
0x15f6   :  { %5770 = vmatprep.subr.bf16.mxu0 %v5769_v0 }
0x15f9   :  { %5772 = vmatpush3.bf16.msra.mxu0 %v5769_v0 }
0x15fa   :  { %5774 = vmatprep.subr.bf16.mxu0 %v5773_v4 }
0x15fd   :  { %5776 = vmatpush3.bf16.msra.mxu0 %v5773_v4  ;;  %v5165_v4 = vld [vmem:[%s6918_s9 + $0x1] ss:$0 sm:$0xff] }
0x15fe   :  { %5778 = vmatprep.subr.bf16.mxu0 %v5777_v8 }
0x1601   :  { %5780 = vmatpush3.bf16.msra.mxu0 %v5777_v8 }
0x1602   :  { %5555 = vmatprep.subr.mxu0 %v5992_v48 }
0x16c7   :  { %v2309_v57 = vpop.f32.mrb[8].mxu0 }
0x16c8   :  { %2314 = vst.msk [vmem:[#allocation3 + $0x5] sm:$0x1f] %vm1347_vm12, %v2309_v57  ;;  %v5503_v18 = vpop.f32.mrb[9].mxu0 }
0x16cf   :  { %v2315_v20 = vld [vmem:[#allocation3] sm:$0xff]  ;;  %v2316_v21 = vld [vmem:[#allocation3 + $0x8] sm:$0x3] }
0x16d0   :  { %v2317_v22 = vadd.f32 %v2315_v20, %v6230_v10  ;;  %v2318_v5 = vadd.f32 %v2316_v21, %v6234_v14 }
0x16d2   :  { %v6483_v23 = vadd.f32 %v5132_v19, %v2317_v22  ;;  %v6487_v26 = vadd.f32 %v5132_v19, %v2318_v5 }
0x16d4   :  { %v2325_v24 = vsel %vm186_vm4, %v6483_v23, 0.0  ;;  %v2328_v27 = vsel %vm190_vm5, %v6487_v26, 0.0 }
0x16d5   :  { %2326 = vadd.xlane.f32.xlu1 %v2325_v24 }
0x16d9   :  { %2329 = vadd.xlane.f32.xlu1 %v2328_v27 }
0x1762   :  { %v2327_v28 = vpop.xlane.xlu1 %2326 }
0x1763   :  { %v2331_v29 = vmul.f32 0.03125, %v2327_v28 }
0x1765   :  { %v2333_v30 = vsub.f32 %v6483_v23, %v2331_v29  ;;  %v5140_v29 = vld [vmem:[%s6926_s17] ss:$0 sm:$0xff] }
0x1766   :  { %v2330_v31 = vpop.xlane.xlu1 %2329 }
0x1767   :  { %v2332_v10 = vmul.f32 0.03125, %v2330_v31  ;;  %v2335_v32 = vmul.f32 %v2333_v30, %v2333_v30 }
0x1769   :  { %v2334_v14 = vsub.f32 %v6487_v26, %v2332_v10  ;;  %v2337_v33 = vsel %vm186_vm4, %v2335_v32, 0.0 }
0x176a   :  { %2338 = vadd.xlane.f32.xlu1 %v2337_v33 }
0x176b   :  { %v2336_v34 = vmul.f32 %v2334_v14, %v2334_v14 }
0x176d   :  { %v2340_v35 = vsel %vm190_vm5, %v2336_v34, 0.0 }
0x176e   :  { %2341 = vadd.xlane.f32.xlu1 %v2340_v35 }
0x17f7   :  { %v2339_v42 = vpop.xlane.xlu1 %2338 }
0x17f8   :  { %v2343_v44 = vmul.f32 0.03125, %v2339_v42 }
0x17fa   :  { %v2345_v45 = vadd.f32 1e-05, %v2343_v44 }
0x17fb   :  { %v2342_v46 = vpop.xlane.xlu1 %2341 }
0x17fc   :  { %5903 = vrsqrt.f32 %v2345_v45  ;;  %v2344_v47 = vmul.f32 0.03125, %v2342_v46  ;;  %v5143_v45 = vld [vmem:[%s6917_s8 + $0x20] sm:$0xff]  ;;  %v5144_v46 = vld [vmem:[%s6917_s8 + $0x28] sm:$0xff] }
0x17fe   :  { %v2346_v49 = vadd.f32 1e-05, %v2344_v47  ;;  %v5781_v47 = vpack.c.bf16 %v5144_v46, %v5143_v45  ;;  %v6648_v46 = vld [vmem:[%s6919_s10 + $0x20] sm:$0xff] }
0x1800   :  { %5905 = vrsqrt.f32 %v2346_v49  ;;  %5782 = vmatprep.subr.bf16.mxu1 %v5781_v47  ;;  %v5145_v49 = vld [vmem:[%s6917_s8 + $0x30] sm:$0xff] }
0x1806   :  { %v5904_v50 = vpop.eup %5903 }
0x1807   :  { %v2349_v52 = vmul.f32 %v5904_v50, %v2333_v30  ;;  %v5146_v50 = vld [vmem:[%s6917_s8 + $0x38] sm:$0xff] }
0x1809   :  { %v2355_v55 = vmul.f32 %v5133_v25, %v2349_v52 }
0x180a   :  { %v5906_v43 = vpop.eup %5905 }
0x180b   :  { %v2350_v56 = vmul.f32 %v5906_v43, %v2334_v14  ;;  %v2361_v58 = vadd.f32 %v5134_v54, %v2355_v55 }
0x180d   :  { %v2356_v59 = vmul.f32 %v5133_v25, %v2350_v56  ;;  %5512 = vmatprep.mubr.msk.f32.mxu1 %vm186_vm4, %v2361_v58  ;;  %v5785_v25 = vpack.c.bf16 %v5146_v50, %v5145_v49 }
0x180f   :  { %v2362_v60 = vadd.f32 %v5134_v54, %v2356_v59 }
0x1811   :  { %5513 = vmatmul.mubr.msk.f32.vlgmr.msra.gmra.mrb[28].mxu1 %vm186_vm4, %v2362_v60  ;;  %v5163_v60 = vld [vmem:[%s6915_s6 + $0x1] ss:$0 sm:$0xff] }
0x1812   :  { %5784 = vmatpush3.bf16.msra.mxu1 %v5781_v47 }
0x1813   :  { %5786 = vmatprep.subr.bf16.mxu1 %v5785_v25 }
0x1816   :  { %5788 = vmatpush3.bf16.msra.mxu1 %v5785_v25 }
0x1817   :  { %5545 = vmatprep.subr.mxu1 %v5992_v48 }
0x18e4   :  { %v5514_v11 = vpop.f32.mrb[28].mxu1 }
0x18e5   :  { %v2445_v12 = vadd.f32 %v5514_v11, %v5135_v9  ;;  %v2439_v13 = vpop.f32.mrb[29].mxu1 }
0x18e6   :  { %v2440_v15 = vadd.f32 %v5135_v9, %v2439_v13 }
0x18e7   :  { %v5139_v16 = vmul.f32 -1.702, %v2445_v12 }
0x18e8   :  { %v5138_v17 = vmul.f32 -1.702, %v2440_v15 }
0x18e9   :  { %v2454_v57 = vmul.f32 1.442695, %v5139_v16 }
0x18ea   :  { %v2452_v18 = vmul.f32 1.442695, %v5138_v17 }
0x18eb   :  { %5907 = vpow2.f32 %v2454_v57 }
0x18ec   :  { %5909 = vpow2.f32 %v2452_v18 }
0x18f5   :  { %v5908_v19 = vpop.eup %5907 }
0x18f6   :  { %v5910_v20 = vpop.eup %5909  ;;  %v2457_v21 = vadd.f32 1.0, %v5908_v19 }
0x18f7   :  { %v2456_v22 = vadd.f32 1.0, %v5910_v20 }
0x18f8   :  { %5911 = vrcp.f32 %v2457_v21 }
0x18f9   :  { %5913 = vrcp.f32 %v2456_v22 }
0x1902   :  { %v5912_v5 = vpop.eup %5911 }
0x1903   :  { %v5914_v24 = vpop.eup %5913  ;;  %v2463_v28 = vmul.f32 %v5912_v5, %v2445_v12 }
0x1904   :  { %v2462_v27 = vmul.f32 %v5914_v24, %v2440_v15 }
0x1906   :  { %5531 = vmatprep.mubr.msk.f32.mxu0 %vm95_vm0, %v2462_v27 }
0x1907   :  { %5532 = vmatmul.mubr.msk.f32.vlgmr.msra.gmra.mrb[12].mxu0 %vm95_vm0, %v2463_v28 }
0x1908   :  { %5557 = vmatprep.mubr.msk.f32.mxu0 %vm5993_vm6, %v5992_v48 }
0x19da   :  { %v5533_v30 = vpop.f32.mrb[12].mxu0 }
0x19db   :  { %v2546_v31 = vadd.f32 %v5533_v30, %v5140_v29  ;;  %v2540_v10 = vpop.f32.mrb[13].mxu0 }
0x19dc   :  { %v2541_v32 = vadd.f32 %v5140_v29, %v2540_v10 }
0x19dd   :  { %v6551_v14 = vadd.f32 %v2546_v31, %v6487_v26 }
0x19de   :  { %v6554_v33 = vadd.f32 %v2541_v32, %v6483_v23 }
0x19df   :  { %v2586_v34 = vsel %vm190_vm5, %v6551_v14, 0.0 }
0x19e0   :  { %2587 = vadd.xlane.f32.xlu0 %v2586_v34  ;;  %v2583_v35 = vsel %vm186_vm4, %v6554_v33, 0.0 }
0x19e1   :  { %2584 = vadd.xlane.f32.xlu1 %v2583_v35 }
0x1a6d   :  { %v2588_v36 = vpop.xlane.xlu0 %2587 }
0x1a6e   :  { %v2590_v37 = vmul.f32 0.03125, %v2588_v36  ;;  %v2585_v38 = vpop.xlane.xlu1 %2584 }
0x1a6f   :  { %v2589_v39 = vmul.f32 0.03125, %v2585_v38 }
0x1a70   :  { %v2592_v40 = vsub.f32 %v6551_v14, %v2590_v37 }
0x1a71   :  { %v2591_v26 = vsub.f32 %v6554_v33, %v2589_v39 }
0x1a72   :  { %v2594_v42 = vmul.f32 %v2592_v40, %v2592_v40 }
0x1a73   :  { %v2593_v41 = vmul.f32 %v2591_v26, %v2591_v26 }
0x1a74   :  { %v2598_v44 = vsel %vm190_vm5, %v2594_v42, 0.0  ;;  %v6641_v42 = vld [vmem:[%s6919_s10 + $0x28] sm:$0xff] }
0x1a75   :  { %v2595_v23 = vsel %vm186_vm4, %v2593_v41, 0.0 }
0x1a76   :  { %2596 = vadd.xlane.f32.xlu1 %v2595_v23 }
0x1a7a   :  { %2599 = vadd.xlane.f32.xlu1 %v2598_v44 }
0x1b03   :  { %v2597_v52 = vpop.xlane.xlu1 %2596 }
0x1b04   :  { %v2601_v54 = vmul.f32 0.03125, %v2597_v52 }
0x1b06   :  { %v2603_v55 = vadd.f32 1e-05, %v2601_v54 }
0x1b07   :  { %v2600_v43 = vpop.xlane.xlu1 %2599 }
0x1b08   :  { %5915 = vrsqrt.f32 %v2603_v55  ;;  %v2602_v56 = vmul.f32 0.03125, %v2600_v43 }
0x1b0a   :  { %v2604_v58 = vadd.f32 1e-05, %v2602_v56 }
0x1b0c   :  { %5917 = vrsqrt.f32 %v2604_v58 }
0x1b12   :  { %v5916_v59 = vpop.eup %5915 }
0x1b13   :  { %v2607_v61 = vmul.f32 %v5916_v59, %v2591_v26 }
0x1b15   :  { %v2613_v62 = vmul.f32 %v5163_v60, %v2607_v61 }
0x1b16   :  { %v5918_v53 = vpop.eup %5917 }
0x1b17   :  { %v2608_v63 = vmul.f32 %v5918_v53, %v2592_v40  ;;  %v2619_v0 = vadd.f32 %v5164_v51, %v2613_v62 }
0x1b19   :  { %v2614_v1 = vmul.f32 %v5163_v60, %v2608_v63  ;;  %5542 = vmatprep.mubr.msk.f32.mxu1 %vm186_vm4, %v2619_v0  ;;  %v6679_v0 = vld [vmem:[%s6919_s10 + $0x30] sm:$0xff] }
0x1b1b   :  { %v2620_v2 = vadd.f32 %v5164_v51, %v2614_v1 }
0x1b1d   :  { %5543 = vmatmul.mubr.msk.f32.vlgmr.msra.gmra.mrb[30].mxu1 %vm186_vm4, %v2620_v2 }
0x1b1e   :  { %5547 = vmatprep.mubr.msk.f32.mxu1 %vm5993_vm6, %v5992_v48 }
0x1bf0   :  { %v5544_v6 = vpop.f32.mrb[30].mxu1 }
0x1bf1   :  { %v6590_v7 = vadd.f32 %v5544_v6, %v5165_v4  ;;  %v2697_v8 = vpop.f32.mrb[31].mxu1 }
0x1bf2   :  { %v6592_v9 = vadd.f32 %v5165_v4, %v2697_v8 }
0x1bf4   :  { %2872 = vrot.lane.b32.xlu0 %v6592_v9, %s5997_s27  ;;  %2707 = vrot.lane.b32.xlu1 %v6592_v9, %s5994_s24 }
0x1bf8   :  { %2874 = vrot.lane.b32.xlu1 %v6592_v9, %s5995_s2 }
0x1c66   :  { %v2708_v11 = vpop.permute.xlu1 %2707  ;;  %v2873_v13 = vpop.permute.xlu0 %2872 }
0x1c67   :  { %5546 = vmatpush3.xpose.msk.msra.mxu1 %vm385_vm7, %v2708_v11 }
0x1c68   :  { %5550 = vmatprep.subr.mxu1 %v5992_v48 }
0x1c6a   :  { %5548 = vmatmul.mubr.msk.f32.vlgmr.msra.gmra.mrb[32].mxu1 %vm385_vm7, %v6592_v9  ;;  %v2875_v12 = vpop.permute.xlu1 %2874 }
0x1c6b   :  { %5556 = vmatpush3.xpose.msk.msra.mxu0 %vm385_vm7, %v2875_v12  ;;  %5552 = vmatprep.mubr.msk.f32.mxu1 %vm5993_vm6, %v5992_v48  ;;  %v3670_v12 = vrot.slane %v6590_v7, 5 }
0x1c6c   :  { %5565 = vmatprep.subr.mxu0 %v5992_v48 }
0x1c6e   :  { %5558 = vmatmul.mubr.msk.f32.vlgmr.msra.gmra.mrb[14].mxu0 %vm385_vm7, %v2873_v13  ;;  %v3669_v13 = vrot.slane %v6592_v9, 5 }
0x1c6f   :  { %5567 = vmatprep.mubr.msk.f32.mxu0 %vm5993_vm6, %v5992_v48  ;;  %5566 = vmatpush3.msra.mxu0 %v6641_v42 }
0x1c70   :  { %5570 = vmatprep.subr.mxu0 %v5992_v48 }
0x1d3d   :  { %v2779_v15 = vpop.f32.mrb[32].mxu1 }
0x1d3e   :  { %v2783_v16 = vmul.f32 0.35355338, %v2779_v15  ;;  %v5549_v17 = vpop.f32.mrb[33].mxu1  ;;  %v6690_v15 = vsel %vm1350_vm11, %v3669_v13, %v3670_v12 }
0x1d40   :  { %v2784_v57 = vsel %vm461_vm8, %v2783_v16, -inf }
0x1d41   :  { %2785 = vmax.xlane.f32.xlu1 %v2784_v57  ;;  %v2946_v18 = vpop.f32.mrb[14].mxu0 }
0x1d42   :  { %v2950_v19 = vmul.f32 0.35355338, %v2946_v18  ;;  %v5559_v20 = vpop.f32.mrb[15].mxu0 }
0x1d44   :  { %v2951_v21 = vsel %vm461_vm8, %v2950_v19, -inf }
0x1d45   :  { %2952 = vmax.xlane.f32.xlu0 %v2951_v21 }
0x1d52   :  { %2795 = vrot.lane.b32.xlu1 %v6592_v9, %s5996_s25 }
0x1d56   :  { %3187 = vrot.lane.b32.xlu1 %v6592_v9, %s6000_s28 }
0x1d5b   :  { %2962 = vrot.lane.b32.xlu0 %v6592_v9, %s5998_s3 }
0x1dce   :  { %v2786_v22 = vpop.xlane.xlu1 %2785 }
0x1dcf   :  { %v2787_v5 = vsub.f32 %v2783_v16, %v2786_v22 }
0x1dd1   :  { %v2788_v24 = vmul.f32 1.442695, %v2787_v5 }
0x1dd2   :  { %v2953_v27 = vpop.xlane.xlu0 %2952  ;;  %v2796_v28 = vpop.permute.xlu1 %2795 }
0x1dd3   :  { %5919 = vpow2.f32 %v2788_v24  ;;  %v2954_v29 = vsub.f32 %v2950_v19, %v2953_v27  ;;  %5551 = vmatpush3.msk.msra.mxu1 %vm479_vm9, %v2796_v28 }
0x1dd4   :  { %5560 = vmatprep.subr.mxu1 %v5992_v48 }
0x1dd5   :  { %v2955_v30 = vmul.f32 1.442695, %v2954_v29  ;;  %v6718_v29 = vld [vmem:[%s6919_s10 + $0x38] sm:$0xff] }
0x1dd6   :  { %v3188_v35 = vpop.permute.xlu1 %3187  ;;  %v2963_v40 = vpop.permute.xlu0 %2962 }
0x1dd7   :  { %5921 = vpow2.f32 %v2955_v30 }
0x1ddd   :  { %v5920_v31 = vpop.eup %5919 }
0x1dde   :  { %v2790_v10 = vsel %vm461_vm8, %v5920_v31, 0.0 }
0x1ddf   :  { %2791 = vadd.xlane.f32.xlu1 %v2790_v10 }
0x1de1   :  { %v5922_v32 = vpop.eup %5921 }
0x1de2   :  { %v2957_v34 = vsel %vm461_vm8, %v5922_v32, 0.0 }
0x1de3   :  { %2958 = vadd.xlane.f32.xlu1 %v2957_v34 }
0x1df4   :  { %3185 = vrot.lane.b32.xlu1 %v6592_v9, %s5999_s26 }
0x1e6c   :  { %v2792_v36 = vpop.xlane.xlu1 %2791 }
0x1e6d   :  { %5923 = vrcp.f32 %v2792_v36 }
0x1e70   :  { %v2959_v37 = vpop.xlane.xlu1 %2958 }
0x1e71   :  { %5925 = vrcp.f32 %v2959_v37 }
0x1e74   :  { %v3186_v23 = vpop.permute.xlu1 %3185 }
0x1e77   :  { %v5924_v38 = vpop.eup %5923 }
0x1e78   :  { %v2794_v39 = vmul.f32 %v5924_v38, %v5920_v31 }
0x1e7a   :  { %5553 = vmatmul.mubr.msk.f32.vlgmr.msra.gmra.mrb[34].mxu1 %vm475_vm10, %v2794_v39 }
0x1e7b   :  { %v5926_v26 = vpop.eup %5925  ;;  %5561 = vmatpush3.msk.msra.mxu1 %vm479_vm9, %v2963_v40  ;;  %5562 = vmatprep.mubr.msk.f32.mxu1 %vm5993_vm6, %v5992_v48 }
0x1e7c   :  { %v2961_v41 = vmul.f32 %v5926_v26, %v5922_v32  ;;  %5575 = vmatprep.subr.mxu1 %v5992_v48 }
0x1e7e   :  { %5563 = vmatmul.mubr.msk.f32.vlgmr.msra.gmra.mrb[36].mxu1 %vm475_vm10, %v2961_v41 }
0x1e7f   :  { %5577 = vmatprep.mubr.msk.f32.mxu1 %vm5993_vm6, %v5992_v48 }
0x1e82   :  { %5576 = vmatpush3.xpose.msk.msra.mxu1 %vm385_vm7, %v3188_v35 }
0x1e83   :  { %5580 = vmatprep.subr.mxu1 %v5992_v48 }
0x1e85   :  { %5578 = vmatmul.mubr.msk.f32.vlgmr.msra.gmra.mrb[38].mxu1 %vm385_vm7, %v3186_v23 }
0x1e86   :  { %5582 = vmatprep.mubr.msk.f32.mxu1 %vm5993_vm6, %v5992_v48 }
0x1f4d   :  { %v2868_v44 = vpop.f32.mrb[34].mxu1 }
0x1f4e   :  { %v5554_v45 = vpop.f32.mrb[35].mxu1 }
0x1f51   :  { %v3035_v47 = vpop.f32.mrb[36].mxu1 }
0x1f52   :  { %v5564_v49 = vpop.f32.mrb[37].mxu1  ;;  %5568 = vmatmul.mubr.msk.f32.vlgmr.msra.gmra.mrb[16].mxu0 %vm385_vm7, %v3035_v47 }
0x1f53   :  { %5571 = vmatpush3.msra.mxu0 %v6648_v46  ;;  %5572 = vmatprep.mubr.msk.f32.mxu0 %vm5993_vm6, %v5992_v48 }
0x1f54   :  { %5585 = vmatprep.subr.mxu0 %v5992_v48 }
0x1f58   :  { %v3259_v50 = vpop.f32.mrb[38].mxu1 }
0x1f59   :  { %v3263_v25 = vmul.f32 0.35355338, %v3259_v50  ;;  %v5579_v52 = vpop.f32.mrb[39].mxu1 }
0x1f5a   :  { %5573 = vmatmul.mubr.msk.f32.vlgmr.msra.gmra.mrb[16].mxu0 %vm385_vm7, %v2868_v44 }
0x1f5b   :  { %v3264_v54 = vsel %vm461_vm8, %v3263_v25, -inf  ;;  %5587 = vmatprep.mubr.msk.f32.mxu0 %vm5993_vm6, %v5992_v48  ;;  %5586 = vmatpush3.msra.mxu0 %v6679_v0 }
0x1f5c   :  { %3265 = vmax.xlane.f32.xlu1 %v3264_v54  ;;  %5595 = vmatprep.subr.mxu0 %v5992_v48 }
0x1f6d   :  { %3275 = vrot.lane.b32.xlu1 %v6592_v9, %s6955_s1 }
0x1f71   :  { %3426 = vrot.lane.b32.xlu1 %v6592_v9, %s6956_s29 }
0x1fe9   :  { %v3266_v55 = vpop.xlane.xlu1 %3265 }
0x1fea   :  { %v3267_v43 = vsub.f32 %v3263_v25, %v3266_v55 }
0x1fec   :  { %v3268_v56 = vmul.f32 1.442695, %v3267_v43 }
0x1fed   :  { %v3276_v58 = vpop.permute.xlu1 %3275 }
0x1fee   :  { %5927 = vpow2.f32 %v3268_v56  ;;  %5581 = vmatpush3.msk.msra.mxu1 %vm479_vm9, %v3276_v58 }
0x1fef   :  { %5590 = vmatprep.subr.mxu1 %v5992_v48 }
0x1ff1   :  { %v3427_v63 = vpop.permute.xlu1 %3426 }
0x1ff8   :  { %v5928_v59 = vpop.eup %5927 }
0x1ff9   :  { %v3270_v60 = vsel %vm461_vm8, %v5928_v59, 0.0 }
0x1ffa   :  { %3271 = vadd.xlane.f32.xlu0 %v3270_v60 }
0x2010   :  { %3428 = vrot.lane.b32.xlu0 %v6592_v9, %s6957_s4 }
0x2087   :  { %v3272_v61 = vpop.xlane.xlu0 %3271 }
0x2088   :  { %5929 = vrcp.f32 %v3272_v61 }
0x208b   :  { %v3429_v53 = vpop.permute.xlu0 %3428 }
0x2092   :  { %v5930_v51 = vpop.eup %5929 }
0x2093   :  { %v3274_v62 = vmul.f32 %v5930_v51, %v5928_v59 }
0x2095   :  { %5583 = vmatmul.mubr.msk.f32.vlgmr.msra.gmra.mrb[40].mxu1 %vm475_vm10, %v3274_v62 }
0x2096   :  { %5591 = vmatpush3.xpose.msk.msra.mxu1 %vm385_vm7, %v3429_v53  ;;  %5592 = vmatprep.mubr.msk.f32.mxu1 %vm5993_vm6, %v5992_v48 }
0x2097   :  { %5605 = vmatprep.subr.mxu1 %v5992_v48 }
0x2099   :  { %5593 = vmatmul.mubr.msk.f32.vlgmr.msra.gmra.mrb[42].mxu1 %vm385_vm7, %v3427_v63 }
0x209a   :  { %5607 = vmatprep.mubr.msk.f32.mxu1 %vm5993_vm6, %v5992_v48 }
0x2168   :  { %v3348_v1 = vpop.f32.mrb[40].mxu1 }
0x2169   :  { %v5584_v2 = vpop.f32.mrb[41].mxu1  ;;  %5588 = vmatmul.mubr.msk.f32.vlgmr.msra.gmra.mrb[16].mxu0 %vm385_vm7, %v3348_v1 }
0x216a   :  { %5597 = vmatprep.mubr.msk.f32.mxu0 %vm5993_vm6, %v5992_v48 }
0x216c   :  { %v3500_v4 = vpop.f32.mrb[42].mxu1 }
0x216d   :  { %v3504_v6 = vmul.f32 0.35355338, %v3500_v4  ;;  %v5594_v8 = vpop.f32.mrb[43].mxu1 }
0x216f   :  { %v3505_v11 = vsel %vm461_vm8, %v3504_v6, -inf }
0x2170   :  { %3506 = vmax.xlane.f32.xlu1 %v3505_v11 }
0x2181   :  { %3672 = vrot.lane.b32.xlu1 %v6690_v15, %s5994_s24  ;;  %s6958_s24 = smov 40  }
0x2185   :  { %3839 = vrot.lane.b32.xlu1 %v6690_v15, %s5995_s2 }
0x21fd   :  { %v3507_v16 = vpop.xlane.xlu1 %3506 }
0x21fe   :  { %v3508_v17 = vsub.f32 %v3504_v6, %v3507_v16 }
0x2200   :  { %v3509_v57 = vmul.f32 1.442695, %v3508_v17 }
0x2201   :  { %v3673_v18 = vpop.permute.xlu1 %3672 }
0x2202   :  { %5931 = vpow2.f32 %v3509_v57  ;;  %5606 = vmatpush3.xpose.msk.msra.mxu1 %vm385_vm7, %v3673_v18 }
0x2203   :  { %5610 = vmatprep.subr.mxu1 %v5992_v48 }
0x2205   :  { %5608 = vmatmul.mubr.msk.f32.vlgmr.msra.gmra.mrb[44].mxu1 %vm385_vm7, %v6690_v15  ;;  %v3840_v31 = vpop.permute.xlu1 %3839 }
0x2206   :  { %5612 = vmatprep.mubr.msk.f32.mxu1 %vm5993_vm6, %v5992_v48 }
0x220c   :  { %v5932_v7 = vpop.eup %5931 }
0x220d   :  { %v3511_v19 = vsel %vm461_vm8, %v5932_v7, 0.0 }
0x220e   :  { %3512 = vadd.xlane.f32.xlu0 %v3511_v19 }
0x2224   :  { %3516 = vrot.lane.b32.xlu0 %v6592_v9, %s6958_s24 }
0x2228   :  { %3837 = vrot.lane.b32.xlu0 %v6690_v15, %s5997_s27 }
0x229b   :  { %v3513_v20 = vpop.xlane.xlu0 %3512 }
0x229c   :  { %5933 = vrcp.f32 %v3513_v20 }
0x229f   :  { %v3517_v21 = vpop.permute.xlu0 %3516 }
0x22a0   :  { %5596 = vmatpush3.msk.msra.mxu0 %vm479_vm9, %v3517_v21 }
0x22a1   :  { %5600 = vmatprep.subr.mxu0 %v5992_v48 }
0x22a3   :  { %v3838_v32 = vpop.permute.xlu0 %3837 }
0x22a6   :  { %v5934_v22 = vpop.eup %5933 }
0x22a7   :  { %v3515_v5 = vmul.f32 %v5934_v22, %v5932_v7 }
0x22a9   :  { %5598 = vmatmul.mubr.msk.f32.vlgmr.msra.gmra.mrb[18].mxu0 %vm475_vm10, %v3515_v5 }
0x22aa   :  { %5602 = vmatprep.mubr.msk.f32.mxu0 %vm5993_vm6, %v5992_v48  ;;  %5601 = vmatpush3.msra.mxu0 %v6718_v29 }
0x22ab   :  { %5615 = vmatprep.subr.mxu0 %v5992_v48 }
0x22d8   :  { %v3744_v24 = vpop.f32.mrb[44].mxu1 }
0x22d9   :  { %v3748_v27 = vmul.f32 0.35355338, %v3744_v24  ;;  %v5609_v9 = vpop.f32.mrb[45].mxu1 }
0x22db   :  { %v3749_v28 = vsel %vm461_vm8, %v3748_v27, -inf }
0x22dc   :  { %3750 = vmax.xlane.f32.xlu1 %v3749_v28 }
0x22ed   :  { %3927 = vrot.lane.b32.xlu1 %v6690_v15, %s5998_s3 }
0x2369   :  { %v3751_v34 = vpop.xlane.xlu1 %3750 }
0x236a   :  { %v3752_v35 = vsub.f32 %v3748_v27, %v3751_v34 }
0x236c   :  { %v3753_v36 = vmul.f32 1.442695, %v3752_v35 }
0x236d   :  { %v3928_v43 = vpop.permute.xlu1 %3927 }
0x236e   :  { %5935 = vpow2.f32 %v3753_v36 }
0x2378   :  { %v5936_v23 = vpop.eup %5935 }
0x237c   :  { %v3589_v30 = vpop.f32.mrb[18].mxu0 }
0x237d   :  { %v5599_v10 = vpop.f32.mrb[19].mxu0  ;;  %5603 = vmatmul.mubr.msk.f32.vlgmr.msra.gmra.mrb[16].mxu0 %vm385_vm7, %v3589_v30 }
0x237e   :  { %5616 = vmatpush3.xpose.msk.msra.mxu0 %vm385_vm7, %v3840_v31  ;;  %5617 = vmatprep.mubr.msk.f32.mxu0 %vm5993_vm6, %v5992_v48 }
0x237f   :  { %5625 = vmatprep.subr.mxu0 %v5992_v48 }
0x2381   :  { %5618 = vmatmul.mubr.msk.f32.vlgmr.msra.gmra.mrb[20].mxu0 %vm385_vm7, %v3838_v32 }
0x2382   :  { %5626 = vmatpush3.msra.mxu0 %v6641_v42  ;;  %5627 = vmatprep.mubr.msk.f32.mxu0 %vm5993_vm6, %v5992_v48  ;;  %v3755_v42 = vsel %vm461_vm8, %v5936_v23, 0.0 }
0x2383   :  { %5630 = vmatprep.subr.mxu0 %v5992_v48 }
0x2450   :  { %v3662_v37 = vpop.f32.mrb[16].mxu0 }
0x2451   :  { %3667 = vst.msk [vmem:[#allocation3] sm:$0x1f] %vm1347_vm12, %v3662_v37  ;;  %v5604_v38 = vpop.f32.mrb[17].mxu0 }
0x2454   :  { %v3911_v39 = vpop.f32.mrb[20].mxu0 }
0x2455   :  { %v3915_v40 = vmul.f32 0.35355338, %v3911_v39  ;;  %v5619_v26 = vpop.f32.mrb[21].mxu0  ;;  %v5208_v39 = vld [vmem:[%s6920_s11 + $0x1] ss:$0 sm:$0xff] }
0x2457   :  { %v3916_v41 = vsel %vm461_vm8, %v3915_v40, -inf }
0x2458   :  { %3917 = vmax.xlane.f32.xlu0 %v3916_v41 }
0x245c   :  { %3756 = vadd.xlane.f32.xlu0 %v3755_v42 }
0x2472   :  { %3760 = vrot.lane.b32.xlu0 %v6690_v15, %s5996_s25 }
0x2476   :  { %4150 = vrot.lane.b32.xlu0 %v6690_v15, %s5999_s26 }
0x24e5   :  { %v3918_v44 = vpop.xlane.xlu0 %3917 }
0x24e6   :  { %v3919_v45 = vsub.f32 %v3915_v40, %v3918_v44 }
0x24e8   :  { %v3920_v47 = vmul.f32 1.442695, %v3919_v45 }
0x24e9   :  { %v3757_v49 = vpop.xlane.xlu0 %3756 }
0x24ea   :  { %5937 = vpow2.f32 %v3920_v47 }
0x24eb   :  { %5939 = vrcp.f32 %v3757_v49 }
0x24ed   :  { %v3761_v50 = vpop.permute.xlu0 %3760 }
0x24ee   :  { %5611 = vmatpush3.msk.msra.mxu1 %vm479_vm9, %v3761_v50 }
0x24ef   :  { %5620 = vmatprep.subr.mxu1 %v5992_v48 }
0x24f1   :  { %v4151_v61 = vpop.permute.xlu0 %4150 }
0x24f4   :  { %v5938_v25 = vpop.eup %5937 }
0x24f5   :  { %v5940_v52 = vpop.eup %5939  ;;  %v3922_v54 = vsel %vm461_vm8, %v5938_v25, 0.0 }
0x24f6   :  { %v3759_v55 = vmul.f32 %v5940_v52, %v5936_v23  ;;  %3923 = vadd.xlane.f32.xlu1 %v3922_v54 }
0x24f8   :  { %5613 = vmatmul.mubr.msk.f32.vlgmr.msra.gmra.mrb[46].mxu1 %vm475_vm10, %v3759_v55 }
0x24f9   :  { %5621 = vmatpush3.msk.msra.mxu1 %vm479_vm9, %v3928_v43  ;;  %5622 = vmatprep.mubr.msk.f32.mxu1 %vm5993_vm6, %v5992_v48 }
0x24fa   :  { %5635 = vmatprep.subr.mxu1 %v5992_v48 }
0x2507   :  { %4152 = vrot.lane.b32.xlu1 %v6690_v15, %s6000_s28 }
0x2583   :  { %v3924_v56 = vpop.xlane.xlu1 %3923 }
0x2584   :  { %5941 = vrcp.f32 %v3924_v56  ;;  %v5151_v56 = vld [vmem:[%s6923_s14 + $0x20] sm:$0xff] }
0x2587   :  { %v4153_v60 = vpop.permute.xlu1 %4152 }
0x258e   :  { %v5942_v58 = vpop.eup %5941 }
0x258f   :  { %v3926_v59 = vmul.f32 %v5942_v58, %v5938_v25  ;;  %v5152_v58 = vld [vmem:[%s6923_s14 + $0x28] sm:$0xff] }
0x2591   :  { %5623 = vmatmul.mubr.msk.f32.vlgmr.msra.gmra.mrb[48].mxu1 %vm475_vm10, %v3926_v59  ;;  %v5789_v59 = vpack.c.bf16 %v5152_v58, %v5151_v56 }
0x2592   :  { %5636 = vmatpush3.xpose.msk.msra.mxu1 %vm385_vm7, %v4153_v60  ;;  %5637 = vmatprep.mubr.msk.f32.mxu1 %vm5993_vm6, %v5992_v48  ;;  %v5153_v60 = vld [vmem:[%s6923_s14 + $0x30] sm:$0xff] }
0x2593   :  { %5640 = vmatprep.subr.mxu1 %v5992_v48 }
0x2595   :  { %5638 = vmatmul.mubr.msk.f32.vlgmr.msra.gmra.mrb[50].mxu1 %vm385_vm7, %v4151_v61  ;;  %v5154_v61 = vld [vmem:[%s6923_s14 + $0x38] sm:$0xff] }
0x2596   :  { %5642 = vmatprep.mubr.msk.f32.mxu1 %vm5993_vm6, %v5992_v48 }
0x25cb   :  { %v3833_v51 = vpop.f32.mrb[46].mxu1 }
0x25cc   :  { %v5614_v62 = vpop.f32.mrb[47].mxu1 }
0x2664   :  { %v4000_v53 = vpop.f32.mrb[48].mxu1 }
0x2665   :  { %v5624_v63 = vpop.f32.mrb[49].mxu1  ;;  %5628 = vmatmul.mubr.msk.f32.vlgmr.msra.gmra.mrb[22].mxu0 %vm385_vm7, %v4000_v53 }
0x2666   :  { %5631 = vmatpush3.msra.mxu0 %v6648_v46  ;;  %5632 = vmatprep.mubr.msk.f32.mxu0 %vm5993_vm6, %v5992_v48 }
0x2667   :  { %5645 = vmatprep.subr.mxu0 %v5992_v48 }
0x2668   :  { %v4224_v1 = vpop.f32.mrb[50].mxu1 }
0x2669   :  { %v4228_v2 = vmul.f32 0.35355338, %v4224_v1  ;;  %v5639_v4 = vpop.f32.mrb[51].mxu1 }
0x266b   :  { %v4229_v6 = vsel %vm461_vm8, %v4228_v2, -inf }
0x266c   :  { %4230 = vmax.xlane.f32.xlu1 %v4229_v6 }
0x266d   :  { %5633 = vmatmul.mubr.msk.f32.vlgmr.msra.gmra.mrb[22].mxu0 %vm385_vm7, %v3833_v51  ;;  %v5793_v51 = vpack.c.bf16 %v5154_v61, %v5153_v60 }
0x266e   :  { %5646 = vmatpush3.msra.mxu0 %v6679_v0  ;;  %5647 = vmatprep.mubr.msk.f32.mxu0 %vm5993_vm6, %v5992_v48 }
0x266f   :  { %5655 = vmatprep.subr.mxu0 %v5992_v48 }
0x267d   :  { %4393 = vrot.lane.b32.xlu1 %v6690_v15, %s6957_s4 }
0x2681   :  { %4391 = vrot.lane.b32.xlu1 %v6690_v15, %s6956_s29 }
0x26f9   :  { %v4231_v46 = vpop.xlane.xlu1 %4230 }
0x26fa   :  { %v4232_v8 = vsub.f32 %v4228_v2, %v4231_v46  ;;  %v5209_v46 = vld [vmem:[%s6921_s12 + $0x1] ss:$0 sm:$0xff] }
0x26fc   :  { %v4233_v11 = vmul.f32 1.442695, %v4232_v8 }
0x26fd   :  { %v4394_v57 = vpop.permute.xlu1 %4393 }
0x26fe   :  { %5943 = vpow2.f32 %v4233_v11  ;;  %v5210_v11 = vld [vmem:[%s6922_s13 + $0x1] ss:$0 sm:$0xff] }
0x2701   :  { %v4392_v7 = vpop.permute.xlu1 %4391 }
0x2708   :  { %v5944_v12 = vpop.eup %5943 }
0x2709   :  { %v4235_v13 = vsel %vm461_vm8, %v5944_v12, 0.0 }
0x270a   :  { %4236 = vadd.xlane.f32.xlu0 %v4235_v13 }
0x2720   :  { %4240 = vrot.lane.b32.xlu0 %v6690_v15, %s6955_s1 }
0x2797   :  { %v4237_v0 = vpop.xlane.xlu0 %4236 }
0x2798   :  { %5945 = vrcp.f32 %v4237_v0 }
0x279b   :  { %v4241_v16 = vpop.permute.xlu0 %4240 }
0x279c   :  { %5641 = vmatpush3.msk.msra.mxu1 %vm479_vm9, %v4241_v16 }
0x279d   :  { %5650 = vmatprep.subr.mxu1 %v5992_v48 }
0x27a2   :  { %v5946_v17 = vpop.eup %5945 }
0x27a3   :  { %v4239_v18 = vmul.f32 %v5946_v17, %v5944_v12 }
0x27a5   :  { %5643 = vmatmul.mubr.msk.f32.vlgmr.msra.gmra.mrb[52].mxu1 %vm475_vm10, %v4239_v18  ;;  %v5155_v18 = vld [vmem:[%s6925_s16 + $0x40] sm:$0xff] }
0x27a6   :  { %5651 = vmatpush3.xpose.msk.msra.mxu1 %vm385_vm7, %v4394_v57  ;;  %5652 = vmatprep.mubr.msk.f32.mxu1 %vm5993_vm6, %v5992_v48 }
0x27a7   :  { %5790 = vmatprep.subr.bf16.mxu1 %v5789_v59 }
0x27a9   :  { %5653 = vmatmul.mubr.msk.f32.vlgmr.msra.gmra.mrb[54].mxu1 %vm385_vm7, %v4392_v7  ;;  %v5156_v7 = vld [vmem:[%s6925_s16 + $0x48] sm:$0xff] }
0x27aa   :  { %5792 = vmatpush3.bf16.msra.mxu1 %v5789_v59 }
0x27ab   :  { %5794 = vmatprep.subr.bf16.mxu1 %v5793_v51 }
0x27ae   :  { %5796 = vmatpush3.bf16.msra.mxu1 %v5793_v51 }
0x27af   :  { %5813 = vmatprep.subr.bf16.mxu1 %v5991_v3 }
0x2878   :  { %v4313_v19 = vpop.f32.mrb[52].mxu1 }
0x2879   :  { %v5644_v20 = vpop.f32.mrb[53].mxu1  ;;  %5648 = vmatmul.mubr.msk.f32.vlgmr.msra.gmra.mrb[22].mxu0 %vm385_vm7, %v4313_v19  ;;  %v5797_v19 = vpack.c.bf16 %v5156_v7, %v5155_v18 }
0x287a   :  { %5657 = vmatprep.mubr.msk.f32.mxu0 %vm5993_vm6, %v5992_v48  ;;  %v5157_v20 = vld [vmem:[%s6925_s16 + $0x50] sm:$0xff] }
0x287c   :  { %v4465_v21 = vpop.f32.mrb[54].mxu1 }
0x287d   :  { %v4469_v22 = vmul.f32 0.35355338, %v4465_v21  ;;  %v5654_v5 = vpop.f32.mrb[55].mxu1  ;;  %v5158_v21 = vld [vmem:[%s6925_s16 + $0x58] sm:$0xff] }
0x287e   :  { %v5159_v5 = vld [vmem:[%s6925_s16 + $0x60] sm:$0xff] }
0x287f   :  { %v4470_v24 = vsel %vm461_vm8, %v4469_v22, -inf }
0x2880   :  { %4471 = vmax.xlane.f32.xlu0 %v4470_v24  ;;  %v5160_v24 = vld [vmem:[%s6925_s16 + $0x68] sm:$0xff] }
0x2896   :  { %4481 = vrot.lane.b32.xlu0 %v6690_v15, %s6958_s24 }
0x290d   :  { %v4472_v27 = vpop.xlane.xlu0 %4471 }
0x290e   :  { %v4473_v9 = vsub.f32 %v4469_v22, %v4472_v27  ;;  %v5801_v22 = vpack.c.bf16 %v5158_v21, %v5157_v20  ;;  %v5805_v27 = vpack.c.bf16 %v5160_v24, %v5159_v5 }
0x2910   :  { %v4474_v28 = vmul.f32 1.442695, %v4473_v9  ;;  %v5161_v9 = vld [vmem:[%s6925_s16 + $0x70] sm:$0xff] }
0x2911   :  { %v4482_v30 = vpop.permute.xlu0 %4481 }
0x2912   :  { %5947 = vpow2.f32 %v4474_v28  ;;  %5656 = vmatpush3.msk.msra.mxu0 %vm479_vm9, %v4482_v30  ;;  %v5162_v28 = vld [vmem:[%s6925_s16 + $0x78] sm:$0xff] }
0x2913   :  { %5660 = vmatprep.subr.mxu0 %v5992_v48  ;;  %v5809_v30 = vpack.c.bf16 %v5162_v28, %v5161_v9 }
0x291c   :  { %v5948_v31 = vpop.eup %5947 }
0x291d   :  { %v4476_v10 = vsel %vm461_vm8, %v5948_v31, 0.0 }
0x291e   :  { %4477 = vadd.xlane.f32.xlu1 %v4476_v10 }
0x29ab   :  { %v4478_v32 = vpop.xlane.xlu1 %4477 }
0x29ac   :  { %5949 = vrcp.f32 %v4478_v32 }
0x29b6   :  { %v5950_v34 = vpop.eup %5949 }
0x29b7   :  { %v4480_v35 = vmul.f32 %v5950_v34, %v5948_v31  ;;  %v5211_v31 = vld [vmem:[%s6924_s15 + $0x1] ss:$0 sm:$0xff] }
0x29b9   :  { %5658 = vmatmul.mubr.msk.f32.vlgmr.msra.gmra.mrb[24].mxu0 %vm475_vm10, %v4480_v35 }
0x29ba   :  { %5661 = vmatpush3.msra.mxu0 %v6718_v29  ;;  %5662 = vmatprep.mubr.msk.f32.mxu0 %vm5993_vm6, %v5992_v48 }
0x29bb   :  { %5798 = vmatprep.subr.bf16.mxu0 %v5797_v19 }
0x2a8c   :  { %v4554_v15 = vpop.f32.mrb[24].mxu0 }
0x2a8d   :  { %v5659_v36 = vpop.f32.mrb[25].mxu0  ;;  %5663 = vmatmul.mubr.msk.f32.vlgmr.msra.gmra.mrb[22].mxu0 %vm385_vm7, %v4554_v15 }
0x2a8e   :  { %5800 = vmatpush3.bf16.msra.mxu0 %v5797_v19 }
0x2a8f   :  { %5802 = vmatprep.subr.bf16.mxu0 %v5801_v22 }
0x2a92   :  { %5804 = vmatpush3.bf16.msra.mxu0 %v5801_v22 }
0x2a93   :  { %5806 = vmatprep.subr.bf16.mxu0 %v5805_v27 }
0x2a96   :  { %5808 = vmatpush3.bf16.msra.mxu0 %v5805_v27 }
0x2a97   :  { %5810 = vmatprep.subr.bf16.mxu0 %v5809_v30 }
0x2a9a   :  { %5812 = vmatpush3.bf16.msra.mxu0 %v5809_v30 }
0x2b60   :  { %v4627_v37 = vpop.f32.mrb[22].mxu0 }
0x2b61   :  { %4632 = vst.msk [vmem:[#allocation3 + $0x5] sm:$0x1f] %vm1347_vm12, %v4627_v37  ;;  %v5664_v38 = vpop.f32.mrb[23].mxu0 }
0x2b68   :  { %v4633_v40 = vld [vmem:[#allocation3] sm:$0xff]  ;;  %v4634_v26 = vld [vmem:[#allocation3 + $0x8] sm:$0x3] }
0x2b69   :  { %v4635_v41 = vadd.f32 %v4633_v40, %v6554_v33  ;;  %v4636_v29 = vadd.f32 %v4634_v26, %v6551_v14 }
0x2b6b   :  { %v6802_v23 = vadd.f32 %v5208_v39, %v4635_v41  ;;  %v6806_v44 = vadd.f32 %v5208_v39, %v4636_v29 }
0x2b6d   :  { %v4643_v42 = vsel %vm186_vm4, %v6802_v23, 0.0  ;;  %v4646_v45 = vsel %vm190_vm5, %v6806_v44, 0.0 }
0x2b6e   :  { %4644 = vadd.xlane.f32.xlu1 %v4643_v42 }
0x2b72   :  { %4647 = vadd.xlane.f32.xlu1 %v4646_v45 }
0x2bfb   :  { %v4645_v47 = vpop.xlane.xlu1 %4644 }
0x2bfc   :  { %v4649_v49 = vmul.f32 0.03125, %v4645_v47 }
0x2bfe   :  { %v4651_v50 = vsub.f32 %v6802_v23, %v4649_v49  ;;  %v4869_v49 = vlaneseq }
0x2bff   :  { %v4648_v25 = vpop.xlane.xlu1 %4647 }
0x2c00   :  { %v4650_v33 = vmul.f32 0.03125, %v4648_v25  ;;  %v4653_v52 = vmul.f32 %v4651_v50, %v4651_v50  ;;  %v5216_v25 = vld [vmem:[%s6926_s17 + $0x1] ss:$0 sm:$0xff] }
0x2c02   :  { %v4652_v14 = vsub.f32 %v6806_v44, %v4650_v33  ;;  %v4655_v54 = vsel %vm186_vm4, %v4653_v52, 0.0 }
0x2c03   :  { %4656 = vadd.xlane.f32.xlu1 %v4655_v54  ;;  %v4872_v54 = vand.u32 127, %v4869_v49 }
0x2c04   :  { %v4654_v55 = vmul.f32 %v4652_v14, %v4652_v14 }
0x2c06   :  { %v4658_v43 = vsel %vm190_vm5, %v4654_v55, 0.0 }
0x2c07   :  { %4659 = vadd.xlane.f32.xlu1 %v4658_v43 }
0x2c90   :  { %v4657_v62 = vpop.xlane.xlu1 %4656 }
0x2c91   :  { %v4661_v53 = vmul.f32 0.03125, %v4657_v62 }
0x2c93   :  { %v4663_v63 = vadd.f32 1e-05, %v4661_v53 }
0x2c94   :  { %v4660_v1 = vpop.xlane.xlu1 %4659 }
0x2c95   :  { %5951 = vrsqrt.f32 %v4663_v63  ;;  %v4662_v2 = vmul.f32 0.03125, %v4660_v1 }
0x2c97   :  { %v4664_v4 = vadd.f32 1e-05, %v4662_v2  ;;  %v4984_v2 = vld [vmem:[%s6929_s20] sm:$0xff] }
0x2c99   :  { %5953 = vrsqrt.f32 %v4664_v4 }
0x2c9f   :  { %v5952_v6 = vpop.eup %5951 }
0x2ca0   :  { %v4667_v8 = vmul.f32 %v5952_v6, %v4651_v50  ;;  %v4870_v50 = vshrl.u32 %v4869_v49, 7  ;;  %v4986_v6 = vld [vmem:[%s6929_s20 + $0x10] sm:$0xff] }
0x2ca2   :  { %v4673_v12 = vmul.f32 %v5209_v46, %v4667_v8  ;;  %v4873_v55 = vmul.u32 5, %v4870_v50 }
0x2ca3   :  { %v5954_v13 = vpop.eup %5953 }
0x2ca4   :  { %v4668_v0 = vmul.f32 %v5954_v13, %v4652_v14  ;;  %v4679_v16 = vadd.f32 %v5210_v11, %v4673_v12 }
0x2ca6   :  { %v4674_v17 = vmul.f32 %v5209_v46, %v4668_v0  ;;  %5673 = vmatprep.mubr.msk.f32.mxu1 %vm186_vm4, %v4679_v16  ;;  %v4987_v46 = vld [vmem:[%s6929_s20 + $0x18] sm:$0xff]  ;;  %v5222_v16 = vld [vmem:[%s6927_s18] ss:$0 sm:$0xff] }
0x2ca7   :  { %v5821_v8 = vpack.c.bf16 %v4987_v46, %v4986_v6 }
0x2ca8   :  { %v4680_v57 = vadd.f32 %v5210_v11, %v4674_v17 }
0x2caa   :  { %5674 = vmatmul.mubr.msk.f32.vlgmr.msra.gmra.mrb[56].mxu1 %vm186_vm4, %v4680_v57  ;;  %v5223_v57 = vld [vmem:[%s6928_s19] ss:$0 sm:$0xff] }
0x2cab   :  { %5699 = vmatprep.mubr.msk.f32.mxu1 %vm5993_vm6, %v5992_v48 }
0x2d7d   :  { %v5675_v10 = vpop.f32.mrb[56].mxu1 }
0x2d7e   :  { %v4763_v32 = vadd.f32 %v5675_v10, %v5211_v31  ;;  %v4757_v34 = vpop.f32.mrb[57].mxu1 }
0x2d7f   :  { %v4758_v35 = vadd.f32 %v5211_v31, %v4757_v34 }
0x2d80   :  { %v5215_v15 = vmul.f32 -1.702, %v4763_v32 }
0x2d81   :  { %v5214_v36 = vmul.f32 -1.702, %v4758_v35 }
0x2d82   :  { %v4772_v37 = vmul.f32 1.442695, %v5215_v15 }
0x2d83   :  { %v4770_v38 = vmul.f32 1.442695, %v5214_v36 }
0x2d84   :  { %5955 = vpow2.f32 %v4772_v37 }
0x2d85   :  { %5957 = vpow2.f32 %v4770_v38 }
0x2d8e   :  { %v5956_v39 = vpop.eup %5955 }
0x2d8f   :  { %v5958_v40 = vpop.eup %5957  ;;  %v4775_v26 = vadd.f32 1.0, %v5956_v39 }
0x2d90   :  { %v4774_v41 = vadd.f32 1.0, %v5958_v40 }
0x2d91   :  { %5959 = vrcp.f32 %v4775_v26 }
0x2d92   :  { %5961 = vrcp.f32 %v4774_v41 }
0x2d9b   :  { %v5960_v29 = vpop.eup %5959 }
0x2d9c   :  { %v5962_v42 = vpop.eup %5961  ;;  %v4781_v47 = vmul.f32 %v5960_v29, %v4763_v32 }
0x2d9d   :  { %v4780_v45 = vmul.f32 %v5962_v42, %v4758_v35 }
0x2d9f   :  { %5692 = vmatprep.mubr.msk.f32.mxu0 %vm95_vm0, %v4780_v45 }
0x2da0   :  { %5693 = vmatmul.mubr.msk.f32.vlgmr.msra.gmra.mrb[26].mxu0 %vm95_vm0, %v4781_v47  ;;  %vm4874_vm0 = vcmp.eq.s32.totalorder %v4872_v54, %v4873_v55 }
0x2da1   :  { %v5219_v60 = vsel %vm4874_vm0, 1.0, %v5992_v48 }
0x2e73   :  { %v5694_v33 = vpop.f32.mrb[26].mxu0 }
0x2e74   :  { %v4864_v52 = vadd.f32 %v5694_v33, %v5216_v25  ;;  %v4858_v14 = vpop.f32.mrb[27].mxu0 }
0x2e75   :  { %v4859_v43 = vadd.f32 %v5216_v25, %v4858_v14 }
0x2e76   :  { %v4868_v56 = vadd.f32 %v4864_v52, %v6806_v44 }
0x2e77   :  { %v4867_v58 = vadd.f32 %v4859_v43, %v6802_v23 }
0x2e79   :  { %v5814_v59 = vpack.c.bf16 %v4868_v56, %v4867_v58 }
0x2e7b   :  { %5816 = vmatpush3.bf16.msk.msra.mxu1 %vm5815_vm15, %v5814_v59 }
0x2e7c   :  { %5817 = vmatprep.subr.bf16.mxu1 %v5991_v3 }
0x2e7e   :  { %5700 = vmatmul.mubr.msk.f32.vlgmr.msra.gmra.mrb[58].mxu1 %vm4877_vm1, %v5219_v60 }
0x2e7f   :  { %5710 = vmatprep.mubr.msk.f32.mxu1 %vm5993_vm6, %v5992_v48  ;;  %v4985_v48 = vld [vmem:[%s6929_s20 + $0x8] sm:$0xff]  ;;  %s6006_s20 = smov [#allocation4]  }
0x2e80   :  { %v5818_v4 = vpack.c.bf16 %v4985_v48, %v4984_v2  ;;  %s5076_s18 = sshll.u32 %s6006_s20, 4  ;;  %s5077_s18 = int_to_ptr.vmem [resolvable:$true] %s5076_s18 }
0x2e81   :  { %s5967_s19 = scalar_lea.vmem %s5077_s18, 32  ;;  %p5972_p1 = scmp.lt.s32.totalorder %s5077_s18, %s5077_s18 }
0x2e82   :  { %5819 = vmatpush3.bf16.msra.mxu1 %v5818_v4  ;;  %p5968_p0 = scmp.ne.s32.totalorder %s5077_s18, %s5967_s19  ;;  %p5973_p2 = scmp.lt.s32.totalorder %s5967_s19, %s5967_s19 }
0x2e83   :  { %5820 = vmatprep.subr.bf16.mxu1 %v5991_v3 }
0x2e84   :  { %p5974_p3 = por %p5973_p2, %p5972_p1 }
0x2e86   :  { %5822 = vmatpush3.bf16.msra.mxu1 %v5821_v8  ;;  %p5975_p4 = pnand %p5974_p3, %p5968_p0 }
0x2f51   :  { %v4951_v61 = vpop.f32.mrb[58].mxu1 }
0x2f52   :  { %v5701_v51 = vpop.f32.mrb[59].mxu1  ;;  %v4957_v44 = vsel %vm190_vm5, %v4951_v61, 0.0 }
0x2f53   :  { %4958 = vadd.xlane.f32.xlu0 %v4957_v44 }
0x2fe0   :  { %v4959_v23 = vpop.xlane.xlu0 %4958 }
0x2fe1   :  { %v4960_v62 = vmul.f32 0.03125, %v4959_v23 }
0x2fe3   :  { %v4961_v53 = vsub.f32 %v4951_v61, %v4960_v62 }
0x2fe5   :  { %v4962_v63 = vmul.f32 %v4961_v53, %v4961_v53 }
0x2fe7   :  { %v4963_v1 = vsel %vm190_vm5, %v4962_v63, 0.0 }
0x2fe8   :  { %4964 = vadd.xlane.f32.xlu1 %v4963_v1 }
0x3075   :  { %v4965_v11 = vpop.xlane.xlu1 %4964 }
0x3076   :  { %v4966_v12 = vmul.f32 0.03125, %v4965_v11 }
0x3078   :  { %v4967_v13 = vadd.f32 1e-05, %v4966_v12 }
0x307a   :  { %5963 = vrsqrt.f32 %v4967_v13 }
0x3084   :  { %v5964_v0 = vpop.eup %5963 }
0x3085   :  { %v4969_v17 = vmul.f32 %v5964_v0, %v4961_v53 }
0x3087   :  { %v4976_v18 = vmul.f32 %v5222_v16, %v4969_v17 }
0x3089   :  { %v4983_v7 = vadd.f32 %v5223_v57, %v4976_v18 }
0x308b   :  { %5711 = vmatmul.mubr.msk.f32.vlgmr.msra.gmra.mrb[60].mxu1 %vm186_vm4, %v4983_v7 }
0x315e   :  { %v5057_v3 = vpop.f32.mrb[60].mxu1 }
0x315f   :  { %v5061_v19 = vmul.f32 %v5057_v3, %v5057_v3  ;;  %v5712_v20 = vpop.f32.mrb[61].mxu1 }
0x3161   :  { %v5063_v21 = vsel %vm5062_vm2, %v5061_v19, 0.0 }
0x3162   :  { %5064 = vadd.xlane.f32.xlu1 %v5063_v21 }
0x31ef   :  { %v5065_v22 = vpop.xlane.xlu1 %5064 }
0x31f0   :  { %v5066_v5 = vadd.f32 1e-12, %v5065_v22 }
0x31f2   :  { %5965 = vrsqrt.f32 %v5066_v5 }
0x31fc   :  { %v5966_v24 = vpop.eup %5965 }
0x31fd   :  { %v5068_v27 = vmul.f32 %v5966_v24, %v5057_v3 }
0x31ff   :  { %5069 = vst.msk [vmem:[#allocation4] sm:$0x3] %vm5062_vm2, %v5068_v27 }
0x3200   :  { %5978 = shalt.err (!%p5975_p4)
}
0x3201   :  { %s5979_s24 = scalar_lea.hbm %s6930_s21, 32 }
0x3202   :  { %p5980_p5 = scmp.ne.s32.totalorder %s6930_s21, %s5979_s24  ;;  %p5983_p6 = scmp.lt.u32.totalorder %s5979_s24, %s6930_s21 }
0x3204   :  { %p5985_p7 = pnand %p5983_p6, %p5980_p5 }
0x3206   :  { %5988 = shalt.err (!%p5985_p7)
}
0x3207   :  { %5079 = dma.vmem_to_hbm [thread:$0]  %s5077_s18, 32, %s6930_s21, [#allocation5]  }
0x3208   :  { %5989 = dma.done.wait [#allocation5], 32  }
0x3209   :  { %5990 = vsyncadd [#allocation5], 4294967264 }
0x320a   :  { %5083 = vsyncpa [#allocation5], 1 }

</bundles_post_ra>
